<compile_context>
chip_gen: v5e
topology: v5e:2x2
jax: 0.10.0
libtpu: 0.0.40
codegen_flags: <defaults>
</compile_context>

<pallas_src>
import math
import functools

import jax
import jax.numpy as jnp
from jax import lax
from jax.experimental import pallas as pl
from jax.experimental.pallas import tpu as pltpu

EMBED_DIM = 768          # hardcoded by LayerNorm(normalized_shape=768)
NUM_HEADS = 12
HEAD_DIM = EMBED_DIM // NUM_HEADS
LN_EPS = 1e-5


def _msa_kernel(x_ref, gamma_ref, beta_ref,
                wq_ref, wk_ref, wv_ref, wo_ref,
                bq_ref, bk_ref, bv_ref, bo_ref,
                out_ref, attn_ref, *, bt, seq_len, embed_dim, num_heads):
    S, E, H = seq_len, embed_dim, num_heads
    d = E // H
    M = bt * S
    scale = 1.0 / math.sqrt(d)

    # ---- LayerNorm (fp32) over the embedding axis on the whole (bt*S, E) slab
    x = x_ref[...].reshape(M, E).astype(jnp.float32)
    mean = jnp.mean(x, axis=-1, keepdims=True)
    xc = x - mean
    var = jnp.mean(xc * xc, axis=-1, keepdims=True)
    xn = xc * lax.rsqrt(var + LN_EPS)
    xn = xn * gamma_ref[...] + beta_ref[...]                 # (M, E) fp32

    # ---- QKV projections: bf16 MXU inputs, fp32 accumulation, M = bt*S rows
    xn_bf = xn.astype(jnp.bfloat16)
    q = (jnp.dot(xn_bf, wq_ref[...], preferred_element_type=jnp.float32)
         + bq_ref[...]).astype(jnp.bfloat16)
    k = (jnp.dot(xn_bf, wk_ref[...], preferred_element_type=jnp.float32)
         + bk_ref[...]).astype(jnp.bfloat16)
    v = (jnp.dot(xn_bf, wv_ref[...], preferred_element_type=jnp.float32)
         + bv_ref[...]).astype(jnp.bfloat16)

    q3 = q.reshape(bt, S, E)
    k3 = k.reshape(bt, S, E)
    v3 = v.reshape(bt, S, E)

    # ---- Attention: one batched-over-bt dot_general per head; each head's
    #      output is stored into the concatenated scratch buffer.
    for h in range(H):                                       # static unroll (12)
        lo = h * d
        qh = q3[:, :, lo:lo + d]                             # (bt, S, d) bf16
        kh = k3[:, :, lo:lo + d]
        vh = v3[:, :, lo:lo + d]
        s = jnp.einsum('bqd,bkd->bqk', qh, kh,
                       preferred_element_type=jnp.float32) * scale
        s = s - jnp.max(s, axis=-1, keepdims=True)
        p = jnp.exp(s)
        p = p * pl.reciprocal(jnp.sum(p, axis=-1, keepdims=True), approx=True)
        oh = jnp.einsum('bqk,bkd->bqd', p.astype(jnp.bfloat16), vh,
                        preferred_element_type=jnp.float32)  # (bt, S, d) fp32
        attn_ref[:, :, lo:lo + d] = oh

    # ---- Single concatenated output projection (full K = 768 depth)
    attn_bf = attn_ref[...].reshape(M, E).astype(jnp.bfloat16)
    out = jnp.dot(attn_bf, wo_ref[...],
                  preferred_element_type=jnp.float32) + bo_ref[...]
    out_ref[...] = out.reshape(bt, S, E).astype(out_ref.dtype)


def _pick_block_batch(B, S, E, target_rows=256, max_bytes=8 << 20):
    """Largest divisor of B keeping the activation slab modest, aiming for at
    least `target_rows` MXU rows per grid step."""
    best = 1
    for bt in range(1, B + 1):
        if B % bt:
            continue
        rows = bt * S
        if rows * E * 4 > max_bytes:
            break
        best = bt
        if rows >= target_rows:
            break
    return best


def msa_block(x, params, *, block_batch=None):
    """x: (B, S, E) float32.  params: dict of pre-transposed fp32 weights."""
    B, S, E = x.shape
    assert E == EMBED_DIM and E % NUM_HEADS == 0
    bt = block_batch or _pick_block_batch(B, S, E)
    assert B % bt == 0

    kernel = functools.partial(_msa_kernel, bt=bt, seq_len=S,
                               embed_dim=E, num_heads=NUM_HEADS)

    # Resident operands (constant index map — fetched once, stay in VMEM).
    vec_spec = pl.BlockSpec((1, E), lambda i: (0, 0))        # LN params / biases
    mat_spec = pl.BlockSpec((E, E), lambda i: (0, 0))        # projection weights

    # bf16 weights: native MXU dtype, and half the HBM->VMEM DMA bytes.
    w_bf = [params[n].astype(jnp.bfloat16)
            for n in ("wq_t", "wk_t", "wv_t", "wo_t")]

    return pl.pallas_call(
        kernel,
        out_shape=jax.ShapeDtypeStruct((B, S, E), x.dtype),
        grid_spec=pltpu.PrefetchScalarGridSpec(
            num_scalar_prefetch=0,
            grid=(B // bt,),
            in_specs=[
                pl.BlockSpec((bt, S, E), lambda i: (i, 0, 0)),   # x
                vec_spec, vec_spec,                              # gamma, beta
                mat_spec, mat_spec, mat_spec, mat_spec,          # Wq^T..Wo^T (bf16)
                vec_spec, vec_spec, vec_spec, vec_spec,          # bq, bk, bv, bo
            ],
            out_specs=pl.BlockSpec((bt, S, E), lambda i: (i, 0, 0)),
            scratch_shapes=[pltpu.VMEM((bt, S, E), jnp.float32)],  # concat heads
        ),
        compiler_params=pltpu.CompilerParams(
            dimension_semantics=("parallel",),                   # batch-independent
            vmem_limit_bytes=40 * 1024 * 1024,                   # fits v7x 64 MiB
        ),
    )(x, params["gamma"], params["beta"], *w_bf,
      params["bq"], params["bk"], params["bv"], params["bo"])


def msa_block_ref(x, params):
    """Pure-JAX fp32 reference mirroring torch semantics (eval mode)."""
    B, S, E = x.shape
    H, d = NUM_HEADS, HEAD_DIM
    mean = jnp.mean(x, axis=-1, keepdims=True)
    var = jnp.mean((x - mean) ** 2, axis=-1, keepdims=True)
    xn = (x - mean) / jnp.sqrt(var + LN_EPS) * params["gamma"] + params["beta"]
    q = xn @ params["wq_t"] + params["bq"]
    k = xn @ params["wk_t"] + params["bk"]
    v = xn @ params["wv_t"] + params["bv"]
    q = q.reshape(B, S, H, d).transpose(0, 2, 1, 3)
    k = k.reshape(B, S, H, d).transpose(0, 2, 1, 3)
    v = v.reshape(B, S, H, d).transpose(0, 2, 1, 3)
    s = jnp.einsum("bhsd,bhtd->bhst", q, k) / math.sqrt(d)
    p = jax.nn.softmax(s, axis=-1)
    o = jnp.einsum("bhst,bhtd->bhsd", p, v)
    o = o.transpose(0, 2, 1, 3).reshape(B, S, E)
    return o @ params["wo_t"] + params["bo"]


def init_params(key, embed_dim=EMBED_DIM):
    """Deterministic synthetic parameters matching torch module shapes."""
    ks = jax.random.split(key, 6)
    E = embed_dim
    # torch: in_proj_weight (3E, E), in_proj_bias (3E,), out_proj (E, E) + (E,)
    in_proj_w = jax.random.normal(ks[0], (3 * E, E), jnp.float32) * 0.02
    in_proj_b = jax.random.normal(ks[1], (3 * E,), jnp.float32) * 0.02
    out_w = jax.random.normal(ks[2], (E, E), jnp.float32) * 0.02
    out_b = jax.random.normal(ks[3], (E,), jnp.float32) * 0.02
    gamma = 1.0 + 0.1 * jax.random.normal(ks[4], (E,), jnp.float32)
    beta = 0.1 * jax.random.normal(ks[5], (E,), jnp.float32)
    return {
        "gamma": gamma.reshape(1, E),
        "beta": beta.reshape(1, E),
        "wq_t": in_proj_w[:E].T,            # (E, E) so that q = x @ wq_t
        "wk_t": in_proj_w[E:2 * E].T,
        "wv_t": in_proj_w[2 * E:].T,
        "wo_t": out_w.T,
        "bq": in_proj_b[:E].reshape(1, E),
        "bk": in_proj_b[E:2 * E].reshape(1, E),
        "bv": in_proj_b[2 * E:].reshape(1, E),
        "bo": out_b.reshape(1, E),
    }


if __name__ == "__main__":
    key = jax.random.PRNGKey(0)
    k_x, k_p = jax.random.split(key)

    B, S, E = 2, 8, EMBED_DIM           # small batch/seq; E fixed at 768 by the module
    x = jax.random.normal(k_x, (B, S, E), jnp.float32)
    params = init_params(k_p)

    out = jax.block_until_ready(msa_block(x, params))
    ref = jax.block_until_ready(msa_block_ref(x, params))

    assert out.shape == (B, S, E) and out.dtype == jnp.float32
    max_err = float(jnp.max(jnp.abs(out - ref)))
    # bf16 MXU inputs (fp32 accumulation) -> loosened tolerance vs fp32 reference.
    assert jnp.allclose(out, ref, atol=3e-2, rtol=3e-2), max_err

    print("KERNEL_OK")
</pallas_src>

<mosaic_0001>
module attributes {stable_mosaic.version = 11 : i64} {
  func.func @_msa_kernel(%arg0: i32, %arg1: memref<2x8x768xf32, #tpu.memory_space<vmem>>, %arg2: memref<1x768xf32, #tpu.memory_space<vmem>>, %arg3: memref<1x768xf32, #tpu.memory_space<vmem>>, %arg4: memref<768x768xbf16, #tpu.memory_space<vmem>>, %arg5: memref<768x768xbf16, #tpu.memory_space<vmem>>, %arg6: memref<768x768xbf16, #tpu.memory_space<vmem>>, %arg7: memref<768x768xbf16, #tpu.memory_space<vmem>>, %arg8: memref<1x768xf32, #tpu.memory_space<vmem>>, %arg9: memref<1x768xf32, #tpu.memory_space<vmem>>, %arg10: memref<1x768xf32, #tpu.memory_space<vmem>>, %arg11: memref<1x768xf32, #tpu.memory_space<vmem>>, %arg12: memref<2x8x768xf32, #tpu.memory_space<vmem>>, %arg13: memref<2x8x768xf32, #tpu.memory_space<vmem>>) attributes {dimension_semantics = [#tpu.dimension_semantics<parallel>], iteration_bounds = array<i64: 1>, scalar_prefetch = 0 : i64, scratch_operands = 1 : i64, tpu.core_type = #tpu.core_type<tc>, window_params = [{transform_indices = @transform_0, window_bounds = array<i64: 2, 8, 768>}, {pipeline_mode = #tpu.pipeline_mode<synchronous>, transform_indices = @transform_1, window_bounds = array<i64: 1, 768>}, {pipeline_mode = #tpu.pipeline_mode<synchronous>, transform_indices = @transform_2, window_bounds = array<i64: 1, 768>}, {pipeline_mode = #tpu.pipeline_mode<synchronous>, transform_indices = @transform_3, window_bounds = array<i64: 768, 768>}, {pipeline_mode = #tpu.pipeline_mode<synchronous>, transform_indices = @transform_4, window_bounds = array<i64: 768, 768>}, {pipeline_mode = #tpu.pipeline_mode<synchronous>, transform_indices = @transform_5, window_bounds = array<i64: 768, 768>}, {pipeline_mode = #tpu.pipeline_mode<synchronous>, transform_indices = @transform_6, window_bounds = array<i64: 768, 768>}, {pipeline_mode = #tpu.pipeline_mode<synchronous>, transform_indices = @transform_7, window_bounds = array<i64: 1, 768>}, {pipeline_mode = #tpu.pipeline_mode<synchronous>, transform_indices = @transform_8, window_bounds = array<i64: 1, 768>}, {pipeline_mode = #tpu.pipeline_mode<synchronous>, transform_indices = @transform_9, window_bounds = array<i64: 1, 768>}, {pipeline_mode = #tpu.pipeline_mode<synchronous>, transform_indices = @transform_10, window_bounds = array<i64: 1, 768>}, {transform_indices = @transform_11, window_bounds = array<i64: 2, 8, 768>}]} {
    %c0 = arith.constant 0 : index
    %c0_0 = arith.constant 0 : index
    %c0_1 = arith.constant 0 : index
    %0 = vector.load %arg1[%c0, %c0_0, %c0_1] : memref<2x8x768xf32, #tpu.memory_space<vmem>>, vector<2x8x768xf32>
    %1 = vector.shape_cast %0 : vector<2x8x768xf32> to vector<16x768xf32>
    %cst = arith.constant dense<0.000000e+00> : vector<16xf32>
    %2 = vector.multi_reduction <add>, %1, %cst [1] : vector<16x768xf32> to vector<16xf32>
    %3 = vector.shape_cast %2 : vector<16xf32> to vector<16x1xf32>
    %cst_2 = arith.constant 7.680000e+02 : f32
    %4 = vector.broadcast %cst_2 : f32 to vector<16x1xf32>
    %5 = arith.divf %3, %4 : vector<16x1xf32>
    %6 = vector.broadcast %5 : vector<16x1xf32> to vector<16x768xf32>
    %7 = arith.subf %1, %6 : vector<16x768xf32>
    %8 = arith.mulf %7, %7 : vector<16x768xf32>
    %cst_3 = arith.constant dense<0.000000e+00> : vector<16xf32>
    %9 = vector.multi_reduction <add>, %8, %cst_3 [1] : vector<16x768xf32> to vector<16xf32>
    %10 = vector.shape_cast %9 : vector<16xf32> to vector<16x1xf32>
    %cst_4 = arith.constant 7.680000e+02 : f32
    %11 = vector.broadcast %cst_4 : f32 to vector<16x1xf32>
    %12 = arith.divf %10, %11 : vector<16x1xf32>
    %cst_5 = arith.constant 9.99999974E-6 : f32
    %13 = vector.broadcast %cst_5 : f32 to vector<16x1xf32>
    %14 = arith.addf %12, %13 : vector<16x1xf32>
    %15 = math.rsqrt %14 : vector<16x1xf32>
    %16 = vector.broadcast %15 : vector<16x1xf32> to vector<16x768xf32>
    %17 = arith.mulf %7, %16 : vector<16x768xf32>
    %c0_6 = arith.constant 0 : index
    %c0_7 = arith.constant 0 : index
    %18 = vector.load %arg2[%c0_6, %c0_7] : memref<1x768xf32, #tpu.memory_space<vmem>>, vector<1x768xf32>
    %19 = vector.broadcast %18 : vector<1x768xf32> to vector<16x768xf32>
    %20 = arith.mulf %17, %19 : vector<16x768xf32>
    %c0_8 = arith.constant 0 : index
    %c0_9 = arith.constant 0 : index
    %21 = vector.load %arg3[%c0_8, %c0_9] : memref<1x768xf32, #tpu.memory_space<vmem>>, vector<1x768xf32>
    %22 = vector.broadcast %21 : vector<1x768xf32> to vector<16x768xf32>
    %23 = arith.addf %20, %22 : vector<16x768xf32>
    %24 = arith.truncf %23 : vector<16x768xf32> to vector<16x768xbf16>
    %c0_10 = arith.constant 0 : index
    %c0_11 = arith.constant 0 : index
    %25 = vector.load %arg4[%c0_10, %c0_11] : memref<768x768xbf16, #tpu.memory_space<vmem>>, vector<768x768xbf16>
    %cst_12 = arith.constant dense<0.000000e+00> : vector<16x768xf32>
    %26 = tpu.matmul %24, %25, %cst_12 {dimension_numbers = #tpu.dot_dimension_numbers<[1], [0], [0], [1], [0, 0, 1, 1], [], []>} : vector<16x768xbf16>, vector<768x768xbf16>, vector<16x768xf32> -> vector<16x768xf32>
    %c0_13 = arith.constant 0 : index
    %c0_14 = arith.constant 0 : index
    %27 = vector.load %arg8[%c0_13, %c0_14] : memref<1x768xf32, #tpu.memory_space<vmem>>, vector<1x768xf32>
    %28 = vector.broadcast %27 : vector<1x768xf32> to vector<16x768xf32>
    %29 = arith.addf %26, %28 : vector<16x768xf32>
    %30 = arith.truncf %29 : vector<16x768xf32> to vector<16x768xbf16>
    %c0_15 = arith.constant 0 : index
    %c0_16 = arith.constant 0 : index
    %31 = vector.load %arg5[%c0_15, %c0_16] : memref<768x768xbf16, #tpu.memory_space<vmem>>, vector<768x768xbf16>
    %cst_17 = arith.constant dense<0.000000e+00> : vector<16x768xf32>
    %32 = tpu.matmul %24, %31, %cst_17 {dimension_numbers = #tpu.dot_dimension_numbers<[1], [0], [0], [1], [0, 0, 1, 1], [], []>} : vector<16x768xbf16>, vector<768x768xbf16>, vector<16x768xf32> -> vector<16x768xf32>
    %c0_18 = arith.constant 0 : index
    %c0_19 = arith.constant 0 : index
    %33 = vector.load %arg9[%c0_18, %c0_19] : memref<1x768xf32, #tpu.memory_space<vmem>>, vector<1x768xf32>
    %34 = vector.broadcast %33 : vector<1x768xf32> to vector<16x768xf32>
    %35 = arith.addf %32, %34 : vector<16x768xf32>
    %36 = arith.truncf %35 : vector<16x768xf32> to vector<16x768xbf16>
    %c0_20 = arith.constant 0 : index
    %c0_21 = arith.constant 0 : index
    %37 = vector.load %arg6[%c0_20, %c0_21] : memref<768x768xbf16, #tpu.memory_space<vmem>>, vector<768x768xbf16>
    %cst_22 = arith.constant dense<0.000000e+00> : vector<16x768xf32>
    %38 = tpu.matmul %24, %37, %cst_22 {dimension_numbers = #tpu.dot_dimension_numbers<[1], [0], [0], [1], [0, 0, 1, 1], [], []>} : vector<16x768xbf16>, vector<768x768xbf16>, vector<16x768xf32> -> vector<16x768xf32>
    %c0_23 = arith.constant 0 : index
    %c0_24 = arith.constant 0 : index
    %39 = vector.load %arg10[%c0_23, %c0_24] : memref<1x768xf32, #tpu.memory_space<vmem>>, vector<1x768xf32>
    %40 = vector.broadcast %39 : vector<1x768xf32> to vector<16x768xf32>
    %41 = arith.addf %38, %40 : vector<16x768xf32>
    %42 = arith.truncf %41 : vector<16x768xf32> to vector<16x768xbf16>
    %43 = vector.shape_cast %30 : vector<16x768xbf16> to vector<2x8x768xbf16>
    %44 = vector.shape_cast %36 : vector<16x768xbf16> to vector<2x8x768xbf16>
    %45 = vector.shape_cast %42 : vector<16x768xbf16> to vector<2x8x768xbf16>
    %46 = vector.extract_strided_slice %43 {offsets = [0, 0, 0], sizes = [2, 8, 64], strides = [1, 1, 1]} : vector<2x8x768xbf16> to vector<2x8x64xbf16>
    %47 = vector.extract_strided_slice %44 {offsets = [0, 0, 0], sizes = [2, 8, 64], strides = [1, 1, 1]} : vector<2x8x768xbf16> to vector<2x8x64xbf16>
    %48 = vector.extract_strided_slice %45 {offsets = [0, 0, 0], sizes = [2, 8, 64], strides = [1, 1, 1]} : vector<2x8x768xbf16> to vector<2x8x64xbf16>
    "tpu.trace_start"() <{level = 10 : i32, message = "bqd,bkd->bqk"}> : () -> ()
    %cst_25 = arith.constant dense<0.000000e+00> : vector<2x8x8xf32>
    %49 = tpu.matmul %46, %47, %cst_25 {dimension_numbers = #tpu.dot_dimension_numbers<[2], [2], [1], [1], [0, 0, 0, 1, 1, 1], [0], [0]>} : vector<2x8x64xbf16>, vector<2x8x64xbf16>, vector<2x8x8xf32> -> vector<2x8x8xf32>
    "tpu.trace_stop"() : () -> ()
    %cst_26 = arith.constant 1.250000e-01 : f32
    %50 = vector.broadcast %cst_26 : f32 to vector<2x8x8xf32>
    %51 = arith.mulf %49, %50 : vector<2x8x8xf32>
    %cst_27 = arith.constant dense<0xFF800000> : vector<2x8xf32>
    %52 = vector.multi_reduction <maximumf>, %51, %cst_27 [2] : vector<2x8x8xf32> to vector<2x8xf32>
    %53 = vector.shape_cast %52 : vector<2x8xf32> to vector<2x8x1xf32>
    %54 = vector.broadcast %53 : vector<2x8x1xf32> to vector<2x8x8xf32>
    %55 = arith.subf %51, %54 : vector<2x8x8xf32>
    %56 = math.exp %55 : vector<2x8x8xf32>
    %cst_28 = arith.constant dense<0.000000e+00> : vector<2x8xf32>
    %57 = vector.multi_reduction <add>, %56, %cst_28 [2] : vector<2x8x8xf32> to vector<2x8xf32>
    %58 = vector.shape_cast %57 : vector<2x8xf32> to vector<2x8x1xf32>
    %59 = tpu.reciprocal %58 {approx = true} : vector<2x8x1xf32> -> vector<2x8x1xf32>
    %60 = vector.broadcast %59 : vector<2x8x1xf32> to vector<2x8x8xf32>
    %61 = arith.mulf %56, %60 : vector<2x8x8xf32>
    %62 = arith.truncf %61 : vector<2x8x8xf32> to vector<2x8x8xbf16>
    "tpu.trace_start"() <{level = 10 : i32, message = "bqk,bkd->bqd"}> : () -> ()
    %cst_29 = arith.constant dense<0.000000e+00> : vector<2x8x64xf32>
    %63 = tpu.matmul %62, %48, %cst_29 {dimension_numbers = #tpu.dot_dimension_numbers<[2], [1], [1], [2], [0, 0, 0, 1, 1, 2], [0], [0]>} : vector<2x8x8xbf16>, vector<2x8x64xbf16>, vector<2x8x64xf32> -> vector<2x8x64xf32>
    "tpu.trace_stop"() : () -> ()
    %c0_30 = arith.constant 0 : index
    %c0_31 = arith.constant 0 : index
    %c0_32 = arith.constant 0 : index
    %64 = vector.load %arg13[%c0_30, %c0_31, %c0_32] : memref<2x8x768xf32, #tpu.memory_space<vmem>>, vector<2x8x64xf32>
    tpu.vector_store %arg13[%c0_30, %c0_31, %c0_32], %63 {strides = array<i32>} : memref<2x8x768xf32, #tpu.memory_space<vmem>>, vector<2x8x64xf32>,
    %65 = vector.extract_strided_slice %43 {offsets = [0, 0, 64], sizes = [2, 8, 64], strides = [1, 1, 1]} : vector<2x8x768xbf16> to vector<2x8x64xbf16>
    %66 = vector.extract_strided_slice %44 {offsets = [0, 0, 64], sizes = [2, 8, 64], strides = [1, 1, 1]} : vector<2x8x768xbf16> to vector<2x8x64xbf16>
    %67 = vector.extract_strided_slice %45 {offsets = [0, 0, 64], sizes = [2, 8, 64], strides = [1, 1, 1]} : vector<2x8x768xbf16> to vector<2x8x64xbf16>
    "tpu.trace_start"() <{level = 10 : i32, message = "bqd,bkd->bqk"}> : () -> ()
    %cst_33 = arith.constant dense<0.000000e+00> : vector<2x8x8xf32>
    %68 = tpu.matmul %65, %66, %cst_33 {dimension_numbers = #tpu.dot_dimension_numbers<[2], [2], [1], [1], [0, 0, 0, 1, 1, 1], [0], [0]>} : vector<2x8x64xbf16>, vector<2x8x64xbf16>, vector<2x8x8xf32> -> vector<2x8x8xf32>
    "tpu.trace_stop"() : () -> ()
    %cst_34 = arith.constant 1.250000e-01 : f32
    %69 = vector.broadcast %cst_34 : f32 to vector<2x8x8xf32>
    %70 = arith.mulf %68, %69 : vector<2x8x8xf32>
    %cst_35 = arith.constant dense<0xFF800000> : vector<2x8xf32>
    %71 = vector.multi_reduction <maximumf>, %70, %cst_35 [2] : vector<2x8x8xf32> to vector<2x8xf32>
    %72 = vector.shape_cast %71 : vector<2x8xf32> to vector<2x8x1xf32>
    %73 = vector.broadcast %72 : vector<2x8x1xf32> to vector<2x8x8xf32>
    %74 = arith.subf %70, %73 : vector<2x8x8xf32>
    %75 = math.exp %74 : vector<2x8x8xf32>
    %cst_36 = arith.constant dense<0.000000e+00> : vector<2x8xf32>
    %76 = vector.multi_reduction <add>, %75, %cst_36 [2] : vector<2x8x8xf32> to vector<2x8xf32>
    %77 = vector.shape_cast %76 : vector<2x8xf32> to vector<2x8x1xf32>
    %78 = tpu.reciprocal %77 {approx = true} : vector<2x8x1xf32> -> vector<2x8x1xf32>
    %79 = vector.broadcast %78 : vector<2x8x1xf32> to vector<2x8x8xf32>
    %80 = arith.mulf %75, %79 : vector<2x8x8xf32>
    %81 = arith.truncf %80 : vector<2x8x8xf32> to vector<2x8x8xbf16>
    "tpu.trace_start"() <{level = 10 : i32, message = "bqk,bkd->bqd"}> : () -> ()
    %cst_37 = arith.constant dense<0.000000e+00> : vector<2x8x64xf32>
    %82 = tpu.matmul %81, %67, %cst_37 {dimension_numbers = #tpu.dot_dimension_numbers<[2], [1], [1], [2], [0, 0, 0, 1, 1, 2], [0], [0]>} : vector<2x8x8xbf16>, vector<2x8x64xbf16>, vector<2x8x64xf32> -> vector<2x8x64xf32>
    "tpu.trace_stop"() : () -> ()
    %c0_38 = arith.constant 0 : index
    %c0_39 = arith.constant 0 : index
    %c64 = arith.constant 64 : index
    %83 = vector.load %arg13[%c0_38, %c0_39, %c64] : memref<2x8x768xf32, #tpu.memory_space<vmem>>, vector<2x8x64xf32>
    tpu.vector_store %arg13[%c0_38, %c0_39, %c64], %82 {strides = array<i32>} : memref<2x8x768xf32, #tpu.memory_space<vmem>>, vector<2x8x64xf32>,
    %84 = vector.extract_strided_slice %43 {offsets = [0, 0, 128], sizes = [2, 8, 64], strides = [1, 1, 1]} : vector<2x8x768xbf16> to vector<2x8x64xbf16>
    %85 = vector.extract_strided_slice %44 {offsets = [0, 0, 128], sizes = [2, 8, 64], strides = [1, 1, 1]} : vector<2x8x768xbf16> to vector<2x8x64xbf16>
    %86 = vector.extract_strided_slice %45 {offsets = [0, 0, 128], sizes = [2, 8, 64], strides = [1, 1, 1]} : vector<2x8x768xbf16> to vector<2x8x64xbf16>
    "tpu.trace_start"() <{level = 10 : i32, message = "bqd,bkd->bqk"}> : () -> ()
    %cst_40 = arith.constant dense<0.000000e+00> : vector<2x8x8xf32>
    %87 = tpu.matmul %84, %85, %cst_40 {dimension_numbers = #tpu.dot_dimension_numbers<[2], [2], [1], [1], [0, 0, 0, 1, 1, 1], [0], [0]>} : vector<2x8x64xbf16>, vector<2x8x64xbf16>, vector<2x8x8xf32> -> vector<2x8x8xf32>
    "tpu.trace_stop"() : () -> ()
    %cst_41 = arith.constant 1.250000e-01 : f32
    %88 = vector.broadcast %cst_41 : f32 to vector<2x8x8xf32>
    %89 = arith.mulf %87, %88 : vector<2x8x8xf32>
    %cst_42 = arith.constant dense<0xFF800000> : vector<2x8xf32>
    %90 = vector.multi_reduction <maximumf>, %89, %cst_42 [2] : vector<2x8x8xf32> to vector<2x8xf32>
    %91 = vector.shape_cast %90 : vector<2x8xf32> to vector<2x8x1xf32>
    %92 = vector.broadcast %91 : vector<2x8x1xf32> to vector<2x8x8xf32>
    %93 = arith.subf %89, %92 : vector<2x8x8xf32>
    %94 = math.exp %93 : vector<2x8x8xf32>
    %cst_43 = arith.constant dense<0.000000e+00> : vector<2x8xf32>
    %95 = vector.multi_reduction <add>, %94, %cst_43 [2] : vector<2x8x8xf32> to vector<2x8xf32>
    %96 = vector.shape_cast %95 : vector<2x8xf32> to vector<2x8x1xf32>
    %97 = tpu.reciprocal %96 {approx = true} : vector<2x8x1xf32> -> vector<2x8x1xf32>
    %98 = vector.broadcast %97 : vector<2x8x1xf32> to vector<2x8x8xf32>
    %99 = arith.mulf %94, %98 : vector<2x8x8xf32>
    %100 = arith.truncf %99 : vector<2x8x8xf32> to vector<2x8x8xbf16>
    "tpu.trace_start"() <{level = 10 : i32, message = "bqk,bkd->bqd"}> : () -> ()
    %cst_44 = arith.constant dense<0.000000e+00> : vector<2x8x64xf32>
    %101 = tpu.matmul %100, %86, %cst_44 {dimension_numbers = #tpu.dot_dimension_numbers<[2], [1], [1], [2], [0, 0, 0, 1, 1, 2], [0], [0]>} : vector<2x8x8xbf16>, vector<2x8x64xbf16>, vector<2x8x64xf32> -> vector<2x8x64xf32>
    "tpu.trace_stop"() : () -> ()
    %c0_45 = arith.constant 0 : index
    %c0_46 = arith.constant 0 : index
    %c128 = arith.constant 128 : index
    %102 = vector.load %arg13[%c0_45, %c0_46, %c128] : memref<2x8x768xf32, #tpu.memory_space<vmem>>, vector<2x8x64xf32>
    tpu.vector_store %arg13[%c0_45, %c0_46, %c128], %101 {strides = array<i32>} : memref<2x8x768xf32, #tpu.memory_space<vmem>>, vector<2x8x64xf32>,
    %103 = vector.extract_strided_slice %43 {offsets = [0, 0, 192], sizes = [2, 8, 64], strides = [1, 1, 1]} : vector<2x8x768xbf16> to vector<2x8x64xbf16>
    %104 = vector.extract_strided_slice %44 {offsets = [0, 0, 192], sizes = [2, 8, 64], strides = [1, 1, 1]} : vector<2x8x768xbf16> to vector<2x8x64xbf16>
    %105 = vector.extract_strided_slice %45 {offsets = [0, 0, 192], sizes = [2, 8, 64], strides = [1, 1, 1]} : vector<2x8x768xbf16> to vector<2x8x64xbf16>
    "tpu.trace_start"() <{level = 10 : i32, message = "bqd,bkd->bqk"}> : () -> ()
    %cst_47 = arith.constant dense<0.000000e+00> : vector<2x8x8xf32>
    %106 = tpu.matmul %103, %104, %cst_47 {dimension_numbers = #tpu.dot_dimension_numbers<[2], [2], [1], [1], [0, 0, 0, 1, 1, 1], [0], [0]>} : vector<2x8x64xbf16>, vector<2x8x64xbf16>, vector<2x8x8xf32> -> vector<2x8x8xf32>
    "tpu.trace_stop"() : () -> ()
    %cst_48 = arith.constant 1.250000e-01 : f32
    %107 = vector.broadcast %cst_48 : f32 to vector<2x8x8xf32>
    %108 = arith.mulf %106, %107 : vector<2x8x8xf32>
    %cst_49 = arith.constant dense<0xFF800000> : vector<2x8xf32>
    %109 = vector.multi_reduction <maximumf>, %108, %cst_49 [2] : vector<2x8x8xf32> to vector<2x8xf32>
    %110 = vector.shape_cast %109 : vector<2x8xf32> to vector<2x8x1xf32>
    %111 = vector.broadcast %110 : vector<2x8x1xf32> to vector<2x8x8xf32>
    %112 = arith.subf %108, %111 : vector<2x8x8xf32>
    %113 = math.exp %112 : vector<2x8x8xf32>
    %cst_50 = arith.constant dense<0.000000e+00> : vector<2x8xf32>
    %114 = vector.multi_reduction <add>, %113, %cst_50 [2] : vector<2x8x8xf32> to vector<2x8xf32>
    %115 = vector.shape_cast %114 : vector<2x8xf32> to vector<2x8x1xf32>
    %116 = tpu.reciprocal %115 {approx = true} : vector<2x8x1xf32> -> vector<2x8x1xf32>
    %117 = vector.broadcast %116 : vector<2x8x1xf32> to vector<2x8x8xf32>
    %118 = arith.mulf %113, %117 : vector<2x8x8xf32>
    %119 = arith.truncf %118 : vector<2x8x8xf32> to vector<2x8x8xbf16>
    "tpu.trace_start"() <{level = 10 : i32, message = "bqk,bkd->bqd"}> : () -> ()
    %cst_51 = arith.constant dense<0.000000e+00> : vector<2x8x64xf32>
    %120 = tpu.matmul %119, %105, %cst_51 {dimension_numbers = #tpu.dot_dimension_numbers<[2], [1], [1], [2], [0, 0, 0, 1, 1, 2], [0], [0]>} : vector<2x8x8xbf16>, vector<2x8x64xbf16>, vector<2x8x64xf32> -> vector<2x8x64xf32>
    "tpu.trace_stop"() : () -> ()
    %c0_52 = arith.constant 0 : index
    %c0_53 = arith.constant 0 : index
    %c192 = arith.constant 192 : index
    %121 = vector.load %arg13[%c0_52, %c0_53, %c192] : memref<2x8x768xf32, #tpu.memory_space<vmem>>, vector<2x8x64xf32>
    tpu.vector_store %arg13[%c0_52, %c0_53, %c192], %120 {strides = array<i32>} : memref<2x8x768xf32, #tpu.memory_space<vmem>>, vector<2x8x64xf32>,
    %122 = vector.extract_strided_slice %43 {offsets = [0, 0, 256], sizes = [2, 8, 64], strides = [1, 1, 1]} : vector<2x8x768xbf16> to vector<2x8x64xbf16>
    %123 = vector.extract_strided_slice %44 {offsets = [0, 0, 256], sizes = [2, 8, 64], strides = [1, 1, 1]} : vector<2x8x768xbf16> to vector<2x8x64xbf16>
    %124 = vector.extract_strided_slice %45 {offsets = [0, 0, 256], sizes = [2, 8, 64], strides = [1, 1, 1]} : vector<2x8x768xbf16> to vector<2x8x64xbf16>
    "tpu.trace_start"() <{level = 10 : i32, message = "bqd,bkd->bqk"}> : () -> ()
    %cst_54 = arith.constant dense<0.000000e+00> : vector<2x8x8xf32>
    %125 = tpu.matmul %122, %123, %cst_54 {dimension_numbers = #tpu.dot_dimension_numbers<[2], [2], [1], [1], [0, 0, 0, 1, 1, 1], [0], [0]>} : vector<2x8x64xbf16>, vector<2x8x64xbf16>, vector<2x8x8xf32> -> vector<2x8x8xf32>
    "tpu.trace_stop"() : () -> ()
    %cst_55 = arith.constant 1.250000e-01 : f32
    %126 = vector.broadcast %cst_55 : f32 to vector<2x8x8xf32>
    %127 = arith.mulf %125, %126 : vector<2x8x8xf32>
    %cst_56 = arith.constant dense<0xFF800000> : vector<2x8xf32>
    %128 = vector.multi_reduction <maximumf>, %127, %cst_56 [2] : vector<2x8x8xf32> to vector<2x8xf32>
    %129 = vector.shape_cast %128 : vector<2x8xf32> to vector<2x8x1xf32>
    %130 = vector.broadcast %129 : vector<2x8x1xf32> to vector<2x8x8xf32>
    %131 = arith.subf %127, %130 : vector<2x8x8xf32>
    %132 = math.exp %131 : vector<2x8x8xf32>
    %cst_57 = arith.constant dense<0.000000e+00> : vector<2x8xf32>
    %133 = vector.multi_reduction <add>, %132, %cst_57 [2] : vector<2x8x8xf32> to vector<2x8xf32>
    %134 = vector.shape_cast %133 : vector<2x8xf32> to vector<2x8x1xf32>
    %135 = tpu.reciprocal %134 {approx = true} : vector<2x8x1xf32> -> vector<2x8x1xf32>
    %136 = vector.broadcast %135 : vector<2x8x1xf32> to vector<2x8x8xf32>
    %137 = arith.mulf %132, %136 : vector<2x8x8xf32>
    %138 = arith.truncf %137 : vector<2x8x8xf32> to vector<2x8x8xbf16>
    "tpu.trace_start"() <{level = 10 : i32, message = "bqk,bkd->bqd"}> : () -> ()
    %cst_58 = arith.constant dense<0.000000e+00> : vector<2x8x64xf32>
    %139 = tpu.matmul %138, %124, %cst_58 {dimension_numbers = #tpu.dot_dimension_numbers<[2], [1], [1], [2], [0, 0, 0, 1, 1, 2], [0], [0]>} : vector<2x8x8xbf16>, vector<2x8x64xbf16>, vector<2x8x64xf32> -> vector<2x8x64xf32>
    "tpu.trace_stop"() : () -> ()
    %c0_59 = arith.constant 0 : index
    %c0_60 = arith.constant 0 : index
    %c256 = arith.constant 256 : index
    %140 = vector.load %arg13[%c0_59, %c0_60, %c256] : memref<2x8x768xf32, #tpu.memory_space<vmem>>, vector<2x8x64xf32>
    tpu.vector_store %arg13[%c0_59, %c0_60, %c256], %139 {strides = array<i32>} : memref<2x8x768xf32, #tpu.memory_space<vmem>>, vector<2x8x64xf32>,
    %141 = vector.extract_strided_slice %43 {offsets = [0, 0, 320], sizes = [2, 8, 64], strides = [1, 1, 1]} : vector<2x8x768xbf16> to vector<2x8x64xbf16>
    %142 = vector.extract_strided_slice %44 {offsets = [0, 0, 320], sizes = [2, 8, 64], strides = [1, 1, 1]} : vector<2x8x768xbf16> to vector<2x8x64xbf16>
    %143 = vector.extract_strided_slice %45 {offsets = [0, 0, 320], sizes = [2, 8, 64], strides = [1, 1, 1]} : vector<2x8x768xbf16> to vector<2x8x64xbf16>
    "tpu.trace_start"() <{level = 10 : i32, message = "bqd,bkd->bqk"}> : () -> ()
    %cst_61 = arith.constant dense<0.000000e+00> : vector<2x8x8xf32>
    %144 = tpu.matmul %141, %142, %cst_61 {dimension_numbers = #tpu.dot_dimension_numbers<[2], [2], [1], [1], [0, 0, 0, 1, 1, 1], [0], [0]>} : vector<2x8x64xbf16>, vector<2x8x64xbf16>, vector<2x8x8xf32> -> vector<2x8x8xf32>
    "tpu.trace_stop"() : () -> ()
    %cst_62 = arith.constant 1.250000e-01 : f32
    %145 = vector.broadcast %cst_62 : f32 to vector<2x8x8xf32>
    %146 = arith.mulf %144, %145 : vector<2x8x8xf32>
    %cst_63 = arith.constant dense<0xFF800000> : vector<2x8xf32>
    %147 = vector.multi_reduction <maximumf>, %146, %cst_63 [2] : vector<2x8x8xf32> to vector<2x8xf32>
    %148 = vector.shape_cast %147 : vector<2x8xf32> to vector<2x8x1xf32>
    %149 = vector.broadcast %148 : vector<2x8x1xf32> to vector<2x8x8xf32>
    %150 = arith.subf %146, %149 : vector<2x8x8xf32>
    %151 = math.exp %150 : vector<2x8x8xf32>
    %cst_64 = arith.constant dense<0.000000e+00> : vector<2x8xf32>
    %152 = vector.multi_reduction <add>, %151, %cst_64 [2] : vector<2x8x8xf32> to vector<2x8xf32>
    %153 = vector.shape_cast %152 : vector<2x8xf32> to vector<2x8x1xf32>
    %154 = tpu.reciprocal %153 {approx = true} : vector<2x8x1xf32> -> vector<2x8x1xf32>
    %155 = vector.broadcast %154 : vector<2x8x1xf32> to vector<2x8x8xf32>
    %156 = arith.mulf %151, %155 : vector<2x8x8xf32>
    %157 = arith.truncf %156 : vector<2x8x8xf32> to vector<2x8x8xbf16>
    "tpu.trace_start"() <{level = 10 : i32, message = "bqk,bkd->bqd"}> : () -> ()
    %cst_65 = arith.constant dense<0.000000e+00> : vector<2x8x64xf32>
    %158 = tpu.matmul %157, %143, %cst_65 {dimension_numbers = #tpu.dot_dimension_numbers<[2], [1], [1], [2], [0, 0, 0, 1, 1, 2], [0], [0]>} : vector<2x8x8xbf16>, vector<2x8x64xbf16>, vector<2x8x64xf32> -> vector<2x8x64xf32>
    "tpu.trace_stop"() : () -> ()
    %c0_66 = arith.constant 0 : index
    %c0_67 = arith.constant 0 : index
    %c320 = arith.constant 320 : index
    %159 = vector.load %arg13[%c0_66, %c0_67, %c320] : memref<2x8x768xf32, #tpu.memory_space<vmem>>, vector<2x8x64xf32>
    tpu.vector_store %arg13[%c0_66, %c0_67, %c320], %158 {strides = array<i32>} : memref<2x8x768xf32, #tpu.memory_space<vmem>>, vector<2x8x64xf32>,
    %160 = vector.extract_strided_slice %43 {offsets = [0, 0, 384], sizes = [2, 8, 64], strides = [1, 1, 1]} : vector<2x8x768xbf16> to vector<2x8x64xbf16>
    %161 = vector.extract_strided_slice %44 {offsets = [0, 0, 384], sizes = [2, 8, 64], strides = [1, 1, 1]} : vector<2x8x768xbf16> to vector<2x8x64xbf16>
    %162 = vector.extract_strided_slice %45 {offsets = [0, 0, 384], sizes = [2, 8, 64], strides = [1, 1, 1]} : vector<2x8x768xbf16> to vector<2x8x64xbf16>
    "tpu.trace_start"() <{level = 10 : i32, message = "bqd,bkd->bqk"}> : () -> ()
    %cst_68 = arith.constant dense<0.000000e+00> : vector<2x8x8xf32>
    %163 = tpu.matmul %160, %161, %cst_68 {dimension_numbers = #tpu.dot_dimension_numbers<[2], [2], [1], [1], [0, 0, 0, 1, 1, 1], [0], [0]>} : vector<2x8x64xbf16>, vector<2x8x64xbf16>, vector<2x8x8xf32> -> vector<2x8x8xf32>
    "tpu.trace_stop"() : () -> ()
    %cst_69 = arith.constant 1.250000e-01 : f32
    %164 = vector.broadcast %cst_69 : f32 to vector<2x8x8xf32>
    %165 = arith.mulf %163, %164 : vector<2x8x8xf32>
    %cst_70 = arith.constant dense<0xFF800000> : vector<2x8xf32>
    %166 = vector.multi_reduction <maximumf>, %165, %cst_70 [2] : vector<2x8x8xf32> to vector<2x8xf32>
    %167 = vector.shape_cast %166 : vector<2x8xf32> to vector<2x8x1xf32>
    %168 = vector.broadcast %167 : vector<2x8x1xf32> to vector<2x8x8xf32>
    %169 = arith.subf %165, %168 : vector<2x8x8xf32>
    %170 = math.exp %169 : vector<2x8x8xf32>
    %cst_71 = arith.constant dense<0.000000e+00> : vector<2x8xf32>
    %171 = vector.multi_reduction <add>, %170, %cst_71 [2] : vector<2x8x8xf32> to vector<2x8xf32>
    %172 = vector.shape_cast %171 : vector<2x8xf32> to vector<2x8x1xf32>
    %173 = tpu.reciprocal %172 {approx = true} : vector<2x8x1xf32> -> vector<2x8x1xf32>
    %174 = vector.broadcast %173 : vector<2x8x1xf32> to vector<2x8x8xf32>
    %175 = arith.mulf %170, %174 : vector<2x8x8xf32>
    %176 = arith.truncf %175 : vector<2x8x8xf32> to vector<2x8x8xbf16>
    "tpu.trace_start"() <{level = 10 : i32, message = "bqk,bkd->bqd"}> : () -> ()
    %cst_72 = arith.constant dense<0.000000e+00> : vector<2x8x64xf32>
    %177 = tpu.matmul %176, %162, %cst_72 {dimension_numbers = #tpu.dot_dimension_numbers<[2], [1], [1], [2], [0, 0, 0, 1, 1, 2], [0], [0]>} : vector<2x8x8xbf16>, vector<2x8x64xbf16>, vector<2x8x64xf32> -> vector<2x8x64xf32>
    "tpu.trace_stop"() : () -> ()
    %c0_73 = arith.constant 0 : index
    %c0_74 = arith.constant 0 : index
    %c384 = arith.constant 384 : index
    %178 = vector.load %arg13[%c0_73, %c0_74, %c384] : memref<2x8x768xf32, #tpu.memory_space<vmem>>, vector<2x8x64xf32>
    tpu.vector_store %arg13[%c0_73, %c0_74, %c384], %177 {strides = array<i32>} : memref<2x8x768xf32, #tpu.memory_space<vmem>>, vector<2x8x64xf32>,
    %179 = vector.extract_strided_slice %43 {offsets = [0, 0, 448], sizes = [2, 8, 64], strides = [1, 1, 1]} : vector<2x8x768xbf16> to vector<2x8x64xbf16>
    %180 = vector.extract_strided_slice %44 {offsets = [0, 0, 448], sizes = [2, 8, 64], strides = [1, 1, 1]} : vector<2x8x768xbf16> to vector<2x8x64xbf16>
    %181 = vector.extract_strided_slice %45 {offsets = [0, 0, 448], sizes = [2, 8, 64], strides = [1, 1, 1]} : vector<2x8x768xbf16> to vector<2x8x64xbf16>
    "tpu.trace_start"() <{level = 10 : i32, message = "bqd,bkd->bqk"}> : () -> ()
    %cst_75 = arith.constant dense<0.000000e+00> : vector<2x8x8xf32>
    %182 = tpu.matmul %179, %180, %cst_75 {dimension_numbers = #tpu.dot_dimension_numbers<[2], [2], [1], [1], [0, 0, 0, 1, 1, 1], [0], [0]>} : vector<2x8x64xbf16>, vector<2x8x64xbf16>, vector<2x8x8xf32> -> vector<2x8x8xf32>
    "tpu.trace_stop"() : () -> ()
    %cst_76 = arith.constant 1.250000e-01 : f32
    %183 = vector.broadcast %cst_76 : f32 to vector<2x8x8xf32>
    %184 = arith.mulf %182, %183 : vector<2x8x8xf32>
    %cst_77 = arith.constant dense<0xFF800000> : vector<2x8xf32>
    %185 = vector.multi_reduction <maximumf>, %184, %cst_77 [2] : vector<2x8x8xf32> to vector<2x8xf32>
    %186 = vector.shape_cast %185 : vector<2x8xf32> to vector<2x8x1xf32>
    %187 = vector.broadcast %186 : vector<2x8x1xf32> to vector<2x8x8xf32>
    %188 = arith.subf %184, %187 : vector<2x8x8xf32>
    %189 = math.exp %188 : vector<2x8x8xf32>
    %cst_78 = arith.constant dense<0.000000e+00> : vector<2x8xf32>
    %190 = vector.multi_reduction <add>, %189, %cst_78 [2] : vector<2x8x8xf32> to vector<2x8xf32>
    %191 = vector.shape_cast %190 : vector<2x8xf32> to vector<2x8x1xf32>
    %192 = tpu.reciprocal %191 {approx = true} : vector<2x8x1xf32> -> vector<2x8x1xf32>
    %193 = vector.broadcast %192 : vector<2x8x1xf32> to vector<2x8x8xf32>
    %194 = arith.mulf %189, %193 : vector<2x8x8xf32>
    %195 = arith.truncf %194 : vector<2x8x8xf32> to vector<2x8x8xbf16>
    "tpu.trace_start"() <{level = 10 : i32, message = "bqk,bkd->bqd"}> : () -> ()
    %cst_79 = arith.constant dense<0.000000e+00> : vector<2x8x64xf32>
    %196 = tpu.matmul %195, %181, %cst_79 {dimension_numbers = #tpu.dot_dimension_numbers<[2], [1], [1], [2], [0, 0, 0, 1, 1, 2], [0], [0]>} : vector<2x8x8xbf16>, vector<2x8x64xbf16>, vector<2x8x64xf32> -> vector<2x8x64xf32>
    "tpu.trace_stop"() : () -> ()
    %c0_80 = arith.constant 0 : index
    %c0_81 = arith.constant 0 : index
    %c448 = arith.constant 448 : index
    %197 = vector.load %arg13[%c0_80, %c0_81, %c448] : memref<2x8x768xf32, #tpu.memory_space<vmem>>, vector<2x8x64xf32>
    tpu.vector_store %arg13[%c0_80, %c0_81, %c448], %196 {strides = array<i32>} : memref<2x8x768xf32, #tpu.memory_space<vmem>>, vector<2x8x64xf32>,
    %198 = vector.extract_strided_slice %43 {offsets = [0, 0, 512], sizes = [2, 8, 64], strides = [1, 1, 1]} : vector<2x8x768xbf16> to vector<2x8x64xbf16>
    %199 = vector.extract_strided_slice %44 {offsets = [0, 0, 512], sizes = [2, 8, 64], strides = [1, 1, 1]} : vector<2x8x768xbf16> to vector<2x8x64xbf16>
    %200 = vector.extract_strided_slice %45 {offsets = [0, 0, 512], sizes = [2, 8, 64], strides = [1, 1, 1]} : vector<2x8x768xbf16> to vector<2x8x64xbf16>
    "tpu.trace_start"() <{level = 10 : i32, message = "bqd,bkd->bqk"}> : () -> ()
    %cst_82 = arith.constant dense<0.000000e+00> : vector<2x8x8xf32>
    %201 = tpu.matmul %198, %199, %cst_82 {dimension_numbers = #tpu.dot_dimension_numbers<[2], [2], [1], [1], [0, 0, 0, 1, 1, 1], [0], [0]>} : vector<2x8x64xbf16>, vector<2x8x64xbf16>, vector<2x8x8xf32> -> vector<2x8x8xf32>
    "tpu.trace_stop"() : () -> ()
    %cst_83 = arith.constant 1.250000e-01 : f32
    %202 = vector.broadcast %cst_83 : f32 to vector<2x8x8xf32>
    %203 = arith.mulf %201, %202 : vector<2x8x8xf32>
    %cst_84 = arith.constant dense<0xFF800000> : vector<2x8xf32>
    %204 = vector.multi_reduction <maximumf>, %203, %cst_84 [2] : vector<2x8x8xf32> to vector<2x8xf32>
    %205 = vector.shape_cast %204 : vector<2x8xf32> to vector<2x8x1xf32>
    %206 = vector.broadcast %205 : vector<2x8x1xf32> to vector<2x8x8xf32>
    %207 = arith.subf %203, %206 : vector<2x8x8xf32>
    %208 = math.exp %207 : vector<2x8x8xf32>
    %cst_85 = arith.constant dense<0.000000e+00> : vector<2x8xf32>
    %209 = vector.multi_reduction <add>, %208, %cst_85 [2] : vector<2x8x8xf32> to vector<2x8xf32>
    %210 = vector.shape_cast %209 : vector<2x8xf32> to vector<2x8x1xf32>
    %211 = tpu.reciprocal %210 {approx = true} : vector<2x8x1xf32> -> vector<2x8x1xf32>
    %212 = vector.broadcast %211 : vector<2x8x1xf32> to vector<2x8x8xf32>
    %213 = arith.mulf %208, %212 : vector<2x8x8xf32>
    %214 = arith.truncf %213 : vector<2x8x8xf32> to vector<2x8x8xbf16>
    "tpu.trace_start"() <{level = 10 : i32, message = "bqk,bkd->bqd"}> : () -> ()
    %cst_86 = arith.constant dense<0.000000e+00> : vector<2x8x64xf32>
    %215 = tpu.matmul %214, %200, %cst_86 {dimension_numbers = #tpu.dot_dimension_numbers<[2], [1], [1], [2], [0, 0, 0, 1, 1, 2], [0], [0]>} : vector<2x8x8xbf16>, vector<2x8x64xbf16>, vector<2x8x64xf32> -> vector<2x8x64xf32>
    "tpu.trace_stop"() : () -> ()
    %c0_87 = arith.constant 0 : index
    %c0_88 = arith.constant 0 : index
    %c512 = arith.constant 512 : index
    %216 = vector.load %arg13[%c0_87, %c0_88, %c512] : memref<2x8x768xf32, #tpu.memory_space<vmem>>, vector<2x8x64xf32>
    tpu.vector_store %arg13[%c0_87, %c0_88, %c512], %215 {strides = array<i32>} : memref<2x8x768xf32, #tpu.memory_space<vmem>>, vector<2x8x64xf32>,
    %217 = vector.extract_strided_slice %43 {offsets = [0, 0, 576], sizes = [2, 8, 64], strides = [1, 1, 1]} : vector<2x8x768xbf16> to vector<2x8x64xbf16>
    %218 = vector.extract_strided_slice %44 {offsets = [0, 0, 576], sizes = [2, 8, 64], strides = [1, 1, 1]} : vector<2x8x768xbf16> to vector<2x8x64xbf16>
    %219 = vector.extract_strided_slice %45 {offsets = [0, 0, 576], sizes = [2, 8, 64], strides = [1, 1, 1]} : vector<2x8x768xbf16> to vector<2x8x64xbf16>
    "tpu.trace_start"() <{level = 10 : i32, message = "bqd,bkd->bqk"}> : () -> ()
    %cst_89 = arith.constant dense<0.000000e+00> : vector<2x8x8xf32>
    %220 = tpu.matmul %217, %218, %cst_89 {dimension_numbers = #tpu.dot_dimension_numbers<[2], [2], [1], [1], [0, 0, 0, 1, 1, 1], [0], [0]>} : vector<2x8x64xbf16>, vector<2x8x64xbf16>, vector<2x8x8xf32> -> vector<2x8x8xf32>
    "tpu.trace_stop"() : () -> ()
    %cst_90 = arith.constant 1.250000e-01 : f32
    %221 = vector.broadcast %cst_90 : f32 to vector<2x8x8xf32>
    %222 = arith.mulf %220, %221 : vector<2x8x8xf32>
    %cst_91 = arith.constant dense<0xFF800000> : vector<2x8xf32>
    %223 = vector.multi_reduction <maximumf>, %222, %cst_91 [2] : vector<2x8x8xf32> to vector<2x8xf32>
    %224 = vector.shape_cast %223 : vector<2x8xf32> to vector<2x8x1xf32>
    %225 = vector.broadcast %224 : vector<2x8x1xf32> to vector<2x8x8xf32>
    %226 = arith.subf %222, %225 : vector<2x8x8xf32>
    %227 = math.exp %226 : vector<2x8x8xf32>
    %cst_92 = arith.constant dense<0.000000e+00> : vector<2x8xf32>
    %228 = vector.multi_reduction <add>, %227, %cst_92 [2] : vector<2x8x8xf32> to vector<2x8xf32>
    %229 = vector.shape_cast %228 : vector<2x8xf32> to vector<2x8x1xf32>
    %230 = tpu.reciprocal %229 {approx = true} : vector<2x8x1xf32> -> vector<2x8x1xf32>
    %231 = vector.broadcast %230 : vector<2x8x1xf32> to vector<2x8x8xf32>
    %232 = arith.mulf %227, %231 : vector<2x8x8xf32>
    %233 = arith.truncf %232 : vector<2x8x8xf32> to vector<2x8x8xbf16>
    "tpu.trace_start"() <{level = 10 : i32, message = "bqk,bkd->bqd"}> : () -> ()
    %cst_93 = arith.constant dense<0.000000e+00> : vector<2x8x64xf32>
    %234 = tpu.matmul %233, %219, %cst_93 {dimension_numbers = #tpu.dot_dimension_numbers<[2], [1], [1], [2], [0, 0, 0, 1, 1, 2], [0], [0]>} : vector<2x8x8xbf16>, vector<2x8x64xbf16>, vector<2x8x64xf32> -> vector<2x8x64xf32>
    "tpu.trace_stop"() : () -> ()
    %c0_94 = arith.constant 0 : index
    %c0_95 = arith.constant 0 : index
    %c576 = arith.constant 576 : index
    %235 = vector.load %arg13[%c0_94, %c0_95, %c576] : memref<2x8x768xf32, #tpu.memory_space<vmem>>, vector<2x8x64xf32>
    tpu.vector_store %arg13[%c0_94, %c0_95, %c576], %234 {strides = array<i32>} : memref<2x8x768xf32, #tpu.memory_space<vmem>>, vector<2x8x64xf32>,
    %236 = vector.extract_strided_slice %43 {offsets = [0, 0, 640], sizes = [2, 8, 64], strides = [1, 1, 1]} : vector<2x8x768xbf16> to vector<2x8x64xbf16>
    %237 = vector.extract_strided_slice %44 {offsets = [0, 0, 640], sizes = [2, 8, 64], strides = [1, 1, 1]} : vector<2x8x768xbf16> to vector<2x8x64xbf16>
    %238 = vector.extract_strided_slice %45 {offsets = [0, 0, 640], sizes = [2, 8, 64], strides = [1, 1, 1]} : vector<2x8x768xbf16> to vector<2x8x64xbf16>
    "tpu.trace_start"() <{level = 10 : i32, message = "bqd,bkd->bqk"}> : () -> ()
    %cst_96 = arith.constant dense<0.000000e+00> : vector<2x8x8xf32>
    %239 = tpu.matmul %236, %237, %cst_96 {dimension_numbers = #tpu.dot_dimension_numbers<[2], [2], [1], [1], [0, 0, 0, 1, 1, 1], [0], [0]>} : vector<2x8x64xbf16>, vector<2x8x64xbf16>, vector<2x8x8xf32> -> vector<2x8x8xf32>
    "tpu.trace_stop"() : () -> ()
    %cst_97 = arith.constant 1.250000e-01 : f32
    %240 = vector.broadcast %cst_97 : f32 to vector<2x8x8xf32>
    %241 = arith.mulf %239, %240 : vector<2x8x8xf32>
    %cst_98 = arith.constant dense<0xFF800000> : vector<2x8xf32>
    %242 = vector.multi_reduction <maximumf>, %241, %cst_98 [2] : vector<2x8x8xf32> to vector<2x8xf32>
    %243 = vector.shape_cast %242 : vector<2x8xf32> to vector<2x8x1xf32>
    %244 = vector.broadcast %243 : vector<2x8x1xf32> to vector<2x8x8xf32>
    %245 = arith.subf %241, %244 : vector<2x8x8xf32>
    %246 = math.exp %245 : vector<2x8x8xf32>
    %cst_99 = arith.constant dense<0.000000e+00> : vector<2x8xf32>
    %247 = vector.multi_reduction <add>, %246, %cst_99 [2] : vector<2x8x8xf32> to vector<2x8xf32>
    %248 = vector.shape_cast %247 : vector<2x8xf32> to vector<2x8x1xf32>
    %249 = tpu.reciprocal %248 {approx = true} : vector<2x8x1xf32> -> vector<2x8x1xf32>
    %250 = vector.broadcast %249 : vector<2x8x1xf32> to vector<2x8x8xf32>
    %251 = arith.mulf %246, %250 : vector<2x8x8xf32>
    %252 = arith.truncf %251 : vector<2x8x8xf32> to vector<2x8x8xbf16>
    "tpu.trace_start"() <{level = 10 : i32, message = "bqk,bkd->bqd"}> : () -> ()
    %cst_100 = arith.constant dense<0.000000e+00> : vector<2x8x64xf32>
    %253 = tpu.matmul %252, %238, %cst_100 {dimension_numbers = #tpu.dot_dimension_numbers<[2], [1], [1], [2], [0, 0, 0, 1, 1, 2], [0], [0]>} : vector<2x8x8xbf16>, vector<2x8x64xbf16>, vector<2x8x64xf32> -> vector<2x8x64xf32>
    "tpu.trace_stop"() : () -> ()
    %c0_101 = arith.constant 0 : index
    %c0_102 = arith.constant 0 : index
    %c640 = arith.constant 640 : index
    %254 = vector.load %arg13[%c0_101, %c0_102, %c640] : memref<2x8x768xf32, #tpu.memory_space<vmem>>, vector<2x8x64xf32>
    tpu.vector_store %arg13[%c0_101, %c0_102, %c640], %253 {strides = array<i32>} : memref<2x8x768xf32, #tpu.memory_space<vmem>>, vector<2x8x64xf32>,
    %255 = vector.extract_strided_slice %43 {offsets = [0, 0, 704], sizes = [2, 8, 64], strides = [1, 1, 1]} : vector<2x8x768xbf16> to vector<2x8x64xbf16>
    %256 = vector.extract_strided_slice %44 {offsets = [0, 0, 704], sizes = [2, 8, 64], strides = [1, 1, 1]} : vector<2x8x768xbf16> to vector<2x8x64xbf16>
    %257 = vector.extract_strided_slice %45 {offsets = [0, 0, 704], sizes = [2, 8, 64], strides = [1, 1, 1]} : vector<2x8x768xbf16> to vector<2x8x64xbf16>
    "tpu.trace_start"() <{level = 10 : i32, message = "bqd,bkd->bqk"}> : () -> ()
    %cst_103 = arith.constant dense<0.000000e+00> : vector<2x8x8xf32>
    %258 = tpu.matmul %255, %256, %cst_103 {dimension_numbers = #tpu.dot_dimension_numbers<[2], [2], [1], [1], [0, 0, 0, 1, 1, 1], [0], [0]>} : vector<2x8x64xbf16>, vector<2x8x64xbf16>, vector<2x8x8xf32> -> vector<2x8x8xf32>
    "tpu.trace_stop"() : () -> ()
    %cst_104 = arith.constant 1.250000e-01 : f32
    %259 = vector.broadcast %cst_104 : f32 to vector<2x8x8xf32>
    %260 = arith.mulf %258, %259 : vector<2x8x8xf32>
    %cst_105 = arith.constant dense<0xFF800000> : vector<2x8xf32>
    %261 = vector.multi_reduction <maximumf>, %260, %cst_105 [2] : vector<2x8x8xf32> to vector<2x8xf32>
    %262 = vector.shape_cast %261 : vector<2x8xf32> to vector<2x8x1xf32>
    %263 = vector.broadcast %262 : vector<2x8x1xf32> to vector<2x8x8xf32>
    %264 = arith.subf %260, %263 : vector<2x8x8xf32>
    %265 = math.exp %264 : vector<2x8x8xf32>
    %cst_106 = arith.constant dense<0.000000e+00> : vector<2x8xf32>
    %266 = vector.multi_reduction <add>, %265, %cst_106 [2] : vector<2x8x8xf32> to vector<2x8xf32>
    %267 = vector.shape_cast %266 : vector<2x8xf32> to vector<2x8x1xf32>
    %268 = tpu.reciprocal %267 {approx = true} : vector<2x8x1xf32> -> vector<2x8x1xf32>
    %269 = vector.broadcast %268 : vector<2x8x1xf32> to vector<2x8x8xf32>
    %270 = arith.mulf %265, %269 : vector<2x8x8xf32>
    %271 = arith.truncf %270 : vector<2x8x8xf32> to vector<2x8x8xbf16>
    "tpu.trace_start"() <{level = 10 : i32, message = "bqk,bkd->bqd"}> : () -> ()
    %cst_107 = arith.constant dense<0.000000e+00> : vector<2x8x64xf32>
    %272 = tpu.matmul %271, %257, %cst_107 {dimension_numbers = #tpu.dot_dimension_numbers<[2], [1], [1], [2], [0, 0, 0, 1, 1, 2], [0], [0]>} : vector<2x8x8xbf16>, vector<2x8x64xbf16>, vector<2x8x64xf32> -> vector<2x8x64xf32>
    "tpu.trace_stop"() : () -> ()
    %c0_108 = arith.constant 0 : index
    %c0_109 = arith.constant 0 : index
    %c704 = arith.constant 704 : index
    %273 = vector.load %arg13[%c0_108, %c0_109, %c704] : memref<2x8x768xf32, #tpu.memory_space<vmem>>, vector<2x8x64xf32>
    tpu.vector_store %arg13[%c0_108, %c0_109, %c704], %272 {strides = array<i32>} : memref<2x8x768xf32, #tpu.memory_space<vmem>>, vector<2x8x64xf32>,
    %c0_110 = arith.constant 0 : index
    %c0_111 = arith.constant 0 : index
    %c0_112 = arith.constant 0 : index
    %274 = vector.load %arg13[%c0_110, %c0_111, %c0_112] : memref<2x8x768xf32, #tpu.memory_space<vmem>>, vector<2x8x768xf32>
    %275 = vector.shape_cast %274 : vector<2x8x768xf32> to vector<16x768xf32>
    %276 = arith.truncf %275 : vector<16x768xf32> to vector<16x768xbf16>
    %c0_113 = arith.constant 0 : index
    %c0_114 = arith.constant 0 : index
    %277 = vector.load %arg7[%c0_113, %c0_114] : memref<768x768xbf16, #tpu.memory_space<vmem>>, vector<768x768xbf16>
    %cst_115 = arith.constant dense<0.000000e+00> : vector<16x768xf32>
    %278 = tpu.matmul %276, %277, %cst_115 {dimension_numbers = #tpu.dot_dimension_numbers<[1], [0], [0], [1], [0, 0, 1, 1], [], []>} : vector<16x768xbf16>, vector<768x768xbf16>, vector<16x768xf32> -> vector<16x768xf32>
    %c0_116 = arith.constant 0 : index
    %c0_117 = arith.constant 0 : index
    %279 = vector.load %arg11[%c0_116, %c0_117] : memref<1x768xf32, #tpu.memory_space<vmem>>, vector<1x768xf32>
    %280 = vector.broadcast %279 : vector<1x768xf32> to vector<16x768xf32>
    %281 = arith.addf %278, %280 : vector<16x768xf32>
    %282 = vector.shape_cast %281 : vector<16x768xf32> to vector<2x8x768xf32>
    %c0_118 = arith.constant 0 : index
    %c0_119 = arith.constant 0 : index
    %c0_120 = arith.constant 0 : index
    %283 = vector.load %arg12[%c0_118, %c0_119, %c0_120] : memref<2x8x768xf32, #tpu.memory_space<vmem>>, vector<2x8x768xf32>
    tpu.vector_store %arg12[%c0_118, %c0_119, %c0_120], %282 {strides = array<i32>} : memref<2x8x768xf32, #tpu.memory_space<vmem>>, vector<2x8x768xf32>,
    return
  }
  func.func @transform_0(%arg0: i32) -> (i32, i32, i32) {
    %c0_i32 = arith.constant 0 : i32
    %c0_i32_0 = arith.constant 0 : i32
    %c0_i32_1 = arith.constant 0 : i32
    return %arg0, %c0_i32, %c0_i32_0 : i32, i32, i32
  }
  func.func @transform_1(%arg0: i32) -> (i32, i32) {
    %c0_i32 = arith.constant 0 : i32
    %c0_i32_0 = arith.constant 0 : i32
    %c0_i32_1 = arith.constant 0 : i32
    return %c0_i32, %c0_i32_0 : i32, i32
  }
  func.func @transform_2(%arg0: i32) -> (i32, i32) {
    %c0_i32 = arith.constant 0 : i32
    %c0_i32_0 = arith.constant 0 : i32
    %c0_i32_1 = arith.constant 0 : i32
    return %c0_i32, %c0_i32_0 : i32, i32
  }
  func.func @transform_3(%arg0: i32) -> (i32, i32) {
    %c0_i32 = arith.constant 0 : i32
    %c0_i32_0 = arith.constant 0 : i32
    %c0_i32_1 = arith.constant 0 : i32
    return %c0_i32, %c0_i32_0 : i32, i32
  }
  func.func @transform_4(%arg0: i32) -> (i32, i32) {
    %c0_i32 = arith.constant 0 : i32
    %c0_i32_0 = arith.constant 0 : i32
    %c0_i32_1 = arith.constant 0 : i32
    return %c0_i32, %c0_i32_0 : i32, i32
  }
  func.func @transform_5(%arg0: i32) -> (i32, i32) {
    %c0_i32 = arith.constant 0 : i32
    %c0_i32_0 = arith.constant 0 : i32
    %c0_i32_1 = arith.constant 0 : i32
    return %c0_i32, %c0_i32_0 : i32, i32
  }
  func.func @transform_6(%arg0: i32) -> (i32, i32) {
    %c0_i32 = arith.constant 0 : i32
    %c0_i32_0 = arith.constant 0 : i32
    %c0_i32_1 = arith.constant 0 : i32
    return %c0_i32, %c0_i32_0 : i32, i32
  }
  func.func @transform_7(%arg0: i32) -> (i32, i32) {
    %c0_i32 = arith.constant 0 : i32
    %c0_i32_0 = arith.constant 0 : i32
    %c0_i32_1 = arith.constant 0 : i32
    return %c0_i32, %c0_i32_0 : i32, i32
  }
  func.func @transform_8(%arg0: i32) -> (i32, i32) {
    %c0_i32 = arith.constant 0 : i32
    %c0_i32_0 = arith.constant 0 : i32
    %c0_i32_1 = arith.constant 0 : i32
    return %c0_i32, %c0_i32_0 : i32, i32
  }
  func.func @transform_9(%arg0: i32) -> (i32, i32) {
    %c0_i32 = arith.constant 0 : i32
    %c0_i32_0 = arith.constant 0 : i32
    %c0_i32_1 = arith.constant 0 : i32
    return %c0_i32, %c0_i32_0 : i32, i32
  }
  func.func @transform_10(%arg0: i32) -> (i32, i32) {
    %c0_i32 = arith.constant 0 : i32
    %c0_i32_0 = arith.constant 0 : i32
    %c0_i32_1 = arith.constant 0 : i32
    return %c0_i32, %c0_i32_0 : i32, i32
  }
  func.func @transform_11(%arg0: i32) -> (i32, i32, i32) {
    %c0_i32 = arith.constant 0 : i32
    %c0_i32_0 = arith.constant 0 : i32
    %c0_i32_1 = arith.constant 0 : i32
    return %arg0, %c0_i32, %c0_i32_0 : i32, i32, i32
  }
}

</mosaic_0001>

<bundles_post_ra>
// kernel: tpu_custom_call.1
= control target key start
LH: loop header
LB: loop body
LE: loop exit
PB: predicated region body
PF: predicated region fallthrough
CT: control target
= control target key end

     0   :  { %16 = vsyncpa [#allocation4], 0  ;;  %s18549_s0 = inlined_call_operand.hbm [shape: f32[2,8,768], index: 0, kind: input, shape index: {}]   ;;  %s18550_s1 = inlined_call_operand.hbm [shape: f32[1,768], index: 1, kind: input, shape index: {}]   ;;  %s18551_s2 = inlined_call_operand.hbm [shape: f32[1,768], index: 2, kind: input, shape index: {}]   ;;  %s18552_s3 = inlined_call_operand.hbm [shape: bf16[768,768], index: 3, kind: input, shape index: {}]   ;;  %s18553_s4 = inlined_call_operand.hbm [shape: bf16[768,768], index: 4, kind: input, shape index: {}]   ;;  %s18554_s5 = inlined_call_operand.hbm [shape: bf16[768,768], index: 5, kind: input, shape index: {}]   ;;  %s18555_s6 = inlined_call_operand.hbm [shape: bf16[768,768], index: 6, kind: input, shape index: {}]   ;;  %s18556_s7 = inlined_call_operand.hbm [shape: f32[1,768], index: 7, kind: input, shape index: {}]   ;;  %s18557_s8 = inlined_call_operand.hbm [shape: f32[1,768], index: 8, kind: input, shape index: {}]   ;;  %s18558_s9 = inlined_call_operand.hbm [shape: f32[1,768], index: 9, kind: input, shape index: {}]   ;;  %s18559_s10 = inlined_call_operand.hbm [shape: f32[1,768], index: 10, kind: input, shape index: {}]   ;;  %s18560_s11 = inlined_call_operand.hbm [shape: f32[2,8,768], index: 11, kind: output, shape index: {}]  }
   0x1   :  { %17 = vsyncpa [#allocation7], 0 }
   0x2   :  { %18 = vsyncpa [#allocation10], 0 }
   0x3   :  { %19 = vsyncpa [#allocation13], 0 }
   0x4   :  { %20 = vsyncpa [#allocation16], 0 }
   0x5   :  { %21 = vsyncpa [#allocation19], 0  ;;  %s41_s19 = sshll.u32 %s18550_s1, 4  ;;  %s42_s19 = int_to_ptr.hbm [resolvable:$true] %s41_s19 }
   0x6   :  { %22 = vsyncpa [#allocation5], 0  ;;  %s17117_s20 = smov [#allocation6]   ;;  %s62_s24 = sshll.u32 %s18552_s3, 4  ;;  %s63_s24 = int_to_ptr.hbm [resolvable:$true] %s62_s24 }
   0x7   :  { %s43_s21 = sshll.u32 %s17117_s20, 4  ;;  %s17118_s25 = smov [#allocation9]   ;;  %s44_s21 = int_to_ptr.vmem [resolvable:$true] %s43_s21 }
   0x8   :  { %46 = dma.hbm_to_vmem [thread:$0]  %s42_s19, 96, %s44_s21, [#allocation7]  }
   0x9   :  { %s64_s26 = sshll.u32 %s17118_s25, 4  ;;  %s17119_s27 = smov 384   ;;  %s65_s26 = int_to_ptr.vmem [resolvable:$true] %s64_s26 }
   0xa   :  { %s17120_s28 = smov 24   ;;  %s88_s30 = sshll.u32 %s18554_s5, 4  ;;  %s89_s30 = int_to_ptr.hbm [resolvable:$true] %s88_s30 }
   0xb   :  { %70 = dma.hbm_to_vmem [thread:$0]  %s63_s24, 36864, %s65_s26, [#allocation10], %s17119_s27, %s17119_s27, %s17120_s28  }
   0xc   :  { %s17121_s12 = smov [#allocation12]   ;;  %s115_s15 = sshll.u32 %s18556_s7, 4  ;;  %s116_s15 = int_to_ptr.hbm [resolvable:$true] %s115_s15 }
   0xd   :  { %s90_s13 = sshll.u32 %s17121_s12, 4  ;;  %s17122_s16 = smov [#allocation15]   ;;  %s91_s13 = int_to_ptr.vmem [resolvable:$true] %s90_s13 }
   0xe   :  { %96 = dma.hbm_to_vmem [thread:$0]  %s89_s30, 36864, %s91_s13, [#allocation13], %s17119_s27, %s17119_s27, %s17120_s28  }
   0xf   :  { %s117_s17 = sshll.u32 %s17122_s16, 4  ;;  %s137_s20 = sshll.u32 %s18558_s9, 4  ;;  %s118_s17 = int_to_ptr.vmem [resolvable:$true] %s117_s17  ;;  %s138_s20 = int_to_ptr.hbm [resolvable:$true] %s137_s20 }
  0x10   :  { %120 = dma.hbm_to_vmem [thread:$0]  %s116_s15, 96, %s118_s17, [#allocation16]  }
  0x11   :  { %s27_s22 = sshll.u32 %s18549_s0, 4  ;;  %s17123_s23 = smov [#allocation18]   ;;  %s28_s22 = int_to_ptr.hbm [resolvable:$true] %s27_s22 }
  0x12   :  { %s139_s7 = sshll.u32 %s17123_s23, 4  ;;  %s17124_s24 = smov [#allocation3]   ;;  %s140_s7 = int_to_ptr.vmem [resolvable:$true] %s139_s7 }
  0x13   :  { %142 = dma.hbm_to_vmem [thread:$0]  %s138_s20, 96, %s140_s7, [#allocation19]  }
  0x14   :  { %s29_s25 = sshll.u32 %s17124_s24, 4  ;;  %s17125_s26 = smov 768   ;;  %s30_s25 = int_to_ptr.vmem [resolvable:$true] %s29_s25 }
  0x15   :  { %s17126_s1 = smov 48   ;;  %s52_s30 = sshll.u32 %s18551_s2, 4  ;;  %s53_s30 = int_to_ptr.hbm [resolvable:$true] %s52_s30 }
  0x16   :  { %35 = dma.hbm_to_vmem [thread:$0]  %s28_s22, 1536, %s30_s25, [#allocation4], %s17125_s26, %s17125_s26, %s17126_s1  }
  0x17   :  { %s17127_s0 = smov [#allocation8]   ;;  %s75_s14 = sshll.u32 %s18553_s4, 4  ;;  %s76_s14 = int_to_ptr.hbm [resolvable:$true] %s75_s14 }
  0x18   :  { %s54_s12 = sshll.u32 %s17127_s0, 4  ;;  %s17128_s15 = smov [#allocation11]   ;;  %s55_s12 = int_to_ptr.vmem [resolvable:$true] %s54_s12 }
  0x19   :  { %57 = dma.hbm_to_vmem [thread:$0]  %s53_s30, 96, %s55_s12, [#allocation7]  }
  0x1a   :  { %s77_s16 = sshll.u32 %s17128_s15, 4  ;;  %s101_s19 = sshll.u32 %s18555_s6, 4  ;;  %s78_s16 = int_to_ptr.vmem [resolvable:$true] %s77_s16  ;;  %s102_s19 = int_to_ptr.hbm [resolvable:$true] %s101_s19 }
  0x1b   :  { %83 = dma.hbm_to_vmem [thread:$0]  %s76_s14, 36864, %s78_s16, [#allocation10], %s17119_s27, %s17119_s27, %s17120_s28  }
  0x1c   :  { %s126_s5 = sshll.u32 %s18557_s8, 4  ;;  %s17129_s21 = smov [#allocation14]   ;;  %s127_s5 = int_to_ptr.hbm [resolvable:$true] %s126_s5 }
  0x1d   :  { %s103_s4 = sshll.u32 %s17129_s21, 4  ;;  %s17130_s22 = smov [#allocation17]   ;;  %s104_s4 = int_to_ptr.vmem [resolvable:$true] %s103_s4 }
  0x1e   :  { %109 = dma.hbm_to_vmem [thread:$0]  %s102_s19, 36864, %s104_s4, [#allocation13], %s17119_s27, %s17119_s27, %s17120_s28  }
  0x1f   :  { %s128_s6 = sshll.u32 %s17130_s22, 4  ;;  %s148_s24 = sshll.u32 %s18559_s10, 4  ;;  %s129_s6 = int_to_ptr.vmem [resolvable:$true] %s128_s6  ;;  %s149_s24 = int_to_ptr.hbm [resolvable:$true] %s148_s24 }
  0x20   :  { %131 = dma.hbm_to_vmem [thread:$0]  %s127_s5, 96, %s129_s6, [#allocation16]  }
  0x21   :  { %s17131_s25 = smov [#allocation20]  }
  0x22   :  { %s150_s9 = sshll.u32 %s17131_s25, 4  ;;  %s151_s9 = int_to_ptr.vmem [resolvable:$true] %s150_s9 }
  0x23   :  { %153 = dma.hbm_to_vmem [thread:$0]  %s149_s24, 96, %s151_s9, [#allocation19]  }
  0x24   :  { %17103 = dma.done.wait [#allocation4], 1536  }
  0x25   :  { %17104 = vsyncadd [#allocation4], 4294965760 }
  0x26   :  { %17105 = dma.done.wait [#allocation7], 192  }
  0x27   :  { %17106 = vsyncadd [#allocation7], 4294967104 }
  0x28   :  { %17107 = dma.done.wait [#allocation10], 73728  }
  0x29   :  { %17108 = vsyncadd [#allocation10], 4294893568 }
  0x2a   :  { %17109 = dma.done.wait [#allocation13], 73728  }
  0x2b   :  { %17110 = vsyncadd [#allocation13], 4294893568 }
  0x2c   :  { %17111 = dma.done.wait [#allocation16], 192  }
  0x2d   :  { %17112 = vsyncadd [#allocation16], 4294967104 }
  0x2e   :  { %17113 = dma.done.wait [#allocation19], 192  }
  0x2f   :  { %17114 = vsyncadd [#allocation19], 4294967104  ;;  %v17243_v0 = vld [vmem:[#allocation3] sm:$0xff]  ;;  %v17245_v1 = vld [vmem:[#allocation3 + $0x8] sm:$0xff]  ;;  %v17132_v22 = vmov 768.0   ;;  %s17133_s8 = smov 64  }
  0x30   :  { %v17247_v2 = vld [vmem:[#allocation3 + $0x10] sm:$0xff]  ;;  %v17249_v3 = vld [vmem:[#allocation3 + $0x18] sm:$0xff]  ;;  %v211_v4 = vadd.f32 %v17245_v1, %v17243_v0  ;;  %v17257_v7 = vld [vmem:[#allocation3 + $0x40] sm:$0xff]  ;;  %16710 = vrcp.f32 %v17132_v22  ;;  %vm7122_vm7 = vcmask 523264   ;;  %vm7191_vm8 = vcmask 1043456   ;;  %s17134_s10 = smov [#allocation21]  }
  0x31   :  { %v17253_v5 = vld [vmem:[#allocation3 + $0x30] sm:$0xff]  ;;  %v17255_v6 = vld [vmem:[#allocation3 + $0x38] sm:$0xff]  ;;  %v17262_v10 = vld [vmem:[#allocation3 + $0x20] sm:$0xff]  ;;  %vm7163_vm9 = vcmask 64512   ;;  %vm7369_vm10 = vcmask 1048064   ;;  %s10864_s27 = sshll.u32 %s17134_s10, 4  ;;  %s10865_s27 = int_to_ptr.vmem [resolvable:$true] %s10864_s27 }
  0x32   :  { %v212_v8 = vadd.f32 %v211_v4, %v17247_v2  ;;  %v218_v9 = vadd.f32 %v17255_v6, %v17253_v5  ;;  %v17264_v11 = vld [vmem:[#allocation3 + $0x48] sm:$0xff]  ;;  %v17272_v17 = vld [vmem:[#allocation3 + $0x50] sm:$0xff]  ;;  %v17276_v20 = vld [vmem:[#allocation3 + $0x58] sm:$0xff]  ;;  %s10866_s30 = sshll.u32 %s18560_s11, 4  ;;  %s10867_s30 = int_to_ptr.hbm [resolvable:$true] %s10866_s30 }
  0x33   :  { %v17268_v14 = vld [vmem:[#allocation3 + $0x28] sm:$0xff]  ;;  %v11054_v27 = vld [vmem:[#allocation9 + $0x150] sm:$0xf]  ;;  %v15585_v28 = vld [vmem:[#allocation9 + $0x164] sm:$0xf0] }
  0x34   :  { %v213_v12 = vadd.f32 %v212_v8, %v17249_v3  ;;  %v219_v13 = vadd.f32 %v218_v9, %v17257_v7  ;;  %v11246_v29 = vld [vmem:[#allocation9 + $0x2d0] sm:$0xf]  ;;  %v11055_v31 = vor.u32 %v15585_v28, %v11054_v27  ;;  %v15633_v32 = vld [vmem:[#allocation9 + $0x2e4] sm:$0xf0]  ;;  %v11030_v39 = vld [vmem:[#allocation9 + $0x120] sm:$0xf] }
  0x35   :  { %v11438_v33 = vld [vmem:[#allocation9 + $0x450] sm:$0xf]  ;;  %v15681_v34 = vld [vmem:[#allocation9 + $0x464] sm:$0xf0]  ;;  %v11247_v35 = vor.u32 %v15633_v32, %v11246_v29  ;;  %v15579_v41 = vld [vmem:[#allocation9 + $0x134] sm:$0xf0] }
  0x36   :  { %v214_v15 = vadd.f32 %v213_v12, %v17262_v10  ;;  %v220_v16 = vadd.f32 %v219_v13, %v17264_v11  ;;  %v16711_v23 = vpop.eup %16710  ;;  %v11439_v36 = vor.u32 %v15681_v34, %v11438_v33  ;;  %v11630_v37 = vld [vmem:[#allocation9 + $0x5d0] sm:$0xf]  ;;  %v15729_v38 = vld [vmem:[#allocation9 + $0x5e4] sm:$0xf0]  ;;  %2108 = vmatpush.bf16.msra.mxu0 %v11055_v31  ;;  %v11222_v42 = vld [vmem:[#allocation9 + $0x2a0] sm:$0xf]  ;;  %v11031_v44 = vor.u32 %v15579_v41, %v11030_v39 }
  0x37   :  { %v226_v24 = vmul.f32 768.0, %v16711_v23  ;;  %vm230_vm0 = vweird.f32 %v16711_v23  ;;  %v11631_v40 = vor.u32 %v15729_v38, %v11630_v37  ;;  %v15627_v43 = vld [vmem:[#allocation9 + $0x2b4] sm:$0xf0]  ;;  %2122 = vmatpush.bf16.msra.mxu1 %v11247_v35  ;;  %v11414_v46 = vld [vmem:[#allocation9 + $0x420] sm:$0xf] }
  0x38   :  { %v215_v18 = vadd.f32 %v214_v15, %v17268_v14  ;;  %v221_v19 = vadd.f32 %v220_v16, %v17272_v17  ;;  %2136 = vmatpush.bf16.msra.mxu2 %v11439_v36  ;;  %v11223_v45 = vor.u32 %v15627_v43, %v11222_v42  ;;  %v15675_v47 = vld [vmem:[#allocation9 + $0x434] sm:$0xf0]  ;;  %v11606_v48 = vld [vmem:[#allocation9 + $0x5a0] sm:$0xf]  ;;  %v11006_v52 = vld [vmem:[#allocation9 + $0xf0] sm:$0xf] }
  0x39   :  { %v227_v25 = vsub.f32 1.0, %v226_v24  ;;  %2150 = vmatpush.bf16.msra.mxu3 %v11631_v40  ;;  %v11415_v50 = vor.u32 %v15675_v47, %v11414_v46  ;;  %v15723_v51 = vld [vmem:[#allocation9 + $0x5b4] sm:$0xf0]  ;;  %v15573_v53 = vld [vmem:[#allocation9 + $0x104] sm:$0xf0] }
  0x3a   :  { %216 = vadd.xlane.f32.xlu0 %v215_v18  ;;  %v222_v21 = vadd.f32 %v221_v19, %v17276_v20  ;;  %v11607_v54 = vor.u32 %v15723_v51, %v11606_v48  ;;  %v11198_v55 = vld [vmem:[#allocation9 + $0x270] sm:$0xf]  ;;  %v15621_v56 = vld [vmem:[#allocation9 + $0x284] sm:$0xf0]  ;;  %2109 = vmatpush.bf16.msra.mxu0 %v11031_v44  ;;  %v11007_v59 = vor.u32 %v15573_v53, %v11006_v52  ;;  %v10982_v8 = vld [vmem:[#allocation9 + $0xc0] sm:$0xf] }
  0x3b   :  { %v228_v26 = vmul.f32 %v16711_v23, %v227_v25  ;;  %v11390_v57 = vld [vmem:[#allocation9 + $0x3f0] sm:$0xf]  ;;  %v15669_v60 = vld [vmem:[#allocation9 + $0x404] sm:$0xf0]  ;;  %2123 = vmatpush.bf16.msra.mxu1 %v11223_v45  ;;  %v11199_v4 = vor.u32 %v15621_v56, %v11198_v55  ;;  %v15567_v9 = vld [vmem:[#allocation9 + $0xd4] sm:$0xf0] }
  0x3c   :  { %v11582_v61 = vld [vmem:[#allocation9 + $0x570] sm:$0xf]  ;;  %v15717_v62 = vld [vmem:[#allocation9 + $0x584] sm:$0xf0]  ;;  %2137 = vmatpush.bf16.msra.mxu2 %v11415_v50  ;;  %v11391_v12 = vor.u32 %v15669_v60, %v11390_v57  ;;  %v11174_v15 = vld [vmem:[#allocation9 + $0x240] sm:$0xf] }
  0x3d   :  { %v229_v30 = vadd.f32 %v16711_v23, %v228_v26  ;;  %2151 = vmatpush.bf16.msra.mxu3 %v11607_v54  ;;  %v11583_v13 = vor.u32 %v15717_v62, %v11582_v61  ;;  %v15615_v16 = vld [vmem:[#allocation9 + $0x254] sm:$0xf0]  ;;  %v11366_v18 = vld [vmem:[#allocation9 + $0x3c0] sm:$0xf]  ;;  %v10983_v26 = vor.u32 %v15567_v9, %v10982_v8  ;;  %v10958_v29 = vld [vmem:[#allocation9 + $0x90] sm:$0xf] }
  0x3e   :  { %v11558_v24 = vld [vmem:[#allocation9 + $0x540] sm:$0xf]  ;;  %v15711_v25 = vld [vmem:[#allocation9 + $0x554] sm:$0xf0]  ;;  %2110 = vmatpush.bf16.msra.mxu0 %v11007_v59  ;;  %v11150_v33 = vld [vmem:[#allocation9 + $0x210] sm:$0xf] }
  0x3f   :  { %v17280_v49 = vsel %vm230_vm0, %v16711_v23, %v229_v30  ;;  %v15663_v23 = vld [vmem:[#allocation9 + $0x3d4] sm:$0xf0]  ;;  %2124 = vmatpush.bf16.msra.mxu1 %v11199_v4  ;;  %v15561_v30 = vld [vmem:[#allocation9 + $0xa4] sm:$0xf0]  ;;  %v11559_v32 = vor.u32 %v15711_v25, %v11558_v24  ;;  %v11342_v34 = vld [vmem:[#allocation9 + $0x390] sm:$0xf] }
  0x40   :  { %2138 = vmatpush.bf16.msra.mxu2 %v11391_v12  ;;  %v11367_v31 = vor.u32 %v15663_v23, %v11366_v18  ;;  %v15657_v37 = vld [vmem:[#allocation9 + $0x3a4] sm:$0xf0]  ;;  %v11534_v38 = vld [vmem:[#allocation9 + $0x510] sm:$0xf]  ;;  %v10934_v8 = vld [vmem:[#allocation9 + $0x60] sm:$0xf] }
  0x41   :  { %2152 = vmatpush.bf16.msra.mxu3 %v11583_v13  ;;  %v15705_v39 = vld [vmem:[#allocation9 + $0x524] sm:$0xf0]  ;;  %v11343_v47 = vor.u32 %v15657_v37, %v11342_v34  ;;  %v15555_v9 = vld [vmem:[#allocation9 + $0x74] sm:$0xf0]  ;;  %v11126_v12 = vld [vmem:[#allocation9 + $0x1e0] sm:$0xf] }
  0x42   :  { %223 = vadd.xlane.f32.xlu0 %v222_v21  ;;  %2111 = vmatpush.bf16.msra.mxu0 %v10983_v26  ;;  %v11535_v48 = vor.u32 %v15705_v39, %v11534_v38  ;;  %v10935_v13 = vor.u32 %v15555_v9, %v10934_v8  ;;  %v11510_v24 = vld [vmem:[#allocation9 + $0x4e0] sm:$0xf]  ;;  %v15699_v25 = vld [vmem:[#allocation9 + $0x4f4] sm:$0xf0]  ;;  %v11486_v34 = vld [vmem:[#allocation9 + $0x4b0] sm:$0xf] }
  0x43   :  { %v11511_v26 = vor.u32 %v15699_v25, %v11510_v24  ;;  %v10886_v37 = vld [vmem:[#allocation9] sm:$0xf]  ;;  %v15543_v38 = vld [vmem:[#allocation9 + $0x14] sm:$0xf0]  ;;  %v11774_v24 = vld [vmem:[#allocation9 + $0x6f0] sm:$0xf] }
  0x44   :  { %2139 = vmatpush.bf16.msra.mxu2 %v11367_v31  ;;  %v11294_v31 = vld [vmem:[#allocation9 + $0x330] sm:$0xf]  ;;  %v11078_v39 = vld [vmem:[#allocation9 + $0x180] sm:$0xf]  ;;  %v15819_v9 = vld [vmem:[#allocation9 + $0x8b4] sm:$0xf0] }
  0x45   :  { %2153 = vmatpush.bf16.msra.mxu3 %v11559_v32  ;;  %v15645_v32 = vld [vmem:[#allocation9 + $0x344] sm:$0xf0]  ;;  %v11990_v8 = vld [vmem:[#allocation9 + $0x8a0] sm:$0xf] }
  0x46   :  { %v15765_v25 = vld [vmem:[#allocation9 + $0x704] sm:$0xf0] }
  0x48   :  { %2140 = vmatpush.bf16.msra.mxu2 %v11343_v47  ;;  %v15687_v47 = vld [vmem:[#allocation9 + $0x494] sm:$0xf0] }
  0x49   :  { %2154 = vmatpush.bf16.msra.mxu3 %v11535_v48  ;;  %v11822_v48 = vld [vmem:[#allocation9 + $0x750] sm:$0xf] }
  0x4d   :  { %2155 = vmatpush.bf16.msra.mxu3 %v11511_v26  ;;  %v11966_v26 = vld [vmem:[#allocation9 + $0x870] sm:$0xf] }
  0xad   :  { %v217_v58 = vpop.xlane.xlu0 %216 }
  0xae   :  { %v232_v63 = vmul.f32 %v17280_v49, %v217_v58 }
  0xb0   :  { %v17284_v19 = vsub.f32 %v17243_v0, %v232_v63  ;;  %v17287_v21 = vsub.f32 %v17245_v1, %v232_v63  ;;  %v17290_v22 = vsub.f32 %v17247_v2, %v232_v63  ;;  %v17293_v27 = vsub.f32 %v17249_v3, %v232_v63  ;;  %v15609_v3 = vld [vmem:[#allocation9 + $0x224] sm:$0xf0] }
  0xb1   :  { %v11175_v1 = vor.u32 %v15615_v16, %v11174_v15  ;;  %v17300_v2 = vsub.f32 %v17262_v10, %v232_v63  ;;  %v17305_v41 = vsub.f32 %v17268_v14, %v232_v63  ;;  %v10959_v10 = vor.u32 %v15561_v30, %v10958_v29  ;;  %v11318_v15 = vld [vmem:[#allocation9 + $0x360] sm:$0xf]  ;;  %v15651_v16 = vld [vmem:[#allocation9 + $0x374] sm:$0xf0]  ;;  %v15597_v30 = vld [vmem:[#allocation9 + $0x1c4] sm:$0xf0] }
  0xb2   :  { %v246_v28 = vmul.f32 %v17284_v19, %v17284_v19  ;;  %v247_v0 = vmul.f32 %v17287_v21, %v17287_v21  ;;  %v248_v35 = vmul.f32 %v17290_v22, %v17290_v22  ;;  %v249_v43 = vmul.f32 %v17293_v27, %v17293_v27 }
  0xb3   :  { %2125 = vmatpush.bf16.msra.mxu1 %v11175_v1  ;;  %v11151_v45 = vor.u32 %v15609_v3, %v11150_v33  ;;  %v250_v46 = vmul.f32 %v17300_v2, %v17300_v2  ;;  %v251_v53 = vmul.f32 %v17305_v41, %v17305_v41  ;;  %2112 = vmatpush.bf16.msra.mxu0 %v10959_v10  ;;  %v11102_v1 = vld [vmem:[#allocation9 + $0x1b0] sm:$0xf]  ;;  %v15591_v10 = vld [vmem:[#allocation9 + $0x194] sm:$0xf0] }
  0xb4   :  { %v258_v36 = vadd.f32 %v247_v0, %v246_v28  ;;  %v11319_v23 = vor.u32 %v15651_v16, %v11318_v15  ;;  %v10910_v28 = vld [vmem:[#allocation9 + $0x30] sm:$0xf]  ;;  %v15549_v0 = vld [vmem:[#allocation9 + $0x44] sm:$0xf0]  ;;  %v11103_v33 = vor.u32 %v15597_v30, %v11102_v1  ;;  %v11295_v3 = vor.u32 %v15645_v32, %v11294_v31  ;;  %v15624_v15 = vld [vmem:[#allocation9 + $0x2a4] sm:$0xf] }
  0xb5   :  { %v224_v40 = vpop.xlane.xlu0 %223  ;;  %v10911_v29 = vor.u32 %v15549_v0, %v10910_v28  ;;  %v11224_v16 = vld [vmem:[#allocation9 + $0x2b8] sm:$0xf0]  ;;  %v11775_v28 = vor.u32 %v15765_v25, %v11774_v24  ;;  %v15813_v0 = vld [vmem:[#allocation9 + $0x884] sm:$0xf0]  ;;  %v15570_v1 = vld [vmem:[#allocation9 + $0xf4] sm:$0xf] }
  0xb6   :  { %v233_v42 = vmul.f32 %v17280_v49, %v224_v40  ;;  %v259_v44 = vadd.f32 %v258_v36, %v248_v35  ;;  %2141 = vmatpush.bf16.msra.mxu2 %v11319_v23  ;;  %v15693_v35 = vld [vmem:[#allocation9 + $0x4c4] sm:$0xf0]  ;;  %v10887_v40 = vor.u32 %v15543_v38, %v10886_v37  ;;  %v11227_v23 = vor.u32 %v15624_v15, %v11224_v16  ;;  %v15618_v32 = vld [vmem:[#allocation9 + $0x274] sm:$0xf]  ;;  %v15807_v38 = vld [vmem:[#allocation9 + $0x854] sm:$0xf0] }
  0xb7   :  { %2126 = vmatpush.bf16.msra.mxu1 %v11151_v45  ;;  %2113 = vmatpush.bf16.msra.mxu0 %v10935_v13  ;;  %v11487_v36 = vor.u32 %v15693_v35, %v11486_v34  ;;  %v11991_v13 = vor.u32 %v15819_v9, %v11990_v8  ;;  %v11967_v30 = vor.u32 %v15813_v0, %v11966_v26  ;;  %v11750_v34 = vld [vmem:[#allocation9 + $0x6c0] sm:$0xf]  ;;  %v15759_v35 = vld [vmem:[#allocation9 + $0x6d4] sm:$0xf0]  ;;  %v10936_v8 = vld [vmem:[#allocation9 + $0x78] sm:$0xf0] }
  0xb8   :  { %v260_v50 = vadd.f32 %v259_v44, %v249_v43  ;;  %v17313_v14 = vsub.f32 %v17253_v5, %v233_v42  ;;  %v17316_v51 = vsub.f32 %v17255_v6, %v233_v42  ;;  %v17319_v52 = vsub.f32 %v17257_v7, %v233_v42  ;;  %v15639_v43 = vld [vmem:[#allocation9 + $0x314] sm:$0xf0]  ;;  %v11870_v24 = vld [vmem:[#allocation9 + $0x7b0] sm:$0xf]  ;;  %v15546_v0 = vld [vmem:[#allocation9 + $0x34] sm:$0xf] }
  0xb9   :  { %v17324_v55 = vsub.f32 %v17264_v11, %v233_v42  ;;  %v17331_v7 = vsub.f32 %v17272_v17, %v233_v42  ;;  %v17336_v11 = vsub.f32 %v17276_v20, %v233_v42  ;;  %v15603_v20 = vld [vmem:[#allocation9 + $0x1f4] sm:$0xf0]  ;;  %2156 = vmatpush.bf16.msra.mxu3 %v11487_v36  ;;  %v11270_v42 = vld [vmem:[#allocation9 + $0x300] sm:$0xf]  ;;  %v11079_v44 = vor.u32 %v15591_v10, %v11078_v39  ;;  %v15564_v39 = vld [vmem:[#allocation9 + $0xc4] sm:$0xf] }
  0xba   :  { %v261_v54 = vadd.f32 %v260_v50, %v250_v46  ;;  %v252_v56 = vmul.f32 %v17313_v14, %v17313_v14  ;;  %v253_v5 = vmul.f32 %v17316_v51, %v17316_v51  ;;  %v254_v57 = vmul.f32 %v17319_v52, %v17319_v52  ;;  %2142 = vmatpush.bf16.msra.mxu2 %v11295_v3  ;;  %v11462_v46 = vld [vmem:[#allocation9 + $0x480] sm:$0xf] }
  0xbb   :  { %v255_v59 = vmul.f32 %v17324_v55, %v17324_v55  ;;  %v256_v61 = vmul.f32 %v17331_v7, %v17331_v7  ;;  %v257_v17 = vmul.f32 %v17336_v11, %v17336_v11  ;;  %v11127_v18 = vor.u32 %v15603_v20, %v11126_v12  ;;  %2114 = vmatpush.bf16.msra.mxu0 %v10911_v29  ;;  %v15576_v12 = vld [vmem:[#allocation9 + $0x124] sm:$0xf]  ;;  %v11032_v20 = vld [vmem:[#allocation9 + $0x138] sm:$0xf0]  ;;  %v11008_v29 = vld [vmem:[#allocation9 + $0x108] sm:$0xf0] }
  0xbc   :  { %v262_v6 = vadd.f32 %v261_v54, %v251_v53  ;;  %v265_v58 = vadd.f32 %v253_v5, %v252_v56  ;;  %v11271_v45 = vor.u32 %v15639_v43, %v11270_v42  ;;  %v11463_v50 = vor.u32 %v15687_v47, %v11462_v46  ;;  %v15777_v53 = vld [vmem:[#allocation9 + $0x764] sm:$0xf0]  ;;  %v12014_v54 = vld [vmem:[#allocation9 + $0x8d0] sm:$0xf]  ;;  %v11942_v36 = vld [vmem:[#allocation9 + $0x840] sm:$0xf] }
  0xbd   :  { %2127 = vmatpush.bf16.msra.mxu1 %v11127_v18  ;;  %v15825_v56 = vld [vmem:[#allocation9 + $0x8e4] sm:$0xf0]  ;;  %v11823_v5 = vor.u32 %v15777_v53, %v11822_v48  ;;  %v11035_v18 = vor.u32 %v15576_v12, %v11032_v20  ;;  %v11011_v31 = vor.u32 %v15570_v1, %v11008_v29  ;;  %v11751_v37 = vor.u32 %v15759_v35, %v11750_v34  ;;  %v15612_v43 = vld [vmem:[#allocation9 + $0x244] sm:$0xf]  ;;  %v11726_v46 = vld [vmem:[#allocation9 + $0x690] sm:$0xf] }
  0xbe   :  { %263 = vadd.xlane.f32.xlu1 %v262_v6  ;;  %v266_v60 = vadd.f32 %v265_v58, %v254_v57  ;;  %2143 = vmatpush.bf16.msra.mxu2 %v11271_v45  ;;  %v12015_v6 = vor.u32 %v15825_v56, %v12014_v54  ;;  %v15582_v57 = vld [vmem:[#allocation9 + $0x154] sm:$0xf]  ;;  %v11056_v58 = vld [vmem:[#allocation9 + $0x168] sm:$0xf0]  ;;  %v11943_v10 = vor.u32 %v15807_v38, %v11942_v36  ;;  %v15753_v47 = vld [vmem:[#allocation9 + $0x6a4] sm:$0xf0] }
  0xbf   :  { %2115 = vmatpush.bf16.msra.mxu0 %v10887_v40  ;;  %2157 = vmatpush.bf16.msra.mxu3 %v11463_v50  ;;  %v10984_v40 = vld [vmem:[#allocation9 + $0xd8] sm:$0xf0]  ;;  %v11918_v48 = vld [vmem:[#allocation9 + $0x810] sm:$0xf]  ;;  %v11727_v50 = vor.u32 %v15753_v47, %v11726_v46  ;;  %v15801_v53 = vld [vmem:[#allocation9 + $0x824] sm:$0xf0] }
  0xc0   :  { %v267_v62 = vadd.f32 %v266_v60, %v255_v59  ;;  %v15630_v59 = vld [vmem:[#allocation9 + $0x2d4] sm:$0xf]  ;;  %v11059_v60 = vor.u32 %v15582_v57, %v11056_v58  ;;  %v10987_v42 = vor.u32 %v15564_v39, %v10984_v40  ;;  %v10960_v56 = vld [vmem:[#allocation9 + $0xa8] sm:$0xf0]  ;;  %v11128_v20 = vld [vmem:[#allocation9 + $0x1f8] sm:$0xf0] }
  0xc1   :  { %2128 = vmatpush.bf16.msra.mxu1 %v11103_v33  ;;  %v11200_v33 = vld [vmem:[#allocation9 + $0x288] sm:$0xf0]  ;;  %v15558_v54 = vld [vmem:[#allocation9 + $0x94] sm:$0xf]  ;;  %v11654_v34 = vld [vmem:[#allocation9 + $0x600] sm:$0xf] }
  0xc2   :  { %v268_v63 = vadd.f32 %v267_v62, %v256_v61  ;;  %v11248_v61 = vld [vmem:[#allocation9 + $0x2e8] sm:$0xf0]  ;;  %v11798_v62 = vld [vmem:[#allocation9 + $0x720] sm:$0xf]  ;;  %2192 = vmatpush.bf16.msrb.mxu2 %v11059_v60  ;;  %v11203_v3 = vor.u32 %v15618_v32, %v11200_v33  ;;  %v15606_v57 = vld [vmem:[#allocation9 + $0x214] sm:$0xf] }
  0xc3   :  { %2164 = vmatpush.bf16.msrb.mxu0 %v11823_v5  ;;  %v11919_v5 = vor.u32 %v15801_v53, %v11918_v48  ;;  %v11152_v58 = vld [vmem:[#allocation9 + $0x228] sm:$0xf0]  ;;  %v11702_v60 = vld [vmem:[#allocation9 + $0x660] sm:$0xf]  ;;  %v15735_v35 = vld [vmem:[#allocation9 + $0x614] sm:$0xf0] }
  0xc4   :  { %v269_v4 = vadd.f32 %v268_v63, %v257_v17  ;;  %v15771_v17 = vld [vmem:[#allocation9 + $0x734] sm:$0xf0]  ;;  %v11251_v63 = vor.u32 %v15630_v59, %v11248_v61  ;;  %v11155_v59 = vor.u32 %v15606_v57, %v11152_v58  ;;  %v10912_v1 = vld [vmem:[#allocation9 + $0x48] sm:$0xf0]  ;;  %v11846_v36 = vld [vmem:[#allocation9 + $0x780] sm:$0xf] }
  0xc5   :  { %2129 = vmatpush.bf16.msra.mxu1 %v11079_v44  ;;  %v11176_v44 = vld [vmem:[#allocation9 + $0x258] sm:$0xf0]  ;;  %v15747_v61 = vld [vmem:[#allocation9 + $0x674] sm:$0xf0]  ;;  %v11104_v32 = vld [vmem:[#allocation9 + $0x1c8] sm:$0xf0] }
  0xc6   :  { %270 = vadd.xlane.f32.xlu1 %v269_v4  ;;  %v11799_v4 = vor.u32 %v15771_v17, %v11798_v62  ;;  %2206 = vmatpush.bf16.msrb.mxu3 %v11251_v63  ;;  %v11179_v45 = vor.u32 %v15612_v43, %v11176_v44  ;;  %v11894_v62 = vld [vmem:[#allocation9 + $0x7e0] sm:$0xf]  ;;  %v11703_v17 = vor.u32 %v15747_v61, %v11702_v60  ;;  %v15795_v63 = vld [vmem:[#allocation9 + $0x7f4] sm:$0xf0]  ;;  %v15540_v39 = vld [vmem:[#allocation9 + $0x4] sm:$0xf] }
  0xc7   :  { %2193 = vmatpush.bf16.msrb.mxu2 %v11035_v18  ;;  %v11895_v9 = vor.u32 %v15795_v63, %v11894_v62  ;;  %v11678_v18 = vld [vmem:[#allocation9 + $0x630] sm:$0xf]  ;;  %v15783_v38 = vld [vmem:[#allocation9 + $0x794] sm:$0xf0]  ;;  %v10888_v40 = vld [vmem:[#allocation9 + $0x18] sm:$0xf0] }
  0xc8   :  { %2165 = vmatpush.bf16.msrb.mxu0 %v11799_v4  ;;  %v15552_v4 = vld [vmem:[#allocation9 + $0x64] sm:$0xf]  ;;  %v11080_v44 = vld [vmem:[#allocation9 + $0x198] sm:$0xf0] }
  0xc9   :  { %2178 = vmatpush.bf16.msrb.mxu1 %v12015_v6  ;;  %v10963_v6 = vor.u32 %v15558_v54, %v10960_v56  ;;  %v10939_v12 = vor.u32 %v15552_v4, %v10936_v8  ;;  %v15588_v43 = vld [vmem:[#allocation9 + $0x184] sm:$0xf]  ;;  %v17354_v8 = vld [vmem:[#allocation8] sm:$0x3f] }
  0xca   :  { %2207 = vmatpush.bf16.msrb.mxu3 %v11227_v23  ;;  %v15741_v23 = vld [vmem:[#allocation9 + $0x644] sm:$0xf0] }
  0xcb   :  { %2194 = vmatpush.bf16.msrb.mxu2 %v11011_v31  ;;  %v11679_v26 = vor.u32 %v15741_v23, %v11678_v18  ;;  %v15594_v31 = vld [vmem:[#allocation9 + $0x1b4] sm:$0xf]  ;;  %v337_v23 = vperm.slane %v17354_v8, 1 }
  0xcc   :  { %2166 = vmatpush.bf16.msrb.mxu0 %v11775_v28  ;;  %v15789_v28 = vld [vmem:[#allocation9 + $0x7c4] sm:$0xf0] }
  0xcd   :  { %2179 = vmatpush.bf16.msrb.mxu1 %v11991_v13  ;;  %v15600_v13 = vld [vmem:[#allocation9 + $0x1e4] sm:$0xf]  ;;  %v11871_v29 = vor.u32 %v15789_v28, %v11870_v24  ;;  %v338_v24 = vperm.slane %v17354_v8, 2 }
  0xce   :  { %2208 = vmatpush.bf16.msrb.mxu3 %v11203_v3  ;;  %v11131_v15 = vor.u32 %v15600_v13, %v11128_v20  ;;  %v11107_v3 = vor.u32 %v15594_v31, %v11104_v32 }
  0xcf   :  { %2195 = vmatpush.bf16.msrb.mxu2 %v10987_v42  ;;  %v10891_v42 = vor.u32 %v15540_v39, %v10888_v40 }
  0xd0   :  { %2167 = vmatpush.bf16.msrb.mxu0 %v11751_v37  ;;  %v11655_v37 = vor.u32 %v15735_v35, %v11654_v34  ;;  %v11440_v34 = vld [vmem:[#allocation9 + $0x468] sm:$0xf0]  ;;  %v15726_v35 = vld [vmem:[#allocation9 + $0x5d4] sm:$0xf] }
  0xd1   :  { %2180 = vmatpush.bf16.msrb.mxu1 %v11967_v30  ;;  %v10915_v30 = vor.u32 %v15546_v0, %v10912_v1 }
  0xd2   :  { %2209 = vmatpush.bf16.msrb.mxu3 %v11179_v45  ;;  %v11083_v45 = vor.u32 %v15588_v43, %v11080_v44  ;;  %v15822_v44 = vld [vmem:[#allocation9 + $0x8d4] sm:$0xf] }
  0xd3   :  { %2196 = vmatpush.bf16.msrb.mxu2 %v10963_v6 }
  0xd4   :  { %2168 = vmatpush.bf16.msrb.mxu0 %v11727_v50 }
  0xd5   :  { %2181 = vmatpush.bf16.msrb.mxu1 %v11943_v10  ;;  %v11847_v10 = vor.u32 %v15783_v38, %v11846_v36  ;;  %v11632_v36 = vld [vmem:[#allocation9 + $0x5e8] sm:$0xf0] }
  0xd6   :  { %2210 = vmatpush.bf16.msrb.mxu3 %v11155_v59  ;;  %v17346_v59 = vld [vmem:[#allocation6] sm:$0x3f] }
  0xd7   :  { %2197 = vmatpush.bf16.msrb.mxu2 %v10939_v12  ;;  %v310_v61 = vperm.slane %v17346_v59, 0  ;;  %v311_v62 = vperm.slane %v17346_v59, 1  ;;  %v312_v63 = vperm.slane %v17346_v59, 2  ;;  %v313_v4 = vperm.slane %v17346_v59, 3 }
  0xd8   :  { %2169 = vmatpush.bf16.msrb.mxu0 %v11703_v17 }
  0xd9   :  { %2182 = vmatpush.bf16.msrb.mxu1 %v11919_v5 }
  0xda   :  { %2211 = vmatpush.bf16.msrb.mxu3 %v11131_v15 }
  0xdb   :  { %2198 = vmatpush.bf16.msrb.mxu2 %v10915_v30  ;;  %v15678_v30 = vld [vmem:[#allocation9 + $0x454] sm:$0xf] }
  0xdc   :  { %2170 = vmatpush.bf16.msrb.mxu0 %v11679_v26 }
  0xdd   :  { %2183 = vmatpush.bf16.msrb.mxu1 %v11895_v9 }
  0xde   :  { %2212 = vmatpush.bf16.msrb.mxu3 %v11107_v3 }
  0xdf   :  { %2199 = vmatpush.bf16.msrb.mxu2 %v10891_v42 }
  0xe0   :  { %2171 = vmatpush.bf16.msrb.mxu0 %v11655_v37 }
  0xe1   :  { %2184 = vmatpush.bf16.msrb.mxu1 %v11871_v29 }
  0xe2   :  { %2213 = vmatpush.bf16.msrb.mxu3 %v11083_v45  ;;  %v11443_v45 = vor.u32 %v15678_v30, %v11440_v34  ;;  %v15660_v30 = vld [vmem:[#allocation9 + $0x3c4] sm:$0xf] }
  0xe5   :  { %2185 = vmatpush.bf16.msrb.mxu1 %v11847_v10  ;;  %v15774_v10 = vld [vmem:[#allocation9 + $0x754] sm:$0xf] }
 0x131   :  { %v264_v16 = vpop.xlane.xlu1 %263 }
 0x132   :  { %v272_v25 = vmul.f32 %v264_v16, %v17280_v49  ;;  %v336_v16 = vperm.slane %v17354_v8, 0 }
 0x134   :  { %v274_v33 = vadd.f32 1e-05, %v272_v25 }
 0x136   :  { %16712 = vrsqrt.f32 %v274_v33  ;;  %vm282_vm2 = vweird.f32 %v274_v33 }
 0x139   :  { %v271_v46 = vpop.xlane.xlu1 %270 }
 0x13a   :  { %v273_v47 = vmul.f32 %v271_v46, %v17280_v49  ;;  %v11635_v46 = vor.u32 %v15726_v35, %v11632_v36  ;;  %v11752_v35 = vld [vmem:[#allocation9 + $0x6d8] sm:$0xf0]  ;;  %v15804_v36 = vld [vmem:[#allocation9 + $0x844] sm:$0xf] }
 0x13c   :  { %v16713_v48 = vpop.eup %16712  ;;  %v275_v50 = vadd.f32 1e-05, %v273_v47 }
 0x13d   :  { %v277_v53 = vmul.f32 %v16713_v48, %v274_v33  ;;  %vm283_vm1 = vweird.f32 %v16713_v48 }
 0x13e   :  { %16714 = vrsqrt.f32 %v275_v50  ;;  %vm284_vm3 = vmor %vm282_vm2, %vm283_vm1  ;;  %vm292_vm5 = vweird.f32 %v275_v50 }
 0x13f   :  { %v278_v54 = vmul.f32 %v16713_v48, %v277_v53 }
 0x141   :  { %v279_v56 = vmul.f32 0.5, %v278_v54  ;;  %v15672_v54 = vld [vmem:[#allocation9 + $0x424] sm:$0xf] }
 0x143   :  { %v280_v5 = vsub.f32 1.5, %v279_v56  ;;  %v11416_v56 = vld [vmem:[#allocation9 + $0x438] sm:$0xf0] }
 0x144   :  { %v16715_v6 = vpop.eup %16714 }
 0x145   :  { %v281_v57 = vmul.f32 %v16713_v48, %v280_v5  ;;  %v287_v58 = vmul.f32 %v16715_v6, %v275_v50  ;;  %vm293_vm4 = vweird.f32 %v16715_v6 }
 0x146   :  { %vm294_vm6 = vmor %vm292_vm5, %vm293_vm4 }
 0x147   :  { %v17348_v49 = vsel %vm284_vm3, %v16713_v48, %v281_v57  ;;  %v288_v60 = vmul.f32 %v16715_v6, %v287_v58  ;;  %v15720_v57 = vld [vmem:[#allocation9 + $0x5a4] sm:$0xf]  ;;  %v11608_v58 = vld [vmem:[#allocation9 + $0x5b8] sm:$0xf0] }
 0x148   :  { %v296_v9 = vmul.f32 %v17348_v49, %v17284_v19  ;;  %v297_v12 = vmul.f32 %v17348_v49, %v17287_v21  ;;  %v298_v13 = vmul.f32 %v17348_v49, %v17290_v22  ;;  %v299_v20 = vmul.f32 %v17348_v49, %v17293_v27 }
 0x149   :  { %v289_v17 = vmul.f32 0.5, %v288_v60  ;;  %v339_v19 = vperm.slane %v17354_v8, 3  ;;  %v15768_v60 = vld [vmem:[#allocation9 + $0x724] sm:$0xf] }
 0x14a   :  { %v322_v25 = vmul.f32 %v310_v61, %v296_v9  ;;  %v323_v21 = vmul.f32 %v311_v62, %v297_v12  ;;  %v324_v26 = vmul.f32 %v312_v63, %v298_v13  ;;  %v325_v28 = vmul.f32 %v313_v4, %v299_v20 }
 0x14b   :  { %v290_v15 = vsub.f32 1.5, %v289_v17  ;;  %v11992_v17 = vld [vmem:[#allocation9 + $0x8b8] sm:$0xf0]  ;;  %v315_v9 = vperm.slane %v17346_v59, 5  ;;  %v11611_v20 = vor.u32 %v15720_v57, %v11608_v58 }
 0x14c   :  { %v348_v37 = vadd.f32 %v336_v16, %v322_v25  ;;  %v349_v38 = vadd.f32 %v337_v23, %v323_v21  ;;  %v350_v39 = vadd.f32 %v338_v24, %v324_v26  ;;  %v351_v40 = vadd.f32 %v339_v19, %v325_v28  ;;  %v15762_v25 = vld [vmem:[#allocation9 + $0x6f4] sm:$0xf]  ;;  %v11968_v26 = vld [vmem:[#allocation9 + $0x888] sm:$0xf0] }
 0x14d   :  { %v291_v18 = vmul.f32 %v16715_v6, %v290_v15  ;;  %v15666_v15 = vld [vmem:[#allocation9 + $0x3f4] sm:$0xf]  ;;  %v300_v21 = vmul.f32 %v17348_v49, %v17300_v2  ;;  %v340_v28 = vperm.slane %v17354_v8, 4 }
 0x14f   :  { %v295_v22 = vsel %vm294_vm6, %v16715_v6, %v291_v18 }
 0x150   :  { %v302_v0 = vmul.f32 %v295_v22, %v17313_v14  ;;  %v303_v27 = vmul.f32 %v295_v22, %v17316_v51  ;;  %v304_v1 = vmul.f32 %v295_v22, %v17319_v52  ;;  %v305_v29 = vmul.f32 %v295_v22, %v17324_v55  ;;  %v11824_v52 = vld [vmem:[#allocation9 + $0x768] sm:$0xf0] }
 0x151   :  { %v12016_v55 = vld [vmem:[#allocation9 + $0x8e8] sm:$0xf0]  ;;  %v11827_v5 = vor.u32 %v15774_v10, %v11824_v52  ;;  %v306_v12 = vmul.f32 %v295_v22, %v17331_v7  ;;  %v307_v13 = vmul.f32 %v295_v22, %v17336_v11  ;;  %v301_v7 = vmul.f32 %v17348_v49, %v17305_v41  ;;  %v15810_v11 = vld [vmem:[#allocation9 + $0x874] sm:$0xf]  ;;  %v15708_v41 = vld [vmem:[#allocation9 + $0x544] sm:$0xf] }
 0x152   :  { %v328_v31 = vmul.f32 %v310_v61, %v302_v0  ;;  %v329_v32 = vmul.f32 %v311_v62, %v303_v27  ;;  %v330_v33 = vmul.f32 %v312_v63, %v304_v1  ;;  %v331_v3 = vmul.f32 %v313_v4, %v305_v29  ;;  %v11800_v61 = vld [vmem:[#allocation9 + $0x738] sm:$0xf0]  ;;  %v15816_v62 = vld [vmem:[#allocation9 + $0x8a4] sm:$0xf]  ;;  %v15654_v10 = vld [vmem:[#allocation9 + $0x394] sm:$0xf] }
 0x153   :  { %v12019_v6 = vor.u32 %v15822_v44, %v12016_v55  ;;  %v314_v63 = vperm.slane %v17346_v59, 4  ;;  %v11419_v4 = vor.u32 %v15672_v54, %v11416_v56  ;;  %v11803_v18 = vor.u32 %v15768_v60, %v11800_v61  ;;  %v11776_v59 = vld [vmem:[#allocation9 + $0x708] sm:$0xf0]  ;;  %v11560_v49 = vld [vmem:[#allocation9 + $0x558] sm:$0xf0] }
 0x154   :  { %v354_v14 = vadd.f32 %v336_v16, %v328_v31  ;;  %v355_v42 = vadd.f32 %v337_v23, %v329_v32  ;;  %v356_v51 = vadd.f32 %v338_v24, %v330_v33  ;;  %v357_v43 = vadd.f32 %v339_v19, %v331_v3  ;;  %v11392_v16 = vld [vmem:[#allocation9 + $0x408] sm:$0xf0]  ;;  %v15714_v24 = vld [vmem:[#allocation9 + $0x574] sm:$0xf]  ;;  %v11368_v31 = vld [vmem:[#allocation9 + $0x3d8] sm:$0xf0] }
 0x155   :  { %v11995_v23 = vor.u32 %v15816_v62, %v11992_v17  ;;  %v11584_v19 = vld [vmem:[#allocation9 + $0x588] sm:$0xf0]  ;;  %v11395_v22 = vor.u32 %v15666_v15, %v11392_v16  ;;  %v341_v0 = vperm.slane %v17354_v8, 5  ;;  %v332_v27 = vmul.f32 %v314_v63, %v306_v12  ;;  %v15756_v33 = vld [vmem:[#allocation9 + $0x6c4] sm:$0xf] }
 0x156   :  { %v17372_v47 = vpack.c.bf16 %v354_v14, %v348_v37  ;;  %v17374_v48 = vpack.c.bf16 %v355_v42, %v349_v38  ;;  %v17376_v50 = vpack.c.bf16 %v356_v51, %v350_v39  ;;  %v17378_v53 = vpack.c.bf16 %v357_v43, %v351_v40  ;;  %v11944_v37 = vld [vmem:[#allocation9 + $0x858] sm:$0xf0]  ;;  %v11344_v14 = vld [vmem:[#allocation9 + $0x3a8] sm:$0xf0]  ;;  %v15702_v43 = vld [vmem:[#allocation9 + $0x514] sm:$0xf] }
 0x157   :  { %v333_v1 = vmul.f32 %v315_v9, %v307_v13  ;;  %v11587_v29 = vor.u32 %v15714_v24, %v11584_v19  ;;  %v11779_v2 = vor.u32 %v15762_v25, %v11776_v59  ;;  %v11971_v32 = vor.u32 %v15810_v11, %v11968_v26  ;;  %v11536_v52 = vld [vmem:[#allocation9 + $0x528] sm:$0xf0]  ;;  %v15750_v44 = vld [vmem:[#allocation9 + $0x694] sm:$0xf]  ;;  %v15648_v60 = vld [vmem:[#allocation9 + $0x364] sm:$0xf] }
 0x158   :  { %2116 = vmatmul.bf16.vlgmr.msra.gmra.mxu0 %v17372_v47  ;;  %2130 = vmatmul.bf16.vlgmr.msra.gmra.mxu1 %v17374_v48  ;;  %v326_v3 = vmul.f32 %v314_v63, %v300_v21  ;;  %v327_v34 = vmul.f32 %v315_v9, %v301_v7  ;;  %v11371_v8 = vor.u32 %v15660_v30, %v11368_v31  ;;  %v15798_v54 = vld [vmem:[#allocation9 + $0x814] sm:$0xf]  ;;  %v11920_v56 = vld [vmem:[#allocation9 + $0x828] sm:$0xf0]  ;;  %v11320_v61 = vld [vmem:[#allocation9 + $0x378] sm:$0xf0] }
 0x159   :  { %2144 = vmatmul.bf16.vlgmr.msra.gmra.mxu2 %v17376_v50  ;;  %2158 = vmatmul.bf16.vlgmr.msra.gmra.mxu3 %v17378_v53  ;;  %v358_v38 = vadd.f32 %v340_v28, %v332_v27  ;;  %v359_v39 = vadd.f32 %v341_v0, %v333_v1  ;;  %v11563_v40 = vor.u32 %v15708_v41, %v11560_v49  ;;  %v15696_v63 = vld [vmem:[#allocation9 + $0x4e4] sm:$0xf]  ;;  %v11704_v12 = vld [vmem:[#allocation9 + $0x678] sm:$0xf0]  ;;  %v15690_v25 = vld [vmem:[#allocation9 + $0x4b4] sm:$0xf] }
 0x15a   :  { %2220 = vmatpush.bf16.msra.mxu0 %v11443_v45  ;;  %2234 = vmatpush.bf16.msra.mxu1 %v11635_v46  ;;  %v11755_v42 = vor.u32 %v15756_v33, %v11752_v35  ;;  %v11947_v51 = vor.u32 %v15804_v36, %v11944_v37  ;;  %v352_v55 = vadd.f32 %v340_v28, %v326_v3  ;;  %v11728_v46 = vld [vmem:[#allocation9 + $0x6a8] sm:$0xf0]  ;;  %v15744_v9 = vld [vmem:[#allocation9 + $0x664] sm:$0xf]  ;;  %v15738_v7 = vld [vmem:[#allocation9 + $0x634] sm:$0xf] }
 0x15b   :  { %2248 = vmatpush.bf16.msra.mxu2 %v11827_v5  ;;  %2262 = vmatpush.bf16.msra.mxu3 %v12019_v6  ;;  %v353_v45 = vadd.f32 %v341_v0, %v327_v34  ;;  %v11347_v5 = vor.u32 %v15654_v10, %v11344_v14  ;;  %v11539_v58 = vor.u32 %v15702_v43, %v11536_v52  ;;  %v15792_v13 = vld [vmem:[#allocation9 + $0x7e4] sm:$0xf]  ;;  %v11488_v21 = vld [vmem:[#allocation9 + $0x4c8] sm:$0xf0]  ;;  %v15786_v11 = vld [vmem:[#allocation9 + $0x7b4] sm:$0xf] }
 0x15c   :  { %v17394_v6 = vpack.c.bf16 %v358_v38, %v352_v55  ;;  %v11731_v62 = vor.u32 %v15750_v44, %v11728_v46  ;;  %v11923_v17 = vor.u32 %v15798_v54, %v11920_v56  ;;  %v11323_v15 = vor.u32 %v15648_v60, %v11320_v61  ;;  %v11680_v59 = vld [vmem:[#allocation9 + $0x648] sm:$0xf0]  ;;  %v15636_v28 = vld [vmem:[#allocation9 + $0x304] sm:$0xf]  ;;  %v11272_v27 = vld [vmem:[#allocation9 + $0x318] sm:$0xf0] }
 0x15d   :  { %v17396_v57 = vpack.c.bf16 %v359_v39, %v353_v45  ;;  %v11707_v24 = vor.u32 %v15744_v9, %v11704_v12  ;;  %v11872_v26 = vld [vmem:[#allocation9 + $0x7c8] sm:$0xf0]  ;;  %v11491_v0 = vor.u32 %v15690_v25, %v11488_v21  ;;  %v15684_v1 = vld [vmem:[#allocation9 + $0x484] sm:$0xf]  ;;  %v11683_v30 = vor.u32 %v15738_v7, %v11680_v59  ;;  %v11848_v49 = vld [vmem:[#allocation9 + $0x798] sm:$0xf0] }
 0x15e   :  { %2221 = vmatpush.bf16.msra.mxu0 %v11419_v4  ;;  %2235 = vmatpush.bf16.msra.mxu1 %v11611_v20  ;;  %v11512_v4 = vld [vmem:[#allocation9 + $0x4f8] sm:$0xf0]  ;;  %v11875_v31 = vor.u32 %v15786_v11, %v11872_v26  ;;  %v15780_v41 = vld [vmem:[#allocation9 + $0x784] sm:$0xf]  ;;  %v11062_v33 = vld [vmem:[#allocation9 + $0x158] sm:$0xf]  ;;  %v11275_v37 = vor.u32 %v15636_v28, %v11272_v27 }
 0x15f   :  { %2249 = vmatpush.bf16.msra.mxu2 %v11803_v18  ;;  %2263 = vmatpush.bf16.msra.mxu3 %v11995_v23  ;;  %v11896_v20 = vld [vmem:[#allocation9 + $0x7f8] sm:$0xf0]  ;;  %v11515_v16 = vor.u32 %v15696_v63, %v11512_v4  ;;  %v15642_v18 = vld [vmem:[#allocation9 + $0x334] sm:$0xf]  ;;  %v11296_v23 = vld [vmem:[#allocation9 + $0x348] sm:$0xf0]  ;;  %v11851_v14 = vor.u32 %v15780_v41, %v11848_v49 }
 0x160   :  { %v11899_v19 = vor.u32 %v15792_v13, %v11896_v20  ;;  %v15586_v3 = vld [vmem:[#allocation9 + $0x16c] sm:$0xf0]  ;;  %v11254_v34 = vld [vmem:[#allocation9 + $0x2d8] sm:$0xf]  ;;  %v11038_v43 = vld [vmem:[#allocation9 + $0x128] sm:$0xf] }
 0x161   :  { %v15634_v35 = vld [vmem:[#allocation9 + $0x2ec] sm:$0xf0]  ;;  %v11446_v36 = vld [vmem:[#allocation9 + $0x458] sm:$0xf]  ;;  %v15580_v52 = vld [vmem:[#allocation9 + $0x13c] sm:$0xf0] }
 0x162   :  { %2222 = vmatpush.bf16.msra.mxu0 %v11395_v22  ;;  %2236 = vmatpush.bf16.msra.mxu1 %v11587_v29  ;;  %v11299_v22 = vor.u32 %v15642_v18, %v11296_v23  ;;  %v11464_v29 = vld [vmem:[#allocation9 + $0x498] sm:$0xf0]  ;;  %v15682_v38 = vld [vmem:[#allocation9 + $0x46c] sm:$0xf0]  ;;  %v11638_v39 = vld [vmem:[#allocation9 + $0x5d8] sm:$0xf]  ;;  %v11039_v60 = vor.u32 %v15580_v52, %v11038_v43 }
 0x163   :  { %2250 = vmatpush.bf16.msra.mxu2 %v11779_v2  ;;  %2264 = vmatpush.bf16.msra.mxu3 %v11971_v32  ;;  %v15732_v2 = vld [vmem:[#allocation9 + $0x604] sm:$0xf]  ;;  %v11656_v32 = vld [vmem:[#allocation9 + $0x618] sm:$0xf0]  ;;  %v11447_v44 = vor.u32 %v15682_v38, %v11446_v36  ;;  %v11230_v45 = vld [vmem:[#allocation9 + $0x2a8] sm:$0xf] }
 0x164   :  { %v11659_v10 = vor.u32 %v15732_v2, %v11656_v32  ;;  %v15628_v46 = vld [vmem:[#allocation9 + $0x2bc] sm:$0xf0]  ;;  %v11422_v54 = vld [vmem:[#allocation9 + $0x428] sm:$0xf]  ;;  %v11206_v9 = vld [vmem:[#allocation9 + $0x278] sm:$0xf] }
 0x165   :  { %v15676_v56 = vld [vmem:[#allocation9 + $0x43c] sm:$0xf0]  ;;  %v11231_v61 = vor.u32 %v15628_v46, %v11230_v45  ;;  %v15622_v12 = vld [vmem:[#allocation9 + $0x28c] sm:$0xf0]  ;;  %v11398_v13 = vld [vmem:[#allocation9 + $0x3f8] sm:$0xf] }
 0x166   :  { %2223 = vmatpush.bf16.msra.mxu0 %v11371_v8  ;;  %2237 = vmatpush.bf16.msra.mxu1 %v11563_v40  ;;  %v11467_v8 = vor.u32 %v15684_v1, %v11464_v29  ;;  %v15730_v40 = vld [vmem:[#allocation9 + $0x5ec] sm:$0xf0]  ;;  %v11423_v63 = vor.u32 %v15676_v56, %v11422_v54  ;;  %v11207_v23 = vor.u32 %v15622_v12, %v11206_v9  ;;  %v11182_v7 = vld [vmem:[#allocation9 + $0x248] sm:$0xf]  ;;  %v15616_v59 = vld [vmem:[#allocation9 + $0x25c] sm:$0xf0] }
 0x167   :  { %2251 = vmatpush.bf16.msra.mxu2 %v11755_v42  ;;  %2265 = vmatpush.bf16.msra.mxu3 %v11947_v51  ;;  %v11063_v42 = vor.u32 %v15586_v3, %v11062_v33  ;;  %v11255_v51 = vor.u32 %v15634_v35, %v11254_v34  ;;  %v11639_v55 = vor.u32 %v15730_v40, %v11638_v39  ;;  %v15670_v20 = vld [vmem:[#allocation9 + $0x40c] sm:$0xf0]  ;;  %v11374_v11 = vld [vmem:[#allocation9 + $0x3c8] sm:$0xf]  ;;  %v15664_v26 = vld [vmem:[#allocation9 + $0x3dc] sm:$0xf0] }
 0x168   :  { %2172 = vmatmul.bf16.vlgmr.msrb.gmra.mxu0 %v17394_v6  ;;  %2186 = vmatmul.bf16.vlgmr.msrb.gmra.mxu1 %v17396_v57  ;;  %v11399_v25 = vor.u32 %v15670_v20, %v11398_v13  ;;  %v11566_v28 = vld [vmem:[#allocation9 + $0x548] sm:$0xf]  ;;  %v11183_v27 = vor.u32 %v15616_v59, %v11182_v7  ;;  %v10966_v1 = vld [vmem:[#allocation9 + $0x98] sm:$0xf]  ;;  %v15562_v29 = vld [vmem:[#allocation9 + $0xac] sm:$0xf0] }
 0x169   :  { %2200 = vmatmul.bf16.vlgmr.msrb.gmra.mxu2 %v17372_v47  ;;  %2214 = vmatmul.bf16.vlgmr.msrb.gmra.mxu3 %v17374_v48  ;;  %v11158_v2 = vld [vmem:[#allocation9 + $0x218] sm:$0xf]  ;;  %v15610_v32 = vld [vmem:[#allocation9 + $0x22c] sm:$0xf0]  ;;  %v10967_v34 = vor.u32 %v15562_v29, %v10966_v1  ;;  %v10942_v36 = vld [vmem:[#allocation9 + $0x68] sm:$0xf] }
 0x16a   :  { %2224 = vmatpush.bf16.msra.mxu0 %v11347_v5  ;;  %2238 = vmatpush.bf16.msra.mxu1 %v11539_v58  ;;  %v11614_v5 = vld [vmem:[#allocation9 + $0x5a8] sm:$0xf]  ;;  %v15724_v58 = vld [vmem:[#allocation9 + $0x5bc] sm:$0xf0]  ;;  %v11350_v41 = vld [vmem:[#allocation9 + $0x398] sm:$0xf]  ;;  %v11159_v35 = vor.u32 %v15610_v32, %v11158_v2 }
 0x16b   :  { %2252 = vmatpush.bf16.msra.mxu2 %v11731_v62  ;;  %2266 = vmatpush.bf16.msra.mxu3 %v11923_v17  ;;  %v11014_v62 = vld [vmem:[#allocation9 + $0xf8] sm:$0xf]  ;;  %v15574_v17 = vld [vmem:[#allocation9 + $0x10c] sm:$0xf0]  ;;  %v11615_v4 = vor.u32 %v15724_v58, %v11614_v5  ;;  %v11134_v39 = vld [vmem:[#allocation9 + $0x1e8] sm:$0xf] }
 0x16c   :  { %v11015_v18 = vor.u32 %v15574_v17, %v11014_v62  ;;  %v15658_v49 = vld [vmem:[#allocation9 + $0x3ac] sm:$0xf0]  ;;  %v11542_v33 = vld [vmem:[#allocation9 + $0x518] sm:$0xf]  ;;  %v15604_v40 = vld [vmem:[#allocation9 + $0x1fc] sm:$0xf0] }
 0x16d   :  { %v15706_v3 = vld [vmem:[#allocation9 + $0x52c] sm:$0xf0]  ;;  %v11135_v52 = vor.u32 %v15604_v40, %v11134_v39  ;;  %v11110_v54 = vld [vmem:[#allocation9 + $0x1b8] sm:$0xf]  ;;  %v10894_v62 = vld [vmem:[#allocation9 + $0x8] sm:$0xf] }
 0x16e   :  { %2225 = vmatpush.bf16.msra.mxu0 %v11323_v15  ;;  %2239 = vmatpush.bf16.msra.mxu1 %v11515_v16  ;;  %v11590_v15 = vld [vmem:[#allocation9 + $0x578] sm:$0xf]  ;;  %v15718_v16 = vld [vmem:[#allocation9 + $0x58c] sm:$0xf0]  ;;  %v11543_v38 = vor.u32 %v15706_v3, %v11542_v33  ;;  %v11086_v9 = vld [vmem:[#allocation9 + $0x188] sm:$0xf] }
 0x16f   :  { %2253 = vmatpush.bf16.msra.mxu2 %v11707_v24  ;;  %2267 = vmatpush.bf16.msra.mxu3 %v11899_v19  ;;  %v10990_v24 = vld [vmem:[#allocation9 + $0xc8] sm:$0xf]  ;;  %v15568_v19 = vld [vmem:[#allocation9 + $0xdc] sm:$0xf0]  ;;  %v11591_v21 = vor.u32 %v15718_v16, %v11590_v15  ;;  %v15598_v56 = vld [vmem:[#allocation9 + $0x1cc] sm:$0xf0] }
 0x170   :  { %v11302_v5 = vld [vmem:[#allocation9 + $0x338] sm:$0xf]  ;;  %v15646_v58 = vld [vmem:[#allocation9 + $0x34c] sm:$0xf0]  ;;  %v15592_v12 = vld [vmem:[#allocation9 + $0x19c] sm:$0xf0] }
 0x171   :  { %v11303_v13 = vor.u32 %v15646_v58, %v11302_v5  ;;  %v11278_v15 = vld [vmem:[#allocation9 + $0x308] sm:$0xf]  ;;  %v15640_v16 = vld [vmem:[#allocation9 + $0x31c] sm:$0xf0]  ;;  %v15583_v7 = vld [vmem:[#allocation9 + $0x15c] sm:$0xf] }
 0x172   :  { %2226 = vmatpush.bf16.msra.mxu0 %v11299_v22  ;;  %2240 = vmatpush.bf16.msra.mxu1 %v11491_v0  ;;  %v15712_v22 = vld [vmem:[#allocation9 + $0x55c] sm:$0xf0]  ;;  %v10991_v0 = vor.u32 %v15568_v19, %v10990_v24  ;;  %v11830_v24 = vld [vmem:[#allocation9 + $0x758] sm:$0xf]  ;;  %v15778_v19 = vld [vmem:[#allocation9 + $0x76c] sm:$0xf0] }
 0x173   :  { %2254 = vmatpush.bf16.msra.mxu2 %v11683_v30  ;;  %2268 = vmatpush.bf16.msra.mxu3 %v11875_v31  ;;  %v11375_v30 = vor.u32 %v15664_v26, %v11374_v11  ;;  %v11567_v31 = vor.u32 %v15712_v22, %v11566_v28  ;;  %v11087_v11 = vor.u32 %v15592_v12, %v11086_v9  ;;  %v11064_v26 = vld [vmem:[#allocation9 + $0x170] sm:$0xf0]  ;;  %v15631_v28 = vld [vmem:[#allocation9 + $0x2dc] sm:$0xf]  ;;  %v15577_v33 = vld [vmem:[#allocation9 + $0x12c] sm:$0xf] }
 0x174   :  { %v11256_v22 = vld [vmem:[#allocation9 + $0x2f0] sm:$0xf0]  ;;  %v11831_v1 = vor.u32 %v15778_v19, %v11830_v24  ;;  %v11067_v2 = vor.u32 %v15583_v7, %v11064_v26  ;;  %v11040_v3 = vld [vmem:[#allocation9 + $0x140] sm:$0xf0]  ;;  %v11950_v5 = vld [vmem:[#allocation9 + $0x848] sm:$0xf] }
 0x175   :  { %v11259_v32 = vor.u32 %v15631_v28, %v11256_v22  ;;  %v11043_v39 = vor.u32 %v15577_v33, %v11040_v3  ;;  %v15808_v58 = vld [vmem:[#allocation9 + $0x85c] sm:$0xf0]  ;;  %v11734_v9 = vld [vmem:[#allocation9 + $0x698] sm:$0xf]  ;;  %v15754_v12 = vld [vmem:[#allocation9 + $0x6ac] sm:$0xf0] }
 0x176   :  { %2227 = vmatpush.bf16.msra.mxu0 %v11275_v37  ;;  %2241 = vmatpush.bf16.msra.mxu1 %v11467_v8  ;;  %v15556_v37 = vld [vmem:[#allocation9 + $0x7c] sm:$0xf0]  ;;  %v11351_v8 = vor.u32 %v15658_v49, %v11350_v41  ;;  %v11998_v41 = vld [vmem:[#allocation9 + $0x8a8] sm:$0xf]  ;;  %v15607_v24 = vld [vmem:[#allocation9 + $0x21c] sm:$0xf] }
 0x177   :  { %2255 = vmatpush.bf16.msra.mxu2 %v11659_v10  ;;  %2269 = vmatpush.bf16.msra.mxu3 %v11851_v14  ;;  %v11326_v10 = vld [vmem:[#allocation9 + $0x368] sm:$0xf]  ;;  %v15652_v14 = vld [vmem:[#allocation9 + $0x37c] sm:$0xf0]  ;;  %v10943_v43 = vor.u32 %v15556_v37, %v10942_v36  ;;  %v11160_v19 = vld [vmem:[#allocation9 + $0x230] sm:$0xf0] }
 0x178   :  { %v11327_v45 = vor.u32 %v15652_v14, %v11326_v10  ;;  %v15820_v49 = vld [vmem:[#allocation9 + $0x8bc] sm:$0xf0]  ;;  %v11974_v10 = vld [vmem:[#allocation9 + $0x878] sm:$0xf]  ;;  %v15814_v14 = vld [vmem:[#allocation9 + $0x88c] sm:$0xf0]  ;;  %v11163_v26 = vor.u32 %v15607_v24, %v11160_v19 }
 0x179   :  { %2228 = vmatmul.bf16.vlgmr.msra.gmra.mxu0 %v17376_v50  ;;  %2242 = vmatmul.bf16.vlgmr.msra.gmra.mxu1 %v17378_v53  ;;  %v11999_v37 = vor.u32 %v15820_v49, %v11998_v41  ;;  %v11710_v7 = vld [vmem:[#allocation9 + $0x668] sm:$0xf]  ;;  %v15796_v22 = vld [vmem:[#allocation9 + $0x7fc] sm:$0xf0]  ;;  %v11878_v33 = vld [vmem:[#allocation9 + $0x7b8] sm:$0xf] }
 0x17a   :  { %2276 = vmatpush.bf16.msrb.mxu0 %v11063_v42  ;;  %2290 = vmatpush.bf16.msrb.mxu1 %v11255_v51  ;;  %v11518_v42 = vld [vmem:[#allocation9 + $0x4e8] sm:$0xf]  ;;  %v15700_v51 = vld [vmem:[#allocation9 + $0x4fc] sm:$0xf0]  ;;  %v15790_v3 = vld [vmem:[#allocation9 + $0x7cc] sm:$0xf0] }
 0x17b   :  { %2304 = vmatpush.bf16.msrb.mxu2 %v11447_v44  ;;  %2318 = vmatpush.bf16.msrb.mxu3 %v11639_v55  ;;  %v10918_v44 = vld [vmem:[#allocation9 + $0x38] sm:$0xf]  ;;  %v15550_v55 = vld [vmem:[#allocation9 + $0x4c] sm:$0xf0]  ;;  %v11519_v46 = vor.u32 %v15700_v51, %v11518_v42  ;;  %v15571_v42 = vld [vmem:[#allocation9 + $0xfc] sm:$0xf] }
 0x17c   :  { %2256 = vmatmul.bf16.vlgmr.msra.gmra.mxu2 %v17394_v6  ;;  %2270 = vmatmul.bf16.vlgmr.msra.gmra.mxu3 %v17396_v57  ;;  %v10919_v17 = vor.u32 %v15550_v55, %v10918_v44  ;;  %v11016_v51 = vld [vmem:[#allocation9 + $0x110] sm:$0xf0]  ;;  %v11975_v55 = vor.u32 %v15814_v14, %v11974_v10  ;;  %v11902_v28 = vld [vmem:[#allocation9 + $0x7e8] sm:$0xf]  ;;  %v15784_v14 = vld [vmem:[#allocation9 + $0x79c] sm:$0xf0] }
 0x17d   :  { %v11854_v10 = vld [vmem:[#allocation9 + $0x788] sm:$0xf]  ;;  %v15769_v24 = vld [vmem:[#allocation9 + $0x72c] sm:$0xf]  ;;  %v11808_v19 = vld [vmem:[#allocation9 + $0x740] sm:$0xf0] }
 0x17e   :  { %2277 = vmatpush.bf16.msrb.mxu0 %v11039_v60  ;;  %2291 = vmatpush.bf16.msrb.mxu1 %v11231_v61  ;;  %v11494_v60 = vld [vmem:[#allocation9 + $0x4b8] sm:$0xf]  ;;  %v15694_v61 = vld [vmem:[#allocation9 + $0x4cc] sm:$0xf0] }
 0x17f   :  { %2305 = vmatpush.bf16.msrb.mxu2 %v11423_v63  ;;  %2319 = vmatpush.bf16.msrb.mxu3 %v11615_v4  ;;  %v11111_v63 = vor.u32 %v15598_v56, %v11110_v54  ;;  %v15544_v4 = vld [vmem:[#allocation9 + $0x1c] sm:$0xf0]  ;;  %v11495_v20 = vor.u32 %v15694_v61, %v11494_v60  ;;  %v11019_v54 = vor.u32 %v15571_v42, %v11016_v51  ;;  %v15565_v60 = vld [vmem:[#allocation9 + $0xcc] sm:$0xf]  ;;  %v10992_v61 = vld [vmem:[#allocation9 + $0xe0] sm:$0xf0] }
 0x180   :  { %v10895_v59 = vor.u32 %v15544_v4, %v10894_v62  ;;  %v15613_v62 = vld [vmem:[#allocation9 + $0x24c] sm:$0xf]  ;;  %v11951_v4 = vor.u32 %v15808_v58, %v11950_v5  ;;  %v15775_v5 = vld [vmem:[#allocation9 + $0x75c] sm:$0xf] }
 0x182   :  { %2278 = vmatpush.bf16.msrb.mxu0 %v11015_v18  ;;  %2292 = vmatpush.bf16.msrb.mxu1 %v11207_v23  ;;  %v11470_v18 = vld [vmem:[#allocation9 + $0x488] sm:$0xf]  ;;  %v15688_v23 = vld [vmem:[#allocation9 + $0x49c] sm:$0xf0] }
 0x183   :  { %2306 = vmatpush.bf16.msrb.mxu2 %v11399_v25  ;;  %2320 = vmatpush.bf16.msrb.mxu3 %v11591_v21  ;;  %v12022_v25 = vld [vmem:[#allocation9 + $0x8d8] sm:$0xf]  ;;  %v15826_v21 = vld [vmem:[#allocation9 + $0x8ec] sm:$0xf0] }
 0x184   :  { %v12023_v29 = vor.u32 %v15826_v21, %v12022_v25  ;;  %v11735_v25 = vor.u32 %v15754_v12, %v11734_v9 }
 0x186   :  { %2279 = vmatpush.bf16.msrb.mxu0 %v10991_v0  ;;  %2293 = vmatpush.bf16.msrb.mxu1 %v11183_v27  ;;  %v11279_v0 = vor.u32 %v15640_v16, %v11278_v15  ;;  %v11471_v27 = vor.u32 %v15688_v23, %v11470_v18  ;;  %v11926_v15 = vld [vmem:[#allocation9 + $0x818] sm:$0xf]  ;;  %v15802_v16 = vld [vmem:[#allocation9 + $0x82c] sm:$0xf0]  ;;  %v15559_v18 = vld [vmem:[#allocation9 + $0x9c] sm:$0xf] }
 0x187   :  { %2307 = vmatpush.bf16.msrb.mxu2 %v11375_v30  ;;  %2321 = vmatpush.bf16.msrb.mxu3 %v11567_v31  ;;  %v11806_v30 = vld [vmem:[#allocation9 + $0x728] sm:$0xf]  ;;  %v15772_v31 = vld [vmem:[#allocation9 + $0x73c] sm:$0xf0]  ;;  %v10968_v23 = vld [vmem:[#allocation9 + $0xb0] sm:$0xf0]  ;;  %v11927_v21 = vor.u32 %v15802_v16, %v11926_v15 }
 0x188   :  { %v11807_v36 = vor.u32 %v15772_v31, %v11806_v30  ;;  %v11903_v31 = vor.u32 %v15796_v22, %v11902_v28  ;;  %v11811_v28 = vor.u32 %v15769_v24, %v11808_v19  ;;  %v15691_v24 = vld [vmem:[#allocation9 + $0x4bc] sm:$0xf]  ;;  %v11496_v19 = vld [vmem:[#allocation9 + $0x4d0] sm:$0xf0] }
 0x18a   :  { %2280 = vmatpush.bf16.msrb.mxu0 %v10967_v34  ;;  %2294 = vmatpush.bf16.msrb.mxu1 %v11159_v35  ;;  %v15625_v34 = vld [vmem:[#allocation9 + $0x2ac] sm:$0xf]  ;;  %v11232_v35 = vld [vmem:[#allocation9 + $0x2c0] sm:$0xf0] }
 0x18b   :  { %2308 = vmatpush.bf16.msrb.mxu2 %v11351_v8  ;;  %2322 = vmatpush.bf16.msrb.mxu3 %v11543_v38  ;;  %v11782_v8 = vld [vmem:[#allocation9 + $0x6f8] sm:$0xf]  ;;  %v15766_v38 = vld [vmem:[#allocation9 + $0x70c] sm:$0xf0]  ;;  %v11235_v40 = vor.u32 %v15625_v34, %v11232_v35  ;;  %v15547_v34 = vld [vmem:[#allocation9 + $0x3c] sm:$0xf] }
 0x18c   :  { %v11783_v44 = vor.u32 %v15766_v38, %v11782_v8  ;;  %v10920_v35 = vld [vmem:[#allocation9 + $0x50] sm:$0xf0]  ;;  %v11662_v8 = vld [vmem:[#allocation9 + $0x608] sm:$0xf] }
 0x18d   :  { %v10923_v42 = vor.u32 %v15547_v34, %v10920_v35  ;;  %v15709_v34 = vld [vmem:[#allocation9 + $0x54c] sm:$0xf]  ;;  %v11568_v35 = vld [vmem:[#allocation9 + $0x560] sm:$0xf0] }
 0x18e   :  { %2281 = vmatpush.bf16.msrb.mxu0 %v10943_v43  ;;  %2295 = vmatpush.bf16.msrb.mxu1 %v11135_v52  ;;  %v15619_v43 = vld [vmem:[#allocation9 + $0x27c] sm:$0xf]  ;;  %v11208_v52 = vld [vmem:[#allocation9 + $0x290] sm:$0xf0] }
 0x18f   :  { %2309 = vmatpush.bf16.msrb.mxu2 %v11327_v45  ;;  %2323 = vmatpush.bf16.msrb.mxu3 %v11519_v46  ;;  %v11758_v45 = vld [vmem:[#allocation9 + $0x6c8] sm:$0xf]  ;;  %v15760_v46 = vld [vmem:[#allocation9 + $0x6dc] sm:$0xf0]  ;;  %v11211_v56 = vor.u32 %v15619_v43, %v11208_v52  ;;  %v15541_v43 = vld [vmem:[#allocation9 + $0xc] sm:$0xf] }
 0x190   :  { %v10896_v52 = vld [vmem:[#allocation9 + $0x20] sm:$0xf0] }
 0x192   :  { %2282 = vmatpush.bf16.msrb.mxu0 %v10919_v17  ;;  %2296 = vmatpush.bf16.msrb.mxu1 %v11111_v63  ;;  %v11184_v17 = vld [vmem:[#allocation9 + $0x260] sm:$0xf0]  ;;  %v11759_v63 = vor.u32 %v15760_v46, %v11758_v45  ;;  %v15679_v45 = vld [vmem:[#allocation9 + $0x45c] sm:$0xf]  ;;  %v11448_v46 = vld [vmem:[#allocation9 + $0x470] sm:$0xf0] }
 0x193   :  { %2310 = vmatpush.bf16.msrb.mxu2 %v11303_v13  ;;  %2324 = vmatpush.bf16.msrb.mxu3 %v11495_v20  ;;  %v10995_v13 = vor.u32 %v15565_v60, %v10992_v61  ;;  %v11187_v20 = vor.u32 %v15613_v62, %v11184_v17  ;;  %v11855_v60 = vor.u32 %v15784_v14, %v11854_v10  ;;  %v11832_v61 = vld [vmem:[#allocation9 + $0x770] sm:$0xf0]  ;;  %v15823_v62 = vld [vmem:[#allocation9 + $0x8dc] sm:$0xf] }
 0x194   :  { %v12024_v17 = vld [vmem:[#allocation9 + $0x8f0] sm:$0xf0]  ;;  %v11451_v9 = vor.u32 %v15679_v45, %v11448_v46  ;;  %v11835_v15 = vor.u32 %v15775_v5, %v11832_v61  ;;  %v15655_v10 = vld [vmem:[#allocation9 + $0x39c] sm:$0xf]  ;;  %v15649_v5 = vld [vmem:[#allocation9 + $0x36c] sm:$0xf] }
 0x195   :  { %v12027_v16 = vor.u32 %v15823_v62, %v12024_v17  ;;  %v11352_v14 = vld [vmem:[#allocation9 + $0x3b0] sm:$0xf0]  ;;  %v15799_v45 = vld [vmem:[#allocation9 + $0x81c] sm:$0xf]  ;;  %v15697_v62 = vld [vmem:[#allocation9 + $0x4ec] sm:$0xf] }
 0x196   :  { %2283 = vmatpush.bf16.msrb.mxu0 %v10895_v59  ;;  %2297 = vmatpush.bf16.msrb.mxu1 %v11087_v11  ;;  %v15748_v59 = vld [vmem:[#allocation9 + $0x67c] sm:$0xf0]  ;;  %v10971_v11 = vor.u32 %v15559_v18, %v10968_v23  ;;  %v15721_v18 = vld [vmem:[#allocation9 + $0x5ac] sm:$0xf]  ;;  %v11616_v23 = vld [vmem:[#allocation9 + $0x5c0] sm:$0xf0] }
 0x197   :  { %2311 = vmatpush.bf16.msrb.mxu2 %v11279_v0  ;;  %2325 = vmatpush.bf16.msrb.mxu3 %v11471_v27  ;;  %v15553_v0 = vld [vmem:[#allocation9 + $0x6c] sm:$0xf]  ;;  %v10944_v27 = vld [vmem:[#allocation9 + $0x80] sm:$0xf0]  ;;  %v11711_v30 = vor.u32 %v15748_v59, %v11710_v7  ;;  %v11619_v59 = vor.u32 %v15721_v18, %v11616_v23  ;;  %v11928_v46 = vld [vmem:[#allocation9 + $0x830] sm:$0xf0] }
 0x198   :  { %v10947_v41 = vor.u32 %v15553_v0, %v10944_v27  ;;  %v15715_v0 = vld [vmem:[#allocation9 + $0x57c] sm:$0xf]  ;;  %v11592_v27 = vld [vmem:[#allocation9 + $0x590] sm:$0xf0]  ;;  %v11931_v61 = vor.u32 %v15799_v45, %v11928_v46  ;;  %v11520_v17 = vld [vmem:[#allocation9 + $0x500] sm:$0xf0] }
 0x199   :  { %2284 = vmatmul.bf16.vlgmr.msrb.gmra.mxu0 %v17372_v47  ;;  %2298 = vmatmul.bf16.vlgmr.msrb.gmra.mxu1 %v17374_v48  ;;  %v11430_v45 = vld [vmem:[#allocation9 + $0x430] sm:$0xf]  ;;  %v15677_v46 = vld [vmem:[#allocation9 + $0x444] sm:$0xf0] }
 0x19a   :  { %2332 = vmatpush.bf16.msra.mxu0 %v11831_v1  ;;  %2346 = vmatpush.bf16.msra.mxu1 %v12023_v29  ;;  %v15601_v1 = vld [vmem:[#allocation9 + $0x1ec] sm:$0xf]  ;;  %v11136_v29 = vld [vmem:[#allocation9 + $0x200] sm:$0xf0] }
 0x19b   :  { %2360 = vmatpush.bf16.msra.mxu2 %v11067_v2  ;;  %2374 = vmatpush.bf16.msra.mxu3 %v11259_v32  ;;  %v11686_v2 = vld [vmem:[#allocation9 + $0x638] sm:$0xf]  ;;  %v15742_v32 = vld [vmem:[#allocation9 + $0x64c] sm:$0xf0]  ;;  %v11139_v49 = vor.u32 %v15601_v1, %v11136_v29  ;;  %v15763_v1 = vld [vmem:[#allocation9 + $0x6fc] sm:$0xf] }
 0x19c   :  { %2312 = vmatmul.bf16.vlgmr.msrb.gmra.mxu2 %v17376_v50  ;;  %2326 = vmatmul.bf16.vlgmr.msrb.gmra.mxu3 %v17378_v53  ;;  %v11687_v38 = vor.u32 %v15742_v32, %v11686_v2  ;;  %v11784_v29 = vld [vmem:[#allocation9 + $0x710] sm:$0xf0]  ;;  %v11595_v32 = vor.u32 %v15715_v0, %v11592_v27  ;;  %v15685_v0 = vld [vmem:[#allocation9 + $0x48c] sm:$0xf]  ;;  %v11472_v27 = vld [vmem:[#allocation9 + $0x4a0] sm:$0xf0] }
 0x19e   :  { %2333 = vmatpush.bf16.msra.mxu0 %v11807_v36  ;;  %2347 = vmatpush.bf16.msra.mxu1 %v11999_v37  ;;  %v15595_v36 = vld [vmem:[#allocation9 + $0x1bc] sm:$0xf]  ;;  %v11112_v37 = vld [vmem:[#allocation9 + $0x1d0] sm:$0xf0] }
 0x19f   :  { %2361 = vmatpush.bf16.msra.mxu2 %v11043_v39  ;;  %2375 = vmatpush.bf16.msra.mxu3 %v11235_v40  ;;  %v11879_v39 = vor.u32 %v15790_v3, %v11878_v33  ;;  %v15736_v40 = vld [vmem:[#allocation9 + $0x61c] sm:$0xf0]  ;;  %v11115_v51 = vor.u32 %v15595_v36, %v11112_v37  ;;  %v11787_v33 = vor.u32 %v15763_v1, %v11784_v29  ;;  %v15757_v36 = vld [vmem:[#allocation9 + $0x6cc] sm:$0xf]  ;;  %v11760_v37 = vld [vmem:[#allocation9 + $0x6e0] sm:$0xf0] }
 0x1a0   :  { %v11663_v58 = vor.u32 %v15736_v40, %v11662_v8  ;;  %v15805_v8 = vld [vmem:[#allocation9 + $0x84c] sm:$0xf]  ;;  %v11571_v40 = vor.u32 %v15709_v34, %v11568_v35  ;;  %v11454_v34 = vld [vmem:[#allocation9 + $0x460] sm:$0xf] }
 0x1a2   :  { %2334 = vmatpush.bf16.msra.mxu0 %v11783_v44  ;;  %2348 = vmatpush.bf16.msra.mxu1 %v11975_v55  ;;  %v15589_v44 = vld [vmem:[#allocation9 + $0x18c] sm:$0xf]  ;;  %v11088_v55 = vld [vmem:[#allocation9 + $0x1a0] sm:$0xf0] }
 0x1a3   :  { %2362 = vmatpush.bf16.msra.mxu2 %v11019_v54  ;;  %2376 = vmatpush.bf16.msra.mxu3 %v11211_v56  ;;  %v15727_v54 = vld [vmem:[#allocation9 + $0x5dc] sm:$0xf]  ;;  %v11640_v56 = vld [vmem:[#allocation9 + $0x5f0] sm:$0xf0] }
 0x1a4   :  { %v11643_v12 = vor.u32 %v15727_v54, %v11640_v56  ;;  %v11355_v54 = vor.u32 %v15655_v10, %v11352_v14 }
 0x1a6   :  { %2335 = vmatpush.bf16.msra.mxu0 %v11759_v63  ;;  %2349 = vmatpush.bf16.msra.mxu1 %v11951_v4  ;;  %v10899_v63 = vor.u32 %v15541_v43, %v10896_v52  ;;  %v11091_v4 = vor.u32 %v15589_v44, %v11088_v55  ;;  %v15703_v43 = vld [vmem:[#allocation9 + $0x51c] sm:$0xf]  ;;  %v11544_v52 = vld [vmem:[#allocation9 + $0x530] sm:$0xf0] }
 0x1a7   :  { %2363 = vmatpush.bf16.msra.mxu2 %v10995_v13  ;;  %2377 = vmatpush.bf16.msra.mxu3 %v11187_v20  ;;  %v15673_v13 = vld [vmem:[#allocation9 + $0x42c] sm:$0xf]  ;;  %v11424_v20 = vld [vmem:[#allocation9 + $0x440] sm:$0xf0]  ;;  %v15751_v44 = vld [vmem:[#allocation9 + $0x69c] sm:$0xf]  ;;  %v11547_v56 = vor.u32 %v15703_v43, %v11544_v52 }
 0x1a8   :  { %v11427_v7 = vor.u32 %v15673_v13, %v11424_v20  ;;  %v11736_v55 = vld [vmem:[#allocation9 + $0x6b0] sm:$0xf0]  ;;  %v11523_v20 = vor.u32 %v15697_v62, %v11520_v17  ;;  %v11431_v62 = vor.u32 %v15677_v46, %v11430_v45 }
 0x1aa   :  { %2336 = vmatpush.bf16.msra.mxu0 %v11735_v25  ;;  %2350 = vmatpush.bf16.msra.mxu1 %v11927_v21  ;;  %v15817_v25 = vld [vmem:[#allocation9 + $0x8ac] sm:$0xf]  ;;  %v12000_v21 = vld [vmem:[#allocation9 + $0x8c0] sm:$0xf0] }
 0x1ab   :  { %2364 = vmatpush.bf16.msra.mxu2 %v10971_v11  ;;  %2378 = vmatpush.bf16.msra.mxu3 %v11163_v26  ;;  %v15667_v11 = vld [vmem:[#allocation9 + $0x3fc] sm:$0xf]  ;;  %v11400_v26 = vld [vmem:[#allocation9 + $0x410] sm:$0xf0]  ;;  %v12003_v22 = vor.u32 %v15817_v25, %v12000_v21 }
 0x1ac   :  { %v11403_v2 = vor.u32 %v15667_v11, %v11400_v26  ;;  %v15739_v25 = vld [vmem:[#allocation9 + $0x63c] sm:$0xf]  ;;  %v11688_v21 = vld [vmem:[#allocation9 + $0x650] sm:$0xf0]  ;;  %v15637_v11 = vld [vmem:[#allocation9 + $0x30c] sm:$0xf] }
 0x1ad   :  { %v11691_v1 = vor.u32 %v15739_v25, %v11688_v21 }
 0x1ae   :  { %2337 = vmatpush.bf16.msra.mxu0 %v11711_v30  ;;  %2351 = vmatpush.bf16.msra.mxu1 %v11903_v31  ;;  %v15811_v30 = vld [vmem:[#allocation9 + $0x87c] sm:$0xf]  ;;  %v11976_v31 = vld [vmem:[#allocation9 + $0x890] sm:$0xf0] }
 0x1af   :  { %2365 = vmatpush.bf16.msra.mxu2 %v10947_v41  ;;  %2379 = vmatpush.bf16.msra.mxu3 %v11139_v49  ;;  %v15661_v41 = vld [vmem:[#allocation9 + $0x3cc] sm:$0xf]  ;;  %v11376_v49 = vld [vmem:[#allocation9 + $0x3e0] sm:$0xf0]  ;;  %v11979_v3 = vor.u32 %v15811_v30, %v11976_v31 }
 0x1b0   :  { %v15733_v30 = vld [vmem:[#allocation9 + $0x60c] sm:$0xf]  ;;  %v11664_v31 = vld [vmem:[#allocation9 + $0x620] sm:$0xf0] }
 0x1b2   :  { %2338 = vmatpush.bf16.msra.mxu0 %v11687_v38  ;;  %2352 = vmatpush.bf16.msra.mxu1 %v11879_v39  ;;  %v11952_v38 = vld [vmem:[#allocation9 + $0x860] sm:$0xf0]  ;;  %v11379_v39 = vor.u32 %v15661_v41, %v11376_v49  ;;  %v11070_v41 = vld [vmem:[#allocation9 + $0x160] sm:$0xf]  ;;  %v15587_v49 = vld [vmem:[#allocation9 + $0x174] sm:$0xf0] }
 0x1b3   :  { %2366 = vmatpush.bf16.msra.mxu2 %v10923_v42  ;;  %2380 = vmatpush.bf16.msra.mxu3 %v11115_v51  ;;  %v11763_v42 = vor.u32 %v15757_v36, %v11760_v37  ;;  %v11955_v51 = vor.u32 %v15805_v8, %v11952_v38  ;;  %v11475_v36 = vor.u32 %v15685_v0, %v11472_v27  ;;  %v15683_v37 = vld [vmem:[#allocation9 + $0x474] sm:$0xf0]  ;;  %v11646_v8 = vld [vmem:[#allocation9 + $0x5e0] sm:$0xf] }
 0x1b4   :  { %v15731_v38 = vld [vmem:[#allocation9 + $0x5f4] sm:$0xf0]  ;;  %v11071_v10 = vor.u32 %v15587_v49, %v11070_v41  ;;  %v11455_v43 = vor.u32 %v15683_v37, %v11454_v34  ;;  %v11358_v41 = vld [vmem:[#allocation9 + $0x3a0] sm:$0xf] }
 0x1b5   :  { %v11647_v52 = vor.u32 %v15731_v38, %v11646_v8  ;;  %v11550_v34 = vld [vmem:[#allocation9 + $0x520] sm:$0xf] }
 0x1b6   :  { %2339 = vmatpush.bf16.msra.mxu0 %v11663_v58  ;;  %2353 = vmatpush.bf16.msra.mxu1 %v11855_v60  ;;  %v11328_v58 = vld [vmem:[#allocation9 + $0x380] sm:$0xf0]  ;;  %v11739_v60 = vor.u32 %v15751_v44, %v11736_v55  ;;  %v11238_v44 = vld [vmem:[#allocation9 + $0x2b0] sm:$0xf]  ;;  %v15629_v55 = vld [vmem:[#allocation9 + $0x2c4] sm:$0xf0] }
 0x1b7   :  { %2367 = vmatpush.bf16.msra.mxu2 %v10899_v63  ;;  %2381 = vmatpush.bf16.msra.mxu3 %v11091_v4  ;;  %v15745_v63 = vld [vmem:[#allocation9 + $0x66c] sm:$0xf]  ;;  %v11712_v4 = vld [vmem:[#allocation9 + $0x680] sm:$0xf0]  ;;  %v11331_v13 = vor.u32 %v15649_v5, %v11328_v58  ;;  %v11239_v58 = vor.u32 %v15629_v55, %v11238_v44  ;;  %v11526_v44 = vld [vmem:[#allocation9 + $0x4f0] sm:$0xf] }
 0x1b8   :  { %v11715_v18 = vor.u32 %v15745_v63, %v11712_v4  ;;  %v11214_v63 = vld [vmem:[#allocation9 + $0x280] sm:$0xf]  ;;  %v15623_v4 = vld [vmem:[#allocation9 + $0x294] sm:$0xf0]  ;;  %v15701_v55 = vld [vmem:[#allocation9 + $0x504] sm:$0xf0] }
 0x1b9   :  { %2340 = vmatmul.bf16.vlgmr.msra.gmra.mxu0 %v17394_v6  ;;  %2354 = vmatmul.bf16.vlgmr.msra.gmra.mxu1 %v17396_v57 }
 0x1ba   :  { %2388 = vmatpush.bf16.msrb.mxu0 %v11451_v9  ;;  %2402 = vmatpush.bf16.msrb.mxu1 %v11643_v12  ;;  %v15793_v9 = vld [vmem:[#allocation9 + $0x7ec] sm:$0xf]  ;;  %v11904_v12 = vld [vmem:[#allocation9 + $0x800] sm:$0xf0] }
 0x1bb   :  { %2416 = vmatpush.bf16.msrb.mxu2 %v11835_v15  ;;  %2430 = vmatpush.bf16.msrb.mxu3 %v12027_v16  ;;  %v15643_v15 = vld [vmem:[#allocation9 + $0x33c] sm:$0xf]  ;;  %v11304_v16 = vld [vmem:[#allocation9 + $0x350] sm:$0xf0]  ;;  %v11907_v23 = vor.u32 %v15793_v9, %v11904_v12  ;;  %v11406_v9 = vld [vmem:[#allocation9 + $0x400] sm:$0xf] }
 0x1bc   :  { %2368 = vmatmul.bf16.vlgmr.msra.gmra.mxu2 %v17372_v47  ;;  %2382 = vmatmul.bf16.vlgmr.msra.gmra.mxu3 %v17374_v48  ;;  %v11307_v26 = vor.u32 %v15643_v15, %v11304_v16  ;;  %v15671_v12 = vld [vmem:[#allocation9 + $0x414] sm:$0xf0] }
 0x1bd   :  { %v11407_v25 = vor.u32 %v15671_v12, %v11406_v9  ;;  %v11502_v9 = vld [vmem:[#allocation9 + $0x4c0] sm:$0xf]  ;;  %v15695_v12 = vld [vmem:[#allocation9 + $0x4d4] sm:$0xf0] }
 0x1be   :  { %2389 = vmatpush.bf16.msrb.mxu0 %v11427_v7  ;;  %2403 = vmatpush.bf16.msrb.mxu1 %v11619_v59  ;;  %v15787_v7 = vld [vmem:[#allocation9 + $0x7bc] sm:$0xf]  ;;  %v11880_v59 = vld [vmem:[#allocation9 + $0x7d0] sm:$0xf0] }
 0x1bf   :  { %2417 = vmatpush.bf16.msrb.mxu2 %v11811_v28  ;;  %2431 = vmatpush.bf16.msrb.mxu3 %v12003_v22  ;;  %v11499_v28 = vor.u32 %v15691_v24, %v11496_v19  ;;  %v11280_v22 = vld [vmem:[#allocation9 + $0x320] sm:$0xf0]  ;;  %v11883_v29 = vor.u32 %v15787_v7, %v11880_v59  ;;  %v10998_v24 = vld [vmem:[#allocation9 + $0xd0] sm:$0xf]  ;;  %v15569_v19 = vld [vmem:[#allocation9 + $0xe4] sm:$0xf0] }
 0x1c0   :  { %v11283_v35 = vor.u32 %v15637_v11, %v11280_v22  ;;  %v11190_v7 = vld [vmem:[#allocation9 + $0x250] sm:$0xf]  ;;  %v15617_v59 = vld [vmem:[#allocation9 + $0x264] sm:$0xf0]  ;;  %v10999_v0 = vor.u32 %v15569_v19, %v10998_v24 }
 0x1c1   :  { %v11382_v11 = vld [vmem:[#allocation9 + $0x3d0] sm:$0xf]  ;;  %v15713_v22 = vld [vmem:[#allocation9 + $0x564] sm:$0xf0]  ;;  %v11191_v27 = vor.u32 %v15617_v59, %v11190_v7  ;;  %v17438_v7 = vld [vmem:[#allocation15] sm:$0x3f] }
 0x1c2   :  { %2390 = vmatpush.bf16.msrb.mxu0 %v11403_v2  ;;  %2404 = vmatpush.bf16.msrb.mxu1 %v11595_v32  ;;  %v15781_v2 = vld [vmem:[#allocation9 + $0x78c] sm:$0xf]  ;;  %v11856_v32 = vld [vmem:[#allocation9 + $0x7a0] sm:$0xf0]  ;;  %v15545_v19 = vld [vmem:[#allocation9 + $0x24] sm:$0xf0] }
 0x1c3   :  { %2418 = vmatpush.bf16.msrb.mxu2 %v11787_v33  ;;  %2432 = vmatpush.bf16.msrb.mxu3 %v11979_v3  ;;  %v11262_v33 = vld [vmem:[#allocation9 + $0x2e0] sm:$0xf]  ;;  %v15635_v3 = vld [vmem:[#allocation9 + $0x2f4] sm:$0xf0] }
 0x1c4   :  { %v11263_v14 = vor.u32 %v15635_v3, %v11262_v33  ;;  %v15659_v3 = vld [vmem:[#allocation9 + $0x3b4] sm:$0xf0] }
 0x1c6   :  { %2391 = vmatpush.bf16.msrb.mxu0 %v11379_v39  ;;  %2405 = vmatpush.bf16.msrb.mxu1 %v11571_v40  ;;  %v11667_v39 = vor.u32 %v15733_v30, %v11664_v31  ;;  %v11859_v40 = vor.u32 %v15781_v2, %v11856_v32  ;;  %v11166_v2 = vld [vmem:[#allocation9 + $0x220] sm:$0xf]  ;;  %v15611_v32 = vld [vmem:[#allocation9 + $0x234] sm:$0xf0] }
 0x1c7   :  { %2419 = vmatpush.bf16.msrb.mxu2 %v11763_v42  ;;  %2433 = vmatpush.bf16.msrb.mxu3 %v11955_v51  ;;  %v11046_v42 = vld [vmem:[#allocation9 + $0x130] sm:$0xf]  ;;  %v15581_v51 = vld [vmem:[#allocation9 + $0x144] sm:$0xf0]  ;;  %v11167_v38 = vor.u32 %v15611_v32, %v11166_v2 }
 0x1c8   :  { %v11047_v5 = vor.u32 %v15581_v51, %v11046_v42  ;;  %v11142_v42 = vld [vmem:[#allocation9 + $0x1f0] sm:$0xf]  ;;  %v15605_v51 = vld [vmem:[#allocation9 + $0x204] sm:$0xf0] }
 0x1c9   :  { %v11143_v46 = vor.u32 %v15605_v51, %v11142_v42  ;;  %v11814_v42 = vld [vmem:[#allocation9 + $0x730] sm:$0xf]  ;;  %v15773_v51 = vld [vmem:[#allocation9 + $0x744] sm:$0xf0] }
 0x1ca   :  { %2392 = vmatpush.bf16.msrb.mxu0 %v11355_v54  ;;  %2406 = vmatpush.bf16.msrb.mxu1 %v11547_v56  ;;  %v11622_v54 = vld [vmem:[#allocation9 + $0x5b0] sm:$0xf]  ;;  %v15725_v56 = vld [vmem:[#allocation9 + $0x5c4] sm:$0xf0] }
 0x1cb   :  { %2420 = vmatpush.bf16.msrb.mxu2 %v11739_v60  ;;  %2434 = vmatpush.bf16.msrb.mxu3 %v11931_v61  ;;  %v11022_v60 = vld [vmem:[#allocation9 + $0x100] sm:$0xf]  ;;  %v15575_v61 = vld [vmem:[#allocation9 + $0x114] sm:$0xf0]  ;;  %v11623_v17 = vor.u32 %v15725_v56, %v11622_v54 }
 0x1cc   :  { %v10926_v54 = vld [vmem:[#allocation9 + $0x40] sm:$0xf]  ;;  %v15551_v56 = vld [vmem:[#allocation9 + $0x54] sm:$0xf0] }
 0x1ce   :  { %2393 = vmatpush.bf16.msrb.mxu0 %v11331_v13  ;;  %2407 = vmatpush.bf16.msrb.mxu1 %v11523_v20  ;;  %v11598_v13 = vld [vmem:[#allocation9 + $0x580] sm:$0xf]  ;;  %v15719_v20 = vld [vmem:[#allocation9 + $0x594] sm:$0xf0] }
 0x1cf   :  { %2421 = vmatpush.bf16.msrb.mxu2 %v11715_v18  ;;  %2435 = vmatpush.bf16.msrb.mxu3 %v11907_v23  ;;  %v11023_v18 = vor.u32 %v15575_v61, %v11022_v60  ;;  %v11215_v23 = vor.u32 %v15623_v4, %v11214_v63  ;;  %v11599_v21 = vor.u32 %v15719_v20, %v11598_v13  ;;  %v11118_v60 = vld [vmem:[#allocation9 + $0x1c0] sm:$0xf]  ;;  %v15599_v61 = vld [vmem:[#allocation9 + $0x1d4] sm:$0xf0]  ;;  %v10902_v20 = vld [vmem:[#allocation9 + $0x10] sm:$0xf] }
 0x1d0   :  { %v15647_v4 = vld [vmem:[#allocation9 + $0x354] sm:$0xf0]  ;;  %v10903_v2 = vor.u32 %v15545_v19, %v10902_v20 }
 0x1d1   :  { %v15815_v19 = vld [vmem:[#allocation9 + $0x894] sm:$0xf0] }
 0x1d2   :  { %2394 = vmatpush.bf16.msrb.mxu0 %v11307_v26  ;;  %2408 = vmatpush.bf16.msrb.mxu1 %v11499_v28  ;;  %v15665_v26 = vld [vmem:[#allocation9 + $0x3e4] sm:$0xf0]  ;;  %v11574_v28 = vld [vmem:[#allocation9 + $0x550] sm:$0xf] }
 0x1d3   :  { %2422 = vmatpush.bf16.msrb.mxu2 %v11691_v1  ;;  %2436 = vmatpush.bf16.msrb.mxu3 %v11883_v29  ;;  %v10974_v1 = vld [vmem:[#allocation9 + $0xa0] sm:$0xf]  ;;  %v15563_v29 = vld [vmem:[#allocation9 + $0xb4] sm:$0xf0]  ;;  %v11383_v30 = vor.u32 %v15665_v26, %v11382_v11  ;;  %v11575_v31 = vor.u32 %v15713_v22, %v11574_v28  ;;  %v11503_v11 = vor.u32 %v15695_v12, %v11502_v9  ;;  %v11286_v26 = vld [vmem:[#allocation9 + $0x310] sm:$0xf] }
 0x1d4   :  { %v10975_v8 = vor.u32 %v15563_v29, %v10974_v1  ;;  %v15641_v28 = vld [vmem:[#allocation9 + $0x324] sm:$0xf0]  ;;  %v11478_v22 = vld [vmem:[#allocation9 + $0x490] sm:$0xf]  ;;  %v15779_v1 = vld [vmem:[#allocation9 + $0x774] sm:$0xf0] }
 0x1d5   :  { %v17418_v15 = vpop.f32.mrf.mxu0  ;;  %v17420_v16 = vpop.f32.mrf.mxu1  ;;  %v12030_v29 = vld [vmem:[#allocation9 + $0x8e0] sm:$0xf]  ;;  %v15767_v9 = vld [vmem:[#allocation9 + $0x714] sm:$0xf0] }
 0x1d6   :  { %2395 = vmatpush.bf16.msrb.mxu0 %v11283_v35  ;;  %2409 = vmatpush.bf16.msrb.mxu1 %v11475_v36  ;;  %v15707_v35 = vld [vmem:[#allocation9 + $0x534] sm:$0xf0] }
 0x1d7   :  { %2423 = vmatpush.bf16.msrb.mxu2 %v11667_v39  ;;  %2437 = vmatpush.bf16.msrb.mxu3 %v11859_v40  ;;  %v10950_v39 = vld [vmem:[#allocation9 + $0x70] sm:$0xf]  ;;  %v15557_v40 = vld [vmem:[#allocation9 + $0x84] sm:$0xf0] }
 0x1d8   :  { %v10951_v45 = vor.u32 %v15557_v40, %v10950_v39 }
 0x1d9   :  { %2396 = vmatmul.bf16.vlgmr.msrb.gmra.mxu0 %v17376_v50  ;;  %2410 = vmatmul.bf16.vlgmr.msrb.gmra.mxu1 %v17378_v53 }
 0x1da   :  { %2444 = vmatpush.bf16.msra.mxu0 %v11071_v10  ;;  %2458 = vmatpush.bf16.msra.mxu1 %v11263_v14  ;;  %v11359_v10 = vor.u32 %v15659_v3, %v11358_v41  ;;  %v11551_v14 = vor.u32 %v15707_v35, %v11550_v34  ;;  %v11072_v41 = vld [vmem:[#allocation9 + $0x178] sm:$0xf0]  ;;  %v15632_v3 = vld [vmem:[#allocation9 + $0x2e4] sm:$0xf]  ;;  %v11287_v35 = vor.u32 %v15641_v28, %v11286_v26 }
 0x1db   :  { %2472 = vmatpush.bf16.msra.mxu2 %v11455_v43  ;;  %2486 = vmatpush.bf16.msra.mxu3 %v11647_v52  ;;  %v11334_v43 = vld [vmem:[#allocation9 + $0x370] sm:$0xf]  ;;  %v15653_v52 = vld [vmem:[#allocation9 + $0x384] sm:$0xf0]  ;;  %v11264_v34 = vld [vmem:[#allocation9 + $0x2f8] sm:$0xf0] }
 0x1dc   :  { %2424 = vmatmul.bf16.vlgmr.msrb.gmra.mxu2 %v17394_v6  ;;  %2438 = vmatmul.bf16.vlgmr.msrb.gmra.mxu3 %v17396_v57  ;;  %v17422_v49 = vpop.f32.mrf.mxu2  ;;  %v17424_v33 = vpop.f32.mrf.mxu3 }
 0x1dd   :  { %v17426_v36 = vpop.f32.mrf.mxu0  ;;  %v17428_v37 = vpop.f32.mrf.mxu1 }
 0x1de   :  { %2445 = vmatpush.bf16.msra.mxu0 %v11047_v5  ;;  %2459 = vmatpush.bf16.msra.mxu1 %v11239_v58  ;;  %v11335_v5 = vor.u32 %v15653_v52, %v11334_v43  ;;  %v11527_v58 = vor.u32 %v15701_v55, %v11526_v44  ;;  %v11267_v52 = vor.u32 %v15632_v3, %v11264_v34  ;;  %v12006_v55 = vld [vmem:[#allocation9 + $0x8b0] sm:$0xf]  ;;  %v11000_v3 = vld [vmem:[#allocation9 + $0xe8] sm:$0xf0]  ;;  %v15614_v34 = vld [vmem:[#allocation9 + $0x254] sm:$0xf] }
 0x1df   :  { %2473 = vmatpush.bf16.msra.mxu2 %v11431_v62  ;;  %2487 = vmatpush.bf16.msra.mxu3 %v11623_v17  ;;  %v11310_v62 = vld [vmem:[#allocation9 + $0x340] sm:$0xf] }
 0x1e0   :  { %v11311_v59 = vor.u32 %v15647_v4, %v11310_v62  ;;  %v11790_v4 = vld [vmem:[#allocation9 + $0x700] sm:$0xf] }
 0x1e2   :  { %2446 = vmatpush.bf16.msra.mxu0 %v11023_v18  ;;  %2460 = vmatpush.bf16.msra.mxu1 %v11215_v23  ;;  %v10927_v18 = vor.u32 %v15551_v56, %v10926_v54  ;;  %v11119_v23 = vor.u32 %v15599_v61, %v11118_v60  ;;  %v11048_v54 = vld [vmem:[#allocation9 + $0x148] sm:$0xf0]  ;;  %v15626_v56 = vld [vmem:[#allocation9 + $0x2b4] sm:$0xf]  ;;  %v11815_v61 = vor.u32 %v15773_v51, %v11814_v42  ;;  %v11742_v51 = vld [vmem:[#allocation9 + $0x6a0] sm:$0xf] }
 0x1e3   :  { %2474 = vmatpush.bf16.msra.mxu2 %v11407_v25  ;;  %2488 = vmatpush.bf16.msra.mxu3 %v11599_v21  ;;  %v11094_v25 = vld [vmem:[#allocation9 + $0x190] sm:$0xf]  ;;  %v15593_v21 = vld [vmem:[#allocation9 + $0x1a4] sm:$0xf0] }
 0x1e4   :  { %v17430_v17 = vpop.f32.mrf.mxu2  ;;  %v17432_v63 = vpop.f32.mrf.mxu3  ;;  %v11095_v32 = vor.u32 %v15593_v21, %v11094_v25  ;;  %v15572_v25 = vld [vmem:[#allocation9 + $0x104] sm:$0xf]  ;;  %v11024_v21 = vld [vmem:[#allocation9 + $0x118] sm:$0xf0] }
 0x1e5   :  { %v17434_v13 = vpop.f32.mrf.mxu0  ;;  %v17436_v24 = vpop.f32.mrf.mxu1 }
 0x1e6   :  { %2447 = vmatpush.bf16.msra.mxu0 %v10999_v0  ;;  %2461 = vmatpush.bf16.msra.mxu1 %v11191_v27  ;;  %v15689_v0 = vld [vmem:[#allocation9 + $0x4a4] sm:$0xf0]  ;;  %v11838_v27 = vld [vmem:[#allocation9 + $0x760] sm:$0xf] }
 0x1e7   :  { %2475 = vmatpush.bf16.msra.mxu2 %v11383_v30  ;;  %2489 = vmatpush.bf16.msra.mxu3 %v11575_v31  ;;  %v15827_v30 = vld [vmem:[#allocation9 + $0x8f4] sm:$0xf0]  ;;  %v15584_v31 = vld [vmem:[#allocation9 + $0x164] sm:$0xf]  ;;  %v11839_v39 = vor.u32 %v15779_v1, %v11838_v27  ;;  %v11766_v27 = vld [vmem:[#allocation9 + $0x6d0] sm:$0xf] }
 0x1e8   :  { %v12031_v40 = vor.u32 %v15827_v30, %v12030_v29  ;;  %v11075_v43 = vor.u32 %v15584_v31, %v11072_v41  ;;  %v15761_v1 = vld [vmem:[#allocation9 + $0x6e4] sm:$0xf0]  ;;  %v11027_v30 = vor.u32 %v15572_v25, %v11024_v21  ;;  %v15566_v41 = vld [vmem:[#allocation9 + $0xd4] sm:$0xf] }
 0x1e9   :  { %v15554_v25 = vld [vmem:[#allocation9 + $0x74] sm:$0xf] }
 0x1ea   :  { %2448 = vmatpush.bf16.msra.mxu0 %v10975_v8  ;;  %2462 = vmatpush.bf16.msra.mxu1 %v11167_v38  ;;  %v11479_v8 = vor.u32 %v15689_v0, %v11478_v22  ;;  %v656_v38 = vperm.slane %v17438_v7, 0 }
 0x1eb   :  { %2476 = vmatpush.bf16.msra.mxu2 %v11359_v10  ;;  %2490 = vmatpush.bf16.msra.mxu3 %v11551_v14 }
 0x1ec   :  { %v2201_v10 = vpop.f32.mrf.mxu2  ;;  %v2215_v14 = vpop.f32.mrf.mxu3  ;;  %v2118_v12 = vadd.f32 %v17418_v15, %v656_v38  ;;  %v11791_v15 = vor.u32 %v15767_v9, %v11790_v4  ;;  %v11718_v4 = vld [vmem:[#allocation9 + $0x670] sm:$0xf]  ;;  %v15749_v9 = vld [vmem:[#allocation9 + $0x684] sm:$0xf0] }
 0x1ed   :  { %v17441_v44 = vpop.f32.mrf.mxu0  ;;  %v17444_v60 = vpop.f32.mrf.mxu1 }
 0x1ee   :  { %2449 = vmatpush.bf16.msra.mxu0 %v10951_v45  ;;  %2463 = vmatpush.bf16.msra.mxu1 %v11143_v46  ;;  %v15821_v45 = vld [vmem:[#allocation9 + $0x8c4] sm:$0xf0]  ;;  %v15578_v46 = vld [vmem:[#allocation9 + $0x134] sm:$0xf]  ;;  %v2132_v29 = vadd.f32 %v17420_v16, %v2118_v12  ;;  %v11767_v16 = vor.u32 %v15761_v1, %v11766_v27 }
 0x1ef   :  { %2477 = vmatpush.bf16.msra.mxu2 %v11335_v5  ;;  %2491 = vmatpush.bf16.msra.mxu3 %v11527_v58  ;;  %v11240_v5 = vld [vmem:[#allocation9 + $0x2c8] sm:$0xf0]  ;;  %v657_v58 = vperm.slane %v17438_v7, 1  ;;  %v12007_v62 = vor.u32 %v15821_v45, %v12006_v55  ;;  %v11051_v20 = vor.u32 %v15578_v46, %v11048_v54  ;;  %v11003_v45 = vor.u32 %v15566_v41, %v11000_v3  ;;  %v15803_v54 = vld [vmem:[#allocation9 + $0x834] sm:$0xf0] }
 0x1f0   :  { %v11886_v41 = vld [vmem:[#allocation9 + $0x7c0] sm:$0xf] }
 0x1f1   :  { %v2202_v26 = vadd.f32 %v2201_v10, %v657_v58  ;;  %v2120_v10 = vadd.f32 %v17426_v36, %v656_v38 }
 0x1f2   :  { %2450 = vmatpush.bf16.msra.mxu0 %v10927_v18  ;;  %2464 = vmatpush.bf16.msra.mxu1 %v11119_v23  ;;  %v11243_v18 = vor.u32 %v15626_v56, %v11240_v5  ;;  %v11982_v23 = vld [vmem:[#allocation9 + $0x880] sm:$0xf]  ;;  %v15608_v5 = vld [vmem:[#allocation9 + $0x224] sm:$0xf] }
 0x1f3   :  { %2478 = vmatpush.bf16.msra.mxu2 %v11311_v59  ;;  %2492 = vmatpush.bf16.msra.mxu3 %v11503_v11  ;;  %v15620_v59 = vld [vmem:[#allocation9 + $0x284] sm:$0xf]  ;;  %v11216_v11 = vld [vmem:[#allocation9 + $0x298] sm:$0xf0]  ;;  %v11983_v28 = vor.u32 %v15815_v19, %v11982_v23  ;;  %v2134_v12 = vadd.f32 %v17428_v37, %v2120_v10  ;;  %v11910_v23 = vld [vmem:[#allocation9 + $0x7f0] sm:$0xf] }
 0x1f4   :  { %v2203_v22 = vpop.f32.mrf.mxu2  ;;  %v2217_v0 = vpop.f32.mrf.mxu3  ;;  %v11219_v31 = vor.u32 %v15620_v59, %v11216_v11  ;;  %v15797_v19 = vld [vmem:[#allocation9 + $0x804] sm:$0xf0]  ;;  %v10952_v11 = vld [vmem:[#allocation9 + $0x88] sm:$0xf0] }
 0x1f5   :  { %v2204_v38 = vadd.f32 %v2203_v22, %v657_v58  ;;  %v15602_v58 = vld [vmem:[#allocation9 + $0x1f4] sm:$0xf]  ;;  %v2148_v37 = vadd.f32 %v17430_v17, %v2134_v12  ;;  %v15548_v17 = vld [vmem:[#allocation9 + $0x44] sm:$0xf] }
 0x1f6   :  { %2451 = vmatpush.bf16.msra.mxu0 %v10903_v2  ;;  %2465 = vmatpush.bf16.msra.mxu1 %v11095_v32  ;;  %v11958_v2 = vld [vmem:[#allocation9 + $0x850] sm:$0xf]  ;;  %v15809_v32 = vld [vmem:[#allocation9 + $0x864] sm:$0xf0]  ;;  %v2243_v56 = vpop.f32.mrf.mxu1  ;;  %v15728_v12 = vld [vmem:[#allocation9 + $0x5e4] sm:$0xf] }
 0x1f7   :  { %2479 = vmatpush.bf16.msra.mxu2 %v11287_v35  ;;  %2493 = vmatpush.bf16.msra.mxu3 %v11479_v8  ;;  %v11192_v35 = vld [vmem:[#allocation9 + $0x268] sm:$0xf0]  ;;  %v2146_v8 = vadd.f32 %v17422_v49, %v2132_v29  ;;  %v11959_v42 = vor.u32 %v15809_v32, %v11958_v2  ;;  %v15560_v49 = vld [vmem:[#allocation9 + $0xa4] sm:$0xf]  ;;  %v2218_v22 = vadd.f32 %v2217_v0, %v2204_v38  ;;  %v11694_v2 = vld [vmem:[#allocation9 + $0x640] sm:$0xf] }
 0x1f8   :  { %v11195_v46 = vor.u32 %v15614_v34, %v11192_v35  ;;  %v11719_v29 = vor.u32 %v15749_v9, %v11718_v4  ;;  %v15743_v32 = vld [vmem:[#allocation9 + $0x654] sm:$0xf0]  ;;  %v10928_v0 = vld [vmem:[#allocation9 + $0x58] sm:$0xf0]  ;;  %v2162_v10 = vadd.f32 %v17432_v63, %v2148_v37  ;;  %v10904_v63 = vld [vmem:[#allocation9 + $0x28] sm:$0xf0] }
 0x1f9   :  { %2452 = vmatmul.bf16.vlgmr.msra.gmra.mxu0 %v17372_v47  ;;  %2466 = vmatmul.bf16.vlgmr.msra.gmra.mxu1 %v17374_v48  ;;  %v2160_v36 = vadd.f32 %v17424_v33, %v2146_v8  ;;  %v15791_v8 = vld [vmem:[#allocation9 + $0x7d4] sm:$0xf0]  ;;  %v11096_v38 = vld [vmem:[#allocation9 + $0x1a8] sm:$0xf0]  ;;  %v11456_v4 = vld [vmem:[#allocation9 + $0x478] sm:$0xf0] }
 0x1fa   :  { %2500 = vmatpush.bf16.msrb.mxu0 %v11839_v39  ;;  %2514 = vmatpush.bf16.msrb.mxu1 %v12031_v40  ;;  %v2216_v39 = vadd.f32 %v2215_v14, %v2202_v26  ;;  %v2229_v40 = vpop.f32.mrf.mxu0  ;;  %v10976_v14 = vld [vmem:[#allocation9 + $0xb8] sm:$0xf0]  ;;  %v11144_v26 = vld [vmem:[#allocation9 + $0x208] sm:$0xf0] }
 0x1fb   :  { %2528 = vmatpush.bf16.msrb.mxu2 %v11075_v43  ;;  %2542 = vmatpush.bf16.msrb.mxu3 %v11267_v52  ;;  %v15755_v43 = vld [vmem:[#allocation9 + $0x6b4] sm:$0xf0]  ;;  %v11934_v52 = vld [vmem:[#allocation9 + $0x820] sm:$0xf]  ;;  %v2174_v21 = vadd.f32 %v17434_v13, %v2160_v36  ;;  %v11147_v13 = vor.u32 %v15602_v58, %v11144_v26 }
 0x1fc   :  { %2480 = vmatmul.bf16.vlgmr.msra.gmra.mxu2 %v17376_v50  ;;  %2494 = vmatmul.bf16.vlgmr.msra.gmra.mxu3 %v17378_v53  ;;  %v2230_v55 = vadd.f32 %v2229_v40, %v2216_v39  ;;  %v15596_v39 = vld [vmem:[#allocation9 + $0x1c4] sm:$0xf]  ;;  %v11120_v40 = vld [vmem:[#allocation9 + $0x1d8] sm:$0xf0] }
 0x1fd   :  { %v2188_v3 = vadd.f32 %v17436_v24, %v2174_v21  ;;  %v10931_v24 = vor.u32 %v15548_v17, %v10928_v0  ;;  %v11408_v17 = vld [vmem:[#allocation9 + $0x418] sm:$0xf0] }
 0x1fe   :  { %2501 = vmatpush.bf16.msrb.mxu0 %v11815_v61  ;;  %2515 = vmatpush.bf16.msrb.mxu1 %v12007_v62  ;;  %v11168_v61 = vld [vmem:[#allocation9 + $0x238] sm:$0xf0]  ;;  %v11743_v62 = vor.u32 %v15755_v43, %v11742_v51  ;;  %v2244_v59 = vadd.f32 %v2243_v56, %v2230_v55  ;;  %v2245_v51 = vpop.f32.mrf.mxu1  ;;  %v11695_v43 = vor.u32 %v15743_v32, %v11694_v2  ;;  %v15737_v55 = vld [vmem:[#allocation9 + $0x624] sm:$0xf0]  ;;  %v15542_v56 = vld [vmem:[#allocation9 + $0x14] sm:$0xf] }
 0x1ff   :  { %2529 = vmatpush.bf16.msrb.mxu2 %v11051_v20  ;;  %2543 = vmatpush.bf16.msrb.mxu3 %v11243_v18  ;;  %v11935_v20 = vor.u32 %v15803_v54, %v11934_v52  ;;  %v10979_v18 = vor.u32 %v15560_v49, %v10976_v14  ;;  %v11171_v33 = vor.u32 %v15608_v5, %v11168_v61  ;;  %v15590_v5 = vld [vmem:[#allocation9 + $0x194] sm:$0xf] }
 0x200   :  { %v11887_v52 = vor.u32 %v15791_v8, %v11886_v41  ;;  %v2176_v54 = vadd.f32 %v17441_v44, %v2162_v10  ;;  %v11123_v14 = vor.u32 %v15596_v39, %v11120_v40  ;;  %v10907_v21 = vor.u32 %v15542_v56, %v10904_v63  ;;  %v15770_v2 = vld [vmem:[#allocation9 + $0x734] sm:$0xf]  ;;  %v12008_v41 = vld [vmem:[#allocation9 + $0x8c8] sm:$0xf0]  ;;  %v15668_v8 = vld [vmem:[#allocation9 + $0x404] sm:$0xf] }
 0x201   :  { %v15818_v32 = vld [vmem:[#allocation9 + $0x8b4] sm:$0xf]  ;;  %v15716_v40 = vld [vmem:[#allocation9 + $0x584] sm:$0xf]  ;;  %v11600_v10 = vld [vmem:[#allocation9 + $0x598] sm:$0xf0] }
 0x202   :  { %2502 = vmatpush.bf16.msrb.mxu0 %v11791_v15  ;;  %2516 = vmatpush.bf16.msrb.mxu1 %v11983_v28  ;;  %v2257_v15 = vpop.f32.mrf.mxu2  ;;  %v2271_v28 = vpop.f32.mrf.mxu3  ;;  %v2190_v58 = vadd.f32 %v17444_v60, %v2176_v54  ;;  %v11816_v60 = vld [vmem:[#allocation9 + $0x748] sm:$0xf0]  ;;  %v12011_v39 = vor.u32 %v15818_v32, %v12008_v41  ;;  %v15710_v56 = vld [vmem:[#allocation9 + $0x554] sm:$0xf]  ;;  %v11312_v32 = vld [vmem:[#allocation9 + $0x358] sm:$0xf0] }
 0x203   :  { %2530 = vmatpush.bf16.msrb.mxu2 %v11027_v30  ;;  %2544 = vmatpush.bf16.msrb.mxu3 %v11219_v31  ;;  %v2258_v27 = vadd.f32 %v2257_v15, %v2244_v59  ;;  %v2231_v1 = vpop.f32.mrf.mxu0  ;;  %v11911_v30 = vor.u32 %v15797_v19, %v11910_v23  ;;  %v10955_v31 = vor.u32 %v15554_v25, %v10952_v11  ;;  %v11840_v59 = vld [vmem:[#allocation9 + $0x778] sm:$0xf0]  ;;  %v11384_v54 = vld [vmem:[#allocation9 + $0x3e8] sm:$0xf0] }
 0x204   :  { %v2232_v35 = vadd.f32 %v2231_v1, %v2218_v22  ;;  %v12032_v11 = vld [vmem:[#allocation9 + $0x8f8] sm:$0xf0]  ;;  %v11099_v15 = vor.u32 %v15590_v5, %v11096_v38  ;;  %v15674_v22 = vld [vmem:[#allocation9 + $0x434] sm:$0xf]  ;;  %v11819_v0 = vor.u32 %v15770_v2, %v11816_v60  ;;  %v11576_v63 = vld [vmem:[#allocation9 + $0x568] sm:$0xf0] }
 0x205   :  { %v2272_v34 = vadd.f32 %v2271_v28, %v2258_v27  ;;  %v11432_v27 = vld [vmem:[#allocation9 + $0x448] sm:$0xf0]  ;;  %v15758_v5 = vld [vmem:[#allocation9 + $0x6d4] sm:$0xf]  ;;  %v15644_v60 = vld [vmem:[#allocation9 + $0x344] sm:$0xf] }
 0x206   :  { %2503 = vmatpush.bf16.msrb.mxu0 %v11767_v16  ;;  %2517 = vmatpush.bf16.msrb.mxu1 %v11959_v42  ;;  %v11670_v42 = vld [vmem:[#allocation9 + $0x610] sm:$0xf]  ;;  %v2246_v49 = vadd.f32 %v2245_v51, %v2232_v35  ;;  %v11792_v51 = vld [vmem:[#allocation9 + $0x718] sm:$0xf0]  ;;  %v11960_v38 = vld [vmem:[#allocation9 + $0x868] sm:$0xf0] }
 0x207   :  { %2531 = vmatpush.bf16.msrb.mxu2 %v11003_v45  ;;  %2545 = vmatpush.bf16.msrb.mxu3 %v11195_v46  ;;  %v17468_v16 = vpack.c.bf16 %v2272_v34, %v2188_v3  ;;  %v11862_v45 = vld [vmem:[#allocation9 + $0x790] sm:$0xf]  ;;  %v15785_v46 = vld [vmem:[#allocation9 + $0x7a4] sm:$0xf0]  ;;  %v11671_v19 = vor.u32 %v15737_v55, %v11670_v42  ;;  %v11435_v34 = vor.u32 %v15674_v22, %v11432_v27  ;;  %v15764_v42 = vld [vmem:[#allocation9 + $0x704] sm:$0xf] }
 0x208   :  { %v11863_v25 = vor.u32 %v15785_v46, %v11862_v45  ;;  %v11411_v55 = vor.u32 %v15668_v8, %v11408_v17  ;;  %v11603_v45 = vor.u32 %v15716_v40, %v11600_v10  ;;  %v15662_v46 = vld [vmem:[#allocation9 + $0x3d4] sm:$0xf]  ;;  %v11528_v22 = vld [vmem:[#allocation9 + $0x508] sm:$0xf0]  ;;  %v15740_v8 = vld [vmem:[#allocation9 + $0x644] sm:$0xf]  ;;  %v11315_v10 = vor.u32 %v15644_v60, %v11312_v32 }
 0x209   :  { %18570 = vst [vmem:[#allocation29_spill] sm:$0xff] %v17468_v16  ;;  %v7230_v61 = vunpack.c.l.b16 %v17468_v16  ;;  %v15746_v27 = vld [vmem:[#allocation9 + $0x674] sm:$0xf]  ;;  %v11696_v17 = vld [vmem:[#allocation9 + $0x658] sm:$0xf0] }
 0x20a   :  { %2504 = vmatpush.bf16.msrb.mxu0 %v11743_v62  ;;  %2518 = vmatpush.bf16.msrb.mxu1 %v11935_v20  ;;  %v2259_v36 = vpop.f32.mrf.mxu2  ;;  %v15680_v62 = vld [vmem:[#allocation9 + $0x464] sm:$0xf]  ;;  %v11648_v20 = vld [vmem:[#allocation9 + $0x5f8] sm:$0xf0]  ;;  %v2273_v44 = vpop.f32.mrf.mxu3  ;;  %v15638_v40 = vld [vmem:[#allocation9 + $0x314] sm:$0xf] }
 0x20b   :  { %2532 = vmatpush.bf16.msrb.mxu2 %v10979_v18  ;;  %2546 = vmatpush.bf16.msrb.mxu3 %v11171_v33  ;;  %v2260_v9 = vadd.f32 %v2259_v36, %v2246_v49  ;;  %v15776_v18 = vld [vmem:[#allocation9 + $0x764] sm:$0xf]  ;;  %v7231_v23 = vpack.c.b16 %v7230_v61, %v7230_v61  ;;  %v11459_v28 = vor.u32 %v15680_v62, %v11456_v4  ;;  %v11768_v61 = vld [vmem:[#allocation9 + $0x6e8] sm:$0xf0]  ;;  %v15806_v36 = vld [vmem:[#allocation9 + $0x854] sm:$0xf] }
 0x20c   :  { %v15824_v33 = vld [vmem:[#allocation9 + $0x8e4] sm:$0xf]  ;;  %v11651_v37 = vor.u32 %v15728_v12, %v11648_v20  ;;  %v11795_v49 = vor.u32 %v15764_v42, %v11792_v51  ;;  %v11387_v62 = vor.u32 %v15662_v46, %v11384_v54  ;;  %v11579_v4 = vor.u32 %v15710_v56, %v11576_v63  ;;  %v11360_v12 = vld [vmem:[#allocation9 + $0x3b8] sm:$0xf0]  ;;  %v11288_v51 = vld [vmem:[#allocation9 + $0x328] sm:$0xf0] }
 0x20d   :  { %v2274_v26 = vadd.f32 %v2273_v44, %v2260_v9  ;;  %7232 = vrot.lane.b32.xlu0 %v7231_v23, %s17133_s8  ;;  %v15656_v9 = vld [vmem:[#allocation9 + $0x3a4] sm:$0xf]  ;;  %v11771_v20 = vor.u32 %v15758_v5, %v11768_v61  ;;  %v11552_v44 = vld [vmem:[#allocation9 + $0x538] sm:$0xf0]  ;;  %v11672_v46 = vld [vmem:[#allocation9 + $0x628] sm:$0xf0] }
 0x20e   :  { %2505 = vmatpush.bf16.msrb.mxu0 %v11719_v29  ;;  %2519 = vmatpush.bf16.msrb.mxu1 %v11911_v30  ;;  %v11843_v29 = vor.u32 %v15776_v18, %v11840_v59  ;;  %v12035_v30 = vor.u32 %v15824_v33, %v12032_v11  ;;  %v11963_v18 = vor.u32 %v15806_v36, %v11960_v38  ;;  %v15704_v23 = vld [vmem:[#allocation9 + $0x524] sm:$0xf]  ;;  %v11936_v59 = vld [vmem:[#allocation9 + $0x838] sm:$0xf0]  ;;  %v15782_v54 = vld [vmem:[#allocation9 + $0x794] sm:$0xf] }
 0x20f   :  { %2533 = vmatpush.bf16.msrb.mxu2 %v10955_v31  ;;  %2547 = vmatpush.bf16.msrb.mxu3 %v11147_v13  ;;  %v17474_v1 = vpack.c.bf16 %v2274_v26, %v2190_v58  ;;  %v15722_v31 = vld [vmem:[#allocation9 + $0x5b4] sm:$0xf]  ;;  %v11624_v13 = vld [vmem:[#allocation9 + $0x5c8] sm:$0xf0]  ;;  %v11363_v33 = vor.u32 %v15656_v9, %v11360_v12  ;;  %v11555_v11 = vor.u32 %v15704_v23, %v11552_v44  ;;  %v15873_v56 = vld [vmem:[#allocation11 + $0x164] sm:$0xf0] }
 0x210   :  { %v11627_v35 = vor.u32 %v15722_v31, %v11624_v13  ;;  %v15650_v58 = vld [vmem:[#allocation9 + $0x374] sm:$0xf]  ;;  %v11336_v26 = vld [vmem:[#allocation9 + $0x388] sm:$0xf0]  ;;  %v12398_v63 = vld [vmem:[#allocation11 + $0x2d0] sm:$0xf]  ;;  %v11291_v36 = vor.u32 %v15638_v40, %v11288_v51 }
 0x211   :  { %18571 = vst [vmem:[#allocation30_spill] sm:$0xff] %v17474_v1  ;;  %v7259_v3 = vunpack.c.l.b16 %v17474_v1  ;;  %v11912_v31 = vld [vmem:[#allocation9 + $0x808] sm:$0xf0]  ;;  %v11339_v13 = vor.u32 %v15650_v58, %v11336_v26  ;;  %v15921_v5 = vld [vmem:[#allocation11 + $0x2e4] sm:$0xf0] }
 0x212   :  { %2506 = vmatpush.bf16.msrb.mxu0 %v11695_v43  ;;  %2520 = vmatpush.bf16.msrb.mxu1 %v11887_v52  ;;  %v15812_v43 = vld [vmem:[#allocation9 + $0x884] sm:$0xf]  ;;  %v11984_v52 = vld [vmem:[#allocation9 + $0x898] sm:$0xf0]  ;;  %v12590_v61 = vld [vmem:[#allocation11 + $0x450] sm:$0xf]  ;;  %v12399_v23 = vor.u32 %v15921_v5, %v12398_v63 }
 0x213   :  { %2534 = vmatpush.bf16.msrb.mxu2 %v10931_v24  ;;  %2548 = vmatpush.bf16.msrb.mxu3 %v11123_v14  ;;  %v7260_v24 = vpack.c.b16 %v7259_v3, %v7259_v3  ;;  %v11987_v14 = vor.u32 %v15812_v43, %v11984_v52  ;;  %v15686_v43 = vld [vmem:[#allocation9 + $0x494] sm:$0xf]  ;;  %v11480_v52 = vld [vmem:[#allocation9 + $0x4a8] sm:$0xf0]  ;;  %v16017_v9 = vld [vmem:[#allocation11 + $0x5e4] sm:$0xf0] }
 0x214   :  { %v11483_v38 = vor.u32 %v15686_v43, %v11480_v52  ;;  %v12182_v44 = vld [vmem:[#allocation11 + $0x120] sm:$0xf]  ;;  %v15963_v58 = vld [vmem:[#allocation11 + $0x434] sm:$0xf0]  ;;  %v12542_v60 = vld [vmem:[#allocation11 + $0x3f0] sm:$0xf] }
 0x215   :  { %7261 = vrot.lane.b32.xlu1 %v7260_v24, %s17133_s8  ;;  %7507 = vrot.lane.b32.xlu0 %v17474_v1, %s17133_s8  ;;  %v11699_v24 = vor.u32 %v15740_v8, %v11696_v17  ;;  %v12758_v26 = vld [vmem:[#allocation11 + $0x5a0] sm:$0xf]  ;;  %v15957_v32 = vld [vmem:[#allocation11 + $0x404] sm:$0xf0]  ;;  %v15951_v43 = vld [vmem:[#allocation11 + $0x3d4] sm:$0xf0] }
 0x216   :  { %2507 = vmatpush.bf16.msrb.mxu0 %v11671_v19  ;;  %2521 = vmatpush.bf16.msrb.mxu1 %v11863_v25  ;;  %v15752_v19 = vld [vmem:[#allocation9 + $0x6a4] sm:$0xf]  ;;  %v11744_v25 = vld [vmem:[#allocation9 + $0x6b8] sm:$0xf0]  ;;  %v12134_v17 = vld [vmem:[#allocation11 + $0xc0] sm:$0xf] }
 0x217   :  { %2535 = vmatpush.bf16.msrb.mxu2 %v10907_v21  ;;  %2549 = vmatpush.bf16.msrb.mxu3 %v11099_v15  ;;  %v15800_v21 = vld [vmem:[#allocation9 + $0x824] sm:$0xf]  ;;  %v11747_v15 = vor.u32 %v15752_v19, %v11744_v25  ;;  %v15867_v19 = vld [vmem:[#allocation11 + $0x134] sm:$0xf0]  ;;  %v12518_v51 = vld [vmem:[#allocation11 + $0x3c0] sm:$0xf] }
 0x218   :  { %v12710_v52 = vld [vmem:[#allocation11 + $0x540] sm:$0xf]  ;;  %v12302_v5 = vld [vmem:[#allocation11 + $0x210] sm:$0xf]  ;;  %v16061_v1 = vld [vmem:[#allocation11 + $0x744] sm:$0xf0] }
 0x219   :  { %2508 = vmatmul.bf16.vlgmr.msrb.gmra.mxu0 %v17394_v6  ;;  %2522 = vmatmul.bf16.vlgmr.msrb.gmra.mxu1 %v17396_v57 }
 0x21a   :  { %2556 = vmatpush.bf16.msra.mxu0 %v11459_v28  ;;  %2570 = vmatpush.bf16.msra.mxu1 %v11651_v37  ;;  %v11939_v28 = vor.u32 %v15800_v21, %v11936_v59  ;;  %v15698_v37 = vld [vmem:[#allocation9 + $0x4f4] sm:$0xf]  ;;  %v12374_v59 = vld [vmem:[#allocation11 + $0x2a0] sm:$0xf] }
 0x21b   :  { %2584 = vmatpush.bf16.msra.mxu2 %v11843_v29  ;;  %2598 = vmatpush.bf16.msra.mxu3 %v12035_v30  ;;  %v11720_v29 = vld [vmem:[#allocation9 + $0x688] sm:$0xf0]  ;;  %v15794_v30 = vld [vmem:[#allocation9 + $0x7f4] sm:$0xf]  ;;  %v11531_v2 = vor.u32 %v15698_v37, %v11528_v22  ;;  %v12158_v22 = vld [vmem:[#allocation11 + $0xf0] sm:$0xf] }
 0x21c   :  { %2536 = vmatmul.bf16.vlgmr.msrb.gmra.mxu2 %v17372_v47  ;;  %2550 = vmatmul.bf16.vlgmr.msrb.gmra.mxu3 %v17374_v48  ;;  %v11723_v41 = vor.u32 %v15746_v27, %v11720_v29  ;;  %v11915_v3 = vor.u32 %v15794_v30, %v11912_v31  ;;  %v15861_v27 = vld [vmem:[#allocation11 + $0x104] sm:$0xf0]  ;;  %v17484_v29 = vpop.f32.mrf.mxu0 }
 0x21e   :  { %2557 = vmatpush.bf16.msra.mxu0 %v11435_v34  ;;  %2571 = vmatpush.bf16.msra.mxu1 %v11627_v35  ;;  %v15692_v34 = vld [vmem:[#allocation9 + $0x4c4] sm:$0xf]  ;;  %v11504_v35 = vld [vmem:[#allocation9 + $0x4d8] sm:$0xf0] }
 0x21f   :  { %2585 = vmatpush.bf16.msra.mxu2 %v11819_v0  ;;  %2599 = vmatpush.bf16.msra.mxu3 %v12011_v39  ;;  %v15788_v0 = vld [vmem:[#allocation9 + $0x7c4] sm:$0xf]  ;;  %v11888_v39 = vld [vmem:[#allocation9 + $0x7d8] sm:$0xf0]  ;;  %v11507_v42 = vor.u32 %v15692_v34, %v11504_v35  ;;  %v17490_v34 = vpop.f32.mrf.mxu1  ;;  %v12159_v35 = vor.u32 %v15861_v27, %v12158_v22  ;;  %v15837_v22 = vld [vmem:[#allocation11 + $0x44] sm:$0xf0] }
 0x222   :  { %2558 = vmatpush.bf16.msra.mxu0 %v11411_v55  ;;  %2572 = vmatpush.bf16.msra.mxu1 %v11603_v45  ;;  %v11891_v55 = vor.u32 %v15788_v0, %v11888_v39  ;;  %v15734_v45 = vld [vmem:[#allocation9 + $0x614] sm:$0xf]  ;;  %v15855_v0 = vld [vmem:[#allocation11 + $0xd4] sm:$0xf0]  ;;  %v12543_v39 = vor.u32 %v15957_v32, %v12542_v60 }
 0x223   :  { %2586 = vmatpush.bf16.msra.mxu2 %v11795_v49  ;;  %2600 = vmatpush.bf16.msra.mxu3 %v11987_v14  ;;  %v11864_v49 = vld [vmem:[#allocation9 + $0x7a8] sm:$0xf0]  ;;  %v12206_v14 = vld [vmem:[#allocation11 + $0x150] sm:$0xf]  ;;  %v11675_v12 = vor.u32 %v15734_v45, %v11672_v46  ;;  %v17494_v45 = vpop.f32.mrf.mxu3  ;;  %v12135_v46 = vor.u32 %v15855_v0, %v12134_v17  ;;  %v12038_v0 = vld [vmem:[#allocation11] sm:$0xf] }
 0x226   :  { %2559 = vmatpush.bf16.msra.mxu0 %v11387_v62  ;;  %2573 = vmatpush.bf16.msra.mxu1 %v11579_v4  ;;  %v15969_v62 = vld [vmem:[#allocation11 + $0x464] sm:$0xf0]  ;;  %v12782_v4 = vld [vmem:[#allocation11 + $0x5d0] sm:$0xf] }
 0x227   :  { %2587 = vmatpush.bf16.msra.mxu2 %v11771_v20  ;;  %2601 = vmatpush.bf16.msra.mxu3 %v11963_v18  ;;  %v11867_v20 = vor.u32 %v15782_v54, %v11864_v49  ;;  %v12207_v18 = vor.u32 %v15873_v56, %v12206_v14  ;;  %v12591_v25 = vor.u32 %v15969_v62, %v12590_v61  ;;  %v12110_v49 = vld [vmem:[#allocation11 + $0x90] sm:$0xf]  ;;  %v15849_v14 = vld [vmem:[#allocation11 + $0xa4] sm:$0xf0] }
 0x228   :  { %v12783_v21 = vor.u32 %v16017_v9, %v12782_v4  ;;  %v12519_v56 = vor.u32 %v15951_v43, %v12518_v51  ;;  %v15897_v61 = vld [vmem:[#allocation11 + $0x224] sm:$0xf0]  ;;  %v12686_v62 = vld [vmem:[#allocation11 + $0x510] sm:$0xf]  ;;  %v17496_v9 = vpop.f32.mrf.mxu0  ;;  %v15879_v51 = vld [vmem:[#allocation11 + $0x194] sm:$0xf0] }
 0x229   :  { %v15993_v4 = vld [vmem:[#allocation11 + $0x524] sm:$0xf0] }
 0x22a   :  { %2560 = vmatpush.bf16.msra.mxu0 %v11363_v33  ;;  %2574 = vmatpush.bf16.msra.mxu1 %v11555_v11  ;;  %v15915_v33 = vld [vmem:[#allocation11 + $0x2b4] sm:$0xf0]  ;;  %v12566_v11 = vld [vmem:[#allocation11 + $0x420] sm:$0xf] }
 0x22b   :  { %2588 = vmatpush.bf16.msra.mxu2 %v11747_v15  ;;  %2602 = vmatpush.bf16.msra.mxu3 %v11939_v28  ;;  %v16011_v15 = vld [vmem:[#allocation11 + $0x5b4] sm:$0xf0]  ;;  %v12183_v28 = vor.u32 %v15867_v19, %v12182_v44  ;;  %v12375_v37 = vor.u32 %v15915_v33, %v12374_v59  ;;  %v12567_v30 = vor.u32 %v15963_v58, %v12566_v11  ;;  %v12470_v59 = vld [vmem:[#allocation11 + $0x360] sm:$0xf]  ;;  %v17498_v33 = vpop.f32.mrf.mxu1  ;;  %v17502_v32 = vpop.f32.mrf.mxu3 }
 0x22c   :  { %v12759_v31 = vor.u32 %v16011_v15, %v12758_v26  ;;  %v12687_v19 = vor.u32 %v15993_v4, %v12686_v62  ;;  %v15939_v11 = vld [vmem:[#allocation11 + $0x374] sm:$0xf0]  ;;  %v12662_v58 = vld [vmem:[#allocation11 + $0x4e0] sm:$0xf]  ;;  %v12208_v4 = vld [vmem:[#allocation11 + $0x168] sm:$0xf0] }
 0x22d   :  { %v15987_v26 = vld [vmem:[#allocation11 + $0x4f4] sm:$0xf0]  ;;  %v12471_v27 = vor.u32 %v15939_v11, %v12470_v59  ;;  %v12950_v59 = vld [vmem:[#allocation11 + $0x720] sm:$0xf] }
 0x22e   :  { %2561 = vmatpush.bf16.msra.mxu0 %v11339_v13  ;;  %2575 = vmatpush.bf16.msra.mxu1 %v11531_v2  ;;  %v12350_v13 = vld [vmem:[#allocation11 + $0x270] sm:$0xf]  ;;  %v15909_v2 = vld [vmem:[#allocation11 + $0x284] sm:$0xf0]  ;;  %v16059_v11 = vld [vmem:[#allocation11 + $0x734] sm:$0xf0] }
 0x22f   :  { %2589 = vmatpush.bf16.msra.mxu2 %v11723_v41  ;;  %2603 = vmatpush.bf16.msra.mxu3 %v11915_v3  ;;  %v12734_v41 = vld [vmem:[#allocation11 + $0x570] sm:$0xf]  ;;  %v16005_v3 = vld [vmem:[#allocation11 + $0x584] sm:$0xf0]  ;;  %v12351_v8 = vor.u32 %v15909_v2, %v12350_v13 }
 0x230   :  { %v12735_v40 = vor.u32 %v16005_v3, %v12734_v41  ;;  %v15885_v13 = vld [vmem:[#allocation11 + $0x1c4] sm:$0xf0]  ;;  %v12446_v2 = vld [vmem:[#allocation11 + $0x330] sm:$0xf] }
 0x231   :  { %v15933_v41 = vld [vmem:[#allocation11 + $0x344] sm:$0xf0]  ;;  %v12638_v3 = vld [vmem:[#allocation11 + $0x4b0] sm:$0xf] }
 0x232   :  { %2562 = vmatpush.bf16.msra.mxu0 %v11315_v10  ;;  %2576 = vmatpush.bf16.msra.mxu1 %v11507_v42  ;;  %v12326_v10 = vld [vmem:[#allocation11 + $0x240] sm:$0xf]  ;;  %v15903_v42 = vld [vmem:[#allocation11 + $0x254] sm:$0xf0]  ;;  %v12447_v43 = vor.u32 %v15933_v41, %v12446_v2  ;;  %v12951_v41 = vor.u32 %v16059_v11, %v12950_v59 }
 0x233   :  { %2590 = vmatpush.bf16.msra.mxu2 %v11699_v24  ;;  %2604 = vmatpush.bf16.msra.mxu3 %v11891_v55  ;;  %v15999_v24 = vld [vmem:[#allocation11 + $0x554] sm:$0xf0]  ;;  %v17492_v55 = vpop.f32.mrf.mxu2  ;;  %v12327_v54 = vor.u32 %v15903_v42, %v12326_v10  ;;  %v12230_v42 = vld [vmem:[#allocation11 + $0x180] sm:$0xf] }
 0x234   :  { %v12711_v63 = vor.u32 %v15999_v24, %v12710_v52  ;;  %v15831_v10 = vld [vmem:[#allocation11 + $0x14] sm:$0xf0]  ;;  %v12422_v24 = vld [vmem:[#allocation11 + $0x300] sm:$0xf]  ;;  %v12231_v62 = vor.u32 %v15879_v51, %v12230_v42  ;;  %v15858_v42 = vld [vmem:[#allocation11 + $0xf4] sm:$0xf] }
 0x236   :  { %2563 = vmatpush.bf16.msra.mxu0 %v11291_v36  ;;  %2577 = vmatpush.bf16.msra.mxu1 %v11483_v38  ;;  %v12494_v36 = vld [vmem:[#allocation11 + $0x390] sm:$0xf]  ;;  %v15945_v38 = vld [vmem:[#allocation11 + $0x3a4] sm:$0xf0]  ;;  %v17505_v17 = vpop.f32.mrf.mxu0 }
 0x237   :  { %2591 = vmatpush.bf16.msra.mxu2 %v11675_v12  ;;  %2605 = vmatpush.bf16.msra.mxu3 %v11867_v20  ;;  %v12111_v12 = vor.u32 %v15849_v14, %v12110_v49  ;;  %v12303_v20 = vor.u32 %v15897_v61, %v12302_v5  ;;  %v12495_v44 = vor.u32 %v15945_v38, %v12494_v36  ;;  %v17507_v49 = vpop.f32.mrf.mxu1  ;;  %v15975_v14 = vld [vmem:[#allocation11 + $0x494] sm:$0xf0]  ;;  %v13166_v5 = vld [vmem:[#allocation11 + $0x8d0] sm:$0xf]  ;;  %v16113_v61 = vld [vmem:[#allocation11 + $0x8e4] sm:$0xf0] }
 0x238   :  { %v15870_v36 = vld [vmem:[#allocation11 + $0x154] sm:$0xf]  ;;  %v12039_v38 = vor.u32 %v15831_v10, %v12038_v0  ;;  %v16053_v0 = vld [vmem:[#allocation11 + $0x704] sm:$0xf0] }
 0x239   :  { %2564 = vmatmul.bf16.vlgmr.msra.gmra.mxu0 %v17376_v50  ;;  %2578 = vmatmul.bf16.vlgmr.msra.gmra.mxu1 %v17378_v53  ;;  %v16101_v10 = vld [vmem:[#allocation11 + $0x884] sm:$0xf0] }
 0x23a   :  { %4360 = vmatpush.bf16.msrb.mxu0 %v12207_v18  ;;  %4374 = vmatpush.bf16.msrb.mxu1 %v12399_v23  ;;  %v12086_v18 = vld [vmem:[#allocation11 + $0x60] sm:$0xf]  ;;  %v15843_v23 = vld [vmem:[#allocation11 + $0x74] sm:$0xf0] }
 0x23b   :  { %4388 = vmatpush.bf16.msrb.mxu2 %v12591_v25  ;;  %4402 = vmatpush.bf16.msrb.mxu3 %v12783_v21  ;;  %v12278_v25 = vld [vmem:[#allocation11 + $0x1e0] sm:$0xf]  ;;  %v15891_v21 = vld [vmem:[#allocation11 + $0x1f4] sm:$0xf0]  ;;  %v12087_v15 = vor.u32 %v15843_v23, %v12086_v18  ;;  %v17500_v60 = vpop.f32.mrf.mxu2 }
 0x23c   :  { %2592 = vmatmul.bf16.vlgmr.msra.gmra.mxu2 %v17394_v6  ;;  %2606 = vmatmul.bf16.vlgmr.msra.gmra.mxu3 %v17396_v57 }
 0x23e   :  { %4361 = vmatpush.bf16.msrb.mxu0 %v12183_v28  ;;  %4375 = vmatpush.bf16.msrb.mxu1 %v12375_v37  ;;  %v12279_v28 = vor.u32 %v15891_v21, %v12278_v25  ;;  %v12062_v37 = vld [vmem:[#allocation11 + $0x30] sm:$0xf]  ;;  %v13167_v21 = vor.u32 %v16113_v61, %v13166_v5  ;;  %v17515_v2 = vpop.f32.mrf.mxu0  ;;  %v16047_v5 = vld [vmem:[#allocation11 + $0x6d4] sm:$0xf0] }
 0x23f   :  { %4389 = vmatpush.bf16.msrb.mxu2 %v12567_v30  ;;  %4403 = vmatpush.bf16.msrb.mxu3 %v12759_v31  ;;  %v12663_v30 = vor.u32 %v15987_v26, %v12662_v58  ;;  %v12254_v31 = vld [vmem:[#allocation11 + $0x1b0] sm:$0xf]  ;;  %v12211_v58 = vor.u32 %v15870_v36, %v12208_v4  ;;  %v15852_v4 = vld [vmem:[#allocation11 + $0xc4] sm:$0xf] }
 0x242   :  { %4362 = vmatpush.bf16.msrb.mxu0 %v12159_v35  ;;  %4376 = vmatpush.bf16.msrb.mxu1 %v12351_v8  ;;  %v15981_v35 = vld [vmem:[#allocation11 + $0x4c4] sm:$0xf0]  ;;  %v658_v8 = vperm.slane %v17438_v7, 2 }
 0x243   :  { %4390 = vmatpush.bf16.msrb.mxu2 %v12543_v39  ;;  %4404 = vmatpush.bf16.msrb.mxu3 %v12735_v40  ;;  %v12063_v39 = vor.u32 %v15837_v22, %v12062_v37  ;;  %v12255_v40 = vor.u32 %v15885_v13, %v12254_v31  ;;  %v12639_v52 = vor.u32 %v15981_v35, %v12638_v3  ;;  %v15864_v37 = vld [vmem:[#allocation11 + $0x124] sm:$0xf]  ;;  %v12376_v31 = vld [vmem:[#allocation11 + $0x2b8] sm:$0xf0]  ;;  %v659_v13 = vperm.slane %v17438_v7, 3 }
 0x244   :  { %v2286_v22 = vadd.f32 %v17484_v29, %v658_v8  ;;  %v12926_v35 = vld [vmem:[#allocation11 + $0x6f0] sm:$0xf] }
 0x246   :  { %4363 = vmatpush.bf16.msrb.mxu0 %v12135_v46  ;;  %4377 = vmatpush.bf16.msrb.mxu1 %v12327_v54  ;;  %v15927_v46 = vld [vmem:[#allocation11 + $0x314] sm:$0xf0]  ;;  %v12614_v54 = vld [vmem:[#allocation11 + $0x480] sm:$0xf]  ;;  %v2300_v51 = vadd.f32 %v17490_v34, %v2286_v22  ;;  %v12927_v34 = vor.u32 %v16053_v0, %v12926_v35 }
 0x247   :  { %4391 = vmatpush.bf16.msrb.mxu2 %v12519_v56  ;;  %4405 = vmatpush.bf16.msrb.mxu3 %v12711_v63  ;;  %v12974_v56 = vld [vmem:[#allocation11 + $0x750] sm:$0xf]  ;;  %v16065_v63 = vld [vmem:[#allocation11 + $0x764] sm:$0xf0]  ;;  %v12423_v18 = vor.u32 %v15927_v46, %v12422_v24  ;;  %v12615_v23 = vor.u32 %v15975_v14, %v12614_v54  ;;  %v15906_v24 = vld [vmem:[#allocation11 + $0x274] sm:$0xf] }
 0x248   :  { %v12975_v25 = vor.u32 %v16065_v63, %v12974_v56  ;;  %v12352_v46 = vld [vmem:[#allocation11 + $0x288] sm:$0xf0]  ;;  %v2314_v14 = vadd.f32 %v17492_v55, %v2300_v51  ;;  %v12902_v63 = vld [vmem:[#allocation11 + $0x6c0] sm:$0xf]  ;;  %v2288_v55 = vadd.f32 %v17496_v9, %v658_v8 }
 0x249   :  { %v12355_v36 = vor.u32 %v15906_v24, %v12352_v46  ;;  %v12903_v11 = vor.u32 %v16047_v5, %v12902_v63  ;;  %v12112_v8 = vld [vmem:[#allocation11 + $0xa8] sm:$0xf0]  ;;  %v16083_v24 = vld [vmem:[#allocation11 + $0x7f4] sm:$0xf0]  ;;  %v15840_v46 = vld [vmem:[#allocation11 + $0x64] sm:$0xf] }
 0x24a   :  { %4364 = vmatpush.bf16.msrb.mxu0 %v12111_v12  ;;  %4378 = vmatpush.bf16.msrb.mxu1 %v12303_v20  ;;  %v15918_v12 = vld [vmem:[#allocation11 + $0x2d4] sm:$0xf]  ;;  %v12400_v20 = vld [vmem:[#allocation11 + $0x2e8] sm:$0xf0]  ;;  %v2328_v59 = vadd.f32 %v17494_v45, %v2314_v14  ;;  %v2302_v35 = vadd.f32 %v17498_v33, %v2288_v55  ;;  %v15888_v33 = vld [vmem:[#allocation11 + $0x1e4] sm:$0xf] }
 0x24b   :  { %4392 = vmatpush.bf16.msrb.mxu2 %v12495_v44  ;;  %4406 = vmatpush.bf16.msrb.mxu3 %v12687_v19  ;;  %v2369_v44 = vpop.f32.mrf.mxu2  ;;  %v17509_v19 = vpop.f32.mrf.mxu3  ;;  %v12403_v26 = vor.u32 %v15918_v12, %v12400_v20  ;;  %v12280_v14 = vld [vmem:[#allocation11 + $0x1f8] sm:$0xf0]  ;;  %v15834_v55 = vld [vmem:[#allocation11 + $0x34] sm:$0xf] }
 0x24c   :  { %v2370_v54 = vadd.f32 %v2369_v44, %v659_v13  ;;  %v12328_v44 = vld [vmem:[#allocation11 + $0x258] sm:$0xf0]  ;;  %v2342_v45 = vadd.f32 %v17505_v17, %v2328_v59  ;;  %v2316_v7 = vadd.f32 %v17500_v60, %v2302_v35  ;;  %v12592_v35 = vld [vmem:[#allocation11 + $0x468] sm:$0xf0] }
 0x24d   :  { %v12088_v17 = vld [vmem:[#allocation11 + $0x78] sm:$0xf0] }
 0x24e   :  { %4365 = vmatpush.bf16.msrb.mxu0 %v12087_v15  ;;  %4379 = vmatpush.bf16.msrb.mxu1 %v12279_v28  ;;  %v13142_v15 = vld [vmem:[#allocation11 + $0x8a0] sm:$0xf]  ;;  %v16107_v28 = vld [vmem:[#allocation11 + $0x8b4] sm:$0xf0] }
 0x24f   :  { %4393 = vmatpush.bf16.msrb.mxu2 %v12471_v27  ;;  %4407 = vmatpush.bf16.msrb.mxu3 %v12663_v30  ;;  %v12184_v27 = vld [vmem:[#allocation11 + $0x138] sm:$0xf0]  ;;  %v15912_v30 = vld [vmem:[#allocation11 + $0x2a4] sm:$0xf]  ;;  %v13143_v3 = vor.u32 %v16107_v28, %v13142_v15  ;;  %v16041_v15 = vld [vmem:[#allocation11 + $0x6a4] sm:$0xf0] }
 0x250   :  { %v12187_v29 = vor.u32 %v15864_v37, %v12184_v27  ;;  %v13070_v27 = vld [vmem:[#allocation11 + $0x810] sm:$0xf] }
 0x252   :  { %4366 = vmatpush.bf16.msrb.mxu0 %v12063_v39  ;;  %4380 = vmatpush.bf16.msrb.mxu1 %v12255_v40  ;;  %v12379_v39 = vor.u32 %v15912_v30, %v12376_v31  ;;  %v13118_v40 = vld [vmem:[#allocation11 + $0x870] sm:$0xf]  ;;  %v16089_v30 = vld [vmem:[#allocation11 + $0x824] sm:$0xf0]  ;;  %v15846_v31 = vld [vmem:[#allocation11 + $0x94] sm:$0xf] }
 0x253   :  { %4394 = vmatpush.bf16.msrb.mxu2 %v12447_v43  ;;  %4408 = vmatpush.bf16.msrb.mxu3 %v12639_v52  ;;  %v17518_v43 = vpop.f32.mrf.mxu1  ;;  %v12160_v52 = vld [vmem:[#allocation11 + $0x108] sm:$0xf0]  ;;  %v13119_v56 = vor.u32 %v16101_v10, %v13118_v40  ;;  %v2371_v12 = vpop.f32.mrf.mxu2  ;;  %v16035_v40 = vld [vmem:[#allocation11 + $0x674] sm:$0xf0]  ;;  %v13046_v10 = vld [vmem:[#allocation11 + $0x7e0] sm:$0xf]  ;;  %v12115_v51 = vor.u32 %v15846_v31, %v12112_v8 }
 0x254   :  { %v12163_v61 = vor.u32 %v15858_v42, %v12160_v52  ;;  %v2385_v20 = vpop.f32.mrf.mxu3  ;;  %v12040_v8 = vld [vmem:[#allocation11 + $0x18] sm:$0xf0] }
 0x256   :  { %4367 = vmatpush.bf16.msrb.mxu0 %v12039_v38  ;;  %4381 = vmatpush.bf16.msrb.mxu1 %v12231_v62  ;;  %v13094_v38 = vld [vmem:[#allocation11 + $0x840] sm:$0xf]  ;;  %v16095_v62 = vld [vmem:[#allocation11 + $0x854] sm:$0xf0] }
 0x257   :  { %4395 = vmatpush.bf16.msrb.mxu2 %v12423_v18  ;;  %4409 = vmatpush.bf16.msrb.mxu3 %v12615_v23  ;;  %v12136_v18 = vld [vmem:[#allocation11 + $0xd8] sm:$0xf0]  ;;  %v15900_v23 = vld [vmem:[#allocation11 + $0x244] sm:$0xf] }
 0x258   :  { %v12139_v37 = vor.u32 %v15852_v4, %v12136_v18  ;;  %v12331_v22 = vor.u32 %v15900_v23, %v12328_v44  ;;  %v16029_v4 = vld [vmem:[#allocation11 + $0x644] sm:$0xf0]  ;;  %v12283_v18 = vor.u32 %v15888_v33, %v12280_v14  ;;  %v13022_v23 = vld [vmem:[#allocation11 + $0x7b0] sm:$0xf] }
 0x259   :  { %4368 = vmatmul.bf16.vlgmr.msrb.gmra.mxu0 %v17372_v47  ;;  %4382 = vmatmul.bf16.vlgmr.msrb.gmra.mxu1 %v17374_v48  ;;  %v16077_v44 = vld [vmem:[#allocation11 + $0x7c4] sm:$0xf0] }
 0x25a   :  { %4416 = vmatpush.bf16.msra.mxu0 %v12975_v25  ;;  %4430 = vmatpush.bf16.msra.mxu1 %v13167_v21  ;;  %v2384_v25 = vadd.f32 %v17509_v19, %v2370_v54  ;;  %v2397_v21 = vpop.f32.mrf.mxu0  ;;  %v15894_v19 = vld [vmem:[#allocation11 + $0x214] sm:$0xf] }
 0x25b   :  { %4444 = vmatpush.bf16.msra.mxu2 %v12211_v58  ;;  %4458 = vmatpush.bf16.msra.mxu3 %v12403_v26  ;;  %v13095_v58 = vor.u32 %v16095_v62, %v13094_v38  ;;  %v12878_v26 = vld [vmem:[#allocation11 + $0x690] sm:$0xf]  ;;  %v2411_v9 = vpop.f32.mrf.mxu1  ;;  %v12091_v38 = vor.u32 %v15840_v46, %v12088_v17  ;;  %v12976_v46 = vld [vmem:[#allocation11 + $0x768] sm:$0xf0]  ;;  %v16110_v17 = vld [vmem:[#allocation11 + $0x8d4] sm:$0xf] }
 0x25c   :  { %4396 = vmatmul.bf16.vlgmr.msrb.gmra.mxu2 %v17376_v50  ;;  %4410 = vmatmul.bf16.vlgmr.msrb.gmra.mxu3 %v17378_v53  ;;  %v2398_v28 = vadd.f32 %v2397_v21, %v2384_v25  ;;  %v12879_v0 = vor.u32 %v16041_v15, %v12878_v26  ;;  %v12830_v62 = vld [vmem:[#allocation11 + $0x630] sm:$0xf]  ;;  %v15882_v25 = vld [vmem:[#allocation11 + $0x1b4] sm:$0xf]  ;;  %v12256_v21 = vld [vmem:[#allocation11 + $0x1c8] sm:$0xf0] }
 0x25d   :  { %v12831_v15 = vor.u32 %v16029_v4, %v12830_v62  ;;  %v12259_v31 = vor.u32 %v15882_v25, %v12256_v21  ;;  %v16056_v62 = vld [vmem:[#allocation11 + $0x724] sm:$0xf]  ;;  %v12952_v4 = vld [vmem:[#allocation11 + $0x738] sm:$0xf0]  ;;  %v16002_v25 = vld [vmem:[#allocation11 + $0x574] sm:$0xf] }
 0x25e   :  { %4417 = vmatpush.bf16.msra.mxu0 %v12951_v41  ;;  %4431 = vmatpush.bf16.msra.mxu1 %v13143_v3  ;;  %v12304_v41 = vld [vmem:[#allocation11 + $0x228] sm:$0xf0]  ;;  %v2372_v3 = vadd.f32 %v2371_v12, %v659_v13  ;;  %v2412_v42 = vadd.f32 %v2411_v9, %v2398_v28  ;;  %v13023_v28 = vor.u32 %v16077_v44, %v13022_v23  ;;  %v15828_v9 = vld [vmem:[#allocation11 + $0x4] sm:$0xf]  ;;  %v15954_v44 = vld [vmem:[#allocation11 + $0x3f4] sm:$0xf] }
 0x25f   :  { %4445 = vmatpush.bf16.msra.mxu2 %v12187_v29  ;;  %4459 = vmatpush.bf16.msra.mxu3 %v12379_v39  ;;  %v13071_v29 = vor.u32 %v16089_v30, %v13070_v27  ;;  %v12854_v39 = vld [vmem:[#allocation11 + $0x660] sm:$0xf]  ;;  %v12307_v52 = vor.u32 %v15894_v19, %v12304_v41  ;;  %v2425_v13 = vpop.f32.mrf.mxu2  ;;  %v2439_v54 = vpop.f32.mrf.mxu3  ;;  %v16071_v27 = vld [vmem:[#allocation11 + $0x794] sm:$0xf0]  ;;  %v15876_v19 = vld [vmem:[#allocation11 + $0x184] sm:$0xf] }
 0x260   :  { %v2426_v63 = vadd.f32 %v2425_v13, %v2412_v42  ;;  %v12736_v21 = vld [vmem:[#allocation11 + $0x588] sm:$0xf0] }
 0x262   :  { %4418 = vmatpush.bf16.msra.mxu0 %v12927_v34  ;;  %4432 = vmatpush.bf16.msra.mxu1 %v13119_v56  ;;  %v2356_v34 = vadd.f32 %v17507_v49, %v2342_v45  ;;  %v2386_v56 = vadd.f32 %v2385_v20, %v2372_v3  ;;  %v2399_v5 = vpop.f32.mrf.mxu0  ;;  %v2440_v12 = vadd.f32 %v2439_v54, %v2426_v63  ;;  %v12064_v20 = vld [vmem:[#allocation11 + $0x48] sm:$0xf0]  ;;  %v15966_v3 = vld [vmem:[#allocation11 + $0x454] sm:$0xf]  ;;  %v12568_v63 = vld [vmem:[#allocation11 + $0x438] sm:$0xf0] }
 0x263   :  { %4446 = vmatpush.bf16.msra.mxu2 %v12163_v61  ;;  %4460 = vmatpush.bf16.msra.mxu3 %v12355_v36  ;;  %v12855_v61 = vor.u32 %v16035_v40, %v12854_v39  ;;  %v13047_v36 = vor.u32 %v16083_v24, %v13046_v10  ;;  %v2330_v49 = vadd.f32 %v17502_v32, %v2316_v7  ;;  %v2413_v26 = vpop.f32.mrf.mxu1  ;;  %v16014_v39 = vld [vmem:[#allocation11 + $0x5d4] sm:$0xf]  ;;  %v12784_v40 = vld [vmem:[#allocation11 + $0x5e8] sm:$0xf0] }
 0x264   :  { %v2400_v60 = vadd.f32 %v2399_v5, %v2386_v56  ;;  %v17539_v59 = vpack.c.bf16 %v2440_v12, %v2356_v34  ;;  %v12067_v32 = vor.u32 %v15834_v55, %v12064_v20  ;;  %v16062_v10 = vld [vmem:[#allocation11 + $0x754] sm:$0xf]  ;;  %v13168_v7 = vld [vmem:[#allocation11 + $0x8e8] sm:$0xf0]  ;;  %v12043_v54 = vor.u32 %v15828_v9, %v12040_v8  ;;  %v15960_v56 = vld [vmem:[#allocation11 + $0x424] sm:$0xf] }
 0x265   :  { %v12595_v14 = vor.u32 %v15966_v3, %v12592_v35  ;;  %v12787_v34 = vor.u32 %v16014_v39, %v12784_v40  ;;  %v12979_v5 = vor.u32 %v16062_v10, %v12976_v46  ;;  %v16104_v12 = vld [vmem:[#allocation11 + $0x8a4] sm:$0xf]  ;;  %v12544_v55 = vld [vmem:[#allocation11 + $0x408] sm:$0xf0]  ;;  %v13096_v3 = vld [vmem:[#allocation11 + $0x858] sm:$0xf0] }
 0x266   :  { %4419 = vmatpush.bf16.msra.mxu0 %v12903_v11  ;;  %4433 = vmatpush.bf16.msra.mxu1 %v13095_v58  ;;  %18572 = vst [vmem:[#allocation31_spill] sm:$0xff] %v17539_v59  ;;  %v12806_v11 = vld [vmem:[#allocation11 + $0x600] sm:$0xf]  ;;  %v2344_v58 = vadd.f32 %v17515_v2, %v2330_v49  ;;  %v2414_v30 = vadd.f32 %v2413_v26, %v2400_v60  ;;  %v7717_v41 = vunpack.c.l.b16 %v17539_v59  ;;  %v12232_v2 = vld [vmem:[#allocation11 + $0x198] sm:$0xf0] }
 0x267   :  { %4447 = vmatpush.bf16.msra.mxu2 %v12139_v37  ;;  %4461 = vmatpush.bf16.msra.mxu3 %v12331_v22  ;;  %v16023_v37 = vld [vmem:[#allocation11 + $0x614] sm:$0xf0]  ;;  %v12998_v22 = vld [vmem:[#allocation11 + $0x780] sm:$0xf]  ;;  %v2427_v45 = vpop.f32.mrf.mxu2  ;;  %v12235_v33 = vor.u32 %v15876_v19, %v12232_v2  ;;  %v13144_v60 = vld [vmem:[#allocation11 + $0x8b8] sm:$0xf0]  ;;  %v12955_v49 = vor.u32 %v16056_v62, %v12952_v4 }
 0x268   :  { %v2358_v42 = vadd.f32 %v17518_v43, %v2344_v58  ;;  %v12999_v24 = vor.u32 %v16071_v27, %v12998_v22  ;;  %v13147_v20 = vor.u32 %v16104_v12, %v13144_v60  ;;  %v12928_v58 = vld [vmem:[#allocation11 + $0x708] sm:$0xf0]  ;;  %v16098_v26 = vld [vmem:[#allocation11 + $0x874] sm:$0xf]  ;;  %v17551_v22 = vld [vmem:[#allocation15] sm:$0x3f] }
 0x269   :  { %v18561_v27 = vperm.slane %v17551_v22, 4  ;;  %v15996_v8 = vld [vmem:[#allocation11 + $0x544] sm:$0xf]  ;;  %v12712_v19 = vld [vmem:[#allocation11 + $0x558] sm:$0xf0] }
 0x26a   :  { %4420 = vmatpush.bf16.msra.mxu0 %v12879_v0  ;;  %4434 = vmatpush.bf16.msra.mxu1 %v13071_v29  ;;  %v2428_v0 = vadd.f32 %v2427_v45, %v2414_v30  ;;  %v7718_v29 = vpack.c.b16 %v7717_v41, %v7717_v41  ;;  %v15948_v30 = vld [vmem:[#allocation11 + $0x3c4] sm:$0xf]  ;;  %v12904_v45 = vld [vmem:[#allocation11 + $0x6d8] sm:$0xf0]  ;;  %v12715_v39 = vor.u32 %v15996_v8, %v12712_v19  ;;  %v15942_v40 = vld [vmem:[#allocation11 + $0x394] sm:$0xf] }
 0x26b   :  { %4448 = vmatpush.bf16.msra.mxu2 %v12115_v51  ;;  %4462 = vmatpush.bf16.msra.mxu3 %v12307_v52  ;;  %v2441_v51 = vpop.f32.mrf.mxu3  ;;  %v12807_v52 = vor.u32 %v16023_v37, %v12806_v11  ;;  %v16050_v11 = vld [vmem:[#allocation11 + $0x6f4] sm:$0xf]  ;;  %v12739_v37 = vor.u32 %v16002_v25, %v12736_v21  ;;  %v16044_v41 = vld [vmem:[#allocation11 + $0x6c4] sm:$0xf]  ;;  %v12496_v10 = vld [vmem:[#allocation11 + $0x3a8] sm:$0xf0] }
 0x26c   :  { %v2442_v13 = vadd.f32 %v2441_v51, %v2428_v0  ;;  %7719 = vrot.lane.b32.xlu0 %v7718_v29, %s17133_s8  ;;  %v16092_v2 = vld [vmem:[#allocation11 + $0x844] sm:$0xf]  ;;  %v12907_v51 = vor.u32 %v16044_v41, %v12904_v45  ;;  %v12688_v46 = vld [vmem:[#allocation11 + $0x528] sm:$0xf0]  ;;  %v12856_v12 = vld [vmem:[#allocation11 + $0x678] sm:$0xf0] }
 0x26d   :  { %v16032_v62 = vld [vmem:[#allocation11 + $0x664] sm:$0xf]  ;;  %v12448_v25 = vld [vmem:[#allocation11 + $0x348] sm:$0xf0]  ;;  %v12424_v19 = vld [vmem:[#allocation11 + $0x318] sm:$0xf0] }
 0x26e   :  { %4421 = vmatpush.bf16.msra.mxu0 %v12855_v61  ;;  %4435 = vmatpush.bf16.msra.mxu1 %v13047_v36  ;;  %v17545_v43 = vpack.c.bf16 %v2442_v13, %v2358_v42  ;;  %v13171_v61 = vor.u32 %v16110_v17, %v13168_v7  ;;  %v16008_v36 = vld [vmem:[#allocation11 + $0x5a4] sm:$0xf]  ;;  %v16038_v17 = vld [vmem:[#allocation11 + $0x694] sm:$0xf]  ;;  %v12880_v13 = vld [vmem:[#allocation11 + $0x6a8] sm:$0xf0] }
 0x26f   :  { %4449 = vmatpush.bf16.msra.mxu2 %v12091_v38  ;;  %4463 = vmatpush.bf16.msra.mxu3 %v12283_v18  ;;  %v12760_v38 = vld [vmem:[#allocation11 + $0x5b8] sm:$0xf0]  ;;  %v12571_v18 = vor.u32 %v15960_v56, %v12568_v63  ;;  %v15936_v56 = vld [vmem:[#allocation11 + $0x364] sm:$0xf] }
 0x270   :  { %v12763_v23 = vor.u32 %v16008_v36, %v12760_v38  ;;  %v12472_v63 = vld [vmem:[#allocation11 + $0x378] sm:$0xf0]  ;;  %v15984_v36 = vld [vmem:[#allocation11 + $0x4e4] sm:$0xf] }
 0x271   :  { %v12664_v38 = vld [vmem:[#allocation11 + $0x4f8] sm:$0xf0]  ;;  %v16080_v60 = vld [vmem:[#allocation11 + $0x7e4] sm:$0xf] }
 0x272   :  { %4422 = vmatpush.bf16.msra.mxu0 %v12831_v15  ;;  %4436 = vmatpush.bf16.msra.mxu1 %v13023_v28  ;;  %v13120_v15 = vld [vmem:[#allocation11 + $0x888] sm:$0xf0]  ;;  %v12547_v28 = vor.u32 %v15954_v44, %v12544_v55  ;;  %v12475_v55 = vor.u32 %v15936_v56, %v12472_v63  ;;  %v15972_v41 = vld [vmem:[#allocation11 + $0x484] sm:$0xf]  ;;  %v12616_v45 = vld [vmem:[#allocation11 + $0x498] sm:$0xf0] }
 0x273   :  { %4450 = vmatpush.bf16.msra.mxu2 %v12067_v32  ;;  %4464 = vmatpush.bf16.msra.mxu3 %v12259_v31  ;;  %v12520_v32 = vld [vmem:[#allocation11 + $0x3d8] sm:$0xf0]  ;;  %v12931_v31 = vor.u32 %v16050_v11, %v12928_v58  ;;  %v13123_v9 = vor.u32 %v16098_v26, %v13120_v15  ;;  %v12859_v11 = vor.u32 %v16032_v62, %v12856_v12  ;;  %v15978_v26 = vld [vmem:[#allocation11 + $0x4b4] sm:$0xf]  ;;  %v12640_v15 = vld [vmem:[#allocation11 + $0x4c8] sm:$0xf0] }
 0x274   :  { %v12523_v29 = vor.u32 %v15948_v30, %v12520_v32  ;;  %v16074_v30 = vld [vmem:[#allocation11 + $0x7b4] sm:$0xf]  ;;  %v13024_v32 = vld [vmem:[#allocation11 + $0x7c8] sm:$0xf0]  ;;  %v12643_v8 = vor.u32 %v15978_v26, %v12640_v15  ;;  %v12190_v56 = vld [vmem:[#allocation11 + $0x128] sm:$0xf] }
 0x275   :  { %v15868_v63 = vld [vmem:[#allocation11 + $0x13c] sm:$0xf0]  ;;  %v12574_v62 = vld [vmem:[#allocation11 + $0x428] sm:$0xf]  ;;  %v15910_v26 = vld [vmem:[#allocation11 + $0x28c] sm:$0xf0] }
 0x276   :  { %4423 = vmatpush.bf16.msra.mxu0 %v12807_v52  ;;  %4437 = vmatpush.bf16.msra.mxu1 %v12999_v24  ;;  %v2453_v35 = vpop.f32.mrf.mxu0  ;;  %v2467_v42 = vpop.f32.mrf.mxu1  ;;  %v13099_v52 = vor.u32 %v16092_v2, %v13096_v3  ;;  %v15990_v24 = vld [vmem:[#allocation11 + $0x514] sm:$0xf]  ;;  %v13027_v3 = vor.u32 %v16074_v30, %v13024_v32  ;;  %v12766_v12 = vld [vmem:[#allocation11 + $0x5a8] sm:$0xf]  ;;  %v12550_v15 = vld [vmem:[#allocation11 + $0x3f8] sm:$0xf] }
 0x277   :  { %4451 = vmatpush.bf16.msra.mxu2 %v12043_v54  ;;  %4465 = vmatpush.bf16.msra.mxu3 %v12235_v33  ;;  %v2454_v0 = vadd.f32 %v2453_v35, %v18561_v27  ;;  %v16086_v54 = vld [vmem:[#allocation11 + $0x814] sm:$0xf]  ;;  %v13072_v33 = vld [vmem:[#allocation11 + $0x828] sm:$0xf0]  ;;  %v16020_v35 = vld [vmem:[#allocation11 + $0x604] sm:$0xf] }
 0x278   :  { %v16006_v30 = vld [vmem:[#allocation11 + $0x58c] sm:$0xf0]  ;;  %v13182_v27 = vld [vmem:[#allocation11 + $0x8e0] sm:$0xf] }
 0x279   :  { %4424 = vmatmul.bf16.vlgmr.msra.gmra.mxu0 %v17394_v6  ;;  %4438 = vmatmul.bf16.vlgmr.msra.gmra.mxu1 %v17396_v57  ;;  %v2468_v7 = vadd.f32 %v2467_v42, %v2454_v0  ;;  %v12808_v0 = vld [vmem:[#allocation11 + $0x618] sm:$0xf0]  ;;  %v12406_v42 = vld [vmem:[#allocation11 + $0x2d8] sm:$0xf] }
 0x27a   :  { %4472 = vmatpush.bf16.msrb.mxu0 %v12595_v14  ;;  %4486 = vmatpush.bf16.msrb.mxu1 %v12787_v34  ;;  %v12499_v14 = vor.u32 %v15942_v40, %v12496_v10  ;;  %v12691_v34 = vor.u32 %v15990_v24, %v12688_v46  ;;  %v12214_v40 = vld [vmem:[#allocation11 + $0x158] sm:$0xf]  ;;  %v15874_v10 = vld [vmem:[#allocation11 + $0x16c] sm:$0xf0]  ;;  %v12619_v46 = vor.u32 %v15972_v41, %v12616_v45  ;;  %v12334_v45 = vld [vmem:[#allocation11 + $0x248] sm:$0xf] }
 0x27b   :  { %4500 = vmatpush.bf16.msrb.mxu2 %v12979_v5  ;;  %4514 = vmatpush.bf16.msrb.mxu3 %v13171_v61  ;;  %v12883_v5 = vor.u32 %v16038_v17, %v12880_v13  ;;  %v13075_v61 = vor.u32 %v16086_v54, %v13072_v33  ;;  %v15970_v17 = vld [vmem:[#allocation11 + $0x46c] sm:$0xf0]  ;;  %v12811_v54 = vor.u32 %v16020_v35, %v12808_v0  ;;  %v15952_v0 = vld [vmem:[#allocation11 + $0x3dc] sm:$0xf0] }
 0x27c   :  { %4452 = vmatmul.bf16.vlgmr.msra.gmra.mxu2 %v17372_v47  ;;  %4466 = vmatmul.bf16.vlgmr.msra.gmra.mxu3 %v17374_v48  ;;  %v16018_v13 = vld [vmem:[#allocation11 + $0x5ec] sm:$0xf0] }
 0x27e   :  { %4473 = vmatpush.bf16.msrb.mxu0 %v12571_v18  ;;  %4487 = vmatpush.bf16.msrb.mxu1 %v12763_v23  ;;  %v13048_v18 = vld [vmem:[#allocation11 + $0x7f8] sm:$0xf0] }
 0x27f   :  { %4501 = vmatpush.bf16.msrb.mxu2 %v12955_v49  ;;  %4515 = vmatpush.bf16.msrb.mxu3 %v13147_v20  ;;  %v2481_v4 = vpop.f32.mrf.mxu2  ;;  %v2495_v44 = vpop.f32.mrf.mxu3  ;;  %v12667_v49 = vor.u32 %v15984_v36, %v12664_v38  ;;  %v15930_v20 = vld [vmem:[#allocation11 + $0x334] sm:$0xf]  ;;  %v13051_v58 = vor.u32 %v16080_v60, %v13048_v18  ;;  %v12382_v36 = vld [vmem:[#allocation11 + $0x2a8] sm:$0xf]  ;;  %v15916_v38 = vld [vmem:[#allocation11 + $0x2bc] sm:$0xf0] }
 0x280   :  { %v2482_v23 = vadd.f32 %v2481_v4, %v2468_v7  ;;  %v12790_v7 = vld [vmem:[#allocation11 + $0x5d8] sm:$0xf]  ;;  %v15964_v4 = vld [vmem:[#allocation11 + $0x43c] sm:$0xf0]  ;;  %v17558_v18 = vpop.f32.mrf.mxu0 }
 0x281   :  { %v16012_v60 = vld [vmem:[#allocation11 + $0x5bc] sm:$0xf0] }
 0x282   :  { %4474 = vmatpush.bf16.msrb.mxu0 %v12547_v28  ;;  %4488 = vmatpush.bf16.msrb.mxu1 %v12739_v37  ;;  %v17556_v21 = vadd.f32 %v2495_v44, %v2482_v23  ;;  %v16026_v28 = vld [vmem:[#allocation11 + $0x634] sm:$0xf]  ;;  %v12832_v37 = vld [vmem:[#allocation11 + $0x648] sm:$0xf0]  ;;  %v12191_v23 = vor.u32 %v15868_v63, %v12190_v56  ;;  %v12383_v44 = vor.u32 %v15916_v38, %v12382_v36  ;;  %v15946_v56 = vld [vmem:[#allocation11 + $0x3ac] sm:$0xf0] }
 0x283   :  { %4502 = vmatpush.bf16.msrb.mxu2 %v12931_v31  ;;  %4516 = vmatpush.bf16.msrb.mxu3 %v13123_v9  ;;  %v15924_v31 = vld [vmem:[#allocation11 + $0x304] sm:$0xf]  ;;  %v12451_v9 = vor.u32 %v15930_v20, %v12448_v25  ;;  %v12835_v2 = vor.u32 %v16026_v28, %v12832_v37  ;;  %v17560_v20 = vpop.f32.mrf.mxu1  ;;  %v12575_v25 = vor.u32 %v15964_v4, %v12574_v62  ;;  %v15958_v28 = vld [vmem:[#allocation11 + $0x40c] sm:$0xf0]  ;;  %v12742_v37 = vld [vmem:[#allocation11 + $0x578] sm:$0xf] }
 0x284   :  { %v12427_v24 = vor.u32 %v15924_v31, %v12424_v19  ;;  %v12551_v19 = vor.u32 %v15958_v28, %v12550_v15  ;;  %v12743_v41 = vor.u32 %v16006_v30, %v12742_v37  ;;  %v12694_v63 = vld [vmem:[#allocation11 + $0x518] sm:$0xf]  ;;  %v12094_v38 = vld [vmem:[#allocation11 + $0x68] sm:$0xf]  ;;  %v15844_v62 = vld [vmem:[#allocation11 + $0x7c] sm:$0xf0] }
 0x285   :  { %v12095_v15 = vor.u32 %v15844_v62, %v12094_v38  ;;  %v12070_v37 = vld [vmem:[#allocation11 + $0x38] sm:$0xf]  ;;  %v15838_v30 = vld [vmem:[#allocation11 + $0x4c] sm:$0xf0]  ;;  %v15919_v38 = vld [vmem:[#allocation11 + $0x2dc] sm:$0xf] }
 0x286   :  { %4475 = vmatpush.bf16.msrb.mxu0 %v12523_v29  ;;  %4489 = vmatpush.bf16.msrb.mxu1 %v12715_v39  ;;  %v16068_v29 = vld [vmem:[#allocation11 + $0x784] sm:$0xf]  ;;  %v13000_v39 = vld [vmem:[#allocation11 + $0x798] sm:$0xf0]  ;;  %v12408_v62 = vld [vmem:[#allocation11 + $0x2f0] sm:$0xf0] }
 0x287   :  { %4503 = vmatpush.bf16.msrb.mxu2 %v12907_v51  ;;  %4517 = vmatpush.bf16.msrb.mxu3 %v13099_v52  ;;  %v15922_v51 = vld [vmem:[#allocation11 + $0x2ec] sm:$0xf0]  ;;  %v12598_v52 = vld [vmem:[#allocation11 + $0x458] sm:$0xf]  ;;  %v13003_v33 = vor.u32 %v16068_v29, %v13000_v39  ;;  %v17566_v35 = vpop.f32.mrf.mxu2  ;;  %v12718_v29 = vld [vmem:[#allocation11 + $0x548] sm:$0xf] }
 0x288   :  { %v16000_v39 = vld [vmem:[#allocation11 + $0x55c] sm:$0xf0] }
 0x28a   :  { %4476 = vmatpush.bf16.msrb.mxu0 %v12499_v14  ;;  %4490 = vmatpush.bf16.msrb.mxu1 %v12691_v34  ;;  %v12215_v14 = vor.u32 %v15874_v10, %v12214_v40  ;;  %v12407_v34 = vor.u32 %v15922_v51, %v12406_v42  ;;  %v17568_v10 = vpop.f32.mrf.mxu3 }
 0x28b   :  { %4504 = vmatpush.bf16.msrb.mxu2 %v12883_v5  ;;  %4518 = vmatpush.bf16.msrb.mxu3 %v13075_v61  ;;  %v12599_v5 = vor.u32 %v15970_v17, %v12598_v52  ;;  %v12791_v61 = vor.u32 %v16018_v13, %v12790_v7  ;;  %v12719_v13 = vor.u32 %v16000_v39, %v12718_v29 }
 0x28c   :  { %v12071_v29 = vor.u32 %v15838_v30, %v12070_v37  ;;  %v12384_v37 = vld [vmem:[#allocation11 + $0x2c0] sm:$0xf0] }
 0x28e   :  { %4477 = vmatpush.bf16.msrb.mxu0 %v12475_v55  ;;  %4491 = vmatpush.bf16.msrb.mxu1 %v12667_v49  ;;  %v12166_v55 = vld [vmem:[#allocation11 + $0xf8] sm:$0xf]  ;;  %v15862_v49 = vld [vmem:[#allocation11 + $0x10c] sm:$0xf0] }
 0x28f   :  { %4505 = vmatpush.bf16.msrb.mxu2 %v12859_v11  ;;  %4519 = vmatpush.bf16.msrb.mxu3 %v13051_v58  ;;  %v12767_v11 = vor.u32 %v16012_v60, %v12766_v12  ;;  %v12358_v58 = vld [vmem:[#allocation11 + $0x278] sm:$0xf]  ;;  %v12167_v32 = vor.u32 %v15862_v49, %v12166_v55  ;;  %v12286_v60 = vld [vmem:[#allocation11 + $0x1e8] sm:$0xf]  ;;  %v15940_v49 = vld [vmem:[#allocation11 + $0x37c] sm:$0xf0] }
 0x290   :  { %v12359_v31 = vor.u32 %v15910_v26, %v12358_v58 }
 0x292   :  { %4478 = vmatpush.bf16.msrb.mxu0 %v12451_v9  ;;  %4492 = vmatpush.bf16.msrb.mxu1 %v12643_v8  ;;  %v12142_v9 = vld [vmem:[#allocation11 + $0xc8] sm:$0xf]  ;;  %v15856_v8 = vld [vmem:[#allocation11 + $0xdc] sm:$0xf0] }
 0x293   :  { %4506 = vmatpush.bf16.msrb.mxu2 %v12835_v2  ;;  %4520 = vmatpush.bf16.msrb.mxu3 %v13027_v3  ;;  %v15904_v2 = vld [vmem:[#allocation11 + $0x25c] sm:$0xf0]  ;;  %v12526_v3 = vld [vmem:[#allocation11 + $0x3c8] sm:$0xf]  ;;  %v12143_v51 = vor.u32 %v15856_v8, %v12142_v9  ;;  %v12262_v8 = vld [vmem:[#allocation11 + $0x1b8] sm:$0xf] }
 0x294   :  { %v12335_v52 = vor.u32 %v15904_v2, %v12334_v45  ;;  %v12527_v7 = vor.u32 %v15952_v0, %v12526_v3  ;;  %v15934_v45 = vld [vmem:[#allocation11 + $0x34c] sm:$0xf0]  ;;  %v12646_v2 = vld [vmem:[#allocation11 + $0x4b8] sm:$0xf]  ;;  %v12046_v0 = vld [vmem:[#allocation11 + $0x8] sm:$0xf] }
 0x295   :  { %v15982_v3 = vld [vmem:[#allocation11 + $0x4cc] sm:$0xf0] }
 0x296   :  { %4479 = vmatpush.bf16.msrb.mxu0 %v12427_v24  ;;  %4493 = vmatpush.bf16.msrb.mxu1 %v12619_v46  ;;  %v2509_v40 = vpop.f32.mrf.mxu0  ;;  %v12118_v24 = vld [vmem:[#allocation11 + $0x98] sm:$0xf]  ;;  %v15850_v46 = vld [vmem:[#allocation11 + $0xac] sm:$0xf0]  ;;  %v2523_v17 = vpop.f32.mrf.mxu1 }
 0x297   :  { %4507 = vmatpush.bf16.msrb.mxu2 %v12811_v54  ;;  %4521 = vmatpush.bf16.msrb.mxu3 %v13003_v33  ;;  %v2510_v42 = vadd.f32 %v2509_v40, %v17556_v21  ;;  %v12310_v54 = vld [vmem:[#allocation11 + $0x218] sm:$0xf]  ;;  %v15898_v33 = vld [vmem:[#allocation11 + $0x22c] sm:$0xf0]  ;;  %v12119_v21 = vor.u32 %v15850_v46, %v12118_v24  ;;  %v15832_v40 = vld [vmem:[#allocation11 + $0x1c] sm:$0xf0]  ;;  %v12647_v24 = vor.u32 %v15982_v3, %v12646_v2 }
 0x298   :  { %v12311_v36 = vor.u32 %v15898_v33, %v12310_v54  ;;  %v12430_v46 = vld [vmem:[#allocation11 + $0x308] sm:$0xf]  ;;  %v12982_v54 = vld [vmem:[#allocation11 + $0x758] sm:$0xf]  ;;  %v16066_v33 = vld [vmem:[#allocation11 + $0x76c] sm:$0xf0] }
 0x299   :  { %4480 = vmatmul.bf16.vlgmr.msrb.gmra.mxu0 %v17376_v50  ;;  %4494 = vmatmul.bf16.vlgmr.msrb.gmra.mxu1 %v17378_v53  ;;  %v13126_v3 = vld [vmem:[#allocation11 + $0x878] sm:$0xf] }
 0x29a   :  { %4528 = vmatpush.bf16.msra.mxu0 %v12215_v14  ;;  %4542 = vmatpush.bf16.msra.mxu1 %v12407_v34  ;;  %v12502_v14 = vld [vmem:[#allocation11 + $0x398] sm:$0xf]  ;;  %v17571_v34 = vadd.f32 %v2523_v17, %v2510_v42  ;;  %v12238_v42 = vld [vmem:[#allocation11 + $0x188] sm:$0xf]  ;;  %v15928_v17 = vld [vmem:[#allocation11 + $0x31c] sm:$0xf0] }
 0x29b   :  { %4556 = vmatpush.bf16.msra.mxu2 %v12599_v5  ;;  %4570 = vmatpush.bf16.msra.mxu3 %v12791_v61  ;;  %v15994_v5 = vld [vmem:[#allocation11 + $0x52c] sm:$0xf0]  ;;  %v18562_v61 = vperm.slane %v17551_v22, 5  ;;  %v12503_v4 = vor.u32 %v15946_v56, %v12502_v14  ;;  %v13174_v14 = vld [vmem:[#allocation11 + $0x8d8] sm:$0xf] }
 0x29c   :  { %4508 = vmatmul.bf16.vlgmr.msrb.gmra.mxu2 %v17394_v6  ;;  %4522 = vmatmul.bf16.vlgmr.msrb.gmra.mxu3 %v17396_v57  ;;  %v12695_v12 = vor.u32 %v15994_v5, %v12694_v63  ;;  %v16114_v56 = vld [vmem:[#allocation11 + $0x8ec] sm:$0xf0]  ;;  %v15871_v63 = vld [vmem:[#allocation11 + $0x15c] sm:$0xf]  ;;  %v12047_v5 = vor.u32 %v15832_v40, %v12046_v0 }
 0x29d   :  { %v16102_v0 = vld [vmem:[#allocation11 + $0x88c] sm:$0xf0]  ;;  %v15907_v40 = vld [vmem:[#allocation11 + $0x27c] sm:$0xf] }
 0x29e   :  { %4529 = vmatpush.bf16.msra.mxu0 %v12191_v23  ;;  %4543 = vmatpush.bf16.msra.mxu1 %v12383_v44  ;;  %v15892_v23 = vld [vmem:[#allocation11 + $0x1fc] sm:$0xf0]  ;;  %v12478_v44 = vld [vmem:[#allocation11 + $0x368] sm:$0xf]  ;;  %v17578_v30 = vpop.f32.mrf.mxu0 }
 0x29f   :  { %4557 = vmatpush.bf16.msra.mxu2 %v12575_v25  ;;  %4571 = vmatpush.bf16.msra.mxu3 %v12767_v11  ;;  %v2537_v55 = vpop.f32.mrf.mxu2  ;;  %v12670_v25 = vld [vmem:[#allocation11 + $0x4e8] sm:$0xf]  ;;  %v15988_v11 = vld [vmem:[#allocation11 + $0x4fc] sm:$0xf0]  ;;  %v2551_v26 = vpop.f32.mrf.mxu3  ;;  %v12287_v28 = vor.u32 %v15892_v23, %v12286_v60  ;;  %v12983_v60 = vor.u32 %v16066_v33, %v12982_v54  ;;  %v13175_v23 = vor.u32 %v16114_v56, %v13174_v14  ;;  %v15853_v33 = vld [vmem:[#allocation11 + $0xcc] sm:$0xf] }
 0x2a0   :  { %v2538_v58 = vadd.f32 %v2537_v55, %v18562_v61  ;;  %v12671_v9 = vor.u32 %v15988_v11, %v12670_v25  ;;  %v16060_v55 = vld [vmem:[#allocation11 + $0x73c] sm:$0xf0]  ;;  %v12411_v25 = vor.u32 %v15919_v38, %v12408_v62  ;;  %v13150_v11 = vld [vmem:[#allocation11 + $0x8a8] sm:$0xf]  ;;  %v12144_v56 = vld [vmem:[#allocation11 + $0xe0] sm:$0xf0] }
 0x2a1   :  { %v16096_v54 = vld [vmem:[#allocation11 + $0x85c] sm:$0xf0] }
 0x2a2   :  { %4530 = vmatpush.bf16.msra.mxu0 %v12167_v32  ;;  %4544 = vmatpush.bf16.msra.mxu1 %v12359_v31  ;;  %v17576_v32 = vadd.f32 %v2551_v26, %v2538_v58  ;;  %v12479_v31 = vor.u32 %v15940_v49, %v12478_v44  ;;  %v12958_v44 = vld [vmem:[#allocation11 + $0x728] sm:$0xf]  ;;  %v16108_v58 = vld [vmem:[#allocation11 + $0x8bc] sm:$0xf0]  ;;  %v15865_v26 = vld [vmem:[#allocation11 + $0x12c] sm:$0xf] }
 0x2a3   :  { %4558 = vmatpush.bf16.msra.mxu2 %v12551_v19  ;;  %4572 = vmatpush.bf16.msra.mxu3 %v12743_v41  ;;  %v15886_v19 = vld [vmem:[#allocation11 + $0x1cc] sm:$0xf0]  ;;  %v12454_v41 = vld [vmem:[#allocation11 + $0x338] sm:$0xf] }
 0x2a4   :  { %v12263_v39 = vor.u32 %v15886_v19, %v12262_v8  ;;  %v12934_v8 = vld [vmem:[#allocation11 + $0x6f8] sm:$0xf]  ;;  %v16054_v19 = vld [vmem:[#allocation11 + $0x70c] sm:$0xf0] }
 0x2a6   :  { %4531 = vmatpush.bf16.msra.mxu0 %v12143_v51  ;;  %4545 = vmatpush.bf16.msra.mxu1 %v12335_v52  ;;  %v15880_v51 = vld [vmem:[#allocation11 + $0x19c] sm:$0xf0]  ;;  %v12455_v52 = vor.u32 %v15934_v45, %v12454_v41  ;;  %v17580_v41 = vpop.f32.mrf.mxu1 }
 0x2a7   :  { %4559 = vmatpush.bf16.msra.mxu2 %v12527_v7  ;;  %4573 = vmatpush.bf16.msra.mxu3 %v12719_v13  ;;  %v12622_v7 = vld [vmem:[#allocation11 + $0x488] sm:$0xf]  ;;  %v15976_v13 = vld [vmem:[#allocation11 + $0x49c] sm:$0xf0]  ;;  %v17586_v14 = vpop.f32.mrf.mxu2 }
 0x2aa   :  { %4532 = vmatpush.bf16.msra.mxu0 %v12119_v21  ;;  %4546 = vmatpush.bf16.msra.mxu1 %v12311_v36  ;;  %v12239_v21 = vor.u32 %v15880_v51, %v12238_v42  ;;  %v12216_v36 = vld [vmem:[#allocation11 + $0x170] sm:$0xf0]  ;;  %v12935_v51 = vor.u32 %v16054_v19, %v12934_v8 }
 0x2ab   :  { %4560 = vmatpush.bf16.msra.mxu2 %v12503_v4  ;;  %4574 = vmatpush.bf16.msra.mxu3 %v12695_v12  ;;  %v12431_v4 = vor.u32 %v15928_v17, %v12430_v46  ;;  %v12623_v12 = vor.u32 %v15976_v13, %v12622_v7  ;;  %v12219_v49 = vor.u32 %v15871_v63, %v12216_v36  ;;  %v12360_v42 = vld [vmem:[#allocation11 + $0x290] sm:$0xf0]  ;;  %v16048_v46 = vld [vmem:[#allocation11 + $0x6dc] sm:$0xf0]  ;;  %v13102_v13 = vld [vmem:[#allocation11 + $0x848] sm:$0xf]  ;;  %v17588_v36 = vpop.f32.mrf.mxu3 }
 0x2ac   :  { %v12363_v7 = vor.u32 %v15907_v40, %v12360_v42  ;;  %v15901_v63 = vld [vmem:[#allocation11 + $0x24c] sm:$0xf]  ;;  %v12288_v40 = vld [vmem:[#allocation11 + $0x200] sm:$0xf0] }
 0x2ae   :  { %4533 = vmatpush.bf16.msra.mxu0 %v12095_v15  ;;  %4547 = vmatpush.bf16.msra.mxu1 %v12287_v28  ;;  %v12192_v15 = vld [vmem:[#allocation11 + $0x140] sm:$0xf0]  ;;  %v15913_v28 = vld [vmem:[#allocation11 + $0x2ac] sm:$0xf] }
 0x2af   :  { %4561 = vmatpush.bf16.msra.mxu2 %v12479_v31  ;;  %4575 = vmatpush.bf16.msra.mxu3 %v12671_v9  ;;  %v12959_v31 = vor.u32 %v16060_v55, %v12958_v44  ;;  %v13151_v9 = vor.u32 %v16108_v58, %v13150_v11  ;;  %v12195_v45 = vor.u32 %v15865_v26, %v12192_v15  ;;  %v15847_v11 = vld [vmem:[#allocation11 + $0x9c] sm:$0xf]  ;;  %v12120_v26 = vld [vmem:[#allocation11 + $0xb0] sm:$0xf0] }
 0x2b0   :  { %v12387_v2 = vor.u32 %v15913_v28, %v12384_v37  ;;  %v12147_v44 = vor.u32 %v15853_v33, %v12144_v56  ;;  %v15895_v15 = vld [vmem:[#allocation11 + $0x21c] sm:$0xf]  ;;  %v12312_v28 = vld [vmem:[#allocation11 + $0x230] sm:$0xf0]  ;;  %v12123_v8 = vor.u32 %v15847_v11, %v12120_v26  ;;  %v13030_v33 = vld [vmem:[#allocation11 + $0x7b8] sm:$0xf] }
 0x2b1   :  { %v12315_v19 = vor.u32 %v15895_v15, %v12312_v28  ;;  %v16078_v56 = vld [vmem:[#allocation11 + $0x7cc] sm:$0xf0]  ;;  %v15829_v11 = vld [vmem:[#allocation11 + $0xc] sm:$0xf]  ;;  %v12240_v15 = vld [vmem:[#allocation11 + $0x1a0] sm:$0xf0] }
 0x2b2   :  { %4534 = vmatpush.bf16.msra.mxu0 %v12071_v29  ;;  %4548 = vmatpush.bf16.msra.mxu1 %v12263_v39  ;;  %v15859_v29 = vld [vmem:[#allocation11 + $0xfc] sm:$0xf]  ;;  %v12168_v39 = vld [vmem:[#allocation11 + $0x110] sm:$0xf0]  ;;  %v15877_v26 = vld [vmem:[#allocation11 + $0x18c] sm:$0xf] }
 0x2b3   :  { %4562 = vmatpush.bf16.msra.mxu2 %v12455_v52  ;;  %4576 = vmatpush.bf16.msra.mxu3 %v12647_v24  ;;  %v13127_v52 = vor.u32 %v16102_v0, %v13126_v3  ;;  %v12910_v24 = vld [vmem:[#allocation11 + $0x6c8] sm:$0xf]  ;;  %v12171_v17 = vor.u32 %v15859_v29, %v12168_v39  ;;  %v15841_v3 = vld [vmem:[#allocation11 + $0x6c] sm:$0xf]  ;;  %v12096_v29 = vld [vmem:[#allocation11 + $0x80] sm:$0xf0] }
 0x2b4   :  { %v12911_v62 = vor.u32 %v16048_v46, %v12910_v24  ;;  %v15889_v39 = vld [vmem:[#allocation11 + $0x1ec] sm:$0xf]  ;;  %v12838_v46 = vld [vmem:[#allocation11 + $0x638] sm:$0xf]  ;;  %v15967_v28 = vld [vmem:[#allocation11 + $0x45c] sm:$0xf] }
 0x2b6   :  { %4535 = vmatpush.bf16.msra.mxu0 %v12047_v5  ;;  %4549 = vmatpush.bf16.msra.mxu1 %v12239_v21  ;;  %v12336_v5 = vld [vmem:[#allocation11 + $0x260] sm:$0xf0]  ;;  %v2565_v21 = vpop.f32.mrf.mxu0 }
 0x2b7   :  { %4563 = vmatpush.bf16.msra.mxu2 %v12431_v4  ;;  %4577 = vmatpush.bf16.msra.mxu3 %v12623_v12  ;;  %v2566_v38 = vadd.f32 %v2565_v21, %v17576_v32  ;;  %v13103_v4 = vor.u32 %v16096_v54, %v13102_v13  ;;  %v12886_v12 = vld [vmem:[#allocation11 + $0x698] sm:$0xf]  ;;  %v12339_v55 = vor.u32 %v15901_v63, %v12336_v5  ;;  %v15835_v63 = vld [vmem:[#allocation11 + $0x3c] sm:$0xf]  ;;  %v12072_v5 = vld [vmem:[#allocation11 + $0x50] sm:$0xf0] }
 0x2b8   :  { %v12099_v13 = vor.u32 %v15841_v3, %v12096_v29  ;;  %v12291_v54 = vor.u32 %v15889_v39, %v12288_v40  ;;  %v15883_v21 = vld [vmem:[#allocation11 + $0x1bc] sm:$0xf]  ;;  %v15961_v40 = vld [vmem:[#allocation11 + $0x42c] sm:$0xf] }
 0x2b9   :  { %4536 = vmatmul.bf16.vlgmr.msra.gmra.mxu0 %v17372_v47  ;;  %4550 = vmatmul.bf16.vlgmr.msra.gmra.mxu1 %v17374_v48 }
 0x2ba   :  { %4584 = vmatpush.bf16.msrb.mxu0 %v12983_v60  ;;  %4598 = vmatpush.bf16.msrb.mxu1 %v13175_v23  ;;  %v16042_v60 = vld [vmem:[#allocation11 + $0x6ac] sm:$0xf0]  ;;  %v2579_v23 = vpop.f32.mrf.mxu1 }
 0x2bb   :  { %4612 = vmatpush.bf16.msrb.mxu2 %v12219_v49  ;;  %4626 = vmatpush.bf16.msrb.mxu3 %v12411_v25  ;;  %v13078_v49 = vld [vmem:[#allocation11 + $0x818] sm:$0xf]  ;;  %v16090_v25 = vld [vmem:[#allocation11 + $0x82c] sm:$0xf0]  ;;  %v2580_v58 = vadd.f32 %v2579_v23, %v2566_v38  ;;  %v12887_v37 = vor.u32 %v16042_v60, %v12886_v12  ;;  %v12264_v38 = vld [vmem:[#allocation11 + $0x1d0] sm:$0xf0]  ;;  %v13031_v60 = vor.u32 %v16078_v56, %v13030_v33 }
 0x2bc   :  { %4564 = vmatmul.bf16.vlgmr.msra.gmra.mxu2 %v17376_v50  ;;  %4578 = vmatmul.bf16.vlgmr.msra.gmra.mxu3 %v17378_v53  ;;  %v13079_v32 = vor.u32 %v16090_v25, %v13078_v49  ;;  %v16024_v23 = vld [vmem:[#allocation11 + $0x61c] sm:$0xf0]  ;;  %v12075_v49 = vor.u32 %v15835_v63, %v12072_v5  ;;  %v12267_v25 = vor.u32 %v15883_v21, %v12264_v38  ;;  %v15955_v63 = vld [vmem:[#allocation11 + $0x3fc] sm:$0xf]  ;;  %v12552_v5 = vld [vmem:[#allocation11 + $0x410] sm:$0xf0] }
 0x2be   :  { %4585 = vmatpush.bf16.msrb.mxu0 %v12959_v31  ;;  %4599 = vmatpush.bf16.msrb.mxu1 %v13151_v9  ;;  %v12862_v31 = vld [vmem:[#allocation11 + $0x668] sm:$0xf]  ;;  %v16036_v9 = vld [vmem:[#allocation11 + $0x67c] sm:$0xf0] }
 0x2bf   :  { %4613 = vmatpush.bf16.msrb.mxu2 %v12195_v45  ;;  %4627 = vmatpush.bf16.msrb.mxu3 %v12387_v2  ;;  %v13054_v45 = vld [vmem:[#allocation11 + $0x7e8] sm:$0xf]  ;;  %v16084_v2 = vld [vmem:[#allocation11 + $0x7fc] sm:$0xf0]  ;;  %v2593_v0 = vpop.f32.mrf.mxu2 }
 0x2c0   :  { %v2594_v42 = vadd.f32 %v2593_v0, %v2580_v58  ;;  %v13055_v24 = vor.u32 %v16084_v2, %v13054_v45  ;;  %v12048_v58 = vld [vmem:[#allocation11 + $0x20] sm:$0xf0]  ;;  %v16111_v45 = vld [vmem:[#allocation11 + $0x8dc] sm:$0xf]  ;;  %v13176_v2 = vld [vmem:[#allocation11 + $0x8f0] sm:$0xf0]  ;;  %v12243_v0 = vor.u32 %v15877_v26, %v12240_v15 }
 0x2c1   :  { %v12051_v3 = vor.u32 %v15829_v11, %v12048_v58  ;;  %v15949_v11 = vld [vmem:[#allocation11 + $0x3cc] sm:$0xf]  ;;  %v12528_v58 = vld [vmem:[#allocation11 + $0x3e0] sm:$0xf0] }
 0x2c2   :  { %4586 = vmatpush.bf16.msrb.mxu0 %v12935_v51  ;;  %4600 = vmatpush.bf16.msrb.mxu1 %v13127_v52  ;;  %v2607_v51 = vpop.f32.mrf.mxu3  ;;  %v12863_v52 = vor.u32 %v16036_v9, %v12862_v31  ;;  %v16063_v31 = vld [vmem:[#allocation11 + $0x75c] sm:$0xf] }
 0x2c3   :  { %4614 = vmatpush.bf16.msrb.mxu2 %v12171_v17  ;;  %4628 = vmatpush.bf16.msrb.mxu3 %v12363_v7  ;;  %v16030_v17 = vld [vmem:[#allocation11 + $0x64c] sm:$0xf0]  ;;  %v2608_v7 = vadd.f32 %v2607_v51, %v2594_v42  ;;  %v12576_v42 = vld [vmem:[#allocation11 + $0x440] sm:$0xf0] }
 0x2c4   :  { %v12839_v12 = vor.u32 %v16030_v17, %v12838_v46  ;;  %v12768_v46 = vld [vmem:[#allocation11 + $0x5c0] sm:$0xf0]  ;;  %v16057_v17 = vld [vmem:[#allocation11 + $0x72c] sm:$0xf]  ;;  %v12579_v33 = vor.u32 %v15961_v40, %v12576_v42  ;;  %v16039_v40 = vld [vmem:[#allocation11 + $0x69c] sm:$0xf] }
 0x2c5   :  { %v12888_v42 = vld [vmem:[#allocation11 + $0x6b0] sm:$0xf0] }
 0x2c6   :  { %4587 = vmatpush.bf16.msrb.mxu0 %v12911_v62  ;;  %4601 = vmatpush.bf16.msrb.mxu1 %v13103_v4  ;;  %v17592_v62 = vpack.c.bf16 %v2608_v7, %v17571_v34  ;;  %v12814_v4 = vld [vmem:[#allocation11 + $0x608] sm:$0xf]  ;;  %v16015_v34 = vld [vmem:[#allocation11 + $0x5dc] sm:$0xf]  ;;  %v12960_v7 = vld [vmem:[#allocation11 + $0x740] sm:$0xf0] }
 0x2c7   :  { %4615 = vmatpush.bf16.msrb.mxu2 %v12147_v44  ;;  %4629 = vmatpush.bf16.msrb.mxu3 %v12339_v55  ;;  %v13006_v44 = vld [vmem:[#allocation11 + $0x788] sm:$0xf]  ;;  %v16072_v55 = vld [vmem:[#allocation11 + $0x79c] sm:$0xf0]  ;;  %v12815_v9 = vor.u32 %v16024_v23, %v12814_v4  ;;  %v12963_v21 = vor.u32 %v16057_v17, %v12960_v7  ;;  %v16003_v4 = vld [vmem:[#allocation11 + $0x57c] sm:$0xf] }
 0x2c8   :  { %18573 = vst [vmem:[#allocation32_spill] sm:$0xff] %v17592_v62  ;;  %v12936_v23 = vld [vmem:[#allocation11 + $0x710] sm:$0xf0]  ;;  %v15937_v17 = vld [vmem:[#allocation11 + $0x36c] sm:$0xf] }
 0x2c9   :  { %v12480_v7 = vld [vmem:[#allocation11 + $0x380] sm:$0xf0] }
 0x2ca   :  { %4588 = vmatpush.bf16.msrb.mxu0 %v12887_v37  ;;  %4602 = vmatpush.bf16.msrb.mxu1 %v13079_v32  ;;  %v12600_v37 = vld [vmem:[#allocation11 + $0x470] sm:$0xf0] }
 0x2cb   :  { %4616 = vmatpush.bf16.msrb.mxu2 %v12123_v8  ;;  %4630 = vmatpush.bf16.msrb.mxu3 %v12315_v19  ;;  %v12792_v32 = vld [vmem:[#allocation11 + $0x5f0] sm:$0xf0]  ;;  %v13007_v8 = vor.u32 %v16072_v55, %v13006_v44  ;;  %v12603_v29 = vor.u32 %v15967_v28, %v12600_v37  ;;  %v16099_v44 = vld [vmem:[#allocation11 + $0x87c] sm:$0xf]  ;;  %v15997_v28 = vld [vmem:[#allocation11 + $0x54c] sm:$0xf] }
 0x2cc   :  { %v12984_v19 = vld [vmem:[#allocation11 + $0x770] sm:$0xf0]  ;;  %v12795_v39 = vor.u32 %v16015_v34, %v12792_v32  ;;  %v12720_v37 = vld [vmem:[#allocation11 + $0x560] sm:$0xf0]  ;;  %v16045_v34 = vld [vmem:[#allocation11 + $0x6cc] sm:$0xf] }
 0x2cd   :  { %v12987_v51 = vor.u32 %v16063_v31, %v12984_v19  ;;  %v13128_v55 = vld [vmem:[#allocation11 + $0x890] sm:$0xf0]  ;;  %v12912_v32 = vld [vmem:[#allocation11 + $0x6e0] sm:$0xf0]  ;;  %v16093_v31 = vld [vmem:[#allocation11 + $0x84c] sm:$0xf]  ;;  %v12723_v19 = vor.u32 %v15997_v28, %v12720_v37 }
 0x2ce   :  { %4589 = vmatpush.bf16.msrb.mxu0 %v12863_v52  ;;  %4603 = vmatpush.bf16.msrb.mxu1 %v13055_v24  ;;  %v13179_v52 = vor.u32 %v16111_v45, %v13176_v2  ;;  %v16009_v24 = vld [vmem:[#allocation11 + $0x5ac] sm:$0xf]  ;;  %v13131_v15 = vor.u32 %v16099_v44, %v13128_v55  ;;  %v15943_v45 = vld [vmem:[#allocation11 + $0x39c] sm:$0xf]  ;;  %v12504_v2 = vld [vmem:[#allocation11 + $0x3b0] sm:$0xf0] }
 0x2cf   :  { %4617 = vmatpush.bf16.msrb.mxu2 %v12099_v13  ;;  %4631 = vmatpush.bf16.msrb.mxu3 %v12291_v54  ;;  %v16105_v13 = vld [vmem:[#allocation11 + $0x8ac] sm:$0xf]  ;;  %v13152_v54 = vld [vmem:[#allocation11 + $0x8c0] sm:$0xf0]  ;;  %v12771_v56 = vor.u32 %v16009_v24, %v12768_v46  ;;  %v12507_v24 = vor.u32 %v15943_v45, %v12504_v2 }
 0x2d0   :  { %v13155_v38 = vor.u32 %v16105_v13, %v13152_v54  ;;  %v12891_v13 = vor.u32 %v16039_v40, %v12888_v42  ;;  %v15925_v28 = vld [vmem:[#allocation11 + $0x30c] sm:$0xf]  ;;  %v12816_v2 = vld [vmem:[#allocation11 + $0x620] sm:$0xf0]  ;;  %v17598_v40 = vpop.f32.mrf.mxu0  ;;  %v12414_v42 = vld [vmem:[#allocation11 + $0x2e0] sm:$0xf] }
 0x2d1   :  { %v16021_v45 = vld [vmem:[#allocation11 + $0x60c] sm:$0xf] }
 0x2d2   :  { %4590 = vmatpush.bf16.msrb.mxu0 %v12839_v12  ;;  %4604 = vmatpush.bf16.msrb.mxu1 %v13031_v60  ;;  %v12744_v12 = vld [vmem:[#allocation11 + $0x590] sm:$0xf0]  ;;  %v16051_v60 = vld [vmem:[#allocation11 + $0x6fc] sm:$0xf] }
 0x2d3   :  { %4618 = vmatpush.bf16.msrb.mxu2 %v12075_v49  ;;  %4632 = vmatpush.bf16.msrb.mxu3 %v12267_v25  ;;  %v12555_v49 = vor.u32 %v15955_v63, %v12552_v5  ;;  %v12747_v25 = vor.u32 %v16003_v4, %v12744_v12  ;;  %v12939_v26 = vor.u32 %v16051_v60, %v12936_v23  ;;  %v16033_v63 = vld [vmem:[#allocation11 + $0x66c] sm:$0xf]  ;;  %v12864_v5 = vld [vmem:[#allocation11 + $0x680] sm:$0xf0]  ;;  %v15931_v60 = vld [vmem:[#allocation11 + $0x33c] sm:$0xf] }
 0x2d4   :  { %v12483_v4 = vor.u32 %v15937_v17, %v12480_v7  ;;  %v12456_v23 = vld [vmem:[#allocation11 + $0x350] sm:$0xf0]  ;;  %v12867_v44 = vor.u32 %v16033_v63, %v12864_v5  ;;  %v15971_v17 = vld [vmem:[#allocation11 + $0x474] sm:$0xf0]  ;;  %v12798_v7 = vld [vmem:[#allocation11 + $0x5e0] sm:$0xf] }
 0x2d5   :  { %v12459_v37 = vor.u32 %v15931_v60, %v12456_v23  ;;  %v12390_v60 = vld [vmem:[#allocation11 + $0x2b0] sm:$0xf]  ;;  %v15917_v23 = vld [vmem:[#allocation11 + $0x2c4] sm:$0xf0] }
 0x2d6   :  { %4591 = vmatpush.bf16.msrb.mxu0 %v12815_v9  ;;  %4605 = vmatpush.bf16.msrb.mxu1 %v13007_v8  ;;  %v13104_v9 = vld [vmem:[#allocation11 + $0x860] sm:$0xf0]  ;;  %v12531_v8 = vor.u32 %v15949_v11, %v12528_v58  ;;  %v16027_v11 = vld [vmem:[#allocation11 + $0x63c] sm:$0xf]  ;;  %v12840_v58 = vld [vmem:[#allocation11 + $0x650] sm:$0xf0] }
 0x2d7   :  { %4619 = vmatpush.bf16.msrb.mxu2 %v12051_v3  ;;  %4633 = vmatpush.bf16.msrb.mxu3 %v12243_v0  ;;  %v12915_v3 = vor.u32 %v16045_v34, %v12912_v32  ;;  %v13107_v0 = vor.u32 %v16093_v31, %v13104_v9  ;;  %v12432_v32 = vld [vmem:[#allocation11 + $0x320] sm:$0xf0]  ;;  %v15973_v31 = vld [vmem:[#allocation11 + $0x48c] sm:$0xf] }
 0x2d8   :  { %v12624_v9 = vld [vmem:[#allocation11 + $0x4a0] sm:$0xf0] }
 0x2d9   :  { %4592 = vmatmul.bf16.vlgmr.msrb.gmra.mxu0 %v17394_v6  ;;  %4606 = vmatmul.bf16.vlgmr.msrb.gmra.mxu1 %v17396_v57 }
 0x2da   :  { %4640 = vmatpush.bf16.msra.mxu0 %v12603_v29  ;;  %4654 = vmatpush.bf16.msra.mxu1 %v12795_v39  ;;  %v15991_v29 = vld [vmem:[#allocation11 + $0x51c] sm:$0xf]  ;;  %v12696_v39 = vld [vmem:[#allocation11 + $0x530] sm:$0xf0] }
 0x2db   :  { %4668 = vmatpush.bf16.msra.mxu2 %v12987_v51  ;;  %4682 = vmatpush.bf16.msra.mxu3 %v13179_v52  ;;  %v16087_v51 = vld [vmem:[#allocation11 + $0x81c] sm:$0xf]  ;;  %v13080_v52 = vld [vmem:[#allocation11 + $0x830] sm:$0xf0]  ;;  %v12699_v46 = vor.u32 %v15991_v29, %v12696_v39  ;;  %v12222_v29 = vld [vmem:[#allocation11 + $0x160] sm:$0xf] }
 0x2dc   :  { %4620 = vmatmul.bf16.vlgmr.msrb.gmra.mxu2 %v17372_v47  ;;  %4634 = vmatmul.bf16.vlgmr.msrb.gmra.mxu3 %v17374_v48  ;;  %v13083_v54 = vor.u32 %v16087_v51, %v13080_v52  ;;  %v15875_v39 = vld [vmem:[#allocation11 + $0x174] sm:$0xf0]  ;;  %v12606_v52 = vld [vmem:[#allocation11 + $0x460] sm:$0xf] }
 0x2dd   :  { %v15923_v51 = vld [vmem:[#allocation11 + $0x2f4] sm:$0xf0]  ;;  %v12223_v63 = vor.u32 %v15875_v39, %v12222_v29 }
 0x2de   :  { %4641 = vmatpush.bf16.msra.mxu0 %v12579_v33  ;;  %4655 = vmatpush.bf16.msra.mxu1 %v12771_v56  ;;  %v15985_v33 = vld [vmem:[#allocation11 + $0x4ec] sm:$0xf]  ;;  %v12672_v56 = vld [vmem:[#allocation11 + $0x500] sm:$0xf0]  ;;  %v12415_v5 = vor.u32 %v15923_v51, %v12414_v42  ;;  %v12150_v42 = vld [vmem:[#allocation11 + $0xd0] sm:$0xf] }
 0x2df   :  { %4669 = vmatpush.bf16.msra.mxu2 %v12963_v21  ;;  %4683 = vmatpush.bf16.msra.mxu3 %v13155_v38  ;;  %v16081_v21 = vld [vmem:[#allocation11 + $0x7ec] sm:$0xf]  ;;  %v13056_v38 = vld [vmem:[#allocation11 + $0x800] sm:$0xf0]  ;;  %v12675_v12 = vor.u32 %v15985_v33, %v12672_v56  ;;  %v17600_v56 = vpop.f32.mrf.mxu1  ;;  %v15857_v51 = vld [vmem:[#allocation11 + $0xe4] sm:$0xf0] }
 0x2e0   :  { %v13059_v55 = vor.u32 %v16081_v21, %v13056_v38  ;;  %v12198_v21 = vld [vmem:[#allocation11 + $0x130] sm:$0xf]  ;;  %v15869_v38 = vld [vmem:[#allocation11 + $0x144] sm:$0xf0] }
 0x2e2   :  { %4642 = vmatpush.bf16.msra.mxu0 %v12555_v49  ;;  %4656 = vmatpush.bf16.msra.mxu1 %v12747_v25  ;;  %v15979_v49 = vld [vmem:[#allocation11 + $0x4bc] sm:$0xf]  ;;  %v12648_v25 = vld [vmem:[#allocation11 + $0x4d0] sm:$0xf0] }
 0x2e3   :  { %4670 = vmatpush.bf16.msra.mxu2 %v12939_v26  ;;  %4684 = vmatpush.bf16.msra.mxu3 %v13131_v15  ;;  %v16075_v26 = vld [vmem:[#allocation11 + $0x7bc] sm:$0xf]  ;;  %v13032_v15 = vld [vmem:[#allocation11 + $0x7d0] sm:$0xf0]  ;;  %v12651_v34 = vor.u32 %v15979_v49, %v12648_v25  ;;  %v12774_v49 = vld [vmem:[#allocation11 + $0x5b0] sm:$0xf] }
 0x2e4   :  { %v16013_v25 = vld [vmem:[#allocation11 + $0x5c4] sm:$0xf0] }
 0x2e6   :  { %4643 = vmatpush.bf16.msra.mxu0 %v12531_v8  ;;  %4657 = vmatpush.bf16.msra.mxu1 %v12723_v19  ;;  %v12843_v8 = vor.u32 %v16027_v11, %v12840_v58  ;;  %v13035_v19 = vor.u32 %v16075_v26, %v13032_v15  ;;  %v17602_v11 = vpop.f32.mrf.mxu2  ;;  %v17604_v58 = vpop.f32.mrf.mxu3  ;;  %v12199_v26 = vor.u32 %v15869_v38, %v12198_v21 }
 0x2e7   :  { %4671 = vmatpush.bf16.msra.mxu2 %v12915_v3  ;;  %4685 = vmatpush.bf16.msra.mxu3 %v13107_v0  ;;  %v16069_v3 = vld [vmem:[#allocation11 + $0x78c] sm:$0xf]  ;;  %v13008_v0 = vld [vmem:[#allocation11 + $0x7a0] sm:$0xf0]  ;;  %v12391_v15 = vor.u32 %v15917_v23, %v12390_v60  ;;  %v12151_v21 = vor.u32 %v15857_v51, %v12150_v42  ;;  %v12678_v42 = vld [vmem:[#allocation11 + $0x4f0] sm:$0xf] }
 0x2e8   :  { %v13011_v33 = vor.u32 %v16069_v3, %v13008_v0  ;;  %v16007_v3 = vld [vmem:[#allocation11 + $0x594] sm:$0xf0]  ;;  %v17612_v0 = vpop.f32.mrf.mxu1  ;;  %v15989_v51 = vld [vmem:[#allocation11 + $0x504] sm:$0xf0] }
 0x2ea   :  { %4644 = vmatpush.bf16.msra.mxu0 %v12507_v24  ;;  %4658 = vmatpush.bf16.msra.mxu1 %v12699_v46  ;;  %v12435_v24 = vor.u32 %v15925_v28, %v12432_v32  ;;  %v12627_v46 = vor.u32 %v15973_v31, %v12624_v9  ;;  %v12174_v28 = vld [vmem:[#allocation11 + $0x100] sm:$0xf]  ;;  %v12775_v31 = vor.u32 %v16013_v25, %v12774_v49  ;;  %v15947_v25 = vld [vmem:[#allocation11 + $0x3b4] sm:$0xf0] }
 0x2eb   :  { %4672 = vmatpush.bf16.msra.mxu2 %v12891_v13  ;;  %4686 = vmatpush.bf16.msra.mxu3 %v13083_v54  ;;  %v16019_v13 = vld [vmem:[#allocation11 + $0x5f4] sm:$0xf0]  ;;  %v12819_v54 = vor.u32 %v16021_v45, %v12816_v2  ;;  %v12366_v9 = vld [vmem:[#allocation11 + $0x280] sm:$0xf] }
 0x2ec   :  { %v15959_v45 = vld [vmem:[#allocation11 + $0x414] sm:$0xf0]  ;;  %v12750_v2 = vld [vmem:[#allocation11 + $0x580] sm:$0xf] }
 0x2ed   :  { %v12510_v49 = vld [vmem:[#allocation11 + $0x3a0] sm:$0xf] }
 0x2ee   :  { %4645 = vmatpush.bf16.msra.mxu0 %v12483_v4  ;;  %4659 = vmatpush.bf16.msra.mxu1 %v12675_v12  ;;  %v12607_v4 = vor.u32 %v15971_v17, %v12606_v52  ;;  %v12799_v12 = vor.u32 %v16019_v13, %v12798_v7  ;;  %v15905_v17 = vld [vmem:[#allocation11 + $0x264] sm:$0xf0]  ;;  %v12534_v7 = vld [vmem:[#allocation11 + $0x3d0] sm:$0xf] }
 0x2ef   :  { %4673 = vmatpush.bf16.msra.mxu2 %v12867_v44  ;;  %4687 = vmatpush.bf16.msra.mxu3 %v13059_v55  ;;  %v12582_v44 = vld [vmem:[#allocation11 + $0x430] sm:$0xf]  ;;  %v15965_v55 = vld [vmem:[#allocation11 + $0x444] sm:$0xf0] }
 0x2f0   :  { %v12583_v32 = vor.u32 %v15965_v55, %v12582_v44  ;;  %v15953_v13 = vld [vmem:[#allocation11 + $0x3e4] sm:$0xf0]  ;;  %v12318_v44 = vld [vmem:[#allocation11 + $0x220] sm:$0xf]  ;;  %v15899_v55 = vld [vmem:[#allocation11 + $0x234] sm:$0xf0] }
 0x2f1   :  { %v12535_v60 = vor.u32 %v15953_v13, %v12534_v7  ;;  %v15839_v7 = vld [vmem:[#allocation11 + $0x54] sm:$0xf0] }
 0x2f2   :  { %4646 = vmatpush.bf16.msra.mxu0 %v12459_v37  ;;  %4660 = vmatpush.bf16.msra.mxu1 %v12651_v34  ;;  %v15863_v37 = vld [vmem:[#allocation11 + $0x114] sm:$0xf0]  ;;  %v17606_v34 = vpop.f32.mrf.mxu0 }
 0x2f3   :  { %4674 = vmatpush.bf16.msra.mxu2 %v12843_v8  ;;  %4688 = vmatpush.bf16.msra.mxu3 %v13035_v19  ;;  %v15911_v8 = vld [vmem:[#allocation11 + $0x294] sm:$0xf0]  ;;  %v12558_v19 = vld [vmem:[#allocation11 + $0x400] sm:$0xf]  ;;  %v12175_v29 = vor.u32 %v15863_v37, %v12174_v28 }
 0x2f4   :  { %v12367_v39 = vor.u32 %v15911_v8, %v12366_v9  ;;  %v12559_v52 = vor.u32 %v15959_v45, %v12558_v19  ;;  %v15845_v9 = vld [vmem:[#allocation11 + $0x84] sm:$0xf0]  ;;  %v12511_v8 = vor.u32 %v15947_v25, %v12510_v49  ;;  %v12294_v45 = vld [vmem:[#allocation11 + $0x1f0] sm:$0xf] }
 0x2f5   :  { %v12054_v25 = vld [vmem:[#allocation11 + $0x10] sm:$0xf] }
 0x2f6   :  { %4647 = vmatpush.bf16.msra.mxu0 %v12435_v24  ;;  %4661 = vmatpush.bf16.msra.mxu1 %v12627_v46  ;;  %v12751_v24 = vor.u32 %v16007_v3, %v12750_v2  ;;  %v12342_v46 = vld [vmem:[#allocation11 + $0x250] sm:$0xf]  ;;  %v15893_v2 = vld [vmem:[#allocation11 + $0x204] sm:$0xf0] }
 0x2f7   :  { %4675 = vmatpush.bf16.msra.mxu2 %v12819_v54  ;;  %4689 = vmatpush.bf16.msra.mxu3 %v13011_v33  ;;  %v12726_v54 = vld [vmem:[#allocation11 + $0x550] sm:$0xf]  ;;  %v16001_v33 = vld [vmem:[#allocation11 + $0x564] sm:$0xf0]  ;;  %v12343_v38 = vor.u32 %v15905_v17, %v12342_v46  ;;  %v12295_v46 = vor.u32 %v15893_v2, %v12294_v45  ;;  %v12078_v17 = vld [vmem:[#allocation11 + $0x40] sm:$0xf] }
 0x2f8   :  { %v12727_v23 = vor.u32 %v16001_v33, %v12726_v54  ;;  %v12486_v3 = vld [vmem:[#allocation11 + $0x370] sm:$0xf]  ;;  %v12679_v54 = vor.u32 %v15989_v51, %v12678_v42  ;;  %v12270_v33 = vld [vmem:[#allocation11 + $0x1c0] sm:$0xf]  ;;  %v15929_v45 = vld [vmem:[#allocation11 + $0x324] sm:$0xf0] }
 0x2f9   :  { %4648 = vmatmul.bf16.vlgmr.msra.gmra.mxu0 %v17376_v50  ;;  %4662 = vmatmul.bf16.vlgmr.msra.gmra.mxu1 %v17378_v53  ;;  %v12630_v2 = vld [vmem:[#allocation11 + $0x490] sm:$0xf]  ;;  %v12990_v42 = vld [vmem:[#allocation11 + $0x760] sm:$0xf]  ;;  %v16067_v51 = vld [vmem:[#allocation11 + $0x774] sm:$0xf0] }
 0x2fa   :  { %4696 = vmatpush.bf16.msrb.mxu0 %v12223_v63  ;;  %4710 = vmatpush.bf16.msrb.mxu1 %v12415_v5  ;;  %v17614_v63 = vpop.f32.mrf.mxu2  ;;  %v17616_v5 = vpop.f32.mrf.mxu3 }
 0x2fb   :  { %4724 = vmatpush.bf16.msrb.mxu2 %v12607_v4  ;;  %4738 = vmatpush.bf16.msrb.mxu3 %v12799_v12  ;;  %v12126_v4 = vld [vmem:[#allocation11 + $0xa0] sm:$0xf]  ;;  %v15851_v12 = vld [vmem:[#allocation11 + $0xb4] sm:$0xf0]  ;;  %v17618_v28 = vpop.f32.mrf.mxu0 }
 0x2fc   :  { %4676 = vmatmul.bf16.vlgmr.msra.gmra.mxu2 %v17394_v6  ;;  %4690 = vmatmul.bf16.vlgmr.msra.gmra.mxu3 %v17396_v57  ;;  %v12127_v37 = vor.u32 %v15851_v12, %v12126_v4 }
 0x2fe   :  { %4697 = vmatpush.bf16.msrb.mxu0 %v12199_v26  ;;  %4711 = vmatpush.bf16.msrb.mxu1 %v12391_v15  ;;  %v12702_v26 = vld [vmem:[#allocation11 + $0x520] sm:$0xf]  ;;  %v15995_v15 = vld [vmem:[#allocation11 + $0x534] sm:$0xf0] }
 0x2ff   :  { %4725 = vmatpush.bf16.msrb.mxu2 %v12583_v32  ;;  %4739 = vmatpush.bf16.msrb.mxu3 %v12775_v31  ;;  %v12319_v32 = vor.u32 %v15899_v55, %v12318_v44  ;;  %v12102_v31 = vld [vmem:[#allocation11 + $0x70] sm:$0xf]  ;;  %v12703_v19 = vor.u32 %v15995_v15, %v12702_v26  ;;  %v15983_v44 = vld [vmem:[#allocation11 + $0x4d4] sm:$0xf0]  ;;  %v12079_v26 = vor.u32 %v15839_v7, %v12078_v17 }
 0x300   :  { %v12966_v55 = vld [vmem:[#allocation11 + $0x730] sm:$0xf] }
 0x302   :  { %4698 = vmatpush.bf16.msrb.mxu0 %v12175_v29  ;;  %4712 = vmatpush.bf16.msrb.mxu1 %v12367_v39  ;;  %v17620_v29 = vpop.f32.mrf.mxu1  ;;  %v15941_v39 = vld [vmem:[#allocation11 + $0x384] sm:$0xf0]  ;;  %v17624_v4 = vpop.f32.mrf.mxu2 }
 0x303   :  { %4726 = vmatpush.bf16.msrb.mxu2 %v12559_v52  ;;  %4740 = vmatpush.bf16.msrb.mxu3 %v12751_v24  ;;  %v17622_v52 = vld [vmem:[#allocation17] sm:$0x3f]  ;;  %v12103_v24 = vor.u32 %v15845_v9, %v12102_v31  ;;  %v12487_v13 = vor.u32 %v15941_v39, %v12486_v3  ;;  %v17626_v12 = vpop.f32.mrf.mxu3  ;;  %v17629_v49 = vpop.f32.mrf.mxu0 }
 0x304   :  { %v15881_v31 = vld [vmem:[#allocation11 + $0x1a4] sm:$0xf0] }
 0x305   :  { %v15977_v39 = vld [vmem:[#allocation11 + $0x4a4] sm:$0xf0] }
 0x306   :  { %4699 = vmatpush.bf16.msrb.mxu0 %v12151_v21  ;;  %4713 = vmatpush.bf16.msrb.mxu1 %v12343_v38  ;;  %v15887_v21 = vld [vmem:[#allocation11 + $0x1d4] sm:$0xf0]  ;;  %v12462_v38 = vld [vmem:[#allocation11 + $0x340] sm:$0xf] }
 0x307   :  { %4727 = vmatpush.bf16.msrb.mxu2 %v12535_v60  ;;  %4741 = vmatpush.bf16.msrb.mxu3 %v12727_v23  ;;  %v15935_v60 = vld [vmem:[#allocation11 + $0x354] sm:$0xf0]  ;;  %v12654_v23 = vld [vmem:[#allocation11 + $0x4c0] sm:$0xf]  ;;  %v12271_v15 = vor.u32 %v15887_v21, %v12270_v33  ;;  %v12224_v33 = vld [vmem:[#allocation11 + $0x178] sm:$0xf0] }
 0x308   :  { %v12463_v9 = vor.u32 %v15935_v60, %v12462_v38  ;;  %v12631_v38 = vor.u32 %v15977_v39, %v12630_v2  ;;  %v12942_v39 = vld [vmem:[#allocation11 + $0x700] sm:$0xf] }
 0x30a   :  { %4700 = vmatpush.bf16.msrb.mxu0 %v12127_v37  ;;  %4714 = vmatpush.bf16.msrb.mxu1 %v12319_v32  ;;  %v15833_v37 = vld [vmem:[#allocation11 + $0x24] sm:$0xf0]  ;;  %v12246_v32 = vld [vmem:[#allocation11 + $0x190] sm:$0xf]  ;;  %v17631_v3 = vpop.f32.mrf.mxu1  ;;  %v4453_v60 = vpop.f32.mrf.mxu2 }
 0x30b   :  { %4728 = vmatpush.bf16.msrb.mxu2 %v12511_v8  ;;  %4742 = vmatpush.bf16.msrb.mxu3 %v12703_v19  ;;  %v12655_v8 = vor.u32 %v15983_v44, %v12654_v23  ;;  %v12438_v19 = vld [vmem:[#allocation11 + $0x310] sm:$0xf]  ;;  %v12055_v17 = vor.u32 %v15833_v37, %v12054_v25  ;;  %v12247_v7 = vor.u32 %v15881_v31, %v12246_v32  ;;  %v17633_v23 = vpop.f32.mrf.mxu3  ;;  %v15866_v25 = vld [vmem:[#allocation11 + $0x134] sm:$0xf]  ;;  %v18574_v37 = vperm.slane %v17622_v52, 0 }
 0x30c   :  { %v12439_v21 = vor.u32 %v15929_v45, %v12438_v19  ;;  %v12991_v44 = vor.u32 %v16067_v51, %v12990_v42  ;;  %v12200_v31 = vld [vmem:[#allocation11 + $0x148] sm:$0xf0]  ;;  %v2909_v19 = vperm.slane %v17622_v52, 1  ;;  %v17639_v45 = vpop.f32.mrf.mxu0  ;;  %v16055_v42 = vld [vmem:[#allocation11 + $0x714] sm:$0xf0] }
 0x30d   :  { %v4370_v32 = vadd.f32 %v17606_v34, %v18574_v37  ;;  %v12203_v34 = vor.u32 %v15866_v25, %v12200_v31  ;;  %v15854_v25 = vld [vmem:[#allocation11 + $0xd4] sm:$0xf] }
 0x30e   :  { %4701 = vmatpush.bf16.msrb.mxu0 %v12103_v24  ;;  %4715 = vmatpush.bf16.msrb.mxu1 %v12295_v46  ;;  %v16115_v24 = vld [vmem:[#allocation11 + $0x8f4] sm:$0xf0]  ;;  %v15872_v46 = vld [vmem:[#allocation11 + $0x164] sm:$0xf]  ;;  %v15902_v31 = vld [vmem:[#allocation11 + $0x254] sm:$0xf] }
 0x30f   :  { %4729 = vmatpush.bf16.msrb.mxu2 %v12487_v13  ;;  %4743 = vmatpush.bf16.msrb.mxu3 %v12679_v54  ;;  %v15920_v13 = vld [vmem:[#allocation11 + $0x2e4] sm:$0xf]  ;;  %v12416_v54 = vld [vmem:[#allocation11 + $0x2f8] sm:$0xf0]  ;;  %v13183_v61 = vor.u32 %v16115_v24, %v13182_v27  ;;  %v12227_v62 = vor.u32 %v15872_v46, %v12224_v33  ;;  %v12967_v27 = vor.u32 %v16061_v1, %v12966_v55  ;;  %v13134_v24 = vld [vmem:[#allocation11 + $0x880] sm:$0xf] }
 0x310   :  { %v12419_v59 = vor.u32 %v15920_v13, %v12416_v54  ;;  %v16103_v46 = vld [vmem:[#allocation11 + $0x894] sm:$0xf0]  ;;  %v15908_v1 = vld [vmem:[#allocation11 + $0x284] sm:$0xf]  ;;  %v12368_v55 = vld [vmem:[#allocation11 + $0x298] sm:$0xf0] }
 0x311   :  { %v13135_v13 = vor.u32 %v16103_v46, %v13134_v24  ;;  %v12918_v54 = vld [vmem:[#allocation11 + $0x6d0] sm:$0xf]  ;;  %v16043_v24 = vld [vmem:[#allocation11 + $0x6b4] sm:$0xf0] }
 0x312   :  { %4702 = vmatpush.bf16.msrb.mxu0 %v12079_v26  ;;  %4716 = vmatpush.bf16.msrb.mxu1 %v12271_v15  ;;  %v13158_v26 = vld [vmem:[#allocation11 + $0x8b0] sm:$0xf]  ;;  %v16109_v15 = vld [vmem:[#allocation11 + $0x8c4] sm:$0xf0]  ;;  %v17642_v33 = vpop.f32.mrf.mxu1 }
 0x313   :  { %4730 = vmatpush.bf16.msrb.mxu2 %v12463_v9  ;;  %4744 = vmatpush.bf16.msrb.mxu3 %v12655_v8  ;;  %v15914_v9 = vld [vmem:[#allocation11 + $0x2b4] sm:$0xf]  ;;  %v12392_v8 = vld [vmem:[#allocation11 + $0x2c8] sm:$0xf0]  ;;  %v13159_v2 = vor.u32 %v16109_v15, %v13158_v26  ;;  %v13110_v26 = vld [vmem:[#allocation11 + $0x850] sm:$0xf]  ;;  %v4469_v37 = vpop.f32.mrf.mxu3 }
 0x314   :  { %v12395_v51 = vor.u32 %v15914_v9, %v12392_v8  ;;  %v16097_v15 = vld [vmem:[#allocation11 + $0x864] sm:$0xf0]  ;;  %v12344_v9 = vld [vmem:[#allocation11 + $0x268] sm:$0xf0] }
 0x316   :  { %4703 = vmatpush.bf16.msrb.mxu0 %v12055_v17  ;;  %4717 = vmatpush.bf16.msrb.mxu1 %v12247_v7  ;;  %v15860_v17 = vld [vmem:[#allocation11 + $0x104] sm:$0xf]  ;;  %v4384_v7 = vadd.f32 %v17612_v0, %v4370_v32  ;;  %v12943_v0 = vor.u32 %v16055_v42, %v12942_v39  ;;  %v12152_v32 = vld [vmem:[#allocation11 + $0xe8] sm:$0xf0] }
 0x317   :  { %4731 = vmatpush.bf16.msrb.mxu2 %v12439_v21  ;;  %4745 = vmatpush.bf16.msrb.mxu3 %v12631_v38  ;;  %v16049_v21 = vld [vmem:[#allocation11 + $0x6e4] sm:$0xf0] }
 0x318   :  { %v12919_v42 = vor.u32 %v16049_v21, %v12918_v54  ;;  %v12870_v21 = vld [vmem:[#allocation11 + $0x670] sm:$0xf] }
 0x319   :  { %4704 = vmatmul.bf16.vlgmr.msrb.gmra.mxu0 %v17372_v47  ;;  %4718 = vmatmul.bf16.vlgmr.msrb.gmra.mxu1 %v17374_v48 }
 0x31a   :  { %4752 = vmatpush.bf16.msra.mxu0 %v12991_v44  ;;  %4766 = vmatpush.bf16.msra.mxu1 %v13183_v61  ;;  %v12176_v61 = vld [vmem:[#allocation11 + $0x118] sm:$0xf0]  ;;  %v12371_v44 = vor.u32 %v15908_v1, %v12368_v55  ;;  %v16091_v1 = vld [vmem:[#allocation11 + $0x834] sm:$0xf0]  ;;  %v15848_v55 = vld [vmem:[#allocation11 + $0xa4] sm:$0xf] }
 0x31b   :  { %4780 = vmatpush.bf16.msra.mxu2 %v12227_v62  ;;  %4794 = vmatpush.bf16.msra.mxu3 %v12419_v59  ;;  %v4454_v62 = vadd.f32 %v4453_v60, %v2909_v19  ;;  %v4398_v59 = vadd.f32 %v17614_v63, %v4384_v7  ;;  %v12179_v38 = vor.u32 %v15860_v17, %v12176_v61  ;;  %v4455_v60 = vpop.f32.mrf.mxu2  ;;  %v18575_v63 = vperm.slane %v17622_v52, 0  ;;  %v13086_v61 = vld [vmem:[#allocation11 + $0x820] sm:$0xf] }
 0x31c   :  { %4732 = vmatmul.bf16.vlgmr.msrb.gmra.mxu2 %v17376_v50  ;;  %4746 = vmatmul.bf16.vlgmr.msrb.gmra.mxu3 %v17378_v53  ;;  %v12155_v17 = vor.u32 %v15854_v25, %v12152_v32  ;;  %v12347_v7 = vor.u32 %v15902_v31, %v12344_v9  ;;  %v13087_v54 = vor.u32 %v16091_v1, %v13086_v61  ;;  %v16085_v32 = vld [vmem:[#allocation11 + $0x804] sm:$0xf0]  ;;  %v15842_v31 = vld [vmem:[#allocation11 + $0x74] sm:$0xf]  ;;  %v13038_v1 = vld [vmem:[#allocation11 + $0x7c0] sm:$0xf] }
 0x31d   :  { %v4372_v8 = vadd.f32 %v17618_v28, %v18575_v63  ;;  %v4412_v39 = vadd.f32 %v17616_v5, %v4398_v59  ;;  %v4495_v28 = vpop.f32.mrf.mxu1  ;;  %v12128_v63 = vld [vmem:[#allocation11 + $0xb8] sm:$0xf0]  ;;  %v4456_v59 = vadd.f32 %v4455_v60, %v2909_v19 }
 0x31e   :  { %4753 = vmatpush.bf16.msra.mxu0 %v12967_v27  ;;  %4767 = vmatpush.bf16.msra.mxu1 %v13159_v2  ;;  %v4468_v27 = vadd.f32 %v17633_v23, %v4454_v62  ;;  %v4481_v2 = vpop.f32.mrf.mxu0  ;;  %v15896_v23 = vld [vmem:[#allocation11 + $0x224] sm:$0xf]  ;;  %v12320_v62 = vld [vmem:[#allocation11 + $0x238] sm:$0xf0] }
 0x31f   :  { %4781 = vmatpush.bf16.msra.mxu2 %v12203_v34  ;;  %4795 = vmatpush.bf16.msra.mxu3 %v12395_v51  ;;  %v13111_v34 = vor.u32 %v16097_v15, %v13110_v26  ;;  %v12894_v51 = vld [vmem:[#allocation11 + $0x6a0] sm:$0xf]  ;;  %v4426_v5 = vadd.f32 %v17629_v49, %v4412_v39  ;;  %v12131_v15 = vor.u32 %v15848_v55, %v12128_v63  ;;  %v12104_v49 = vld [vmem:[#allocation11 + $0x88] sm:$0xf0]  ;;  %v4523_v60 = vpop.f32.mrf.mxu3  ;;  %v16079_v55 = vld [vmem:[#allocation11 + $0x7d4] sm:$0xf0] }
 0x320   :  { %v4482_v46 = vadd.f32 %v4481_v2, %v4468_v27  ;;  %v12323_v25 = vor.u32 %v15896_v23, %v12320_v62  ;;  %v4470_v2 = vadd.f32 %v4469_v37, %v4456_v59  ;;  %v12080_v37 = vld [vmem:[#allocation11 + $0x58] sm:$0xf0]  ;;  %v15884_v63 = vld [vmem:[#allocation11 + $0x1c4] sm:$0xf] }
 0x321   :  { %v4440_v27 = vadd.f32 %v17631_v3, %v4426_v5  ;;  %v12272_v23 = vld [vmem:[#allocation11 + $0x1d8] sm:$0xf0]  ;;  %v12822_v5 = vld [vmem:[#allocation11 + $0x610] sm:$0xf] }
 0x322   :  { %4754 = vmatpush.bf16.msra.mxu0 %v12943_v0  ;;  %4768 = vmatpush.bf16.msra.mxu1 %v13135_v13  ;;  %v4386_v0 = vadd.f32 %v17620_v29, %v4372_v8  ;;  %v12895_v13 = vor.u32 %v16043_v24, %v12894_v51  ;;  %v4496_v26 = vadd.f32 %v4495_v28, %v4482_v46  ;;  %v15890_v29 = vld [vmem:[#allocation11 + $0x1f4] sm:$0xf]  ;;  %v12296_v8 = vld [vmem:[#allocation11 + $0x208] sm:$0xf0]  ;;  %v12846_v46 = vld [vmem:[#allocation11 + $0x640] sm:$0xf] }
 0x323   :  { %4782 = vmatpush.bf16.msra.mxu2 %v12179_v38  ;;  %4796 = vmatpush.bf16.msra.mxu3 %v12371_v44  ;;  %v16037_v38 = vld [vmem:[#allocation11 + $0x684] sm:$0xf0]  ;;  %v13062_v44 = vld [vmem:[#allocation11 + $0x7f0] sm:$0xf]  ;;  %v4509_v19 = vpop.f32.mrf.mxu2  ;;  %v12107_v24 = vor.u32 %v15842_v31, %v12104_v49  ;;  %v12299_v61 = vor.u32 %v15890_v29, %v12296_v8  ;;  %v15836_v28 = vld [vmem:[#allocation11 + $0x44] sm:$0xf] }
 0x324   :  { %v4400_v9 = vadd.f32 %v17624_v4, %v4386_v0  ;;  %v4510_v39 = vadd.f32 %v4509_v19, %v4496_v26  ;;  %v13063_v51 = vor.u32 %v16085_v32, %v13062_v44  ;;  %v16073_v44 = vld [vmem:[#allocation11 + $0x7a4] sm:$0xf0]  ;;  %v12056_v32 = vld [vmem:[#allocation11 + $0x28] sm:$0xf0]  ;;  %v15878_v31 = vld [vmem:[#allocation11 + $0x194] sm:$0xf] }
 0x325   :  { %v4497_v0 = vpop.f32.mrf.mxu1  ;;  %v15968_v19 = vld [vmem:[#allocation11 + $0x464] sm:$0xf] }
 0x326   :  { %4755 = vmatpush.bf16.msra.mxu0 %v12919_v42  ;;  %4769 = vmatpush.bf16.msra.mxu1 %v13111_v34  ;;  %v4483_v42 = vpop.f32.mrf.mxu0  ;;  %v12871_v34 = vor.u32 %v16037_v38, %v12870_v21  ;;  %v4414_v3 = vadd.f32 %v17626_v12, %v4400_v9  ;;  %v16025_v21 = vld [vmem:[#allocation11 + $0x624] sm:$0xf0]  ;;  %v13014_v38 = vld [vmem:[#allocation11 + $0x790] sm:$0xf]  ;;  %v12083_v12 = vor.u32 %v15836_v28, %v12080_v37  ;;  %v12584_v37 = vld [vmem:[#allocation11 + $0x448] sm:$0xf0] }
 0x327   :  { %4783 = vmatpush.bf16.msra.mxu2 %v12155_v17  ;;  %4797 = vmatpush.bf16.msra.mxu3 %v12347_v7  ;;  %v16031_v17 = vld [vmem:[#allocation11 + $0x654] sm:$0xf0]  ;;  %v4524_v7 = vadd.f32 %v4523_v60, %v4510_v39  ;;  %v4484_v4 = vadd.f32 %v4483_v42, %v4470_v2  ;;  %v12608_v60 = vld [vmem:[#allocation11 + $0x478] sm:$0xf0]  ;;  %v16064_v39 = vld [vmem:[#allocation11 + $0x764] sm:$0xf] }
 0x328   :  { %v4428_v59 = vadd.f32 %v17639_v45, %v4414_v3  ;;  %v12248_v45 = vld [vmem:[#allocation11 + $0x1a8] sm:$0xf0]  ;;  %v12800_v2 = vld [vmem:[#allocation11 + $0x5f8] sm:$0xf0]  ;;  %v15962_v3 = vld [vmem:[#allocation11 + $0x434] sm:$0xf] }
 0x329   :  { %v17663_v62 = vpack.c.bf16 %v4524_v7, %v4440_v27  ;;  %v4498_v26 = vadd.f32 %v4497_v0, %v4484_v4  ;;  %v16016_v27 = vld [vmem:[#allocation11 + $0x5e4] sm:$0xf]  ;;  %v13184_v7 = vld [vmem:[#allocation11 + $0x8f8] sm:$0xf0]  ;;  %v16058_v0 = vld [vmem:[#allocation11 + $0x734] sm:$0xf] }
 0x32a   :  { %4756 = vmatpush.bf16.msra.mxu0 %v12895_v13  ;;  %4770 = vmatpush.bf16.msra.mxu1 %v13087_v54  ;;  %v12847_v13 = vor.u32 %v16031_v17, %v12846_v46  ;;  %v13039_v54 = vor.u32 %v16079_v55, %v13038_v1  ;;  %v4442_v42 = vadd.f32 %v17642_v33, %v4428_v59  ;;  %v12992_v46 = vld [vmem:[#allocation11 + $0x778] sm:$0xf0]  ;;  %v16112_v17 = vld [vmem:[#allocation11 + $0x8e4] sm:$0xf]  ;;  %v12776_v59 = vld [vmem:[#allocation11 + $0x5c8] sm:$0xf0] }
 0x32b   :  { %4784 = vmatpush.bf16.msra.mxu2 %v12131_v15  ;;  %4798 = vmatpush.bf16.msra.mxu3 %v12323_v25  ;;  %v12275_v15 = vor.u32 %v15884_v63, %v12272_v23  ;;  %v15830_v25 = vld [vmem:[#allocation11 + $0x14] sm:$0xf]  ;;  %v7235_v49 = vunpack.c.l.b16 %v17663_v62  ;;  %v4511_v9 = vpop.f32.mrf.mxu2  ;;  %v12251_v1 = vor.u32 %v15878_v31, %v12248_v45  ;;  %v12611_v55 = vor.u32 %v15968_v19, %v12608_v60  ;;  %v16004_v31 = vld [vmem:[#allocation11 + $0x584] sm:$0xf]  ;;  %v12944_v19 = vld [vmem:[#allocation11 + $0x718] sm:$0xf0] }
 0x32c   :  { %v4512_v29 = vadd.f32 %v4511_v9, %v4498_v26  ;;  %v12803_v28 = vor.u32 %v16016_v27, %v12800_v2  ;;  %v12995_v63 = vor.u32 %v16064_v39, %v12992_v46  ;;  %v13187_v23 = vor.u32 %v16112_v17, %v13184_v7  ;;  %v16052_v9 = vld [vmem:[#allocation11 + $0x704] sm:$0xf]  ;;  %v15950_v2 = vld [vmem:[#allocation11 + $0x3d4] sm:$0xf]  ;;  %v12536_v39 = vld [vmem:[#allocation11 + $0x3e8] sm:$0xf0] }
 0x32d   :  { %v7236_v8 = vpack.c.b16 %v7235_v49, %v7235_v49  ;;  %v12752_v49 = vld [vmem:[#allocation11 + $0x598] sm:$0xf0]  ;;  %v16100_v60 = vld [vmem:[#allocation11 + $0x884] sm:$0xf]  ;;  %v16046_v46 = vld [vmem:[#allocation11 + $0x6d4] sm:$0xf] }
 0x32e   :  { %4757 = vmatpush.bf16.msra.mxu0 %v12871_v34  ;;  %4771 = vmatpush.bf16.msra.mxu1 %v13063_v51  ;;  %v4525_v34 = vpop.f32.mrf.mxu3  ;;  %v12823_v51 = vor.u32 %v16025_v21, %v12822_v5  ;;  %v16010_v5 = vld [vmem:[#allocation11 + $0x5b4] sm:$0xf]  ;;  %v13160_v21 = vld [vmem:[#allocation11 + $0x8c8] sm:$0xf0]  ;;  %v12755_v27 = vor.u32 %v16004_v31, %v12752_v49 }
 0x32f   :  { %4785 = vmatpush.bf16.msra.mxu2 %v12107_v24  ;;  %4799 = vmatpush.bf16.msra.mxu3 %v12299_v61  ;;  %v13015_v24 = vor.u32 %v16073_v44, %v13014_v38  ;;  %v4526_v4 = vadd.f32 %v4525_v34, %v4512_v29  ;;  %v12059_v61 = vor.u32 %v15830_v25, %v12056_v32  ;;  %v13136_v29 = vld [vmem:[#allocation11 + $0x898] sm:$0xf0]  ;;  %v12920_v17 = vld [vmem:[#allocation11 + $0x6e8] sm:$0xf0]  ;;  %v16094_v7 = vld [vmem:[#allocation11 + $0x854] sm:$0xf] }
 0x330   :  { %7237 = vrot.lane.b32.xlu2 %v7236_v8, %s17133_s8  ;;  %v12587_v44 = vor.u32 %v15962_v3, %v12584_v37  ;;  %v12779_v26 = vor.u32 %v16010_v5, %v12776_v59  ;;  %v13139_v34 = vor.u32 %v16100_v60, %v13136_v29  ;;  %v12923_v3 = vor.u32 %v16046_v46, %v12920_v17  ;;  %v16040_v5 = vld [vmem:[#allocation11 + $0x6a4] sm:$0xf]  ;;  %v12896_v59 = vld [vmem:[#allocation11 + $0x6b8] sm:$0xf0]  ;;  %v12872_v31 = vld [vmem:[#allocation11 + $0x688] sm:$0xf0] }
 0x331   :  { %v17669_v33 = vpack.c.bf16 %v4526_v4, %v4442_v42  ;;  %v12947_v42 = vor.u32 %v16052_v9, %v12944_v19  ;;  %v13112_v4 = vld [vmem:[#allocation11 + $0x868] sm:$0xf0]  ;;  %v16082_v49 = vld [vmem:[#allocation11 + $0x7f4] sm:$0xf]  ;;  %v15932_v60 = vld [vmem:[#allocation11 + $0x344] sm:$0xf] }
 0x332   :  { %4758 = vmatpush.bf16.msra.mxu0 %v12847_v13  ;;  %4772 = vmatpush.bf16.msra.mxu1 %v13039_v54  ;;  %v12968_v13 = vld [vmem:[#allocation11 + $0x748] sm:$0xf0]  ;;  %v16106_v54 = vld [vmem:[#allocation11 + $0x8b4] sm:$0xf]  ;;  %v13115_v37 = vor.u32 %v16094_v7, %v13112_v4  ;;  %v12464_v29 = vld [vmem:[#allocation11 + $0x358] sm:$0xf0] }
 0x333   :  { %4786 = vmatpush.bf16.msra.mxu2 %v12083_v12  ;;  %4800 = vmatpush.bf16.msra.mxu3 %v12275_v15  ;;  %v7264_v38 = vunpack.c.l.b16 %v17669_v33  ;;  %v15956_v12 = vld [vmem:[#allocation11 + $0x404] sm:$0xf]  ;;  %v12560_v15 = vld [vmem:[#allocation11 + $0x418] sm:$0xf0]  ;;  %v12971_v25 = vor.u32 %v16058_v0, %v12968_v13  ;;  %v13163_v32 = vor.u32 %v16106_v54, %v13160_v21  ;;  %v13064_v9 = vld [vmem:[#allocation11 + $0x808] sm:$0xf0]  ;;  %v12467_v17 = vor.u32 %v15932_v60, %v12464_v29 }
 0x334   :  { %v12563_v8 = vor.u32 %v15956_v12, %v12560_v15  ;;  %v16088_v0 = vld [vmem:[#allocation11 + $0x824] sm:$0xf]  ;;  %v13088_v13 = vld [vmem:[#allocation11 + $0x838] sm:$0xf0]  ;;  %v15986_v15 = vld [vmem:[#allocation11 + $0x4f4] sm:$0xf] }
 0x335   :  { %v7265_v45 = vpack.c.b16 %v7264_v38, %v7264_v38  ;;  %v15938_v38 = vld [vmem:[#allocation11 + $0x374] sm:$0xf]  ;;  %v13091_v12 = vor.u32 %v16088_v0, %v13088_v13  ;;  %v12440_v4 = vld [vmem:[#allocation11 + $0x328] sm:$0xf0]  ;;  %v13550_v0 = vld [vmem:[#allocation12 + $0x2d0] sm:$0xf] }
 0x336   :  { %4759 = vmatpush.bf16.msra.mxu0 %v12823_v51  ;;  %4773 = vmatpush.bf16.msra.mxu1 %v13015_v24  ;;  %v15998_v51 = vld [vmem:[#allocation11 + $0x554] sm:$0xf]  ;;  %v12728_v24 = vld [vmem:[#allocation11 + $0x568] sm:$0xf0]  ;;  %v16209_v13 = vld [vmem:[#allocation12 + $0x2e4] sm:$0xf0] }
 0x337   :  { %4787 = vmatpush.bf16.msra.mxu2 %v12059_v61  ;;  %4801 = vmatpush.bf16.msra.mxu3 %v12251_v1  ;;  %v12539_v61 = vor.u32 %v15950_v2, %v12536_v39  ;;  %v12731_v1 = vor.u32 %v15998_v51, %v12728_v24  ;;  %v15980_v2 = vld [vmem:[#allocation11 + $0x4c4] sm:$0xf]  ;;  %v12656_v39 = vld [vmem:[#allocation11 + $0x4d8] sm:$0xf0]  ;;  %v15926_v46 = vld [vmem:[#allocation11 + $0x314] sm:$0xf] }
 0x338   :  { %7266 = vrot.lane.b32.xlu2 %v7265_v45, %s17133_s8  ;;  %v16076_v51 = vld [vmem:[#allocation11 + $0x7c4] sm:$0xf]  ;;  %v13040_v24 = vld [vmem:[#allocation11 + $0x7d8] sm:$0xf0]  ;;  %v12659_v7 = vor.u32 %v15980_v2, %v12656_v39  ;;  %v13526_v60 = vld [vmem:[#allocation12 + $0x2a0] sm:$0xf] }
 0x339   :  { %4760 = vmatmul.bf16.vlgmr.msra.gmra.mxu0 %v17394_v6  ;;  %4774 = vmatmul.bf16.vlgmr.msra.gmra.mxu1 %v17396_v57  ;;  %v16203_v29 = vld [vmem:[#allocation12 + $0x2b4] sm:$0xf0]  ;;  %v13910_v2 = vld [vmem:[#allocation12 + $0x5a0] sm:$0xf] }
 0x33a   :  { %4808 = vmatpush.bf16.msrb.mxu0 %v12611_v55  ;;  %4822 = vmatpush.bf16.msrb.mxu1 %v12803_v28  ;;  %v15944_v55 = vld [vmem:[#allocation11 + $0x3a4] sm:$0xf]  ;;  %v12512_v28 = vld [vmem:[#allocation11 + $0x3b8] sm:$0xf0]  ;;  %v16299_v39 = vld [vmem:[#allocation12 + $0x5b4] sm:$0xf0] }
 0x33b   :  { %4836 = vmatpush.bf16.msrb.mxu2 %v12995_v63  ;;  %4850 = vmatpush.bf16.msrb.mxu3 %v13187_v23  ;;  %v15992_v63 = vld [vmem:[#allocation11 + $0x524] sm:$0xf]  ;;  %v12704_v23 = vld [vmem:[#allocation11 + $0x538] sm:$0xf0]  ;;  %v12515_v54 = vor.u32 %v15944_v55, %v12512_v28  ;;  %v13043_v28 = vor.u32 %v16076_v51, %v13040_v24  ;;  %v13527_v51 = vor.u32 %v16203_v29, %v13526_v60  ;;  %v16185_v29 = vld [vmem:[#allocation12 + $0x224] sm:$0xf0] }
 0x33c   :  { %4788 = vmatmul.bf16.vlgmr.msra.gmra.mxu2 %v17372_v47  ;;  %4802 = vmatmul.bf16.vlgmr.msra.gmra.mxu3 %v17374_v48  ;;  %v12707_v21 = vor.u32 %v15992_v63, %v12704_v23  ;;  %v16070_v63 = vld [vmem:[#allocation11 + $0x794] sm:$0xf]  ;;  %v13016_v23 = vld [vmem:[#allocation11 + $0x7a8] sm:$0xf0] }
 0x33e   :  { %4809 = vmatpush.bf16.msrb.mxu0 %v12587_v44  ;;  %4823 = vmatpush.bf16.msrb.mxu1 %v12779_v26  ;;  %v12488_v44 = vld [vmem:[#allocation11 + $0x388] sm:$0xf0]  ;;  %v12899_v26 = vor.u32 %v16040_v5, %v12896_v59  ;;  %v13358_v5 = vld [vmem:[#allocation12 + $0x150] sm:$0xf]  ;;  %v16161_v59 = vld [vmem:[#allocation12 + $0x164] sm:$0xf0] }
 0x33f   :  { %4837 = vmatpush.bf16.msrb.mxu2 %v12971_v25  ;;  %4851 = vmatpush.bf16.msrb.mxu3 %v13163_v32  ;;  %v12680_v25 = vld [vmem:[#allocation11 + $0x508] sm:$0xf0]  ;;  %v16034_v32 = vld [vmem:[#allocation11 + $0x674] sm:$0xf]  ;;  %v12491_v45 = vor.u32 %v15938_v38, %v12488_v44  ;;  %v16257_v44 = vld [vmem:[#allocation12 + $0x464] sm:$0xf0] }
 0x340   :  { %7485 = vrot.lane.b32.xlu2 %v17663_v62, %s17133_s8  ;;  %v12683_v19 = vor.u32 %v15986_v15, %v12680_v25  ;;  %v13019_v25 = vor.u32 %v16070_v63, %v13016_v23 }
 0x342   :  { %4810 = vmatpush.bf16.msrb.mxu0 %v12563_v8  ;;  %4824 = vmatpush.bf16.msrb.mxu1 %v12755_v27  ;;  %v12875_v8 = vor.u32 %v16034_v32, %v12872_v31  ;;  %v13067_v27 = vor.u32 %v16082_v49, %v13064_v9  ;;  %v13359_v32 = vor.u32 %v16161_v59, %v13358_v5  ;;  %v13286_v59 = vld [vmem:[#allocation12 + $0xc0] sm:$0xf] }
 0x343   :  { %4838 = vmatpush.bf16.msrb.mxu2 %v12947_v42  ;;  %4852 = vmatpush.bf16.msrb.mxu3 %v13139_v34  ;;  %v16028_v42 = vld [vmem:[#allocation11 + $0x644] sm:$0xf]  ;;  %v12848_v34 = vld [vmem:[#allocation11 + $0x658] sm:$0xf0]  ;;  %v13551_v31 = vor.u32 %v16209_v13, %v13550_v0  ;;  %v16143_v0 = vld [vmem:[#allocation12 + $0xd4] sm:$0xf0] }
 0x344   :  { %v12851_v55 = vor.u32 %v16028_v42, %v12848_v34  ;;  %v17681_v34 = vpop.f32.mrf.mxu0  ;;  %v13478_v13 = vld [vmem:[#allocation12 + $0x240] sm:$0xf] }
 0x346   :  { %4811 = vmatpush.bf16.msrb.mxu0 %v12539_v61  ;;  %4825 = vmatpush.bf16.msrb.mxu1 %v12731_v1  ;;  %v15974_v61 = vld [vmem:[#allocation11 + $0x494] sm:$0xf]  ;;  %v12632_v1 = vld [vmem:[#allocation11 + $0x4a8] sm:$0xf0] }
 0x347   :  { %4839 = vmatpush.bf16.msrb.mxu2 %v12923_v3  ;;  %4853 = vmatpush.bf16.msrb.mxu3 %v13115_v37  ;;  %v16022_v3 = vld [vmem:[#allocation11 + $0x614] sm:$0xf]  ;;  %v12824_v37 = vld [vmem:[#allocation11 + $0x628] sm:$0xf0]  ;;  %v12635_v38 = vor.u32 %v15974_v61, %v12632_v1  ;;  %v16197_v61 = vld [vmem:[#allocation12 + $0x284] sm:$0xf0] }
 0x348   :  { %7510 = vrot.lane.b32.xlu2 %v17669_v33, %s17133_s8  ;;  %v12827_v15 = vor.u32 %v16022_v3, %v12824_v37  ;;  %v13694_v1 = vld [vmem:[#allocation12 + $0x3f0] sm:$0xf]  ;;  %v16293_v3 = vld [vmem:[#allocation12 + $0x584] sm:$0xf0]  ;;  %v17687_v37 = vpop.f32.mrf.mxu1 }
 0x34a   :  { %4812 = vmatpush.bf16.msrb.mxu0 %v12515_v54  ;;  %4826 = vmatpush.bf16.msrb.mxu1 %v12707_v21  ;;  %v13742_v54 = vld [vmem:[#allocation12 + $0x450] sm:$0xf]  ;;  %v12443_v21 = vor.u32 %v15926_v46, %v12440_v4  ;;  %v13911_v4 = vor.u32 %v16299_v39, %v13910_v2 }
 0x34b   :  { %4840 = vmatpush.bf16.msrb.mxu2 %v12899_v26  ;;  %4854 = vmatpush.bf16.msrb.mxu3 %v13091_v12  ;;  %v13934_v26 = vld [vmem:[#allocation12 + $0x5d0] sm:$0xf]  ;;  %v16305_v12 = vld [vmem:[#allocation12 + $0x5e4] sm:$0xf0]  ;;  %v13743_v49 = vor.u32 %v16257_v44, %v13742_v54  ;;  %v16239_v44 = vld [vmem:[#allocation12 + $0x3d4] sm:$0xf0] }
 0x34c   :  { %v13935_v9 = vor.u32 %v16305_v12, %v13934_v26  ;;  %v13310_v46 = vld [vmem:[#allocation12 + $0xf0] sm:$0xf]  ;;  %v13862_v26 = vld [vmem:[#allocation12 + $0x540] sm:$0xf]  ;;  %v16287_v12 = vld [vmem:[#allocation12 + $0x554] sm:$0xf0]  ;;  %v17695_v2 = vpop.f32.mrf.mxu0 }
 0x34d   :  { %v13863_v60 = vor.u32 %v16287_v12, %v13862_v26  ;;  %v13838_v39 = vld [vmem:[#allocation12 + $0x510] sm:$0xf]  ;;  %v16173_v12 = vld [vmem:[#allocation12 + $0x1c4] sm:$0xf0] }
 0x34e   :  { %4813 = vmatpush.bf16.msrb.mxu0 %v12491_v45  ;;  %4827 = vmatpush.bf16.msrb.mxu1 %v12683_v19  ;;  %v13334_v45 = vld [vmem:[#allocation12 + $0x120] sm:$0xf]  ;;  %v16155_v19 = vld [vmem:[#allocation12 + $0x134] sm:$0xf0] }
 0x34f   :  { %4841 = vmatpush.bf16.msrb.mxu2 %v12875_v8  ;;  %4855 = vmatpush.bf16.msrb.mxu3 %v13067_v27  ;;  %v13718_v8 = vld [vmem:[#allocation12 + $0x420] sm:$0xf]  ;;  %v16251_v27 = vld [vmem:[#allocation12 + $0x434] sm:$0xf0]  ;;  %v13335_v42 = vor.u32 %v16155_v19, %v13334_v45  ;;  %v16137_v45 = vld [vmem:[#allocation12 + $0xa4] sm:$0xf0] }
 0x350   :  { %v13719_v24 = vor.u32 %v16251_v27, %v13718_v8  ;;  %7482 = vrot.lane.b32.xlu2 %v17468_v16, %s17133_s8  ;;  %v13454_v19 = vld [vmem:[#allocation12 + $0x210] sm:$0xf]  ;;  %v16233_v27 = vld [vmem:[#allocation12 + $0x3a4] sm:$0xf0]  ;;  %v16134_v16 = vld [vmem:[#allocation12 + $0x94] sm:$0xf] }
 0x351   :  { %v13646_v8 = vld [vmem:[#allocation12 + $0x390] sm:$0xf] }
 0x352   :  { %4814 = vmatpush.bf16.msrb.mxu0 %v12467_v17  ;;  %4828 = vmatpush.bf16.msrb.mxu1 %v12659_v7  ;;  %v16149_v17 = vld [vmem:[#allocation12 + $0x104] sm:$0xf0]  ;;  %v13502_v7 = vld [vmem:[#allocation12 + $0x270] sm:$0xf] }
 0x353   :  { %4842 = vmatpush.bf16.msrb.mxu2 %v12851_v55  ;;  %4856 = vmatpush.bf16.msrb.mxu3 %v13043_v28  ;;  %v16245_v55 = vld [vmem:[#allocation12 + $0x404] sm:$0xf0]  ;;  %v13886_v28 = vld [vmem:[#allocation12 + $0x570] sm:$0xf]  ;;  %v13311_v63 = vor.u32 %v16149_v17, %v13310_v46  ;;  %v13503_v23 = vor.u32 %v16197_v61, %v13502_v7  ;;  %v13647_v46 = vor.u32 %v16233_v27, %v13646_v8  ;;  %v13238_v17 = vld [vmem:[#allocation12 + $0x60] sm:$0xf]  ;;  %v17697_v61 = vpop.f32.mrf.mxu1 }
 0x354   :  { %v13695_v5 = vor.u32 %v16245_v55, %v13694_v1  ;;  %v13887_v54 = vor.u32 %v16293_v3, %v13886_v28  ;;  %v16131_v7 = vld [vmem:[#allocation12 + $0x74] sm:$0xf0]  ;;  %v13622_v28 = vld [vmem:[#allocation12 + $0x360] sm:$0xf] }
 0x355   :  { %v16179_v55 = vld [vmem:[#allocation12 + $0x1f4] sm:$0xf0] }
 0x356   :  { %4815 = vmatpush.bf16.msrb.mxu0 %v12443_v21  ;;  %4829 = vmatpush.bf16.msrb.mxu1 %v12635_v38  ;;  %v16191_v21 = vld [vmem:[#allocation12 + $0x254] sm:$0xf0]  ;;  %v13670_v38 = vld [vmem:[#allocation12 + $0x3c0] sm:$0xf] }
 0x357   :  { %4843 = vmatpush.bf16.msrb.mxu2 %v12827_v15  ;;  %4857 = vmatpush.bf16.msrb.mxu3 %v13019_v25  ;;  %v17691_v15 = vpop.f32.mrf.mxu2  ;;  %v17693_v25 = vpop.f32.mrf.mxu3  ;;  %v16227_v3 = vld [vmem:[#allocation12 + $0x374] sm:$0xf0] }
 0x359   :  { %4816 = vmatmul.bf16.vlgmr.msrb.gmra.mxu0 %v17376_v50  ;;  %4830 = vmatmul.bf16.vlgmr.msrb.gmra.mxu1 %v17378_v53 }
 0x35a   :  { %6612 = vmatpush.bf16.msra.mxu0 %v13359_v32  ;;  %6626 = vmatpush.bf16.msra.mxu1 %v13551_v31  ;;  %v13287_v32 = vor.u32 %v16143_v0, %v13286_v59  ;;  %v13479_v31 = vor.u32 %v16191_v21, %v13478_v13  ;;  %v13623_v0 = vor.u32 %v16227_v3, %v13622_v28  ;;  %v13214_v13 = vld [vmem:[#allocation12 + $0x30] sm:$0xf] }
 0x35b   :  { %6640 = vmatpush.bf16.msra.mxu2 %v13743_v49  ;;  %6654 = vmatpush.bf16.msra.mxu3 %v13935_v9  ;;  %v13671_v49 = vor.u32 %v16239_v44, %v13670_v38  ;;  %v13262_v9 = vld [vmem:[#allocation12 + $0x90] sm:$0xf] }
 0x35c   :  { %4844 = vmatmul.bf16.vlgmr.msrb.gmra.mxu2 %v17394_v6  ;;  %4858 = vmatmul.bf16.vlgmr.msrb.gmra.mxu3 %v17396_v57  ;;  %v13406_v21 = vld [vmem:[#allocation12 + $0x1b0] sm:$0xf] }
 0x35d   :  { %v13407_v8 = vor.u32 %v16173_v12, %v13406_v21  ;;  %v14318_v28 = vld [vmem:[#allocation12 + $0x8d0] sm:$0xf] }
 0x35e   :  { %6613 = vmatpush.bf16.msra.mxu0 %v13335_v42  ;;  %6627 = vmatpush.bf16.msra.mxu1 %v13527_v51  ;;  %v16281_v42 = vld [vmem:[#allocation12 + $0x524] sm:$0xf0]  ;;  %v13263_v51 = vor.u32 %v16137_v45, %v13262_v9  ;;  %v13790_v9 = vld [vmem:[#allocation12 + $0x4b0] sm:$0xf] }
 0x35f   :  { %6641 = vmatpush.bf16.msra.mxu2 %v13719_v24  ;;  %6655 = vmatpush.bf16.msra.mxu3 %v13911_v4  ;;  %v13455_v24 = vor.u32 %v16185_v29, %v13454_v19  ;;  %v13430_v4 = vld [vmem:[#allocation12 + $0x1e0] sm:$0xf]  ;;  %v13839_v1 = vor.u32 %v16281_v42, %v13838_v39  ;;  %v17699_v38 = vpop.f32.mrf.mxu2  ;;  %v17701_v44 = vpop.f32.mrf.mxu3  ;;  %v16269_v45 = vld [vmem:[#allocation12 + $0x4c4] sm:$0xf0]  ;;  %v16119_v29 = vld [vmem:[#allocation12 + $0x14] sm:$0xf0] }
 0x360   :  { %v13431_v59 = vor.u32 %v16179_v55, %v13430_v4  ;;  %v13382_v39 = vld [vmem:[#allocation12 + $0x180] sm:$0xf]  ;;  %v16167_v42 = vld [vmem:[#allocation12 + $0x194] sm:$0xf0]  ;;  %v16353_v55 = vld [vmem:[#allocation12 + $0x764] sm:$0xf0] }
 0x361   :  { %v16263_v4 = vld [vmem:[#allocation12 + $0x494] sm:$0xf0] }
 0x362   :  { %6614 = vmatpush.bf16.msra.mxu0 %v13311_v63  ;;  %6628 = vmatpush.bf16.msra.mxu1 %v13503_v23  ;;  %v13814_v63 = vld [vmem:[#allocation12 + $0x4e0] sm:$0xf]  ;;  %v16275_v23 = vld [vmem:[#allocation12 + $0x4f4] sm:$0xf0] }
 0x363   :  { %6642 = vmatpush.bf16.msra.mxu2 %v13695_v5  ;;  %6656 = vmatpush.bf16.msra.mxu3 %v13887_v54  ;;  %v13239_v5 = vor.u32 %v16131_v7, %v13238_v17  ;;  %v16125_v54 = vld [vmem:[#allocation12 + $0x44] sm:$0xf0]  ;;  %v13815_v26 = vor.u32 %v16275_v23, %v13814_v63  ;;  %v16215_v17 = vld [vmem:[#allocation12 + $0x314] sm:$0xf0]  ;;  %v13766_v7 = vld [vmem:[#allocation12 + $0x480] sm:$0xf] }
 0x364   :  { %v13215_v19 = vor.u32 %v16125_v54, %v13214_v13  ;;  %v16401_v63 = vld [vmem:[#allocation12 + $0x8e4] sm:$0xf0]  ;;  %v16158_v23 = vld [vmem:[#allocation12 + $0x154] sm:$0xf]  ;;  %v13552_v54 = vld [vmem:[#allocation12 + $0x2e8] sm:$0xf0] }
 0x365   :  { %v16206_v13 = vld [vmem:[#allocation12 + $0x2d4] sm:$0xf] }
 0x366   :  { %6615 = vmatpush.bf16.msra.mxu0 %v13287_v32  ;;  %6629 = vmatpush.bf16.msra.mxu1 %v13479_v31  ;;  %v13598_v32 = vld [vmem:[#allocation12 + $0x330] sm:$0xf]  ;;  %v16221_v31 = vld [vmem:[#allocation12 + $0x344] sm:$0xf0] }
 0x367   :  { %6643 = vmatpush.bf16.msra.mxu2 %v13671_v49  ;;  %6657 = vmatpush.bf16.msra.mxu3 %v13863_v60  ;;  %v17703_v49 = vpop.f32.mrf.mxu0  ;;  %v13190_v60 = vld [vmem:[#allocation12] sm:$0xf]  ;;  %v13599_v27 = vor.u32 %v16221_v31, %v13598_v32  ;;  %v17708_v12 = vpop.f32.mrf.mxu3  ;;  %v13767_v32 = vor.u32 %v16263_v4, %v13766_v7  ;;  %v13528_v7 = vld [vmem:[#allocation12 + $0x2b8] sm:$0xf0]  ;;  %v18576_v4 = vperm.slane %v17622_v52, 2 }
 0x368   :  { %v13191_v3 = vor.u32 %v16119_v29, %v13190_v60  ;;  %v16347_v60 = vld [vmem:[#allocation12 + $0x734] sm:$0xf0]  ;;  %v14294_v29 = vld [vmem:[#allocation12 + $0x8a0] sm:$0xf] }
 0x36a   :  { %6616 = vmatpush.bf16.msra.mxu0 %v13263_v51  ;;  %6630 = vmatpush.bf16.msra.mxu1 %v13455_v24  ;;  %v13574_v51 = vld [vmem:[#allocation12 + $0x300] sm:$0xf]  ;;  %v17705_v24 = vpop.f32.mrf.mxu1 }
 0x36b   :  { %6644 = vmatpush.bf16.msra.mxu2 %v13647_v46  ;;  %6658 = vmatpush.bf16.msra.mxu3 %v13839_v1  ;;  %v13791_v46 = vor.u32 %v16269_v45, %v13790_v9  ;;  %v14126_v1 = vld [vmem:[#allocation12 + $0x750] sm:$0xf]  ;;  %v14319_v9 = vor.u32 %v16401_v63, %v14318_v28 }
 0x36c   :  { %v14127_v31 = vor.u32 %v16353_v55, %v14126_v1  ;;  %v4538_v1 = vadd.f32 %v17681_v34, %v18576_v4  ;;  %v14078_v63 = vld [vmem:[#allocation12 + $0x6f0] sm:$0xf]  ;;  %v16383_v4 = vld [vmem:[#allocation12 + $0x854] sm:$0xf0] }
 0x36e   :  { %6617 = vmatpush.bf16.msra.mxu0 %v13239_v5  ;;  %6631 = vmatpush.bf16.msra.mxu1 %v13431_v59  ;;  %v13360_v5 = vld [vmem:[#allocation12 + $0x168] sm:$0xf0]  ;;  %v13383_v59 = vor.u32 %v16167_v42, %v13382_v39  ;;  %v16152_v39 = vld [vmem:[#allocation12 + $0x124] sm:$0xf]  ;;  %v13336_v42 = vld [vmem:[#allocation12 + $0x138] sm:$0xf0] }
 0x36f   :  { %6645 = vmatpush.bf16.msra.mxu2 %v13623_v0  ;;  %6659 = vmatpush.bf16.msra.mxu3 %v13815_v26  ;;  %v13575_v0 = vor.u32 %v16215_v17, %v13574_v51  ;;  %v4621_v26 = vpop.f32.mrf.mxu2  ;;  %v13363_v45 = vor.u32 %v16158_v23, %v13360_v5  ;;  %v17710_v51 = vld [vmem:[#allocation17] sm:$0x3f]  ;;  %v17713_v21 = vpop.f32.mrf.mxu0  ;;  %v14270_v5 = vld [vmem:[#allocation12 + $0x870] sm:$0xf]  ;;  %v13312_v17 = vld [vmem:[#allocation12 + $0x108] sm:$0xf0] }
 0x370   :  { %v16341_v23 = vld [vmem:[#allocation12 + $0x704] sm:$0xf0]  ;;  %v18577_v34 = vperm.slane %v17710_v51, 3 }
 0x372   :  { %6618 = vmatpush.bf16.msra.mxu0 %v13215_v19  ;;  %6632 = vmatpush.bf16.msra.mxu1 %v13407_v8  ;;  %v14102_v19 = vld [vmem:[#allocation12 + $0x720] sm:$0xf]  ;;  %v13555_v8 = vor.u32 %v16206_v13, %v13552_v54  ;;  %v17718_v13 = vpop.f32.mrf.mxu1  ;;  %v16146_v54 = vld [vmem:[#allocation12 + $0xf4] sm:$0xf] }
 0x373   :  { %6646 = vmatpush.bf16.msra.mxu2 %v13599_v27  ;;  %6660 = vmatpush.bf16.msra.mxu3 %v13791_v46  ;;  %v16395_v27 = vld [vmem:[#allocation12 + $0x8b4] sm:$0xf0]  ;;  %v16200_v46 = vld [vmem:[#allocation12 + $0x2a4] sm:$0xf]  ;;  %v14103_v55 = vor.u32 %v16347_v60, %v14102_v19  ;;  %v14079_v19 = vor.u32 %v16341_v23, %v14078_v63 }
 0x374   :  { %v14295_v28 = vor.u32 %v16395_v27, %v14294_v29  ;;  %v13315_v29 = vor.u32 %v16146_v54, %v13312_v17  ;;  %v16335_v27 = vld [vmem:[#allocation12 + $0x6d4] sm:$0xf0]  ;;  %v16188_v63 = vld [vmem:[#allocation12 + $0x244] sm:$0xf]  ;;  %v16329_v54 = vld [vmem:[#allocation12 + $0x6a4] sm:$0xf0] }
 0x376   :  { %6619 = vmatpush.bf16.msra.mxu0 %v13191_v3  ;;  %6633 = vmatpush.bf16.msra.mxu1 %v13383_v59  ;;  %v13339_v3 = vor.u32 %v16152_v39, %v13336_v42  ;;  %v13531_v59 = vor.u32 %v16200_v46, %v13528_v7  ;;  %v14246_v39 = vld [vmem:[#allocation12 + $0x840] sm:$0xf]  ;;  %v4637_v46 = vpop.f32.mrf.mxu3 }
 0x377   :  { %6647 = vmatpush.bf16.msra.mxu2 %v13575_v0  ;;  %6661 = vmatpush.bf16.msra.mxu3 %v13767_v32  ;;  %v16389_v0 = vld [vmem:[#allocation12 + $0x884] sm:$0xf0]  ;;  %v4622_v32 = vadd.f32 %v4621_v26, %v18577_v34  ;;  %v4623_v42 = vpop.f32.mrf.mxu2  ;;  %v16140_v34 = vld [vmem:[#allocation12 + $0xc4] sm:$0xf] }
 0x378   :  { %v14271_v60 = vor.u32 %v16389_v0, %v14270_v5  ;;  %v14247_v5 = vor.u32 %v16383_v4, %v14246_v39  ;;  %v14030_v0 = vld [vmem:[#allocation12 + $0x690] sm:$0xf] }
 0x379   :  { %6620 = vmatmul.bf16.vlgmr.msra.gmra.mxu0 %v17372_v47  ;;  %6634 = vmatmul.bf16.vlgmr.msra.gmra.mxu1 %v17374_v48 }
 0x37a   :  { %6668 = vmatpush.bf16.msrb.mxu0 %v14127_v31  ;;  %6682 = vmatpush.bf16.msrb.mxu1 %v14319_v9  ;;  %v16194_v31 = vld [vmem:[#allocation12 + $0x274] sm:$0xf]  ;;  %v13504_v9 = vld [vmem:[#allocation12 + $0x288] sm:$0xf0] }
 0x37b   :  { %6696 = vmatpush.bf16.msrb.mxu2 %v13363_v45  ;;  %6710 = vmatpush.bf16.msrb.mxu3 %v13555_v8  ;;  %v4552_v45 = vadd.f32 %v17687_v37, %v4538_v1  ;;  %v14054_v8 = vld [vmem:[#allocation12 + $0x6c0] sm:$0xf]  ;;  %v13507_v7 = vor.u32 %v16194_v31, %v13504_v9  ;;  %v13288_v37 = vld [vmem:[#allocation12 + $0xd8] sm:$0xf0]  ;;  %v4636_v1 = vadd.f32 %v17708_v12, %v4622_v32  ;;  %v14222_v31 = vld [vmem:[#allocation12 + $0x810] sm:$0xf]  ;;  %v4663_v12 = vpop.f32.mrf.mxu1 }
 0x37c   :  { %6648 = vmatmul.bf16.vlgmr.msra.gmra.mxu2 %v17376_v50  ;;  %6662 = vmatmul.bf16.vlgmr.msra.gmra.mxu3 %v17378_v53  ;;  %v14055_v23 = vor.u32 %v16335_v27, %v14054_v8  ;;  %v16182_v8 = vld [vmem:[#allocation12 + $0x214] sm:$0xf] }
 0x37d   :  { %v4566_v26 = vadd.f32 %v17691_v15, %v4552_v45  ;;  %v16377_v45 = vld [vmem:[#allocation12 + $0x824] sm:$0xf0] }
 0x37e   :  { %6669 = vmatpush.bf16.msrb.mxu0 %v14103_v55  ;;  %6683 = vmatpush.bf16.msrb.mxu1 %v14295_v28  ;;  %v4649_v55 = vpop.f32.mrf.mxu0  ;;  %v13480_v28 = vld [vmem:[#allocation12 + $0x258] sm:$0xf0] }
 0x37f   :  { %6697 = vmatpush.bf16.msrb.mxu2 %v13339_v3  ;;  %6711 = vmatpush.bf16.msrb.mxu3 %v13531_v59  ;;  %v18578_v3 = vperm.slane %v17622_v52, 2  ;;  %v4650_v15 = vadd.f32 %v4649_v55, %v4636_v1  ;;  %v13291_v59 = vor.u32 %v16140_v34, %v13288_v37  ;;  %v4580_v9 = vadd.f32 %v17693_v25, %v4566_v26  ;;  %v13264_v52 = vld [vmem:[#allocation12 + $0xa8] sm:$0xf0]  ;;  %v14006_v26 = vld [vmem:[#allocation12 + $0x660] sm:$0xf] }
 0x380   :  { %v13483_v32 = vor.u32 %v16188_v63, %v13480_v28  ;;  %v14031_v25 = vor.u32 %v16329_v54, %v14030_v0  ;;  %v14223_v34 = vor.u32 %v16377_v45, %v14222_v31  ;;  %v13267_v37 = vor.u32 %v16134_v16, %v13264_v52  ;;  %v16323_v1 = vld [vmem:[#allocation12 + $0x674] sm:$0xf0]  ;;  %v16176_v0 = vld [vmem:[#allocation12 + $0x1e4] sm:$0xf]  ;;  %v13432_v16 = vld [vmem:[#allocation12 + $0x1f8] sm:$0xf0] }
 0x381   :  { %v4540_v17 = vadd.f32 %v17695_v2, %v18578_v3  ;;  %v18579_v2 = vperm.slane %v17710_v51, 3  ;;  %v4594_v4 = vadd.f32 %v17703_v49, %v4580_v9  ;;  %v16371_v55 = vld [vmem:[#allocation12 + $0x7f4] sm:$0xf0]  ;;  %v18581_v63 = vperm.slane %v17551_v22, 4  ;;  %v4677_v49 = vpop.f32.mrf.mxu2  ;;  %v4691_v3 = vpop.f32.mrf.mxu3  ;;  %v16317_v45 = vld [vmem:[#allocation12 + $0x644] sm:$0xf0] }
 0x382   :  { %6670 = vmatpush.bf16.msrb.mxu0 %v14079_v19  ;;  %6684 = vmatpush.bf16.msrb.mxu1 %v14271_v60  ;;  %v13456_v60 = vld [vmem:[#allocation12 + $0x228] sm:$0xf0]  ;;  %v14174_v52 = vld [vmem:[#allocation12 + $0x7b0] sm:$0xf] }
 0x383   :  { %6698 = vmatpush.bf16.msrb.mxu2 %v13315_v29  ;;  %6712 = vmatpush.bf16.msrb.mxu3 %v13507_v7  ;;  %v4624_v19 = vadd.f32 %v4623_v42, %v18579_v2  ;;  %v18580_v29 = vperm.slane %v17551_v22, 5  ;;  %v4554_v39 = vadd.f32 %v17697_v61, %v4540_v17  ;;  %v4664_v7 = vadd.f32 %v4663_v12, %v4650_v15  ;;  %v14198_v42 = vld [vmem:[#allocation12 + $0x7e0] sm:$0xf]  ;;  %v16128_v17 = vld [vmem:[#allocation12 + $0x64] sm:$0xf] }
 0x384   :  { %v2456_v28 = vadd.f32 %v17558_v18, %v18581_v63  ;;  %v13459_v61 = vor.u32 %v16182_v8, %v13456_v60  ;;  %v4608_v31 = vadd.f32 %v17705_v24, %v4594_v4  ;;  %v14007_v22 = vor.u32 %v16323_v1, %v14006_v26  ;;  %v16365_v24 = vld [vmem:[#allocation12 + $0x7c4] sm:$0xf0]  ;;  %v16122_v8 = vld [vmem:[#allocation12 + $0x34] sm:$0xf]  ;;  %v13216_v60 = vld [vmem:[#allocation12 + $0x48] sm:$0xf0]  ;;  %v4665_v26 = vpop.f32.mrf.mxu1 }
 0x385   :  { %v2540_v27 = vadd.f32 %v17586_v14, %v18580_v29  ;;  %v4568_v14 = vadd.f32 %v17699_v38, %v4554_v39  ;;  %v4638_v15 = vadd.f32 %v4637_v46, %v4624_v19  ;;  %v14199_v18 = vor.u32 %v16371_v55, %v14198_v42  ;;  %v13408_v39 = vld [vmem:[#allocation12 + $0x1c8] sm:$0xf0]  ;;  %v14150_v1 = vld [vmem:[#allocation12 + $0x780] sm:$0xf]  ;;  %v16359_v42 = vld [vmem:[#allocation12 + $0x794] sm:$0xf0] }
 0x386   :  { %6671 = vmatpush.bf16.msrb.mxu0 %v14055_v23  ;;  %6685 = vmatpush.bf16.msrb.mxu1 %v14247_v5  ;;  %v13240_v23 = vld [vmem:[#allocation12 + $0x78] sm:$0xf0]  ;;  %v4678_v5 = vadd.f32 %v4677_v49, %v4664_v7  ;;  %v2470_v46 = vadd.f32 %v17560_v20, %v2456_v28  ;;  %v13958_v7 = vld [vmem:[#allocation12 + $0x600] sm:$0xf]  ;;  %v16116_v55 = vld [vmem:[#allocation12 + $0x4] sm:$0xf] }
 0x387   :  { %6699 = vmatpush.bf16.msrb.mxu2 %v13291_v59  ;;  %6713 = vmatpush.bf16.msrb.mxu3 %v13483_v32  ;;  %v4651_v59 = vpop.f32.mrf.mxu0  ;;  %v2554_v54 = vadd.f32 %v17588_v36, %v2540_v27  ;;  %v13243_v12 = vor.u32 %v16128_v17, %v13240_v23  ;;  %v13982_v32 = vld [vmem:[#allocation12 + $0x630] sm:$0xf]  ;;  %v4582_v19 = vadd.f32 %v17701_v44, %v4568_v14  ;;  %v16170_v27 = vld [vmem:[#allocation12 + $0x1b4] sm:$0xf]  ;;  %v13192_v14 = vld [vmem:[#allocation12 + $0x18] sm:$0xf0] }
 0x388   :  { %v4692_v38 = vadd.f32 %v4691_v3, %v4678_v5  ;;  %v4652_v9 = vadd.f32 %v4651_v59, %v4638_v15  ;;  %v13435_v36 = vor.u32 %v16176_v0, %v13432_v16  ;;  %v2484_v4 = vadd.f32 %v17566_v35, %v2470_v46  ;;  %v13384_v49 = vld [vmem:[#allocation12 + $0x198] sm:$0xf0]  ;;  %v16254_v23 = vld [vmem:[#allocation12 + $0x454] sm:$0xf]  ;;  %v13744_v15 = vld [vmem:[#allocation12 + $0x468] sm:$0xf0] }
 0x389   :  { %v2568_v2 = vadd.f32 %v17598_v40, %v2554_v54  ;;  %v13983_v20 = vor.u32 %v16317_v45, %v13982_v32  ;;  %v16311_v40 = vld [vmem:[#allocation12 + $0x614] sm:$0xf0]  ;;  %v14175_v44 = vor.u32 %v16365_v24, %v14174_v52  ;;  %v13411_v35 = vor.u32 %v16170_v27, %v13408_v39  ;;  %v16302_v5 = vld [vmem:[#allocation12 + $0x5d4] sm:$0xf]  ;;  %v4693_v54 = vpop.f32.mrf.mxu3  ;;  %v14320_v45 = vld [vmem:[#allocation12 + $0x8e8] sm:$0xf0] }
 0x38a   :  { %6672 = vmatpush.bf16.msrb.mxu0 %v14031_v25  ;;  %6686 = vmatpush.bf16.msrb.mxu1 %v14223_v34  ;;  %v17749_v29 = vpack.c.bf16 %v4692_v38, %v4608_v31  ;;  %v4596_v25 = vadd.f32 %v17713_v21, %v4582_v19  ;;  %v4666_v34 = vadd.f32 %v4665_v26, %v4652_v9  ;;  %v4679_v21 = vpop.f32.mrf.mxu2  ;;  %v13936_v31 = vld [vmem:[#allocation12 + $0x5e8] sm:$0xf0]  ;;  %v16398_v32 = vld [vmem:[#allocation12 + $0x8d4] sm:$0xf]  ;;  %v16248_v19 = vld [vmem:[#allocation12 + $0x424] sm:$0xf] }
 0x38b   :  { %6700 = vmatpush.bf16.msrb.mxu2 %v13267_v37  ;;  %6714 = vmatpush.bf16.msrb.mxu3 %v13459_v61  ;;  %v13219_v37 = vor.u32 %v16122_v8, %v13216_v60  ;;  %v2582_v28 = vadd.f32 %v17600_v56, %v2568_v2  ;;  %v16164_v61 = vld [vmem:[#allocation12 + $0x184] sm:$0xf]  ;;  %v2498_v59 = vadd.f32 %v17568_v10, %v2484_v4  ;;  %v13912_v27 = vld [vmem:[#allocation12 + $0x5b8] sm:$0xf0] }
 0x38c   :  { %v7722_v63 = vunpack.c.l.b16 %v17749_v29  ;;  %v4680_v3 = vadd.f32 %v4679_v21, %v4666_v34  ;;  %v4610_v16 = vadd.f32 %v17718_v13, %v4596_v25  ;;  %v13959_v56 = vor.u32 %v16311_v40, %v13958_v7  ;;  %v16296_v60 = vld [vmem:[#allocation12 + $0x5a4] sm:$0xf]  ;;  %v14296_v25 = vld [vmem:[#allocation12 + $0x8b8] sm:$0xf0]  ;;  %v16242_v34 = vld [vmem:[#allocation12 + $0x3f4] sm:$0xf] }
 0x38d   :  { %v2596_v0 = vadd.f32 %v17602_v11, %v2582_v28  ;;  %v14151_v9 = vor.u32 %v16359_v42, %v14150_v1  ;;  %v2512_v52 = vadd.f32 %v17578_v30, %v2498_v59  ;;  %v13387_v10 = vor.u32 %v16164_v61, %v13384_v49  ;;  %v16344_v39 = vld [vmem:[#allocation12 + $0x724] sm:$0xf]  ;;  %v14104_v30 = vld [vmem:[#allocation12 + $0x738] sm:$0xf0]  ;;  %v16386_v21 = vld [vmem:[#allocation12 + $0x874] sm:$0xf] }
 0x38e   :  { %6673 = vmatpush.bf16.msrb.mxu0 %v14007_v22  ;;  %6687 = vmatpush.bf16.msrb.mxu1 %v14199_v18  ;;  %v7723_v17 = vpack.c.b16 %v7722_v63, %v7722_v63  ;;  %v16350_v22 = vld [vmem:[#allocation12 + $0x754] sm:$0xf]  ;;  %v14128_v18 = vld [vmem:[#allocation12 + $0x768] sm:$0xf0]  ;;  %v4694_v38 = vadd.f32 %v4693_v54, %v4680_v3  ;;  %v13747_v11 = vor.u32 %v16254_v23, %v13744_v15  ;;  %v16392_v4 = vld [vmem:[#allocation12 + $0x8a4] sm:$0xf]  ;;  %v7746_v40 = vunpack.c.l.b16 %v17545_v43 }
 0x38f   :  { %6701 = vmatpush.bf16.msrb.mxu2 %v13243_v12  ;;  %6715 = vmatpush.bf16.msrb.mxu3 %v13435_v36  ;;  %v13195_v12 = vor.u32 %v16116_v55, %v13192_v14  ;;  %v13939_v46 = vor.u32 %v16302_v5, %v13936_v31  ;;  %v14131_v2 = vor.u32 %v16350_v22, %v14128_v18  ;;  %v13720_v36 = vld [vmem:[#allocation12 + $0x438] sm:$0xf0]  ;;  %v16290_v55 = vld [vmem:[#allocation12 + $0x574] sm:$0xf]  ;;  %v13888_v63 = vld [vmem:[#allocation12 + $0x588] sm:$0xf0] }
 0x390   :  { %7724 = vrot.lane.b32.xlu2 %v7723_v17, %s17133_s8  ;;  %v17760_v13 = vpack.c.bf16 %v4694_v38, %v4610_v16  ;;  %v2610_v24 = vadd.f32 %v17604_v58, %v2596_v0  ;;  %v14323_v8 = vor.u32 %v16398_v32, %v14320_v45  ;;  %v13723_v7 = vor.u32 %v16248_v19, %v13720_v36  ;;  %v14272_v14 = vld [vmem:[#allocation12 + $0x888] sm:$0xf0]  ;;  %v16236_v17 = vld [vmem:[#allocation12 + $0x3c4] sm:$0xf]  ;;  %v13672_v23 = vld [vmem:[#allocation12 + $0x3d8] sm:$0xf0] }
 0x391   :  { %v13915_v58 = vor.u32 %v16296_v60, %v13912_v27  ;;  %v14107_v1 = vor.u32 %v16344_v39, %v14104_v30  ;;  %v14299_v42 = vor.u32 %v16392_v4, %v14296_v25  ;;  %v7747_v61 = vpack.c.b16 %v7746_v40, %v7746_v40  ;;  %v16284_v0 = vld [vmem:[#allocation12 + $0x544] sm:$0xf]  ;;  %v13864_v16 = vld [vmem:[#allocation12 + $0x558] sm:$0xf0]  ;;  %v16374_v19 = vld [vmem:[#allocation12 + $0x814] sm:$0xf] }
 0x392   :  { %6674 = vmatpush.bf16.msrb.mxu0 %v13983_v20  ;;  %6688 = vmatpush.bf16.msrb.mxu1 %v14175_v44  ;;  %v7751_v26 = vunpack.c.l.b16 %v17760_v13  ;;  %v2526_v20 = vadd.f32 %v17580_v41, %v2512_v52  ;;  %v13696_v44 = vld [vmem:[#allocation12 + $0x408] sm:$0xf0]  ;;  %v16338_v41 = vld [vmem:[#allocation12 + $0x6f4] sm:$0xf]  ;;  %v13891_v3 = vor.u32 %v16290_v55, %v13888_v63  ;;  %v14275_v5 = vor.u32 %v16386_v21, %v14272_v14  ;;  %v16332_v54 = vld [vmem:[#allocation12 + $0x6c4] sm:$0xf] }
 0x393   :  { %6702 = vmatpush.bf16.msrb.mxu2 %v13219_v37  ;;  %6716 = vmatpush.bf16.msrb.mxu3 %v13411_v35  ;;  %v14080_v35 = vld [vmem:[#allocation12 + $0x708] sm:$0xf0]  ;;  %v13699_v49 = vor.u32 %v16242_v34, %v13696_v44  ;;  %v16380_v31 = vld [vmem:[#allocation12 + $0x844] sm:$0xf]  ;;  %v14248_v22 = vld [vmem:[#allocation12 + $0x858] sm:$0xf0]  ;;  %v13675_v18 = vor.u32 %v16236_v17, %v13672_v23  ;;  %v13867_v38 = vor.u32 %v16284_v0, %v13864_v16 }
 0x394   :  { %v17766_v37 = vpack.c.bf16 %v2610_v24, %v2526_v20  ;;  %v7752_v28 = vpack.c.b16 %v7751_v26, %v7751_v26  ;;  %7996 = vrot.lane.b32.xlu0 %v17760_v13, %s17133_s8  ;;  %v14083_v15 = vor.u32 %v16338_v41, %v14080_v35  ;;  %v14251_v52 = vor.u32 %v16380_v31, %v14248_v22  ;;  %v14224_v36 = vld [vmem:[#allocation12 + $0x828] sm:$0xf0]  ;;  %v16224_v60 = vld [vmem:[#allocation12 + $0x364] sm:$0xf]  ;;  %v13624_v27 = vld [vmem:[#allocation12 + $0x378] sm:$0xf0] }
 0x395   :  { %v14227_v30 = vor.u32 %v16374_v19, %v14224_v36  ;;  %v16272_v4 = vld [vmem:[#allocation12 + $0x4e4] sm:$0xf]  ;;  %v13816_v25 = vld [vmem:[#allocation12 + $0x4f8] sm:$0xf0]  ;;  %v18582_v20 = vld [vmem:[#allocation31_spill] sm:$0xff]  ;;  %v13627_v34 = vor.u32 %v16224_v60, %v13624_v27 }
 0x396   :  { %6675 = vmatpush.bf16.msrb.mxu0 %v13959_v56  ;;  %6689 = vmatpush.bf16.msrb.mxu1 %v14151_v9  ;;  %v8232_v59 = vunpack.c.l.b16 %v17766_v37  ;;  %v14056_v56 = vld [vmem:[#allocation12 + $0x6d8] sm:$0xf0]  ;;  %v16230_v9 = vld [vmem:[#allocation12 + $0x394] sm:$0xf]  ;;  %v16320_v26 = vld [vmem:[#allocation12 + $0x664] sm:$0xf]  ;;  %v13819_v44 = vor.u32 %v16272_v4, %v13816_v25 }
 0x397   :  { %6703 = vmatpush.bf16.msrb.mxu2 %v13195_v12  ;;  %6717 = vmatpush.bf16.msrb.mxu3 %v13387_v10  ;;  %v13648_v12 = vld [vmem:[#allocation12 + $0x3a8] sm:$0xf0]  ;;  %v14059_v45 = vor.u32 %v16332_v54, %v14056_v56  ;;  %v16278_v10 = vld [vmem:[#allocation12 + $0x514] sm:$0xf]  ;;  %v14200_v40 = vld [vmem:[#allocation12 + $0x7f8] sm:$0xf0] }
 0x398   :  { %7753 = vrot.lane.b32.xlu1 %v7752_v28, %s17133_s8  ;;  %7748 = vrot.lane.b32.xlu2 %v7747_v61, %s17133_s8  ;;  %v8233_v32 = vpack.c.b16 %v8232_v59, %v8232_v59  ;;  %v13651_v24 = vor.u32 %v16230_v9, %v13648_v12  ;;  %v16266_v41 = vld [vmem:[#allocation12 + $0x4b4] sm:$0xf]  ;;  %v13792_v28 = vld [vmem:[#allocation12 + $0x4c8] sm:$0xf0]  ;;  %v13576_v23 = vld [vmem:[#allocation12 + $0x318] sm:$0xf0] }
 0x399   :  { %6676 = vmatmul.bf16.vlgmr.msrb.gmra.mxu0 %v17394_v6  ;;  %6690 = vmatmul.bf16.vlgmr.msrb.gmra.mxu1 %v17396_v57  ;;  %v16314_v35 = vld [vmem:[#allocation12 + $0x634] sm:$0xf]  ;;  %v13984_v21 = vld [vmem:[#allocation12 + $0x648] sm:$0xf0]  ;;  %v13795_v17 = vor.u32 %v16266_v41, %v13792_v28  ;;  %v16308_v16 = vld [vmem:[#allocation12 + $0x604] sm:$0xf] }
 0x39a   :  { %6724 = vmatpush.bf16.msra.mxu0 %v13747_v11  ;;  %6738 = vmatpush.bf16.msra.mxu1 %v13939_v46  ;;  %v13840_v11 = vld [vmem:[#allocation12 + $0x528] sm:$0xf0]  ;;  %v16326_v46 = vld [vmem:[#allocation12 + $0x694] sm:$0xf]  ;;  %v13987_v59 = vor.u32 %v16314_v35, %v13984_v21  ;;  %v13960_v54 = vld [vmem:[#allocation12 + $0x618] sm:$0xf0] }
 0x39b   :  { %6752 = vmatpush.bf16.msra.mxu2 %v14131_v2  ;;  %6766 = vmatpush.bf16.msra.mxu3 %v14323_v8  ;;  %v14032_v2 = vld [vmem:[#allocation12 + $0x6a8] sm:$0xf0]  ;;  %v13843_v8 = vor.u32 %v16278_v10, %v13840_v11  ;;  %v16362_v14 = vld [vmem:[#allocation12 + $0x7b4] sm:$0xf]  ;;  %v16356_v56 = vld [vmem:[#allocation12 + $0x784] sm:$0xf] }
 0x39c   :  { %6704 = vmatmul.bf16.vlgmr.msrb.gmra.mxu2 %v17372_v47  ;;  %6718 = vmatmul.bf16.vlgmr.msrb.gmra.mxu3 %v17374_v48  ;;  %v14035_v39 = vor.u32 %v16326_v46, %v14032_v2  ;;  %v14176_v61 = vld [vmem:[#allocation12 + $0x7c8] sm:$0xf0]  ;;  %v14152_v31 = vld [vmem:[#allocation12 + $0x798] sm:$0xf0]  ;;  %v13366_v22 = vld [vmem:[#allocation12 + $0x158] sm:$0xf]  ;;  %v13963_v46 = vor.u32 %v16308_v16, %v13960_v54 }
 0x39d   :  { %8234 = vrot.lane.b32.xlu0 %v8233_v32, %s17133_s8  ;;  %v14179_v0 = vor.u32 %v16362_v14, %v14176_v61  ;;  %v16210_v9 = vld [vmem:[#allocation12 + $0x2ec] sm:$0xf0]  ;;  %v13750_v12 = vld [vmem:[#allocation12 + $0x458] sm:$0xf]  ;;  %v14155_v2 = vor.u32 %v16356_v56, %v14152_v31  ;;  %v13342_v60 = vld [vmem:[#allocation12 + $0x128] sm:$0xf] }
 0x39e   :  { %6725 = vmatpush.bf16.msra.mxu0 %v13723_v7  ;;  %6739 = vmatpush.bf16.msra.mxu1 %v13915_v58  ;;  %v14008_v7 = vld [vmem:[#allocation12 + $0x678] sm:$0xf0]  ;;  %v16368_v58 = vld [vmem:[#allocation12 + $0x7e4] sm:$0xf]  ;;  %v13942_v10 = vld [vmem:[#allocation12 + $0x5d8] sm:$0xf] }
 0x39f   :  { %6753 = vmatpush.bf16.msra.mxu2 %v14107_v1  ;;  %6767 = vmatpush.bf16.msra.mxu3 %v14299_v42  ;;  %v16218_v1 = vld [vmem:[#allocation12 + $0x334] sm:$0xf]  ;;  %v13600_v42 = vld [vmem:[#allocation12 + $0x348] sm:$0xf0]  ;;  %v14011_v55 = vor.u32 %v16320_v26, %v14008_v7  ;;  %v14203_v63 = vor.u32 %v16368_v58, %v14200_v40  ;;  %v16306_v11 = vld [vmem:[#allocation12 + $0x5ec] sm:$0xf0] }
 0x3a0   :  { %7971 = vrot.lane.b32.xlu1 %v17749_v29, %s17133_s8  ;;  %7968 = vrot.lane.b32.xlu2 %v18582_v20, %s17133_s8  ;;  %v16156_v27 = vld [vmem:[#allocation12 + $0x13c] sm:$0xf0]  ;;  %v13726_v26 = vld [vmem:[#allocation12 + $0x428] sm:$0xf]  ;;  %v13510_v41 = vld [vmem:[#allocation12 + $0x278] sm:$0xf] }
 0x3a1   :  { %v16204_v25 = vld [vmem:[#allocation12 + $0x2bc] sm:$0xf0]  ;;  %v13918_v58 = vld [vmem:[#allocation12 + $0x5a8] sm:$0xf]  ;;  %v16198_v21 = vld [vmem:[#allocation12 + $0x28c] sm:$0xf0] }
 0x3a2   :  { %6726 = vmatpush.bf16.msra.mxu0 %v13699_v49  ;;  %6740 = vmatpush.bf16.msra.mxu1 %v13891_v3  ;;  %v16212_v49 = vld [vmem:[#allocation12 + $0x304] sm:$0xf]  ;;  %v13603_v3 = vor.u32 %v16218_v1, %v13600_v42  ;;  %v16252_v7 = vld [vmem:[#allocation12 + $0x43c] sm:$0xf0]  ;;  %v13702_v14 = vld [vmem:[#allocation12 + $0x3f8] sm:$0xf] }
 0x3a3   :  { %6754 = vmatpush.bf16.msra.mxu2 %v14083_v15  ;;  %6768 = vmatpush.bf16.msra.mxu3 %v14275_v5  ;;  %v16260_v15 = vld [vmem:[#allocation12 + $0x484] sm:$0xf]  ;;  %v13768_v5 = vld [vmem:[#allocation12 + $0x498] sm:$0xf0]  ;;  %v13579_v32 = vor.u32 %v16212_v49, %v13576_v23  ;;  %v16300_v40 = vld [vmem:[#allocation12 + $0x5bc] sm:$0xf0]  ;;  %v13727_v42 = vor.u32 %v16252_v7, %v13726_v26  ;;  %v17789_v49 = vpop.f32.mrf.mxu1 }
 0x3a4   :  { %v13919_v35 = vor.u32 %v16300_v40, %v13918_v58  ;;  %v16246_v61 = vld [vmem:[#allocation12 + $0x40c] sm:$0xf0]  ;;  %v13486_v16 = vld [vmem:[#allocation12 + $0x248] sm:$0xf]  ;;  %v16192_v56 = vld [vmem:[#allocation12 + $0x25c] sm:$0xf0] }
 0x3a5   :  { %v13678_v31 = vld [vmem:[#allocation12 + $0x3c8] sm:$0xf]  ;;  %v16132_v58 = vld [vmem:[#allocation12 + $0x7c] sm:$0xf0] }
 0x3a6   :  { %6727 = vmatpush.bf16.msra.mxu0 %v13675_v18  ;;  %6741 = vmatpush.bf16.msra.mxu1 %v13867_v38  ;;  %v16162_v18 = vld [vmem:[#allocation12 + $0x16c] sm:$0xf0]  ;;  %v13558_v38 = vld [vmem:[#allocation12 + $0x2d8] sm:$0xf]  ;;  %v13246_v7 = vld [vmem:[#allocation12 + $0x68] sm:$0xf] }
 0x3a7   :  { %6755 = vmatpush.bf16.msra.mxu2 %v14059_v45  ;;  %6769 = vmatpush.bf16.msra.mxu3 %v14251_v52  ;;  %v13771_v45 = vor.u32 %v16260_v15, %v13768_v5  ;;  %v16258_v52 = vld [vmem:[#allocation12 + $0x46c] sm:$0xf0]  ;;  %v13367_v19 = vor.u32 %v16162_v18, %v13366_v22  ;;  %v13559_v36 = vor.u32 %v16210_v9, %v13558_v38  ;;  %v16240_v22 = vld [vmem:[#allocation12 + $0x3dc] sm:$0xf0]  ;;  %v17794_v18 = vpop.f32.mrf.mxu2  ;;  %v17796_v38 = vpop.f32.mrf.mxu3  ;;  %v13870_v9 = vld [vmem:[#allocation12 + $0x548] sm:$0xf] }
 0x3a8   :  { %7993 = vrot.lane.b32.xlu1 %v17545_v43, %s17133_s8  ;;  %v13511_v15 = vor.u32 %v16198_v21, %v13510_v41  ;;  %v13703_v5 = vor.u32 %v16246_v61, %v13702_v14  ;;  %v13438_v40 = vld [vmem:[#allocation12 + $0x1e8] sm:$0xf]  ;;  %v16276_v41 = vld [vmem:[#allocation12 + $0x4fc] sm:$0xf0] }
 0x3aa   :  { %6728 = vmatpush.bf16.msra.mxu0 %v13651_v24  ;;  %6742 = vmatpush.bf16.msra.mxu1 %v13843_v8  ;;  %v13751_v24 = vor.u32 %v16258_v52, %v13750_v12  ;;  %v13943_v8 = vor.u32 %v16306_v11, %v13942_v10  ;;  %v16288_v12 = vld [vmem:[#allocation12 + $0x55c] sm:$0xf0]  ;;  %v13679_v52 = vor.u32 %v16240_v22, %v13678_v31  ;;  %v13270_v10 = vld [vmem:[#allocation12 + $0x98] sm:$0xf]  ;;  %v16138_v11 = vld [vmem:[#allocation12 + $0xac] sm:$0xf0] }
 0x3ab   :  { %6756 = vmatpush.bf16.msra.mxu2 %v14035_v39  ;;  %6770 = vmatpush.bf16.msra.mxu3 %v14227_v30  ;;  %v13534_v39 = vld [vmem:[#allocation12 + $0x2a8] sm:$0xf]  ;;  %v18583_v30 = vld [vmem:[#allocation32_spill] sm:$0xff] }
 0x3ac   :  { %v8203_v4 = vunpack.c.l.b16 %v18583_v30  ;;  %v13535_v1 = vor.u32 %v16204_v25, %v13534_v39  ;;  %v13271_v39 = vor.u32 %v16138_v11, %v13270_v10  ;;  %v13198_v22 = vld [vmem:[#allocation12 + $0x8] sm:$0xf]  ;;  %v16168_v10 = vld [vmem:[#allocation12 + $0x19c] sm:$0xf0] }
 0x3ad   :  { %v13582_v11 = vld [vmem:[#allocation12 + $0x308] sm:$0xf] }
 0x3ae   :  { %6729 = vmatpush.bf16.msra.mxu0 %v13627_v34  ;;  %6743 = vmatpush.bf16.msra.mxu1 %v13819_v44  ;;  %v17785_v34 = vpop.f32.mrf.mxu0  ;;  %v13343_v44 = vor.u32 %v16156_v27, %v13342_v60  ;;  %v8204_v28 = vpack.c.b16 %v8203_v4, %v8203_v4  ;;  %v13846_v60 = vld [vmem:[#allocation12 + $0x518] sm:$0xf]  ;;  %v16282_v27 = vld [vmem:[#allocation12 + $0x52c] sm:$0xf0]  ;;  %v17802_v4 = vpop.f32.mrf.mxu1 }
 0x3af   :  { %6757 = vmatpush.bf16.msra.mxu2 %v14011_v55  ;;  %6771 = vmatpush.bf16.msra.mxu3 %v14203_v63  ;;  %v13318_v55 = vld [vmem:[#allocation12 + $0xf8] sm:$0xf]  ;;  %v16150_v63 = vld [vmem:[#allocation12 + $0x10c] sm:$0xf0]  ;;  %v17806_v21 = vpop.f32.mrf.mxu3 }
 0x3b0   :  { %8205 = vrot.lane.b32.xlu1 %v8204_v28, %s17133_s8  ;;  %v13319_v23 = vor.u32 %v16150_v63, %v13318_v55  ;;  %v16228_v55 = vld [vmem:[#allocation12 + $0x37c] sm:$0xf0]  ;;  %v13822_v63 = vld [vmem:[#allocation12 + $0x4e8] sm:$0xf]  ;;  %v13247_v28 = vor.u32 %v16132_v58, %v13246_v7  ;;  %v13368_v7 = vld [vmem:[#allocation12 + $0x170] sm:$0xf0] }
 0x3b2   :  { %6730 = vmatpush.bf16.msra.mxu0 %v13603_v3  ;;  %6744 = vmatpush.bf16.msra.mxu1 %v13795_v17  ;;  %v13894_v3 = vld [vmem:[#allocation12 + $0x578] sm:$0xf]  ;;  %v16294_v17 = vld [vmem:[#allocation12 + $0x58c] sm:$0xf0] }
 0x3b3   :  { %6758 = vmatpush.bf16.msra.mxu2 %v13987_v59  ;;  %6772 = vmatpush.bf16.msra.mxu3 %v14179_v0  ;;  %v13294_v59 = vld [vmem:[#allocation12 + $0xc8] sm:$0xf]  ;;  %v16144_v0 = vld [vmem:[#allocation12 + $0xdc] sm:$0xf0]  ;;  %v13895_v54 = vor.u32 %v16294_v17, %v13894_v3  ;;  %v13222_v3 = vld [vmem:[#allocation12 + $0x38] sm:$0xf] }
 0x3b4   :  { %v16126_v17 = vld [vmem:[#allocation12 + $0x4c] sm:$0xf0] }
 0x3b5   :  { %v13223_v31 = vor.u32 %v16126_v17, %v13222_v3  ;;  %v14110_v17 = vld [vmem:[#allocation12 + $0x728] sm:$0xf] }
 0x3b6   :  { %6731 = vmatpush.bf16.msra.mxu0 %v13579_v32  ;;  %6745 = vmatpush.bf16.msra.mxu1 %v13771_v45  ;;  %v13295_v32 = vor.u32 %v16144_v0, %v13294_v59  ;;  %v13487_v45 = vor.u32 %v16192_v56, %v13486_v16  ;;  %v16174_v59 = vld [vmem:[#allocation12 + $0x1cc] sm:$0xf0]  ;;  %v13606_v0 = vld [vmem:[#allocation12 + $0x338] sm:$0xf] }
 0x3b7   :  { %6759 = vmatpush.bf16.msra.mxu2 %v13963_v46  ;;  %6773 = vmatpush.bf16.msra.mxu3 %v14155_v2  ;;  %v13462_v46 = vld [vmem:[#allocation12 + $0x218] sm:$0xf]  ;;  %v17798_v2 = vpop.f32.mrf.mxu0  ;;  %v16222_v16 = vld [vmem:[#allocation12 + $0x34c] sm:$0xf0] }
 0x3b8   :  { %8454 = vrot.lane.b32.xlu1 %v18583_v30, %s17133_s8  ;;  %v16270_v56 = vld [vmem:[#allocation12 + $0x4cc] sm:$0xf0] }
 0x3b9   :  { %6732 = vmatmul.bf16.vlgmr.msra.gmra.mxu0 %v17376_v50  ;;  %6746 = vmatmul.bf16.vlgmr.msra.gmra.mxu1 %v17378_v53 }
 0x3ba   :  { %6780 = vmatpush.bf16.msrb.mxu0 %v13367_v19  ;;  %6794 = vmatpush.bf16.msrb.mxu1 %v13559_v36  ;;  %v13871_v19 = vor.u32 %v16288_v12, %v13870_v9  ;;  %v16186_v36 = vld [vmem:[#allocation12 + $0x22c] sm:$0xf0]  ;;  %v16120_v9 = vld [vmem:[#allocation12 + $0x1c] sm:$0xf0]  ;;  %v17812_v12 = vpop.f32.mrf.mxu1 }
 0x3bb   :  { %6808 = vmatpush.bf16.msrb.mxu2 %v13751_v24  ;;  %6822 = vmatpush.bf16.msrb.mxu3 %v13943_v8  ;;  %v13654_v24 = vld [vmem:[#allocation12 + $0x398] sm:$0xf]  ;;  %v16234_v8 = vld [vmem:[#allocation12 + $0x3ac] sm:$0xf0]  ;;  %v13463_v25 = vor.u32 %v16186_v36, %v13462_v46  ;;  %v13774_v36 = vld [vmem:[#allocation12 + $0x488] sm:$0xf] }
 0x3bc   :  { %6760 = vmatmul.bf16.vlgmr.msra.gmra.mxu2 %v17394_v6  ;;  %6774 = vmatmul.bf16.vlgmr.msra.gmra.mxu3 %v17396_v57  ;;  %v13655_v26 = vor.u32 %v16234_v8, %v13654_v24  ;;  %v16264_v24 = vld [vmem:[#allocation12 + $0x49c] sm:$0xf0]  ;;  %v14134_v8 = vld [vmem:[#allocation12 + $0x758] sm:$0xf] }
 0x3be   :  { %6781 = vmatpush.bf16.msrb.mxu0 %v13343_v44  ;;  %6795 = vmatpush.bf16.msrb.mxu1 %v13535_v1  ;;  %v13847_v44 = vor.u32 %v16282_v27, %v13846_v60  ;;  %v16180_v1 = vld [vmem:[#allocation12 + $0x1fc] sm:$0xf0]  ;;  %v16354_v60 = vld [vmem:[#allocation12 + $0x76c] sm:$0xf0]  ;;  %v14326_v27 = vld [vmem:[#allocation12 + $0x8d8] sm:$0xf] }
 0x3bf   :  { %6809 = vmatpush.bf16.msrb.mxu2 %v13727_v42  ;;  %6823 = vmatpush.bf16.msrb.mxu3 %v13919_v35  ;;  %v13630_v42 = vld [vmem:[#allocation12 + $0x368] sm:$0xf]  ;;  %v17804_v35 = vpop.f32.mrf.mxu2  ;;  %v13439_v14 = vor.u32 %v16180_v1, %v13438_v40  ;;  %v17814_v40 = vpop.f32.mrf.mxu3 }
 0x3c0   :  { %v13631_v61 = vor.u32 %v16228_v55, %v13630_v42  ;;  %8479 = vrot.lane.b32.xlu1 %v17766_v37, %s17133_s8  ;;  %v16207_v42 = vld [vmem:[#allocation12 + $0x2dc] sm:$0xf]  ;;  %v13560_v55 = vld [vmem:[#allocation12 + $0x2f0] sm:$0xf0] }
 0x3c2   :  { %6782 = vmatpush.bf16.msrb.mxu0 %v13319_v23  ;;  %6796 = vmatpush.bf16.msrb.mxu1 %v13511_v15  ;;  %v13414_v23 = vld [vmem:[#allocation12 + $0x1b8] sm:$0xf]  ;;  %v17808_v15 = vpop.f32.mrf.mxu0 }
 0x3c3   :  { %6810 = vmatpush.bf16.msrb.mxu2 %v13703_v5  ;;  %6824 = vmatpush.bf16.msrb.mxu3 %v13895_v54  ;;  %v13823_v5 = vor.u32 %v16276_v41, %v13822_v63  ;;  %v13798_v54 = vld [vmem:[#allocation12 + $0x4b8] sm:$0xf]  ;;  %v2912_v63 = vperm.slane %v17710_v51, 4  ;;  %v2913_v41 = vperm.slane %v17710_v51, 5 }
 0x3c4   :  { %v13799_v46 = vor.u32 %v16270_v56, %v13798_v54  ;;  %v16153_v54 = vld [vmem:[#allocation12 + $0x12c] sm:$0xf]  ;;  %v13344_v56 = vld [vmem:[#allocation12 + $0x140] sm:$0xf0] }
 0x3c6   :  { %6783 = vmatpush.bf16.msrb.mxu0 %v13295_v32  ;;  %6797 = vmatpush.bf16.msrb.mxu1 %v13487_v45  ;;  %v13415_v32 = vor.u32 %v16174_v59, %v13414_v23  ;;  %v13607_v45 = vor.u32 %v16222_v16, %v13606_v0  ;;  %v16348_v23 = vld [vmem:[#allocation12 + $0x73c] sm:$0xf0]  ;;  %v13563_v0 = vor.u32 %v16207_v42, %v13560_v55  ;;  %v14062_v42 = vld [vmem:[#allocation12 + $0x6c8] sm:$0xf] }
 0x3c7   :  { %6811 = vmatpush.bf16.msrb.mxu2 %v13679_v52  ;;  %6825 = vmatpush.bf16.msrb.mxu3 %v13871_v19  ;;  %v13390_v52 = vld [vmem:[#allocation12 + $0x188] sm:$0xf]  ;;  %v16216_v19 = vld [vmem:[#allocation12 + $0x31c] sm:$0xf0]  ;;  %v4789_v58 = vpop.f32.mrf.mxu2 }
 0x3c8   :  { %v13583_v1 = vor.u32 %v16216_v19, %v13582_v11  ;;  %v16396_v16 = vld [vmem:[#allocation12 + $0x8bc] sm:$0xf0]  ;;  %v14086_v11 = vld [vmem:[#allocation12 + $0x6f8] sm:$0xf] }
 0x3c9   :  { %v14278_v19 = vld [vmem:[#allocation12 + $0x878] sm:$0xf]  ;;  %v16336_v55 = vld [vmem:[#allocation12 + $0x6dc] sm:$0xf0] }
 0x3ca   :  { %6784 = vmatpush.bf16.msrb.mxu0 %v13271_v39  ;;  %6798 = vmatpush.bf16.msrb.mxu1 %v13463_v25  ;;  %v13199_v39 = vor.u32 %v16120_v9, %v13198_v22  ;;  %v16402_v25 = vld [vmem:[#allocation12 + $0x8ec] sm:$0xf0]  ;;  %v17818_v59 = vpop.f32.mrf.mxu0  ;;  %v13536_v22 = vld [vmem:[#allocation12 + $0x2c0] sm:$0xf0]  ;;  %v4706_v9 = vadd.f32 %v17785_v34, %v2912_v63 }
 0x3cb   :  { %6812 = vmatpush.bf16.msrb.mxu2 %v13655_v26  ;;  %6826 = vmatpush.bf16.msrb.mxu3 %v13847_v44  ;;  %v16159_v26 = vld [vmem:[#allocation12 + $0x15c] sm:$0xf]  ;;  %v13391_v44 = vor.u32 %v16168_v10, %v13390_v52  ;;  %v13347_v10 = vor.u32 %v16153_v54, %v13344_v56  ;;  %v16390_v34 = vld [vmem:[#allocation12 + $0x88c] sm:$0xf0]  ;;  %v4708_v54 = vadd.f32 %v17798_v2, %v2912_v63  ;;  %v13272_v63 = vld [vmem:[#allocation12 + $0xb0] sm:$0xf0] }
 0x3cc   :  { %v13371_v3 = vor.u32 %v16159_v26, %v13368_v7  ;;  %v16135_v2 = vld [vmem:[#allocation12 + $0x9c] sm:$0xf] }
 0x3ce   :  { %6785 = vmatpush.bf16.msrb.mxu0 %v13247_v28  ;;  %6799 = vmatpush.bf16.msrb.mxu1 %v13439_v14  ;;  %v13775_v28 = vor.u32 %v16264_v24, %v13774_v36  ;;  %v14135_v14 = vor.u32 %v16354_v60, %v14134_v8  ;;  %v4790_v36 = vadd.f32 %v4789_v58, %v2913_v41  ;;  %v16147_v8 = vld [vmem:[#allocation12 + $0xfc] sm:$0xf]  ;;  %v13320_v60 = vld [vmem:[#allocation12 + $0x110] sm:$0xf0]  ;;  %v4805_v58 = vpop.f32.mrf.mxu3 }
 0x3cf   :  { %6813 = vmatpush.bf16.msrb.mxu2 %v13631_v61  ;;  %6827 = vmatpush.bf16.msrb.mxu3 %v13823_v5  ;;  %v14327_v61 = vor.u32 %v16402_v25, %v14326_v27  ;;  %v14302_v5 = vld [vmem:[#allocation12 + $0x8a8] sm:$0xf]  ;;  %v16195_v27 = vld [vmem:[#allocation12 + $0x27c] sm:$0xf]  ;;  %v4720_v25 = vadd.f32 %v17789_v49, %v4706_v9  ;;  %v4791_v7 = vpop.f32.mrf.mxu2  ;;  %v14038_v9 = vld [vmem:[#allocation12 + $0x698] sm:$0xf] }
 0x3d0   :  { %v14303_v52 = vor.u32 %v16396_v16, %v14302_v5  ;;  %v13296_v5 = vld [vmem:[#allocation12 + $0xe0] sm:$0xf0] }
 0x3d1   :  { %v13488_v16 = vld [vmem:[#allocation12 + $0x260] sm:$0xf0] }
 0x3d2   :  { %6786 = vmatpush.bf16.msrb.mxu0 %v13223_v31  ;;  %6800 = vmatpush.bf16.msrb.mxu1 %v13415_v32  ;;  %v16201_v31 = vld [vmem:[#allocation12 + $0x2ac] sm:$0xf]  ;;  %v14111_v32 = vor.u32 %v16348_v23, %v14110_v17  ;;  %v16384_v17 = vld [vmem:[#allocation12 + $0x85c] sm:$0xf0] }
 0x3d3   :  { %6814 = vmatpush.bf16.msrb.mxu2 %v13607_v45  ;;  %6828 = vmatpush.bf16.msrb.mxu3 %v13799_v46  ;;  %v17823_v45 = vpop.f32.mrf.mxu1  ;;  %v16342_v46 = vld [vmem:[#allocation12 + $0x70c] sm:$0xf0]  ;;  %v13539_v24 = vor.u32 %v16201_v31, %v13536_v22  ;;  %v16141_v23 = vld [vmem:[#allocation12 + $0xcc] sm:$0xf]  ;;  %v14063_v31 = vor.u32 %v16336_v55, %v14062_v42 }
 0x3d4   :  { %v14087_v26 = vor.u32 %v16342_v46, %v14086_v11  ;;  %v4792_v11 = vadd.f32 %v4791_v7, %v2913_v41  ;;  %v14206_v7 = vld [vmem:[#allocation12 + $0x7e8] sm:$0xf] }
 0x3d6   :  { %6787 = vmatpush.bf16.msrb.mxu0 %v13199_v39  ;;  %6801 = vmatpush.bf16.msrb.mxu1 %v13391_v44  ;;  %v13512_v39 = vld [vmem:[#allocation12 + $0x290] sm:$0xf0]  ;;  %v14279_v44 = vor.u32 %v16390_v34, %v14278_v19  ;;  %v4817_v49 = vpop.f32.mrf.mxu0  ;;  %v16378_v19 = vld [vmem:[#allocation12 + $0x82c] sm:$0xf0]  ;;  %v4722_v34 = vadd.f32 %v17802_v4, %v4708_v54  ;;  %v14182_v54 = vld [vmem:[#allocation12 + $0x7b8] sm:$0xf] }
 0x3d7   :  { %6815 = vmatpush.bf16.msrb.mxu2 %v13583_v1  ;;  %6829 = vmatpush.bf16.msrb.mxu3 %v13775_v28  ;;  %v13323_v1 = vor.u32 %v16147_v8, %v13320_v60  ;;  %v14254_v28 = vld [vmem:[#allocation12 + $0x848] sm:$0xf] }
 0x3d8   :  { %v14255_v22 = vor.u32 %v16384_v17, %v14254_v28  ;;  %v16129_v28 = vld [vmem:[#allocation12 + $0x6c] sm:$0xf] }
 0x3d9   :  { %6788 = vmatmul.bf16.vlgmr.msrb.gmra.mxu0 %v17372_v47  ;;  %6802 = vmatmul.bf16.vlgmr.msrb.gmra.mxu1 %v17374_v48 }
 0x3da   :  { %6836 = vmatpush.bf16.msra.mxu0 %v14135_v14  ;;  %6850 = vmatpush.bf16.msra.mxu1 %v14327_v61  ;;  %v4734_v14 = vadd.f32 %v17794_v18, %v4720_v25  ;;  %v4804_v61 = vadd.f32 %v17814_v40, %v4790_v36  ;;  %v13299_v40 = vor.u32 %v16141_v23, %v13296_v5  ;;  %v16183_v36 = vld [vmem:[#allocation12 + $0x21c] sm:$0xf]  ;;  %v14014_v25 = vld [vmem:[#allocation12 + $0x668] sm:$0xf] }
 0x3db   :  { %6864 = vmatpush.bf16.msra.mxu2 %v13371_v3  ;;  %6878 = vmatpush.bf16.msra.mxu3 %v13563_v0  ;;  %v13515_v3 = vor.u32 %v16195_v27, %v13512_v39  ;;  %v16189_v0 = vld [vmem:[#allocation12 + $0x24c] sm:$0xf]  ;;  %v4831_v18 = vpop.f32.mrf.mxu1  ;;  %v13275_v39 = vor.u32 %v16135_v2, %v13272_v63 }
 0x3dc   :  { %6816 = vmatmul.bf16.vlgmr.msrb.gmra.mxu2 %v17376_v50  ;;  %6830 = vmatmul.bf16.vlgmr.msrb.gmra.mxu3 %v17378_v53  ;;  %v4818_v56 = vadd.f32 %v4817_v49, %v4804_v61  ;;  %v13491_v46 = vor.u32 %v16189_v0, %v13488_v16  ;;  %v16177_v61 = vld [vmem:[#allocation12 + $0x1ec] sm:$0xf]  ;;  %v16318_v16 = vld [vmem:[#allocation12 + $0x64c] sm:$0xf0] }
 0x3de   :  { %6837 = vmatpush.bf16.msra.mxu0 %v14111_v32  ;;  %6851 = vmatpush.bf16.msra.mxu1 %v14303_v52  ;;  %v16330_v32 = vld [vmem:[#allocation12 + $0x6ac] sm:$0xf0]  ;;  %v14230_v52 = vld [vmem:[#allocation12 + $0x818] sm:$0xf]  ;;  %v4832_v60 = vadd.f32 %v4831_v18, %v4818_v56  ;;  %v4819_v55 = vpop.f32.mrf.mxu0 }
 0x3df   :  { %6865 = vmatpush.bf16.msra.mxu2 %v13347_v10  ;;  %6879 = vmatpush.bf16.msra.mxu3 %v13539_v24  ;;  %v4748_v10 = vadd.f32 %v17796_v38, %v4734_v14  ;;  %v13464_v24 = vld [vmem:[#allocation12 + $0x230] sm:$0xf0]  ;;  %v14039_v27 = vor.u32 %v16330_v32, %v14038_v9  ;;  %v14231_v38 = vor.u32 %v16378_v19, %v14230_v52  ;;  %v4845_v51 = vpop.f32.mrf.mxu2  ;;  %v4859_v41 = vpop.f32.mrf.mxu3  ;;  %v13248_v14 = vld [vmem:[#allocation12 + $0x80] sm:$0xf0]  ;;  %v16171_v32 = vld [vmem:[#allocation12 + $0x1bc] sm:$0xf] }
 0x3e0   :  { %v13467_v42 = vor.u32 %v16183_v36, %v13464_v24  ;;  %v4846_v4 = vadd.f32 %v4845_v51, %v4832_v60  ;;  %v13416_v52 = vld [vmem:[#allocation12 + $0x1d0] sm:$0xf0]  ;;  %v13966_v19 = vld [vmem:[#allocation12 + $0x608] sm:$0xf]  ;;  %v16117_v60 = vld [vmem:[#allocation12 + $0xc] sm:$0xf] }
 0x3e1   :  { %v4762_v8 = vadd.f32 %v17808_v15, %v4748_v10  ;;  %v16372_v15 = vld [vmem:[#allocation12 + $0x7fc] sm:$0xf0]  ;;  %v13392_v51 = vld [vmem:[#allocation12 + $0x1a0] sm:$0xf0] }
 0x3e2   :  { %6838 = vmatpush.bf16.msra.mxu0 %v14087_v26  ;;  %6852 = vmatpush.bf16.msra.mxu1 %v14279_v44  ;;  %v16324_v26 = vld [vmem:[#allocation12 + $0x67c] sm:$0xf0]  ;;  %v4736_v44 = vadd.f32 %v17804_v35, %v4722_v34  ;;  %v4860_v17 = vadd.f32 %v4859_v41, %v4846_v4  ;;  %v14207_v0 = vor.u32 %v16372_v15, %v14206_v7  ;;  %v14158_v34 = vld [vmem:[#allocation12 + $0x788] sm:$0xf]  ;;  %v13752_v7 = vld [vmem:[#allocation12 + $0x470] sm:$0xf0] }
 0x3e3   :  { %6866 = vmatpush.bf16.msra.mxu2 %v13323_v1  ;;  %6880 = vmatpush.bf16.msra.mxu3 %v13515_v3  ;;  %v4806_v1 = vadd.f32 %v4805_v58, %v4792_v11  ;;  %v13440_v3 = vld [vmem:[#allocation12 + $0x200] sm:$0xf0]  ;;  %v4776_v49 = vadd.f32 %v17812_v12, %v4762_v8  ;;  %v14015_v5 = vor.u32 %v16324_v26, %v14014_v25  ;;  %v13990_v58 = vld [vmem:[#allocation12 + $0x638] sm:$0xf]  ;;  %v13224_v12 = vld [vmem:[#allocation12 + $0x50] sm:$0xf0]  ;;  %v4833_v9 = vpop.f32.mrf.mxu1 }
 0x3e4   :  { %v13251_v35 = vor.u32 %v16129_v28, %v13248_v14  ;;  %v4750_v56 = vadd.f32 %v17806_v21, %v4736_v44  ;;  %v13443_v18 = vor.u32 %v16177_v61, %v13440_v3  ;;  %v16312_v21 = vld [vmem:[#allocation12 + $0x61c] sm:$0xf0]  ;;  %v16255_v26 = vld [vmem:[#allocation12 + $0x45c] sm:$0xf]  ;;  %v14136_v28 = vld [vmem:[#allocation12 + $0x770] sm:$0xf0] }
 0x3e5   :  { %v4820_v23 = vadd.f32 %v4819_v55, %v4806_v1  ;;  %v16360_v8 = vld [vmem:[#allocation12 + $0x79c] sm:$0xf0]  ;;  %v16303_v44 = vld [vmem:[#allocation12 + $0x5dc] sm:$0xf]  ;;  %v13967_v4 = vor.u32 %v16312_v21, %v13966_v19  ;;  %v13944_v55 = vld [vmem:[#allocation12 + $0x5f0] sm:$0xf0] }
 0x3e6   :  { %6839 = vmatpush.bf16.msra.mxu0 %v14063_v31  ;;  %6853 = vmatpush.bf16.msra.mxu1 %v14255_v22  ;;  %v17845_v31 = vpack.c.bf16 %v4860_v17, %v4776_v49  ;;  %v16366_v22 = vld [vmem:[#allocation12 + $0x7cc] sm:$0xf0]  ;;  %v4764_v10 = vadd.f32 %v17818_v59, %v4750_v56  ;;  %v13419_v59 = vor.u32 %v16171_v32, %v13416_v52  ;;  %v16351_v15 = vld [vmem:[#allocation12 + $0x75c] sm:$0xf]  ;;  %v14328_v49 = vld [vmem:[#allocation12 + $0x8f0] sm:$0xf0] }
 0x3e7   :  { %6867 = vmatpush.bf16.msra.mxu2 %v13299_v40  ;;  %6881 = vmatpush.bf16.msra.mxu3 %v13491_v46  ;;  %v16123_v40 = vld [vmem:[#allocation12 + $0x3c] sm:$0xf]  ;;  %v4834_v11 = vadd.f32 %v4833_v9, %v4820_v23  ;;  %v13991_v46 = vor.u32 %v16318_v16, %v13990_v58  ;;  %v14183_v63 = vor.u32 %v16366_v22, %v14182_v54  ;;  %v4847_v24 = vpop.f32.mrf.mxu2  ;;  %v4861_v25 = vpop.f32.mrf.mxu3  ;;  %v13728_v58 = vld [vmem:[#allocation12 + $0x440] sm:$0xf0]  ;;  %v16297_v16 = vld [vmem:[#allocation12 + $0x5ac] sm:$0xf] }
 0x3e8   :  { %8457 = vrot.lane.b32.xlu2 %v17845_v31, %s17133_s8  ;;  %v8208_v2 = vunpack.c.l.b16 %v17845_v31  ;;  %v13227_v36 = vor.u32 %v16123_v40, %v13224_v12  ;;  %v4778_v1 = vadd.f32 %v17823_v45, %v4764_v10  ;;  %v14159_v14 = vor.u32 %v16360_v8, %v14158_v34  ;;  %v16399_v3 = vld [vmem:[#allocation12 + $0x8dc] sm:$0xf]  ;;  %v13920_v56 = vld [vmem:[#allocation12 + $0x5c0] sm:$0xf0]  ;;  %v16393_v12 = vld [vmem:[#allocation12 + $0x8ac] sm:$0xf] }
 0x3e9   :  { %v13947_v45 = vor.u32 %v16303_v44, %v13944_v55  ;;  %v14331_v54 = vor.u32 %v16399_v3, %v14328_v49  ;;  %v14112_v22 = vld [vmem:[#allocation12 + $0x740] sm:$0xf0]  ;;  %v13923_v52 = vor.u32 %v16297_v16, %v13920_v56  ;;  %v16291_v19 = vld [vmem:[#allocation12 + $0x57c] sm:$0xf]  ;;  %v14280_v8 = vld [vmem:[#allocation12 + $0x890] sm:$0xf0] }
 0x3ea   :  { %6840 = vmatpush.bf16.msra.mxu0 %v14039_v27  ;;  %6854 = vmatpush.bf16.msra.mxu1 %v14231_v38  ;;  %v4848_v27 = vadd.f32 %v4847_v24, %v4834_v11  ;;  %v13200_v38 = vld [vmem:[#allocation12 + $0x20] sm:$0xf0]  ;;  %v8209_v41 = vpack.c.b16 %v8208_v2, %v8208_v2  ;;  %v16243_v11 = vld [vmem:[#allocation12 + $0x3fc] sm:$0xf]  ;;  %v14088_v24 = vld [vmem:[#allocation12 + $0x710] sm:$0xf0] }
 0x3eb   :  { %6868 = vmatpush.bf16.msra.mxu2 %v13275_v39  ;;  %6882 = vmatpush.bf16.msra.mxu3 %v13467_v42  ;;  %v16165_v39 = vld [vmem:[#allocation12 + $0x18c] sm:$0xf]  ;;  %v13203_v61 = vor.u32 %v16117_v60, %v13200_v38  ;;  %v14304_v9 = vld [vmem:[#allocation12 + $0x8c0] sm:$0xf0]  ;;  %v16387_v34 = vld [vmem:[#allocation12 + $0x87c] sm:$0xf] }
 0x3ec   :  { %v4862_v42 = vadd.f32 %v4861_v25, %v4848_v27  ;;  %8210 = vrot.lane.b32.xlu0 %v8209_v41, %s17133_s8  ;;  %v13395_v23 = vor.u32 %v16165_v39, %v13392_v51  ;;  %v14307_v21 = vor.u32 %v16393_v12, %v14304_v9  ;;  %v16237_v38 = vld [vmem:[#allocation12 + $0x3cc] sm:$0xf]  ;;  %v13680_v39 = vld [vmem:[#allocation12 + $0x3e0] sm:$0xf0]  ;;  %v14283_v41 = vor.u32 %v16387_v34, %v14280_v8  ;;  %v13848_v3 = vld [vmem:[#allocation12 + $0x530] sm:$0xf0] }
 0x3ed   :  { %v16285_v51 = vld [vmem:[#allocation12 + $0x54c] sm:$0xf]  ;;  %v13872_v25 = vld [vmem:[#allocation12 + $0x560] sm:$0xf0]  ;;  %v16327_v49 = vld [vmem:[#allocation12 + $0x69c] sm:$0xf] }
 0x3ee   :  { %6841 = vmatpush.bf16.msra.mxu0 %v14015_v5  ;;  %6855 = vmatpush.bf16.msra.mxu1 %v14207_v0  ;;  %v17853_v17 = vpack.c.bf16 %v4862_v42, %v4778_v1  ;;  %v13755_v5 = vor.u32 %v16255_v26, %v13752_v7  ;;  %v14139_v0 = vor.u32 %v16351_v15, %v14136_v28  ;;  %v16333_v26 = vld [vmem:[#allocation12 + $0x6cc] sm:$0xf]  ;;  %v14064_v7 = vld [vmem:[#allocation12 + $0x6e0] sm:$0xf0]  ;;  %v16231_v15 = vld [vmem:[#allocation12 + $0x39c] sm:$0xf] }
 0x3ef   :  { %6869 = vmatpush.bf16.msra.mxu2 %v13251_v35  ;;  %6883 = vmatpush.bf16.msra.mxu3 %v13443_v18  ;;  %v16249_v35 = vld [vmem:[#allocation12 + $0x42c] sm:$0xf]  ;;  %v14256_v1 = vld [vmem:[#allocation12 + $0x860] sm:$0xf0]  ;;  %v13683_v42 = vor.u32 %v16237_v38, %v13680_v39  ;;  %v14067_v55 = vor.u32 %v16333_v26, %v14064_v7  ;;  %v13656_v28 = vld [vmem:[#allocation12 + $0x3b0] sm:$0xf0] }
 0x3f0   :  { %8482 = vrot.lane.b32.xlu1 %v17853_v17, %s17133_s8  ;;  %v16345_v18 = vld [vmem:[#allocation12 + $0x72c] sm:$0xf]  ;;  %v8237_v40 = vunpack.c.l.b16 %v17853_v17  ;;  %v13731_v32 = vor.u32 %v16249_v35, %v13728_v58  ;;  %v14016_v12 = vld [vmem:[#allocation12 + $0x680] sm:$0xf0]  ;;  %v16363_v34 = vld [vmem:[#allocation12 + $0x7bc] sm:$0xf] }
 0x3f1   :  { %v14115_v10 = vor.u32 %v16345_v18, %v14112_v22  ;;  %v16381_v44 = vld [vmem:[#allocation12 + $0x84c] sm:$0xf]  ;;  %v13824_v22 = vld [vmem:[#allocation12 + $0x500] sm:$0xf0]  ;;  %v14184_v8 = vld [vmem:[#allocation12 + $0x7d0] sm:$0xf0] }
 0x3f2   :  { %6842 = vmatpush.bf16.msra.mxu0 %v13991_v46  ;;  %6856 = vmatpush.bf16.msra.mxu1 %v14183_v63  ;;  %v13704_v46 = vld [vmem:[#allocation12 + $0x410] sm:$0xf0]  ;;  %v8238_v2 = vpack.c.b16 %v8237_v40, %v8237_v40  ;;  %v16225_v16 = vld [vmem:[#allocation12 + $0x36c] sm:$0xf]  ;;  %v14187_v26 = vor.u32 %v16363_v34, %v14184_v8  ;;  %v13968_v7 = vld [vmem:[#allocation12 + $0x620] sm:$0xf0] }
 0x3f3   :  { %6870 = vmatpush.bf16.msra.mxu2 %v13227_v36  ;;  %6884 = vmatpush.bf16.msra.mxu3 %v13419_v59  ;;  %v13896_v63 = vld [vmem:[#allocation12 + $0x590] sm:$0xf0]  ;;  %v16339_v36 = vld [vmem:[#allocation12 + $0x6fc] sm:$0xf]  ;;  %v13707_v60 = vor.u32 %v16243_v11, %v13704_v46  ;;  %v16273_v56 = vld [vmem:[#allocation12 + $0x4ec] sm:$0xf] }
 0x3f4   :  { %v13899_v59 = vor.u32 %v16291_v19, %v13896_v63  ;;  %v14091_v27 = vor.u32 %v16339_v36, %v14088_v24  ;;  %8239 = vrot.lane.b32.xlu2 %v8238_v2, %s17133_s8  ;;  %v16321_v40 = vld [vmem:[#allocation12 + $0x66c] sm:$0xf]  ;;  %v16219_v46 = vld [vmem:[#allocation12 + $0x33c] sm:$0xf]  ;;  %v13608_v19 = vld [vmem:[#allocation12 + $0x350] sm:$0xf0] }
 0x3f5   :  { %v16369_v9 = vld [vmem:[#allocation12 + $0x7ec] sm:$0xf]  ;;  %v14019_v11 = vor.u32 %v16321_v40, %v14016_v12  ;;  %v13800_v63 = vld [vmem:[#allocation12 + $0x4d0] sm:$0xf0]  ;;  %v16315_v36 = vld [vmem:[#allocation12 + $0x63c] sm:$0xf] }
 0x3f6   :  { %6843 = vmatpush.bf16.msra.mxu0 %v13967_v4  ;;  %6857 = vmatpush.bf16.msra.mxu1 %v14159_v14  ;;  %v13875_v4 = vor.u32 %v16285_v51, %v13872_v25  ;;  %v16279_v14 = vld [vmem:[#allocation12 + $0x51c] sm:$0xf]  ;;  %v13992_v24 = vld [vmem:[#allocation12 + $0x650] sm:$0xf0]  ;;  %v16261_v51 = vld [vmem:[#allocation12 + $0x48c] sm:$0xf] }
 0x3f7   :  { %6871 = vmatpush.bf16.msra.mxu2 %v13203_v61  ;;  %6885 = vmatpush.bf16.msra.mxu3 %v13395_v23  ;;  %v14259_v61 = vor.u32 %v16381_v44, %v14256_v1  ;;  %v14040_v23 = vld [vmem:[#allocation12 + $0x6b0] sm:$0xf0]  ;;  %v13851_v35 = vor.u32 %v16279_v14, %v13848_v3  ;;  %v13995_v39 = vor.u32 %v16315_v36, %v13992_v24  ;;  %v16309_v25 = vld [vmem:[#allocation12 + $0x60c] sm:$0xf]  ;;  %v14160_v1 = vld [vmem:[#allocation12 + $0x7a0] sm:$0xf0] }
 0x3f8   :  { %v14043_v58 = vor.u32 %v16327_v49, %v14040_v23  ;;  %v16357_v44 = vld [vmem:[#allocation12 + $0x78c] sm:$0xf]  ;;  %v13758_v14 = vld [vmem:[#allocation12 + $0x460] sm:$0xf]  ;;  %v13971_v49 = vor.u32 %v16309_v25, %v13968_v7  ;;  %v13734_v40 = vld [vmem:[#allocation12 + $0x430] sm:$0xf] }
 0x3f9   :  { %6844 = vmatmul.bf16.vlgmr.msra.gmra.mxu0 %v17394_v6  ;;  %6858 = vmatmul.bf16.vlgmr.msra.gmra.mxu1 %v17396_v57  ;;  %v13950_v23 = vld [vmem:[#allocation12 + $0x5e0] sm:$0xf]  ;;  %v16253_v12 = vld [vmem:[#allocation12 + $0x444] sm:$0xf0]  ;;  %v16199_v36 = vld [vmem:[#allocation12 + $0x294] sm:$0xf0] }
 0x3fa   :  { %6892 = vmatpush.bf16.msrb.mxu0 %v13755_v5  ;;  %6906 = vmatpush.bf16.msrb.mxu1 %v13947_v45  ;;  %v16375_v5 = vld [vmem:[#allocation12 + $0x81c] sm:$0xf]  ;;  %v14232_v45 = vld [vmem:[#allocation12 + $0x830] sm:$0xf0]  ;;  %v13710_v24 = vld [vmem:[#allocation12 + $0x400] sm:$0xf] }
 0x3fb   :  { %6920 = vmatpush.bf16.msrb.mxu2 %v14139_v0  ;;  %6934 = vmatpush.bf16.msrb.mxu3 %v14331_v54  ;;  %v13659_v0 = vor.u32 %v16231_v15, %v13656_v28  ;;  %v13632_v54 = vld [vmem:[#allocation12 + $0x380] sm:$0xf0]  ;;  %v14235_v18 = vor.u32 %v16375_v5, %v14232_v45  ;;  %v16211_v28 = vld [vmem:[#allocation12 + $0x2f4] sm:$0xf0]  ;;  %v14163_v45 = vor.u32 %v16357_v44, %v14160_v1  ;;  %v13902_v8 = vld [vmem:[#allocation12 + $0x580] sm:$0xf] }
 0x3fc   :  { %6872 = vmatmul.bf16.vlgmr.msra.gmra.mxu2 %v17372_v47  ;;  %6886 = vmatmul.bf16.vlgmr.msra.gmra.mxu3 %v17374_v48  ;;  %v16307_v5 = vld [vmem:[#allocation12 + $0x5f4] sm:$0xf0]  ;;  %v13494_v25 = vld [vmem:[#allocation12 + $0x250] sm:$0xf]  ;;  %v16193_v7 = vld [vmem:[#allocation12 + $0x264] sm:$0xf0] }
 0x3fd   :  { %v16247_v34 = vld [vmem:[#allocation12 + $0x414] sm:$0xf0]  ;;  %v13686_v44 = vld [vmem:[#allocation12 + $0x3d0] sm:$0xf]  ;;  %v16241_v1 = vld [vmem:[#allocation12 + $0x3e4] sm:$0xf0] }
 0x3fe   :  { %6893 = vmatpush.bf16.msrb.mxu0 %v13731_v32  ;;  %6907 = vmatpush.bf16.msrb.mxu1 %v13923_v52  ;;  %v14208_v32 = vld [vmem:[#allocation12 + $0x800] sm:$0xf0]  ;;  %v13635_v52 = vor.u32 %v16225_v16, %v13632_v54  ;;  %v13350_v16 = vld [vmem:[#allocation12 + $0x130] sm:$0xf]  ;;  %v16157_v54 = vld [vmem:[#allocation12 + $0x144] sm:$0xf0] }
 0x3ff   :  { %6921 = vmatpush.bf16.msrb.mxu2 %v14115_v10  ;;  %6935 = vmatpush.bf16.msrb.mxu3 %v14307_v21  ;;  %v13827_v10 = vor.u32 %v16273_v56, %v13824_v22  ;;  %v16267_v21 = vld [vmem:[#allocation12 + $0x4bc] sm:$0xf]  ;;  %v14211_v2 = vor.u32 %v16369_v9, %v14208_v32  ;;  %v13542_v56 = vld [vmem:[#allocation12 + $0x2b0] sm:$0xf]  ;;  %v16205_v22 = vld [vmem:[#allocation12 + $0x2c4] sm:$0xf0] }
 0x400   :  { %v13803_v38 = vor.u32 %v16267_v21, %v13800_v63  ;;  %v13926_v9 = vld [vmem:[#allocation12 + $0x5b0] sm:$0xf]  ;;  %v16301_v32 = vld [vmem:[#allocation12 + $0x5c4] sm:$0xf0]  ;;  %v16151_v21 = vld [vmem:[#allocation12 + $0x114] sm:$0xf0] }
 0x401   :  { %v13927_v63 = vor.u32 %v16301_v32, %v13926_v9  ;;  %v13446_v9 = vld [vmem:[#allocation12 + $0x1f0] sm:$0xf] }
 0x402   :  { %6894 = vmatpush.bf16.msrb.mxu0 %v13707_v60  ;;  %6908 = vmatpush.bf16.msrb.mxu1 %v13899_v59  ;;  %v13611_v60 = vor.u32 %v16219_v46, %v13608_v19  ;;  %v16213_v59 = vld [vmem:[#allocation12 + $0x30c] sm:$0xf]  ;;  %v13735_v46 = vor.u32 %v16253_v12, %v13734_v40  ;;  %v13326_v19 = vld [vmem:[#allocation12 + $0x100] sm:$0xf]  ;;  %v13254_v40 = vld [vmem:[#allocation12 + $0x70] sm:$0xf] }
 0x403   :  { %6922 = vmatpush.bf16.msrb.mxu2 %v14091_v27  ;;  %6936 = vmatpush.bf16.msrb.mxu3 %v14283_v41  ;;  %v13584_v27 = vld [vmem:[#allocation12 + $0x320] sm:$0xf0]  ;;  %v16133_v12 = vld [vmem:[#allocation12 + $0x84] sm:$0xf0] }
 0x404   :  { %v13776_v41 = vld [vmem:[#allocation12 + $0x4a0] sm:$0xf0]  ;;  %v13587_v15 = vor.u32 %v16213_v59, %v13584_v27  ;;  %v17868_v59 = vpop.f32.mrf.mxu1  ;;  %v13327_v27 = vor.u32 %v16151_v21, %v13326_v19  ;;  %v16229_v19 = vld [vmem:[#allocation12 + $0x384] sm:$0xf0]  ;;  %v13830_v21 = vld [vmem:[#allocation12 + $0x4f0] sm:$0xf] }
 0x405   :  { %v13779_v3 = vor.u32 %v16261_v51, %v13776_v41  ;;  %v13302_v51 = vld [vmem:[#allocation12 + $0xd0] sm:$0xf]  ;;  %v16145_v41 = vld [vmem:[#allocation12 + $0xe4] sm:$0xf0] }
 0x406   :  { %6895 = vmatpush.bf16.msrb.mxu0 %v13683_v42  ;;  %6909 = vmatpush.bf16.msrb.mxu1 %v13875_v4  ;;  %v13374_v42 = vld [vmem:[#allocation12 + $0x160] sm:$0xf]  ;;  %v16163_v4 = vld [vmem:[#allocation12 + $0x174] sm:$0xf0] }
 0x407   :  { %6923 = vmatpush.bf16.msrb.mxu2 %v14067_v55  ;;  %6937 = vmatpush.bf16.msrb.mxu3 %v14259_v61  ;;  %v13566_v55 = vld [vmem:[#allocation12 + $0x2e0] sm:$0xf]  ;;  %v16259_v61 = vld [vmem:[#allocation12 + $0x474] sm:$0xf0] }
 0x40a   :  { %6896 = vmatpush.bf16.msrb.mxu0 %v13659_v0  ;;  %6910 = vmatpush.bf16.msrb.mxu1 %v13851_v35  ;;  %v13375_v0 = vor.u32 %v16163_v4, %v13374_v42  ;;  %v13567_v35 = vor.u32 %v16211_v28, %v13566_v55  ;;  %v13878_v42 = vld [vmem:[#allocation12 + $0x550] sm:$0xf]  ;;  %v16289_v4 = vld [vmem:[#allocation12 + $0x564] sm:$0xf0]  ;;  %v17871_v55 = vpop.f32.mrf.mxu2  ;;  %v17873_v28 = vpop.f32.mrf.mxu3 }
 0x40b   :  { %6924 = vmatpush.bf16.msrb.mxu2 %v14043_v58  ;;  %6938 = vmatpush.bf16.msrb.mxu3 %v14235_v18  ;;  %v13759_v58 = vor.u32 %v16259_v61, %v13758_v14  ;;  %v13951_v18 = vor.u32 %v16307_v5, %v13950_v23  ;;  %v13495_v14 = vor.u32 %v16193_v7, %v13494_v25  ;;  %v13470_v23 = vld [vmem:[#allocation12 + $0x220] sm:$0xf] }
 0x40c   :  { %v13687_v61 = vor.u32 %v16241_v1, %v13686_v44  ;;  %v13879_v5 = vor.u32 %v16289_v4, %v13878_v42  ;;  %v17877_v32 = vpop.f32.mrf.mxu1  ;;  %v13806_v7 = vld [vmem:[#allocation12 + $0x4c0] sm:$0xf]  ;;  %v16271_v44 = vld [vmem:[#allocation12 + $0x4d4] sm:$0xf0]  ;;  %v13206_v42 = vld [vmem:[#allocation12 + $0x10] sm:$0xf] }
 0x40d   :  { %v16121_v4 = vld [vmem:[#allocation12 + $0x24] sm:$0xf0] }
 0x40e   :  { %6897 = vmatpush.bf16.msrb.mxu0 %v13635_v52  ;;  %6911 = vmatpush.bf16.msrb.mxu1 %v13827_v10  ;;  %v13351_v52 = vor.u32 %v16157_v54, %v13350_v16  ;;  %v17863_v10 = vpop.f32.mrf.mxu0  ;;  %v13854_v16 = vld [vmem:[#allocation12 + $0x520] sm:$0xf]  ;;  %v16283_v54 = vld [vmem:[#allocation12 + $0x534] sm:$0xf0] }
 0x40f   :  { %6925 = vmatpush.bf16.msrb.mxu2 %v14019_v11  ;;  %6939 = vmatpush.bf16.msrb.mxu3 %v14211_v2  ;;  %v13543_v11 = vor.u32 %v16205_v22, %v13542_v56  ;;  %v13518_v2 = vld [vmem:[#allocation12 + $0x280] sm:$0xf] }
 0x412   :  { %6898 = vmatpush.bf16.msrb.mxu0 %v13611_v60  ;;  %6912 = vmatpush.bf16.msrb.mxu1 %v13803_v38  ;;  %v16295_v60 = vld [vmem:[#allocation12 + $0x594] sm:$0xf0]  ;;  %v13519_v38 = vor.u32 %v16199_v36, %v13518_v2  ;;  %v16277_v2 = vld [vmem:[#allocation12 + $0x504] sm:$0xf0]  ;;  %v17881_v25 = vpop.f32.mrf.mxu3 }
 0x413   :  { %6926 = vmatpush.bf16.msrb.mxu2 %v13995_v39  ;;  %6940 = vmatpush.bf16.msrb.mxu3 %v14187_v26  ;;  %v13711_v39 = vor.u32 %v16247_v34, %v13710_v24  ;;  %v13903_v26 = vor.u32 %v16295_v60, %v13902_v8  ;;  %v13230_v34 = vld [vmem:[#allocation12 + $0x40] sm:$0xf]  ;;  %v16127_v8 = vld [vmem:[#allocation12 + $0x54] sm:$0xf0] }
 0x414   :  { %v13422_v60 = vld [vmem:[#allocation12 + $0x1c0] sm:$0xf]  ;;  %v13231_v1 = vor.u32 %v16127_v8, %v13230_v34 }
 0x416   :  { %6899 = vmatpush.bf16.msrb.mxu0 %v13587_v15  ;;  %6913 = vmatpush.bf16.msrb.mxu1 %v13779_v3  ;;  %v13303_v15 = vor.u32 %v16145_v41, %v13302_v51  ;;  %v13278_v3 = vld [vmem:[#allocation12 + $0xa0] sm:$0xf]  ;;  %v16223_v41 = vld [vmem:[#allocation12 + $0x354] sm:$0xf0] }
 0x417   :  { %6927 = vmatpush.bf16.msrb.mxu2 %v13971_v49  ;;  %6941 = vmatpush.bf16.msrb.mxu3 %v14163_v45  ;;  %v16139_v49 = vld [vmem:[#allocation12 + $0xb4] sm:$0xf0]  ;;  %v13614_v51 = vld [vmem:[#allocation12 + $0x340] sm:$0xf] }
 0x418   :  { %v16187_v45 = vld [vmem:[#allocation12 + $0x234] sm:$0xf0]  ;;  %v13279_v56 = vor.u32 %v16139_v49, %v13278_v3  ;;  %v13398_v3 = vld [vmem:[#allocation12 + $0x190] sm:$0xf]  ;;  %v16169_v49 = vld [vmem:[#allocation12 + $0x1a4] sm:$0xf0] }
 0x419   :  { %6900 = vmatmul.bf16.vlgmr.msrb.gmra.mxu0 %v17376_v50  ;;  %6914 = vmatmul.bf16.vlgmr.msrb.gmra.mxu1 %v17378_v53 }
 0x41a   :  { %6948 = vmatpush.bf16.msra.mxu0 %v13375_v0  ;;  %6962 = vmatpush.bf16.msra.mxu1 %v13567_v35  ;;  %v13662_v0 = vld [vmem:[#allocation12 + $0x3a0] sm:$0xf]  ;;  %v16235_v35 = vld [vmem:[#allocation12 + $0x3b4] sm:$0xf0] }
 0x41b   :  { %6976 = vmatpush.bf16.msra.mxu2 %v13759_v58  ;;  %6990 = vmatpush.bf16.msra.mxu3 %v13951_v18  ;;  %v17875_v58 = vpop.f32.mrf.mxu0  ;;  %v13471_v18 = vor.u32 %v16187_v45, %v13470_v23  ;;  %v13663_v22 = vor.u32 %v16235_v35, %v13662_v0  ;;  %v13590_v23 = vld [vmem:[#allocation12 + $0x310] sm:$0xf]  ;;  %v13807_v45 = vor.u32 %v16271_v44, %v13806_v7  ;;  %v16217_v0 = vld [vmem:[#allocation12 + $0x324] sm:$0xf0]  ;;  %v16154_v7 = vld [vmem:[#allocation12 + $0x134] sm:$0xf] }
 0x41c   :  { %6928 = vmatmul.bf16.vlgmr.msrb.gmra.mxu2 %v17394_v6  ;;  %6942 = vmatmul.bf16.vlgmr.msrb.gmra.mxu3 %v17396_v57  ;;  %v13782_v35 = vld [vmem:[#allocation12 + $0x490] sm:$0xf]  ;;  %v13352_v44 = vld [vmem:[#allocation12 + $0x148] sm:$0xf0] }
 0x41e   :  { %6949 = vmatpush.bf16.msra.mxu0 %v13351_v52  ;;  %6963 = vmatpush.bf16.msra.mxu1 %v13543_v11  ;;  %v13855_v52 = vor.u32 %v16283_v54, %v13854_v16  ;;  %v16181_v11 = vld [vmem:[#allocation12 + $0x204] sm:$0xf0]  ;;  %v14142_v54 = vld [vmem:[#allocation12 + $0x760] sm:$0xf] }
 0x41f   :  { %6977 = vmatpush.bf16.msra.mxu2 %v13735_v46  ;;  %6991 = vmatpush.bf16.msra.mxu3 %v13927_v63  ;;  %v13638_v46 = vld [vmem:[#allocation12 + $0x370] sm:$0xf]  ;;  %v13255_v63 = vor.u32 %v16133_v12, %v13254_v40  ;;  %v13447_v36 = vor.u32 %v16181_v11, %v13446_v9  ;;  %v16265_v16 = vld [vmem:[#allocation12 + $0x4a4] sm:$0xf0]  ;;  %v16403_v40 = vld [vmem:[#allocation12 + $0x8f4] sm:$0xf0]  ;;  %v13591_v11 = vor.u32 %v16217_v0, %v13590_v23 }
 0x420   :  { %v13639_v24 = vor.u32 %v16229_v19, %v13638_v46  ;;  %v16160_v12 = vld [vmem:[#allocation12 + $0x164] sm:$0xf]  ;;  %v13376_v9 = vld [vmem:[#allocation12 + $0x178] sm:$0xf0]  ;;  %v13355_v23 = vor.u32 %v16154_v7, %v13352_v44  ;;  %v16343_v0 = vld [vmem:[#allocation12 + $0x714] sm:$0xf0] }
 0x421   :  { %v16208_v46 = vld [vmem:[#allocation12 + $0x2e4] sm:$0xf]  ;;  %v13568_v19 = vld [vmem:[#allocation12 + $0x2f8] sm:$0xf0]  ;;  %v13379_v8 = vor.u32 %v16160_v12, %v13376_v9  ;;  %v16190_v7 = vld [vmem:[#allocation12 + $0x254] sm:$0xf] }
 0x422   :  { %6950 = vmatpush.bf16.msra.mxu0 %v13327_v27  ;;  %6964 = vmatpush.bf16.msra.mxu1 %v13519_v38  ;;  %v17879_v27 = vpop.f32.mrf.mxu2  ;;  %v13831_v38 = vor.u32 %v16277_v2, %v13830_v21  ;;  %v13520_v12 = vld [vmem:[#allocation12 + $0x298] sm:$0xf0]  ;;  %v13496_v44 = vld [vmem:[#allocation12 + $0x268] sm:$0xf0] }
 0x423   :  { %6978 = vmatpush.bf16.msra.mxu2 %v13711_v39  ;;  %6992 = vmatpush.bf16.msra.mxu3 %v13903_v26  ;;  %v16175_v39 = vld [vmem:[#allocation12 + $0x1d4] sm:$0xf0]  ;;  %v17883_v26 = vpop.f32.mrf.mxu0 }
 0x426   :  { %6951 = vmatpush.bf16.msra.mxu0 %v13303_v15  ;;  %6965 = vmatpush.bf16.msra.mxu1 %v13495_v14  ;;  %v17885_v15 = vld [vmem:[#allocation18] sm:$0x3f]  ;;  %v13423_v14 = vor.u32 %v16175_v39, %v13422_v60 }
 0x427   :  { %6979 = vmatpush.bf16.msra.mxu2 %v13687_v61  ;;  %6993 = vmatpush.bf16.msra.mxu3 %v13879_v5  ;;  %v13615_v61 = vor.u32 %v16223_v41, %v13614_v51  ;;  %v17887_v5 = vpop.f32.mrf.mxu1  ;;  %v5160_v21 = vperm.slane %v17885_v15, 0  ;;  %v14118_v60 = vld [vmem:[#allocation12 + $0x730] sm:$0xf]  ;;  %v13571_v51 = vor.u32 %v16208_v46, %v13568_v19  ;;  %v16397_v41 = vld [vmem:[#allocation12 + $0x8c4] sm:$0xf0] }
 0x428   :  { %v14310_v39 = vld [vmem:[#allocation12 + $0x8b0] sm:$0xf] }
 0x429   :  { %v14070_v19 = vld [vmem:[#allocation12 + $0x6d0] sm:$0xf] }
 0x42a   :  { %6952 = vmatpush.bf16.msra.mxu0 %v13279_v56  ;;  %6966 = vmatpush.bf16.msra.mxu1 %v13471_v18  ;;  %v16355_v56 = vld [vmem:[#allocation12 + $0x774] sm:$0xf0]  ;;  %v14334_v18 = vld [vmem:[#allocation12 + $0x8e0] sm:$0xf]  ;;  %v6705_v2 = vpop.f32.mrf.mxu2 }
 0x42b   :  { %6980 = vmatpush.bf16.msra.mxu2 %v13663_v22  ;;  %6994 = vmatpush.bf16.msra.mxu3 %v13855_v52  ;;  %v13207_v22 = vor.u32 %v16121_v4, %v13206_v42  ;;  %v13399_v52 = vor.u32 %v16169_v49, %v13398_v3  ;;  %v14335_v34 = vor.u32 %v16403_v40, %v14334_v18  ;;  %v17891_v42 = vpop.f32.mrf.mxu0  ;;  %v16202_v4 = vld [vmem:[#allocation12 + $0x2b4] sm:$0xf]  ;;  %v16148_v18 = vld [vmem:[#allocation12 + $0x104] sm:$0xf] }
 0x42c   :  { %v14311_v49 = vor.u32 %v16397_v41, %v14310_v39  ;;  %v16196_v40 = vld [vmem:[#allocation12 + $0x284] sm:$0xf]  ;;  %v13304_v39 = vld [vmem:[#allocation12 + $0xe8] sm:$0xf0] }
 0x42e   :  { %6953 = vmatpush.bf16.msra.mxu0 %v13255_v63  ;;  %6967 = vmatpush.bf16.msra.mxu1 %v13447_v36  ;;  %v13783_v63 = vor.u32 %v16265_v16, %v13782_v35  ;;  %v14143_v36 = vor.u32 %v16355_v56, %v14142_v54  ;;  %v14286_v35 = vld [vmem:[#allocation12 + $0x880] sm:$0xf]  ;;  %v16391_v56 = vld [vmem:[#allocation12 + $0x894] sm:$0xf0] }
 0x42f   :  { %6981 = vmatpush.bf16.msra.mxu2 %v13639_v24  ;;  %6995 = vmatpush.bf16.msra.mxu3 %v13831_v38  ;;  %v6719_v24 = vpop.f32.mrf.mxu3  ;;  %v16349_v38 = vld [vmem:[#allocation12 + $0x744] sm:$0xf0]  ;;  %v17896_v16 = vpop.f32.mrf.mxu1 }
 0x430   :  { %v14119_v3 = vor.u32 %v16349_v38, %v14118_v60  ;;  %v16385_v60 = vld [vmem:[#allocation12 + $0x864] sm:$0xf0]  ;;  %v16142_v38 = vld [vmem:[#allocation12 + $0xd4] sm:$0xf] }
 0x432   :  { %6954 = vmatpush.bf16.msra.mxu0 %v13231_v1  ;;  %6968 = vmatpush.bf16.msra.mxu1 %v13423_v14  ;;  %v5161_v1 = vperm.slane %v17885_v15, 1  ;;  %v13544_v14 = vld [vmem:[#allocation12 + $0x2c8] sm:$0xf0] }
 0x433   :  { %6982 = vmatpush.bf16.msra.mxu2 %v13615_v61  ;;  %6996 = vmatpush.bf16.msra.mxu3 %v13807_v45  ;;  %v6622_v61 = vadd.f32 %v17863_v10, %v5160_v21  ;;  %v14094_v45 = vld [vmem:[#allocation12 + $0x700] sm:$0xf]  ;;  %v13547_v54 = vor.u32 %v16202_v4, %v13544_v14  ;;  %v6624_v4 = vadd.f32 %v17875_v58, %v5160_v21  ;;  %v16184_v21 = vld [vmem:[#allocation12 + $0x224] sm:$0xf] }
 0x434   :  { %v6706_v10 = vadd.f32 %v6705_v2, %v5161_v1 }
 0x435   :  { %v6636_v9 = vadd.f32 %v17868_v59, %v6622_v61 }
 0x436   :  { %6955 = vmatpush.bf16.msra.mxu0 %v13207_v22  ;;  %6969 = vmatpush.bf16.msra.mxu1 %v13399_v52  ;;  %v13328_v22 = vld [vmem:[#allocation12 + $0x118] sm:$0xf0]  ;;  %v14095_v52 = vor.u32 %v16343_v0, %v14094_v45  ;;  %v6720_v59 = vadd.f32 %v6719_v24, %v6706_v10  ;;  %v6733_v41 = vpop.f32.mrf.mxu0  ;;  %v14238_v45 = vld [vmem:[#allocation12 + $0x820] sm:$0xf]  ;;  %v6638_v10 = vadd.f32 %v17877_v32, %v6624_v4  ;;  %v13256_v32 = vld [vmem:[#allocation12 + $0x88] sm:$0xf0] }
 0x437   :  { %6983 = vmatpush.bf16.msra.mxu2 %v13591_v11  ;;  %6997 = vmatpush.bf16.msra.mxu3 %v13783_v63  ;;  %v14287_v11 = vor.u32 %v16391_v56, %v14286_v35  ;;  %v13331_v46 = vor.u32 %v16148_v18, %v13328_v22  ;;  %v16337_v63 = vld [vmem:[#allocation12 + $0x6e4] sm:$0xf0]  ;;  %v6650_v2 = vadd.f32 %v17871_v55, %v6636_v9  ;;  %v6747_v0 = vpop.f32.mrf.mxu1  ;;  %v16136_v56 = vld [vmem:[#allocation12 + $0xa4] sm:$0xf]  ;;  %v13280_v18 = vld [vmem:[#allocation12 + $0xb8] sm:$0xf0] }
 0x438   :  { %v14071_v14 = vor.u32 %v16337_v63, %v14070_v19  ;;  %v6734_v55 = vadd.f32 %v6733_v41, %v6720_v59  ;;  %v13499_v35 = vor.u32 %v16190_v7, %v13496_v44  ;;  %v13472_v22 = vld [vmem:[#allocation12 + $0x238] sm:$0xf0]  ;;  %v14022_v9 = vld [vmem:[#allocation12 + $0x670] sm:$0xf]  ;;  %v16373_v63 = vld [vmem:[#allocation12 + $0x804] sm:$0xf0] }
 0x439   :  { %6956 = vmatmul.bf16.vlgmr.msra.gmra.mxu0 %v17372_v47  ;;  %6970 = vmatmul.bf16.vlgmr.msra.gmra.mxu1 %v17374_v48  ;;  %v6664_v24 = vadd.f32 %v17873_v28, %v6650_v2  ;;  %v14214_v19 = vld [vmem:[#allocation12 + $0x7f0] sm:$0xf]  ;;  %v13448_v59 = vld [vmem:[#allocation12 + $0x208] sm:$0xf0] }
 0x43a   :  { %7004 = vmatpush.bf16.msrb.mxu0 %v14143_v36  ;;  %7018 = vmatpush.bf16.msrb.mxu1 %v14335_v34  ;;  %v14262_v36 = vld [vmem:[#allocation12 + $0x850] sm:$0xf]  ;;  %v6707_v34 = vpop.f32.mrf.mxu2  ;;  %v14215_v44 = vor.u32 %v16373_v63, %v14214_v19  ;;  %v13400_v19 = vld [vmem:[#allocation12 + $0x1a8] sm:$0xf0] }
 0x43b   :  { %7032 = vmatpush.bf16.msrb.mxu2 %v13379_v8  ;;  %7046 = vmatpush.bf16.msrb.mxu3 %v13571_v51  ;;  %v13523_v8 = vor.u32 %v16196_v40, %v13520_v12  ;;  %v6721_v51 = vpop.f32.mrf.mxu3  ;;  %v14263_v61 = vor.u32 %v16385_v60, %v14262_v36  ;;  %v6708_v58 = vadd.f32 %v6707_v34, %v5161_v1  ;;  %v16130_v34 = vld [vmem:[#allocation12 + $0x74] sm:$0xf] }
 0x43c   :  { %6984 = vmatmul.bf16.vlgmr.msra.gmra.mxu2 %v17376_v50  ;;  %6998 = vmatmul.bf16.vlgmr.msra.gmra.mxu3 %v17378_v53  ;;  %v6678_v40 = vadd.f32 %v17883_v26, %v6664_v24  ;;  %v6652_v36 = vadd.f32 %v17879_v27, %v6638_v10  ;;  %v13475_v1 = vor.u32 %v16184_v21, %v13472_v22  ;;  %v13232_v24 = vld [vmem:[#allocation12 + $0x58] sm:$0xf0]  ;;  %v16313_v21 = vld [vmem:[#allocation12 + $0x624] sm:$0xf0] }
 0x43e   :  { %7005 = vmatpush.bf16.msrb.mxu0 %v14119_v3  ;;  %7019 = vmatpush.bf16.msrb.mxu1 %v14311_v49  ;;  %v13307_v3 = vor.u32 %v16142_v38, %v13304_v39  ;;  %v14046_v49 = vld [vmem:[#allocation12 + $0x6a0] sm:$0xf]  ;;  %v6735_v38 = vpop.f32.mrf.mxu0  ;;  %v16178_v39 = vld [vmem:[#allocation12 + $0x1f4] sm:$0xf]  ;;  %v6692_v41 = vadd.f32 %v17887_v5, %v6678_v40  ;;  %v16172_v5 = vld [vmem:[#allocation12 + $0x1c4] sm:$0xf] }
 0x43f   :  { %7033 = vmatpush.bf16.msrb.mxu2 %v13355_v23  ;;  %7047 = vmatpush.bf16.msrb.mxu3 %v13547_v54  ;;  %v16331_v23 = vld [vmem:[#allocation12 + $0x6b4] sm:$0xf0]  ;;  %v14166_v40 = vld [vmem:[#allocation12 + $0x790] sm:$0xf] }
 0x440   :  { %v16379_v54 = vld [vmem:[#allocation12 + $0x834] sm:$0xf0]  ;;  %v14047_v12 = vor.u32 %v16331_v23, %v14046_v49  ;;  %v13451_v49 = vor.u32 %v16178_v39, %v13448_v59  ;;  %v16352_v39 = vld [vmem:[#allocation12 + $0x764] sm:$0xf]  ;;  %v14144_v59 = vld [vmem:[#allocation12 + $0x778] sm:$0xf0] }
 0x441   :  { %v14239_v28 = vor.u32 %v16379_v54, %v14238_v45  ;;  %v16367_v23 = vld [vmem:[#allocation12 + $0x7d4] sm:$0xf0]  ;;  %v16124_v45 = vld [vmem:[#allocation12 + $0x44] sm:$0xf] }
 0x442   :  { %7006 = vmatpush.bf16.msrb.mxu0 %v14095_v52  ;;  %7020 = vmatpush.bf16.msrb.mxu1 %v14287_v11  ;;  %v6748_v52 = vadd.f32 %v6747_v0, %v6734_v55  ;;  %v13283_v11 = vor.u32 %v16136_v56, %v13280_v18  ;;  %v6761_v2 = vpop.f32.mrf.mxu2  ;;  %v13998_v55 = vld [vmem:[#allocation12 + $0x640] sm:$0xf]  ;;  %v6749_v56 = vpop.f32.mrf.mxu1  ;;  %v13235_v10 = vor.u32 %v16124_v45, %v13232_v24  ;;  %v13928_v24 = vld [vmem:[#allocation12 + $0x5c8] sm:$0xf0] }
 0x443   :  { %7034 = vmatpush.bf16.msrb.mxu2 %v13331_v46  ;;  %7048 = vmatpush.bf16.msrb.mxu3 %v13523_v8  ;;  %v16325_v46 = vld [vmem:[#allocation12 + $0x684] sm:$0xf0]  ;;  %v6722_v8 = vadd.f32 %v6721_v51, %v6708_v58  ;;  %v6775_v60 = vpop.f32.mrf.mxu3  ;;  %v6666_v51 = vadd.f32 %v17881_v25, %v6652_v36  ;;  %v13974_v58 = vld [vmem:[#allocation12 + $0x610] sm:$0xf] }
 0x444   :  { %v6762_v26 = vadd.f32 %v6761_v2, %v6748_v52  ;;  %v14023_v7 = vor.u32 %v16325_v46, %v14022_v9  ;;  %v16118_v9 = vld [vmem:[#allocation12 + $0x14] sm:$0xf]  ;;  %v13760_v2 = vld [vmem:[#allocation12 + $0x478] sm:$0xf0] }
 0x445   :  { %v6736_v27 = vadd.f32 %v6735_v38, %v6722_v8  ;;  %v6680_v54 = vadd.f32 %v17891_v42, %v6666_v51  ;;  %v16166_v46 = vld [vmem:[#allocation12 + $0x194] sm:$0xf]  ;;  %v13952_v38 = vld [vmem:[#allocation12 + $0x5f8] sm:$0xf0] }
 0x446   :  { %7007 = vmatpush.bf16.msrb.mxu0 %v14071_v14  ;;  %7021 = vmatpush.bf16.msrb.mxu1 %v14263_v61  ;;  %v6776_v4 = vadd.f32 %v6775_v60, %v6762_v26  ;;  %v13259_v14 = vor.u32 %v16130_v34, %v13256_v32  ;;  %v16319_v61 = vld [vmem:[#allocation12 + $0x654] sm:$0xf0]  ;;  %v16304_v34 = vld [vmem:[#allocation12 + $0x5e4] sm:$0xf]  ;;  %v17923_v32 = vpop.permute.xlu2 %7237  ;;  %v13975_v60 = vor.u32 %v16313_v21, %v13974_v58  ;;  %v16250_v51 = vld [vmem:[#allocation12 + $0x434] sm:$0xf] }
 0x447   :  { %7035 = vmatpush.bf16.msrb.mxu2 %v13307_v3  ;;  %7049 = vmatpush.bf16.msrb.mxu3 %v13499_v35  ;;  %v14190_v3 = vld [vmem:[#allocation12 + $0x7c0] sm:$0xf]  ;;  %v13424_v35 = vld [vmem:[#allocation12 + $0x1d8] sm:$0xf0]  ;;  %v13999_v18 = vor.u32 %v16319_v61, %v13998_v55  ;;  %v6750_v22 = vadd.f32 %v6749_v56, %v6736_v27  ;;  %v6694_v8 = vadd.f32 %v17896_v16, %v6680_v54  ;;  %v16394_v54 = vld [vmem:[#allocation12 + $0x8b4] sm:$0xf] }
 0x448   :  { %v17917_v0 = vpack.c.bf16 %v6776_v4, %v6692_v41  ;;  %v14191_v25 = vor.u32 %v16367_v23, %v14190_v3  ;;  %v16400_v4 = vld [vmem:[#allocation12 + $0x8e4] sm:$0xf]  ;;  %v14336_v27 = vld [vmem:[#allocation12 + $0x8f8] sm:$0xf0]  ;;  %v13955_v16 = vor.u32 %v16304_v34, %v13952_v38  ;;  %v14147_v3 = vor.u32 %v16352_v39, %v14144_v59  ;;  %v16298_v23 = vld [vmem:[#allocation12 + $0x5b4] sm:$0xf] }
 0x449   :  { %v14339_v45 = vor.u32 %v16400_v4, %v14336_v27  ;;  %v14312_v56 = vld [vmem:[#allocation12 + $0x8c8] sm:$0xf0]  ;;  %v13931_v21 = vor.u32 %v16298_v23, %v13928_v24  ;;  %v16238_v34 = vld [vmem:[#allocation12 + $0x3d4] sm:$0xf]  ;;  %v13856_v23 = vld [vmem:[#allocation12 + $0x538] sm:$0xf0] }
 0x44a   :  { %7008 = vmatpush.bf16.msrb.mxu0 %v14047_v12  ;;  %7022 = vmatpush.bf16.msrb.mxu1 %v14239_v28  ;;  %v16361_v12 = vld [vmem:[#allocation12 + $0x7a4] sm:$0xf0]  ;;  %v7314_v52 = vunpack.c.l.b16 %v17917_v0  ;;  %v13427_v28 = vor.u32 %v16172_v5, %v13424_v35  ;;  %v6763_v42 = vpop.f32.mrf.mxu2  ;;  %v16346_v5 = vld [vmem:[#allocation12 + $0x734] sm:$0xf]  ;;  %v14120_v35 = vld [vmem:[#allocation12 + $0x748] sm:$0xf0] }
 0x44b   :  { %7036 = vmatpush.bf16.msrb.mxu2 %v13283_v11  ;;  %7050 = vmatpush.bf16.msrb.mxu3 %v13475_v1  ;;  %v13208_v11 = vld [vmem:[#allocation12 + $0x28] sm:$0xf0]  ;;  %v6764_v63 = vadd.f32 %v6763_v42, %v6750_v22  ;;  %v16256_v1 = vld [vmem:[#allocation12 + $0x464] sm:$0xf]  ;;  %v6777_v26 = vpop.f32.mrf.mxu3  ;;  %v14123_v22 = vor.u32 %v16346_v5, %v14120_v35  ;;  %v14096_v42 = vld [vmem:[#allocation12 + $0x718] sm:$0xf0] }
 0x44c   :  { %7558 = vrot.lane.b32.xlu0 %v17917_v0, %s17133_s8  ;;  %v7315_v36 = vpack.c.b16 %v7314_v52, %v7314_v52  ;;  %v13763_v55 = vor.u32 %v16256_v1, %v13760_v2  ;;  %v13904_v52 = vld [vmem:[#allocation12 + $0x598] sm:$0xf0]  ;;  %v16334_v38 = vld [vmem:[#allocation12 + $0x6d4] sm:$0xf]  ;;  %v14072_v39 = vld [vmem:[#allocation12 + $0x6e8] sm:$0xf0] }
 0x44d   :  { %v6778_v41 = vadd.f32 %v6777_v26, %v6764_v63  ;;  %v16286_v26 = vld [vmem:[#allocation12 + $0x554] sm:$0xf]  ;;  %v14048_v24 = vld [vmem:[#allocation12 + $0x6b8] sm:$0xf0]  ;;  %v16376_v5 = vld [vmem:[#allocation12 + $0x824] sm:$0xf] }
 0x44e   :  { %7009 = vmatpush.bf16.msrb.mxu0 %v14023_v7  ;;  %7023 = vmatpush.bf16.msrb.mxu1 %v14215_v44  ;;  %v14167_v7 = vor.u32 %v16361_v12, %v14166_v40  ;;  %v13211_v44 = vor.u32 %v16118_v9, %v13208_v11  ;;  %v16292_v40 = vld [vmem:[#allocation12 + $0x584] sm:$0xf]  ;;  %v14315_v12 = vor.u32 %v16394_v54, %v14312_v56  ;;  %v14240_v35 = vld [vmem:[#allocation12 + $0x838] sm:$0xf0] }
 0x44f   :  { %7037 = vmatpush.bf16.msrb.mxu2 %v13259_v14  ;;  %7051 = vmatpush.bf16.msrb.mxu3 %v13451_v49  ;;  %v13403_v14 = vor.u32 %v16166_v46, %v13400_v19  ;;  %v17927_v61 = vpack.c.bf16 %v6778_v41, %v6694_v8  ;;  %v13736_v49 = vld [vmem:[#allocation12 + $0x448] sm:$0xf0]  ;;  %v16388_v11 = vld [vmem:[#allocation12 + $0x884] sm:$0xf]  ;;  %v14288_v46 = vld [vmem:[#allocation12 + $0x898] sm:$0xf0]  ;;  %v17933_v19 = vpop.permute.xlu2 %7266  ;;  %v13907_v1 = vor.u32 %v16292_v40, %v13904_v52 }
 0x450   :  { %7316 = vrot.lane.b32.xlu2 %v7315_v36, %s17133_s8  ;;  %v13739_v58 = vor.u32 %v16250_v51, %v13736_v49  ;;  %v5162_v36 = vperm.slane %v17885_v15, 2  ;;  %v13688_v8 = vld [vmem:[#allocation12 + $0x3e8] sm:$0xf0] }
 0x451   :  { %v14264_v41 = vld [vmem:[#allocation12 + $0x868] sm:$0xf0] }
 0x452   :  { %7010 = vmatpush.bf16.msrb.mxu0 %v13999_v18  ;;  %7024 = vmatpush.bf16.msrb.mxu1 %v14191_v25  ;;  %v7338_v18 = vunpack.c.l.b16 %v17927_v61  ;;  %v16244_v25 = vld [vmem:[#allocation12 + $0x404] sm:$0xf]  ;;  %v14024_v52 = vld [vmem:[#allocation12 + $0x688] sm:$0xf0] }
 0x453   :  { %7038 = vmatpush.bf16.msrb.mxu2 %v13235_v10  ;;  %7052 = vmatpush.bf16.msrb.mxu3 %v13427_v28  ;;  %v13712_v10 = vld [vmem:[#allocation12 + $0x418] sm:$0xf0]  ;;  %v16340_v28 = vld [vmem:[#allocation12 + $0x704] sm:$0xf] }
 0x454   :  { %v7339_v9 = vpack.c.b16 %v7338_v18, %v7338_v18  ;;  %v13715_v63 = vor.u32 %v16244_v25, %v13712_v10  ;;  %v14099_v2 = vor.u32 %v16340_v28, %v14096_v42  ;;  %v14243_v10 = vor.u32 %v16376_v5, %v14240_v35  ;;  %v16370_v42 = vld [vmem:[#allocation12 + $0x7f4] sm:$0xf] }
 0x456   :  { %7011 = vmatpush.bf16.msrb.mxu0 %v13975_v60  ;;  %7025 = vmatpush.bf16.msrb.mxu1 %v14167_v7  ;;  %v13880_v60 = vld [vmem:[#allocation12 + $0x568] sm:$0xf0]  ;;  %v6789_v59 = vpop.f32.mrf.mxu0  ;;  %v6803_v4 = vpop.f32.mrf.mxu1 }
 0x457   :  { %7039 = vmatpush.bf16.msrb.mxu2 %v13211_v44  ;;  %7053 = vmatpush.bf16.msrb.mxu3 %v13403_v14  ;;  %v6790_v7 = vadd.f32 %v6789_v59, %v5162_v36  ;;  %v13691_v44 = vor.u32 %v16238_v34, %v13688_v8  ;;  %v13883_v27 = vor.u32 %v16286_v26, %v13880_v60  ;;  %v17940_v25 = vpop.permute.xlu2 %7485  ;;  %v16220_v8 = vld [vmem:[#allocation12 + $0x344] sm:$0xf]  ;;  %v13616_v26 = vld [vmem:[#allocation12 + $0x358] sm:$0xf0] }
 0x458   :  { %7340 = vrot.lane.b32.xlu1 %v7339_v9, %s17133_s8  ;;  %v14075_v14 = vor.u32 %v16334_v38, %v14072_v39  ;;  %v16322_v9 = vld [vmem:[#allocation12 + $0x674] sm:$0xf]  ;;  %v13808_v38 = vld [vmem:[#allocation12 + $0x4d8] sm:$0xf0]  ;;  %v16316_v39 = vld [vmem:[#allocation12 + $0x644] sm:$0xf] }
 0x459   :  { %7012 = vmatmul.bf16.vlgmr.msrb.gmra.mxu0 %v17394_v6  ;;  %7026 = vmatmul.bf16.vlgmr.msrb.gmra.mxu1 %v17396_v57  ;;  %v6804_v51 = vadd.f32 %v6803_v4, %v6790_v7  ;;  %v14027_v34 = vor.u32 %v16322_v9, %v14024_v52  ;;  %v14000_v59 = vld [vmem:[#allocation12 + $0x658] sm:$0xf0]  ;;  %v13619_v7 = vor.u32 %v16220_v8, %v13616_v26  ;;  %v7272_v9 = vsel %vm7122_vm7, %v17933_v19, 0 }
 0x45a   :  { %7060 = vmatpush.bf16.msra.mxu0 %v13763_v55  ;;  %7074 = vmatpush.bf16.msra.mxu1 %v13955_v16  ;;  %v16232_v55 = vld [vmem:[#allocation12 + $0x3a4] sm:$0xf]  ;;  %v13664_v16 = vld [vmem:[#allocation12 + $0x3b8] sm:$0xf0]  ;;  %v14003_v4 = vor.u32 %v16316_v39, %v14000_v59  ;;  %v7373_v19 = vrot.slane %v17663_v62, 4  ;;  %v7487_v59 = vrot.slane %v17940_v25, 4 }
 0x45b   :  { %7088 = vmatpush.bf16.msra.mxu2 %v14147_v3  ;;  %7102 = vmatpush.bf16.msra.mxu3 %v14339_v45  ;;  %v16280_v3 = vld [vmem:[#allocation12 + $0x524] sm:$0xf]  ;;  %v13667_v54 = vor.u32 %v16232_v55, %v13664_v16  ;;  %v16262_v55 = vld [vmem:[#allocation12 + $0x494] sm:$0xf] }
 0x45c   :  { %7040 = vmatmul.bf16.vlgmr.msrb.gmra.mxu2 %v17372_v47  ;;  %7054 = vmatmul.bf16.vlgmr.msrb.gmra.mxu3 %v17374_v48  ;;  %v14291_v47 = vor.u32 %v16388_v11, %v14288_v46  ;;  %v16382_v48 = vld [vmem:[#allocation12 + $0x854] sm:$0xf]  ;;  %v16328_v45 = vld [vmem:[#allocation12 + $0x6a4] sm:$0xf]  ;;  %v13859_v56 = vor.u32 %v16280_v3, %v13856_v23  ;;  %v14216_v11 = vld [vmem:[#allocation12 + $0x808] sm:$0xf0] }
 0x45d   :  { %v14267_v49 = vor.u32 %v16382_v48, %v14264_v41  ;;  %v14051_v18 = vor.u32 %v16328_v45, %v14048_v24  ;;  %v14219_v60 = vor.u32 %v16370_v42, %v14216_v11  ;;  %v16364_v48 = vld [vmem:[#allocation12 + $0x7c4] sm:$0xf]  ;;  %v14192_v41 = vld [vmem:[#allocation12 + $0x7d8] sm:$0xf0]  ;;  %v13784_v3 = vld [vmem:[#allocation12 + $0x4a8] sm:$0xf0] }
 0x45e   :  { %7061 = vmatpush.bf16.msra.mxu0 %v13739_v58  ;;  %7075 = vmatpush.bf16.msra.mxu1 %v13931_v21  ;;  %v16226_v58 = vld [vmem:[#allocation12 + $0x374] sm:$0xf]  ;;  %v13640_v21 = vld [vmem:[#allocation12 + $0x388] sm:$0xf0]  ;;  %v14195_v16 = vor.u32 %v16364_v48, %v14192_v41  ;;  %v13787_v35 = vor.u32 %v16262_v55, %v13784_v3 }
 0x45f   :  { %7089 = vmatpush.bf16.msra.mxu2 %v14123_v22  ;;  %7103 = vmatpush.bf16.msra.mxu3 %v14315_v12  ;;  %v16274_v22 = vld [vmem:[#allocation12 + $0x4f4] sm:$0xf]  ;;  %v6817_v40 = vpop.f32.mrf.mxu2  ;;  %v13832_v12 = vld [vmem:[#allocation12 + $0x508] sm:$0xf0]  ;;  %v6831_v46 = vpop.f32.mrf.mxu3 }
 0x460   :  { %v6818_v28 = vadd.f32 %v6817_v40, %v6804_v51  ;;  %v16310_v51 = vld [vmem:[#allocation12 + $0x614] sm:$0xf]  ;;  %v14168_v45 = vld [vmem:[#allocation12 + $0x7a8] sm:$0xf0]  ;;  %v17944_v24 = vpop.permute.xlu2 %7510  ;;  %v7212_v40 = vsel %vm7191_vm8, %v17927_v61, 0 }
 0x461   :  { %v16358_v23 = vld [vmem:[#allocation12 + $0x794] sm:$0xf]  ;;  %v7512_v48 = vrot.slane %v17944_v24, 4 }
 0x462   :  { %7062 = vmatpush.bf16.msra.mxu0 %v13715_v63  ;;  %7076 = vmatpush.bf16.msra.mxu1 %v13907_v1  ;;  %v13643_v63 = vor.u32 %v16226_v58, %v13640_v21  ;;  %v17942_v1 = vadd.f32 %v6831_v46, %v6818_v28  ;;  %v7127_v58 = vsel %vm7122_vm7, %v17663_v62, 0  ;;  %v7146_v21 = vsel %vm7122_vm7, %v17669_v33, 0 }
 0x463   :  { %7090 = vmatpush.bf16.msra.mxu2 %v14099_v2  ;;  %7104 = vmatpush.bf16.msra.mxu3 %v14291_v47  ;;  %v13835_v2 = vor.u32 %v16274_v22, %v13832_v12  ;;  %v16268_v47 = vld [vmem:[#allocation12 + $0x4c4] sm:$0xf]  ;;  %v7193_v22 = vsel %vm7191_vm8, %v17917_v0, 0  ;;  %v7243_v12 = vsel %vm7122_vm7, %v17923_v32, 0 }
 0x466   :  { %7063 = vmatpush.bf16.msra.mxu0 %v13691_v44  ;;  %7077 = vmatpush.bf16.msra.mxu1 %v13883_v27  ;;  %v13811_v44 = vor.u32 %v16268_v47, %v13808_v38  ;;  %v16214_v27 = vld [vmem:[#allocation12 + $0x314] sm:$0xf]  ;;  %v18584_v47 = vld [vmem:[#allocation29_spill] sm:$0xff] }
 0x467   :  { %7091 = vmatpush.bf16.msra.mxu2 %v14075_v14  ;;  %7105 = vmatpush.bf16.msra.mxu3 %v14267_v49  ;;  %v13592_v14 = vld [vmem:[#allocation12 + $0x328] sm:$0xf0]  ;;  %v6819_v28 = vpop.f32.mrf.mxu2  ;;  %v6833_v11 = vpop.f32.mrf.mxu3 }
 0x468   :  { %v13976_v49 = vld [vmem:[#allocation12 + $0x628] sm:$0xf0]  ;;  %v13595_v5 = vor.u32 %v16214_v27, %v13592_v14  ;;  %v17961_v52 = vpop.permute.xlu2 %7482  ;;  %v7517_v14 = vsel %vm7122_vm7, %v7512_v48, 0 }
 0x46a   :  { %7064 = vmatpush.bf16.msra.mxu0 %v13667_v54  ;;  %7078 = vmatpush.bf16.msra.mxu1 %v13859_v56  ;;  %v13979_v54 = vor.u32 %v16310_v51, %v13976_v49  ;;  %v14171_v56 = vor.u32 %v16358_v23, %v14168_v45 }
 0x46b   :  { %7092 = vmatpush.bf16.msra.mxu2 %v14051_v18  ;;  %7106 = vmatpush.bf16.msra.mxu3 %v14243_v10  ;;  %v6791_v18 = vpop.f32.mrf.mxu0  ;;  %v6805_v10 = vpop.f32.mrf.mxu1 }
 0x46c   :  { %v6792_v51 = vadd.f32 %v6791_v18, %v5162_v36 }
 0x46e   :  { %7065 = vmatpush.bf16.msra.mxu0 %v13643_v63  ;;  %7079 = vmatpush.bf16.msra.mxu1 %v13835_v2 }
 0x46f   :  { %7093 = vmatpush.bf16.msra.mxu2 %v14027_v34  ;;  %7107 = vmatpush.bf16.msra.mxu3 %v14219_v60  ;;  %v7394_v34 = vrot.slane %v17669_v33, 4  ;;  %v18585_v60 = vld [vmem:[#allocation30_spill] sm:$0xff] }
 0x470   :  { %v17966_v63 = vpop.permute.xlu2 %7724  ;;  %v7393_v36 = vrot.slane %v18585_v60, 4 }
 0x471   :  { %v7399_v38 = vsel %vm7122_vm7, %v7394_v34, 0 }
 0x472   :  { %7066 = vmatpush.bf16.msra.mxu0 %v13619_v7  ;;  %7080 = vmatpush.bf16.msra.mxu1 %v13811_v44  ;;  %v7233_v44 = vpop.permute.xlu0 %7232 }
 0x473   :  { %7094 = vmatpush.bf16.msra.mxu2 %v14003_v4  ;;  %7108 = vmatpush.bf16.msra.mxu3 %v14195_v16  ;;  %v7492_v4 = vsel %vm7122_vm7, %v7487_v59, 0  ;;  %v7484_v59 = vrot.slane %v17961_v52, 4 }
 0x476   :  { %7067 = vmatpush.bf16.msra.mxu0 %v13595_v5  ;;  %7081 = vmatpush.bf16.msra.mxu1 %v13787_v35  ;;  %v6845_v42 = vpop.f32.mrf.mxu0  ;;  %v6859_v46 = vpop.f32.mrf.mxu1  ;;  %v6806_v5 = vadd.f32 %v6805_v10, %v6792_v51  ;;  %v7859_v51 = vrot.slane %v17749_v29, 4 }
 0x477   :  { %7095 = vmatpush.bf16.msra.mxu2 %v13979_v54  ;;  %7109 = vmatpush.bf16.msra.mxu3 %v14171_v56 }
 0x478   :  { %v17976_v39 = vpop.permute.xlu2 %7748  ;;  %v6820_v56 = vadd.f32 %v6819_v28, %v6806_v5  ;;  %v7616_v28 = vsel %vm7122_vm7, %v17749_v29, 0 }
 0x479   :  { %7068 = vmatmul.bf16.vlgmr.msra.gmra.mxu0 %v17376_v50  ;;  %7082 = vmatmul.bf16.vlgmr.msra.gmra.mxu1 %v17378_v53  ;;  %v6846_v50 = vadd.f32 %v6845_v42, %v17942_v1  ;;  %v5163_v53 = vperm.slane %v17885_v15, 3  ;;  %v7378_v1 = vsel %vm7122_vm7, %v7373_v19, 0  ;;  %v7372_v42 = vrot.slane %v18584_v47, 4 }
 0x47a   :  { %7136 = vmatpush.bf16.xpose.msrb.mxu0 %v7127_v58  ;;  %7155 = vmatpush.bf16.xpose.msrb.mxu1 %v7146_v21  ;;  %v6834_v18 = vadd.f32 %v6833_v11, %v6820_v56  ;;  %v7635_v19 = vsel %vm7122_vm7, %v17760_v13, 0 }
 0x47b   :  { %7202 = vmatpush.bf16.msrb.mxu2 %v7193_v22  ;;  %7221 = vmatpush.bf16.msrb.mxu3 %v7212_v40  ;;  %v6860_v32 = vadd.f32 %v6859_v46, %v6846_v50 }
 0x47c   :  { %7096 = vmatmul.bf16.vlgmr.msra.gmra.mxu2 %v17394_v6  ;;  %7110 = vmatmul.bf16.vlgmr.msra.gmra.mxu3 %v17396_v57  ;;  %v7262_v57 = vpop.permute.xlu1 %7261 }
 0x47e   :  { %v6847_v33 = vpop.f32.mrf.mxu0  ;;  %v6861_v41 = vpop.f32.mrf.mxu1 }
 0x47f   :  { %v6873_v6 = vpop.f32.mrf.mxu2  ;;  %v6887_v8 = vpop.f32.mrf.mxu3 }
 0x480   :  { %v6874_v2 = vadd.f32 %v6873_v6, %v5163_v53  ;;  %v17982_v7 = vpop.permute.xlu2 %7968 }
 0x482   :  { %7252 = vmatpush.bf16.xpose.msra.mxu0 %v7243_v12  ;;  %7281 = vmatpush.bf16.xpose.msra.mxu1 %v7272_v9  ;;  %v6888_v26 = vadd.f32 %v6887_v8, %v6874_v2 }
 0x484   :  { %v17978_v62 = vpop.permute.xlu1 %7753 }
 0x487   :  { %v6875_v55 = vpop.f32.mrf.mxu2  ;;  %v6889_v25 = vpop.f32.mrf.mxu3 }
 0x488   :  { %v17992_v23 = vpop.permute.xlu2 %8457  ;;  %v6876_v24 = vadd.f32 %v6875_v55, %v5163_v53  ;;  %v6848_v53 = vadd.f32 %v6847_v33, %v6834_v18  ;;  %v7508_v33 = vpop.permute.xlu0 %7507 }
 0x489   :  { %14340 = vmatmul.msk.bf16.vlgmr.msrb.gmra.mxu0 %vm7122_vm7, %v18584_v47  ;;  %14341 = vmatmul.msk.bf16.vlgmr.msrb.gmra.mxu1 %vm7122_vm7, %v18585_v60 }
 0x48a   :  { %7387 = vmatpush.bf16.xpose.msrb.mxu0 %v7378_v1  ;;  %7408 = vmatpush.bf16.xpose.msrb.mxu1 %v7399_v38  ;;  %v6890_v58 = vadd.f32 %v6889_v25, %v6876_v24 }
 0x48c   :  { %v17985_v27 = vpop.permute.xlu1 %7971 }
 0x490   :  { %v17997_v50 = vpop.permute.xlu2 %8239  ;;  %v7720_v24 = vpop.permute.xlu0 %7719 }
 0x494   :  { %v17994_v35 = vpop.permute.xlu1 %7993 }
 0x496   :  { %v6901_v16 = vpop.f32.mrf.mxu0  ;;  %v6915_v49 = vpop.f32.mrf.mxu1 }
 0x497   :  { %v6902_v3 = vadd.f32 %v6901_v16, %v6888_v26 }
 0x499   :  { %14344 = vmatmul.msk.bf16.vlgmr.msra.gmra.mxu0 %vm7122_vm7, %v7233_v44  ;;  %14345 = vmatmul.msk.bf16.vlgmr.msra.gmra.mxu1 %vm7122_vm7, %v7262_v57  ;;  %v6916_v45 = vadd.f32 %v6915_v49, %v6902_v3  ;;  %v6862_v57 = vadd.f32 %v6861_v41, %v6848_v53  ;;  %v5164_v44 = vperm.slane %v17885_v15, 4  ;;  %v7509_v41 = vrot.slane %v7508_v33, 4 }
 0x49a   :  { %7501 = vmatpush.bf16.xpose.msra.mxu0 %v7492_v4  ;;  %7526 = vmatpush.bf16.xpose.msra.mxu1 %v7517_v14  ;;  %v7730_v4 = vsel %vm7122_vm7, %v17966_v63, 0  ;;  %v7759_v14 = vsel %vm7122_vm7, %v17978_v62, 0  ;;  %v7880_v63 = vrot.slane %v17760_v13, 4  ;;  %v7864_v62 = vsel %vm7122_vm7, %v7859_v51, 0 }
 0x49c   :  { %v18008_v11 = vpop.permute.xlu1 %8205 }
 0x49e   :  { %v6903_v40 = vpop.f32.mrf.mxu0  ;;  %v6917_v10 = vpop.f32.mrf.mxu1 }
 0x49f   :  { %v6929_v54 = vpop.f32.mrf.mxu2  ;;  %v6943_v22 = vpop.f32.mrf.mxu3  ;;  %v6904_v9 = vadd.f32 %v6903_v40, %v6890_v58 }
 0x4a0   :  { %v6930_v21 = vadd.f32 %v6929_v54, %v6916_v45  ;;  %v7885_v45 = vsel %vm7122_vm7, %v7880_v63, 0  ;;  %v7997_v58 = vpop.permute.xlu0 %7996 }
 0x4a1   :  { %v6918_v6 = vadd.f32 %v6917_v10, %v6904_v9  ;;  %v7998_v40 = vrot.slane %v7997_v58, 4 }
 0x4a2   :  { %v6944_v12 = vadd.f32 %v6943_v22, %v6930_v21  ;;  %v7973_v22 = vrot.slane %v17985_v27, 4 }
 0x4a3   :  { %v8003_v10 = vsel %vm7122_vm7, %v7998_v40, 0  ;;  %v8345_v40 = vrot.slane %v17845_v31, 4 }
 0x4a4   :  { %v18000_v46 = vpack.c.bf16 %v6944_v12, %v6860_v32  ;;  %v18016_v48 = vpop.permute.xlu1 %8454 }
 0x4a7   :  { %v6931_v2 = vpop.f32.mrf.mxu2  ;;  %v6945_v32 = vpop.f32.mrf.mxu3 }
 0x4a8   :  { %v6932_v34 = vadd.f32 %v6931_v2, %v6918_v6  ;;  %v7879_v2 = vrot.slane %v17545_v43, 4 }
 0x4a9   :  { %14348 = vmatmul.msk.bf16.vlgmr.msrb.gmra.mxu0 %vm7122_vm7, %v7372_v42  ;;  %14349 = vmatmul.msk.bf16.vlgmr.msrb.gmra.mxu1 %vm7122_vm7, %v7393_v36  ;;  %v7978_v36 = vsel %vm7122_vm7, %v7973_v22, 0 }
 0x4aa   :  { %7625 = vmatpush.bf16.xpose.msrb.mxu0 %v7616_v28  ;;  %7644 = vmatpush.bf16.xpose.msrb.mxu1 %v7635_v19  ;;  %v6946_v8 = vadd.f32 %v6945_v32, %v6932_v34  ;;  %v7317_v26 = vpop.permute.xlu2 %7316  ;;  %v7858_v19 = vrot.slane %v18582_v20, 4  ;;  %v8102_v34 = vsel %vm7122_vm7, %v17845_v31, 0 }
 0x4ab   :  { %v7322_v1 = vsel %vm7191_vm8, %v7317_v26, 0 }
 0x4ac   :  { %v18010_v47 = vpack.c.bf16 %v6946_v8, %v6862_v57  ;;  %7331 = vmatpush.bf16.msra.mxu2 %v7322_v1  ;;  %v18027_v3 = vpop.permute.xlu1 %8479  ;;  %v16814_v57 = vld [vmem:[#allocation18] sm:$0x3f]  ;;  %v8235_v1 = vpop.permute.xlu0 %8234 }
 0x4ad   :  { %v5165_v8 = vperm.slane %v16814_v57, 5 }
 0x4ae   :  { %v7825_v60 = vunpack.c.l.b16 %v18010_v47 }
 0x4b0   :  { %v7826_v38 = vpack.c.b16 %v7825_v60, %v7825_v60 }
 0x4b2   :  { %7827 = vrot.lane.b32.xlu1 %v7826_v38, %s17133_s8 }
 0x4b4   :  { %v18031_v49 = vpop.permute.xlu1 %8482 }
 0x4b6   :  { %v6957_v55 = vpop.f32.mrf.mxu0  ;;  %v6971_v25 = vpop.f32.mrf.mxu1 }
 0x4b7   :  { %v6958_v52 = vadd.f32 %v6957_v55, %v5164_v44 }
 0x4b9   :  { %14352 = vmatmul.msk.bf16.vlgmr.msra.gmra.mxu0 %vm7122_vm7, %v7484_v59  ;;  %14353 = vmatmul.msk.bf16.vlgmr.msra.gmra.mxu1 %vm7122_vm7, %v7509_v41  ;;  %v6972_v16 = vadd.f32 %v6971_v25, %v6958_v52  ;;  %v8211_v59 = vpop.permute.xlu0 %8210  ;;  %v7995_v25 = vrot.slane %v17994_v35, 4 }
 0x4ba   :  { %7739 = vmatpush.bf16.xpose.msra.mxu0 %v7730_v4  ;;  %7768 = vmatpush.bf16.xpose.msra.mxu1 %v7759_v14  ;;  %v7970_v4 = vrot.slane %v17982_v7, 4 }
 0x4be   :  { %v18039_v54 = vpop.f32.mrf.mxu0  ;;  %v18041_v13 = vpop.f32.mrf.mxu1 }
 0x4bf   :  { %v6985_v5 = vpop.f32.mrf.mxu2  ;;  %v6999_v12 = vpop.f32.mrf.mxu3 }
 0x4c0   :  { %v6986_v21 = vadd.f32 %v6985_v5, %v6972_v16  ;;  %v8216_v16 = vsel %vm7122_vm7, %v8211_v59, 0 }
 0x4c2   :  { %v7000_v9 = vadd.f32 %v6999_v12, %v6986_v21 }
 0x4c7   :  { %v18050_v6 = vpop.f32.mrf.mxu2  ;;  %v18052_v27 = vpop.f32.mrf.mxu3 }
 0x4c9   :  { %14356 = vmatmul.msk.bf16.vlgmr.msrb.gmra.mxu0 %vm7122_vm7, %v18582_v20  ;;  %14357 = vmatmul.msk.bf16.vlgmr.msrb.gmra.mxu1 %vm7122_vm7, %v17545_v43 }
 0x4ca   :  { %7873 = vmatpush.bf16.xpose.msrb.mxu0 %v7864_v62  ;;  %7894 = vmatpush.bf16.xpose.msrb.mxu1 %v7885_v45  ;;  %v7341_v29 = vpop.permute.xlu1 %7340  ;;  %v8245_v62 = vsel %vm7122_vm7, %v17997_v50, 0  ;;  %v8366_v50 = vrot.slane %v17853_v17, 4 }
 0x4cb   :  { %v7346_v56 = vsel %vm7191_vm8, %v7341_v29, 0 }
 0x4cc   :  { %7355 = vmatpush.bf16.msra.mxu3 %v7346_v56  ;;  %v8371_v31 = vsel %vm7122_vm7, %v8366_v50, 0 }
 0x4d6   :  { %v7013_v42 = vpop.f32.mrf.mxu0  ;;  %v7027_v28 = vpop.f32.mrf.mxu1 }
 0x4d7   :  { %v7014_v18 = vadd.f32 %v7013_v42, %v7000_v9 }
 0x4d9   :  { %14360 = vmatmul.msk.bf16.vlgmr.msra.gmra.mxu0 %vm7122_vm7, %v7720_v24  ;;  %14361 = vmatmul.msk.bf16.vlgmr.msra.gmra.mxu1 %vm7122_vm7, %v17976_v39  ;;  %v7028_v53 = vadd.f32 %v7027_v28, %v7014_v18  ;;  %v8121_v39 = vsel %vm7122_vm7, %v17853_v17, 0  ;;  %v8350_v18 = vsel %vm7122_vm7, %v8345_v40, 0 }
 0x4da   :  { %7987 = vmatpush.bf16.xpose.msra.mxu0 %v7978_v36  ;;  %8012 = vmatpush.bf16.xpose.msra.mxu1 %v8003_v10 }
 0x4de   :  { %v18062_v20 = vpop.f32.mrf.mxu0  ;;  %v18064_v43 = vpop.f32.mrf.mxu1 }
 0x4df   :  { %v7041_v32 = vpop.f32.mrf.mxu2  ;;  %v7055_v26 = vpop.f32.mrf.mxu3 }
 0x4e0   :  { %v7042_v60 = vadd.f32 %v7041_v32, %v5165_v8 }
 0x4e2   :  { %v7056_v38 = vadd.f32 %v7055_v26, %v7042_v60 }
 0x4e7   :  { %v7043_v33 = vpop.f32.mrf.mxu2  ;;  %v7057_v14 = vpop.f32.mrf.mxu3 }
 0x4e8   :  { %v7044_v51 = vadd.f32 %v7043_v33, %v5165_v8  ;;  %v8344_v33 = vrot.slane %v18583_v30, 4 }
 0x4e9   :  { %14364 = vmatmul.msk.bf16.vlgmr.msrb.gmra.mxu0 %vm7122_vm7, %v7858_v19  ;;  %14365 = vmatmul.msk.bf16.vlgmr.msrb.gmra.mxu1 %vm7122_vm7, %v7879_v2  ;;  %v8459_v19 = vrot.slane %v17992_v23, 4  ;;  %v8484_v2 = vrot.slane %v18031_v49, 4  ;;  %v7801_v23 = vunpack.c.l.b16 %v18000_v46 }
 0x4ea   :  { %8111 = vmatpush.bf16.xpose.msrb.mxu0 %v8102_v34  ;;  %8130 = vmatpush.bf16.xpose.msrb.mxu1 %v8121_v39  ;;  %v7058_v45 = vadd.f32 %v7057_v14, %v7044_v51 }
 0x4eb   :  { %v8464_v57 = vsel %vm7122_vm7, %v8459_v19, 0  ;;  %v8489_v26 = vsel %vm7122_vm7, %v8484_v2, 0  ;;  %v7802_v49 = vpack.c.b16 %v7801_v23, %v7801_v23 }
 0x4f6   :  { %v7069_v41 = vpop.f32.mrf.mxu0  ;;  %v7083_v52 = vpop.f32.mrf.mxu1 }
 0x4f7   :  { %v7070_v55 = vadd.f32 %v7069_v41, %v7056_v38  ;;  %v8365_v41 = vrot.slane %v17766_v37, 4 }
 0x4f9   :  { %v7084_v63 = vadd.f32 %v7083_v52, %v7070_v55  ;;  %14368 = vmatmul.msk.bf16.vlgmr.msra.gmra.mxu0 %vm7122_vm7, %v7970_v4  ;;  %14369 = vmatmul.msk.bf16.vlgmr.msra.gmra.mxu1 %vm7122_vm7, %v7995_v25  ;;  %v8456_v55 = vrot.slane %v18016_v48, 4  ;;  %v8481_v25 = vrot.slane %v18027_v3, 4 }
 0x4fa   :  { %8225 = vmatpush.bf16.xpose.msra.mxu0 %v8216_v16  ;;  %8254 = vmatpush.bf16.xpose.msra.mxu1 %v8245_v62 }
 0x4fe   :  { %v7071_v5 = vpop.f32.mrf.mxu0  ;;  %v7085_v35 = vpop.f32.mrf.mxu1 }
 0x4ff   :  { %v7097_v7 = vpop.f32.mrf.mxu2  ;;  %v7111_v29 = vpop.f32.mrf.mxu3  ;;  %v7072_v56 = vadd.f32 %v7071_v5, %v7058_v45 }
 0x500   :  { %v7098_v24 = vadd.f32 %v7097_v7, %v7084_v63 }
 0x501   :  { %v18073_v21 = vadd.f32 %v7085_v35, %v7072_v56 }
 0x502   :  { %v7112_v58 = vadd.f32 %v7111_v29, %v7098_v24 }
 0x504   :  { %v18075_v22 = vpack.c.bf16 %v7112_v58, %v7028_v53 }
 0x506   :  { %v7138_v12 = vpop.f32.mrf.mxu0  ;;  %v7157_v42 = vpop.f32.mrf.mxu1 }
 0x507   :  { %v18079_v9 = vmul.f32 0.125, %v7138_v12  ;;  %v18081_v36 = vmul.f32 0.125, %v7157_v42 }
 0x509   :  { %14372 = vmatmul.msk.bf16.vlgmr.msrb.gmra.mxu0 %vm7122_vm7, %v18583_v30  ;;  %v7164_v10 = vsel %vm7163_vm9, %v18079_v9, -inf  ;;  %14373 = vmatmul.msk.bf16.vlgmr.msrb.gmra.mxu1 %vm7122_vm7, %v17766_v37  ;;  %v7167_v17 = vsel %vm7163_vm9, %v18081_v36, -inf }
 0x50a   :  { %8359 = vmatpush.bf16.xpose.msrb.mxu0 %v8350_v18  ;;  %8380 = vmatpush.bf16.xpose.msrb.mxu1 %v8371_v31 }
 0x50b   :  { %7168 = vmax.xlane.f32.xlu2 %v7167_v17  ;;  %7165 = vmax.xlane.f32.xlu0 %v7164_v10 }
 0x50e   :  { %v7140_v28 = vpop.f32.mrf.mxu0  ;;  %v7159_v53 = vpop.f32.mrf.mxu1 }
 0x516   :  { %v7254_v34 = vpop.f32.mrf.mxu0  ;;  %v7283_v32 = vpop.f32.mrf.mxu1 }
 0x517   :  { %v18095_v39 = vmul.f32 0.125, %v7254_v34  ;;  %v18116_v51 = vmul.f32 0.125, %v7283_v32 }
 0x519   :  { %14376 = vmatmul.msk.bf16.vlgmr.msra.gmra.mxu0 %vm7122_vm7, %v18008_v11  ;;  %v7289_v8 = vsel %vm7163_vm9, %v18095_v39, -inf  ;;  %14377 = vmatmul.msk.bf16.vlgmr.msra.gmra.mxu1 %vm7122_vm7, %v8235_v1  ;;  %v7292_v45 = vsel %vm7163_vm9, %v18116_v51, -inf }
 0x51a   :  { %8473 = vmatpush.bf16.xpose.msra.mxu0 %v8464_v57  ;;  %8498 = vmatpush.bf16.xpose.msra.mxu1 %v8489_v26 }
 0x51b   :  { %7290 = vmax.xlane.f32.xlu1 %v7289_v8 }
 0x51e   :  { %v7256_v60 = vpop.f32.mrf.mxu0  ;;  %v7285_v38 = vpop.f32.mrf.mxu1 }
 0x51f   :  { %7803 = vrot.lane.b32.xlu0 %v7802_v49, %s17133_s8  ;;  %v18158_v38 = vpop.permute.xlu0 %7558 }
 0x523   :  { %7580 = vrot.lane.b32.xlu2 %v17927_v61, %s17133_s8 }
 0x526   :  { %v7389_v11 = vpop.f32.mrf.mxu0  ;;  %v7410_v59 = vpop.f32.mrf.mxu1 }
 0x527   :  { %v18118_v63 = vmul.f32 0.125, %v7389_v11  ;;  %v18124_v3 = vmul.f32 0.125, %v7410_v59 }
 0x529   :  { %14380 = vmatmul.msk.bf16.vlgmr.msrb.gmra.mxu0 %vm7122_vm7, %v8344_v33  ;;  %14381 = vmatmul.msk.bf16.vlgmr.msrb.gmra.mxu1 %vm7122_vm7, %v8365_v41  ;;  %v7416_v48 = vsel %vm7163_vm9, %v18118_v63, -inf  ;;  %v7419_v29 = vsel %vm7163_vm9, %v18124_v3, -inf }
 0x52e   :  { %v7391_v1 = vpop.f32.mrf.mxu0  ;;  %v7412_v4 = vpop.f32.mrf.mxu1 }
 0x536   :  { %v7503_v14 = vpop.f32.mrf.mxu0  ;;  %v7528_v52 = vpop.f32.mrf.mxu1 }
 0x537   :  { %v18126_v24 = vmul.f32 0.125, %v7503_v14  ;;  %v18132_v35 = vmul.f32 0.125, %v7528_v52 }
 0x539   :  { %14384 = vmatmul.msk.bf16.vlgmr.msra.gmra.mxu0 %vm7122_vm7, %v8456_v55  ;;  %14385 = vmatmul.msk.bf16.vlgmr.msra.gmra.mxu1 %vm7122_vm7, %v8481_v25  ;;  %v7534_v56 = vsel %vm7163_vm9, %v18126_v24, -inf  ;;  %v7537_v50 = vsel %vm7163_vm9, %v18132_v35, -inf }
 0x53e   :  { %v7505_v30 = vpop.f32.mrf.mxu0  ;;  %v7530_v16 = vpop.f32.mrf.mxu1 }
 0x546   :  { %v7627_v37 = vpop.f32.mrf.mxu0  ;;  %v7646_v62 = vpop.f32.mrf.mxu1 }
 0x547   :  { %v18134_v40 = vmul.f32 0.125, %v7646_v62  ;;  %v18140_v18 = vmul.f32 0.125, %v7627_v37 }
 0x549   :  { %7293 = vmax.xlane.f32.xlu0 %v7292_v45  ;;  %v7655_v42 = vsel %vm7163_vm9, %v18134_v40, -inf  ;;  %v7652_v17 = vsel %vm7163_vm9, %v18140_v18, -inf  ;;  %v18172_v45 = vpop.permute.xlu1 %7827 }
 0x54c   :  { %7417 = vmax.xlane.f32.xlu2 %v7416_v48 }
 0x54e   :  { %v7629_v7 = vpop.f32.mrf.mxu0  ;;  %v7648_v5 = vpop.f32.mrf.mxu1 }
 0x551   :  { %7420 = vmax.xlane.f32.xlu0 %v7419_v29 }
 0x554   :  { %7535 = vmax.xlane.f32.xlu2 %v7534_v56 }
 0x556   :  { %v7741_v58 = vpop.f32.mrf.mxu0  ;;  %v7770_v12 = vpop.f32.mrf.mxu1 }
 0x557   :  { %v18144_v28 = vmul.f32 0.125, %v7741_v58  ;;  %v18152_v57 = vmul.f32 0.125, %v7770_v12 }
 0x559   :  { %7538 = vmax.xlane.f32.xlu0 %v7537_v50  ;;  %v7776_v34 = vsel %vm7163_vm9, %v18144_v28, -inf  ;;  %v7779_v23 = vsel %vm7163_vm9, %v18152_v57, -inf }
 0x55c   :  { %7656 = vmax.xlane.f32.xlu2 %v7655_v42 }
 0x55e   :  { %v7743_v10 = vpop.f32.mrf.mxu0  ;;  %v7772_v31 = vpop.f32.mrf.mxu1 }
 0x561   :  { %7653 = vmax.xlane.f32.xlu0 %v7652_v17 }
 0x566   :  { %v7875_v53 = vpop.f32.mrf.mxu0  ;;  %v7896_v2 = vpop.f32.mrf.mxu1 }
 0x567   :  { %v18146_v19 = vmul.f32 0.125, %v7875_v53  ;;  %v18156_v49 = vmul.f32 0.125, %v7896_v2 }
 0x569   :  { %v7902_v32 = vsel %vm7163_vm9, %v18146_v19, -inf  ;;  %7777 = vmax.xlane.f32.xlu0 %v7776_v34  ;;  %v7905_v59 = vsel %vm7163_vm9, %v18156_v49, -inf }
 0x56a   :  { %7903 = vmax.xlane.f32.xlu1 %v7902_v32 }
 0x56e   :  { %v7877_v8 = vpop.f32.mrf.mxu0  ;;  %v7898_v26 = vpop.f32.mrf.mxu1 }
 0x571   :  { %7780 = vmax.xlane.f32.xlu0 %v7779_v23 }
 0x576   :  { %v7989_v60 = vpop.f32.mrf.mxu0  ;;  %v8014_v33 = vpop.f32.mrf.mxu1 }
 0x577   :  { %v18160_v11 = vmul.f32 0.125, %v7989_v60  ;;  %v18166_v1 = vmul.f32 0.125, %v8014_v33 }
 0x579   :  { %v8020_v41 = vsel %vm7163_vm9, %v18160_v11, -inf  ;;  %7906 = vmax.xlane.f32.xlu0 %v7905_v59  ;;  %v8023_v37 = vsel %vm7163_vm9, %v18166_v1, -inf }
 0x57a   :  { %8021 = vmax.xlane.f32.xlu1 %v8020_v41 }
 0x57e   :  { %v7169_v4 = vpop.xlane.xlu2 %7168  ;;  %v7991_v14 = vpop.f32.mrf.mxu0 }
 0x57f   :  { %v7171_v55 = vsub.f32 %v18081_v36, %v7169_v4  ;;  %v7166_v52 = vpop.xlane.xlu0 %7165  ;;  %v8016_v25 = vpop.f32.mrf.mxu1 }
 0x580   :  { %v7170_v30 = vsub.f32 %v18079_v9, %v7166_v52 }
 0x581   :  { %v7174_v16 = vmul.f32 1.442695, %v7171_v55  ;;  %8024 = vmax.xlane.f32.xlu0 %v8023_v37 }
 0x582   :  { %v7172_v62 = vmul.f32 1.442695, %v7170_v30 }
 0x583   :  { %16716 = vpow2.f32 %v7174_v16 }
 0x584   :  { %16718 = vpow2.f32 %v7172_v62 }
 0x586   :  { %v8113_v48 = vpop.f32.mrf.mxu0  ;;  %v18209_v16 = vpop.permute.xlu2 %7580 }
 0x587   :  { %v8132_v7 = vpop.f32.mrf.mxu1  ;;  %v18184_v50 = vmul.f32 0.125, %v8113_v48 }
 0x588   :  { %v18182_v56 = vmul.f32 0.125, %v8132_v7 }
 0x589   :  { %v18174_v5 = vpop.eup %16716  ;;  %v8138_v53 = vsel %vm7163_vm9, %v18184_v50, -inf }
 0x58a   :  { %v18176_v29 = vpop.eup %16718  ;;  %v7179_v36 = vsel %vm7163_vm9, %v18174_v5, 0.0  ;;  %v8141_v17 = vsel %vm7163_vm9, %v18182_v56, -inf }
 0x58b   :  { %v7176_v9 = vsel %vm7163_vm9, %v18176_v29, 0.0  ;;  %7180 = vadd.xlane.f32.xlu1 %v7179_v36 }
 0x58c   :  { %7177 = vadd.xlane.f32.xlu2 %v7176_v9 }
 0x58e   :  { %v7291_v58 = vpop.xlane.xlu1 %7290  ;;  %v8115_v12 = vpop.f32.mrf.mxu0 }
 0x58f   :  { %v7295_v42 = vsub.f32 %v18095_v39, %v7291_v58  ;;  %v8134_v10 = vpop.f32.mrf.mxu1 }
 0x591   :  { %v7297_v31 = vmul.f32 1.442695, %v7295_v42  ;;  %v18203_v52 = vpop.permute.xlu0 %7803 }
 0x593   :  { %16720 = vpow2.f32 %v7297_v31  ;;  %8142 = vmax.xlane.f32.xlu1 %v8141_v17 }
 0x594   :  { %8139 = vmax.xlane.f32.xlu2 %v8138_v53 }
 0x596   :  { %v8227_v2 = vpop.f32.mrf.mxu0 }
 0x597   :  { %v18191_v34 = vmul.f32 0.125, %v8227_v2  ;;  %v8256_v32 = vpop.f32.mrf.mxu1 }
 0x598   :  { %v18218_v2 = vmul.f32 0.125, %v8256_v32 }
 0x599   :  { %v18193_v8 = vpop.eup %16720  ;;  %v8262_v39 = vsel %vm7163_vm9, %v18191_v34, -inf }
 0x59a   :  { %v7301_v26 = vsel %vm7163_vm9, %v18193_v8, 0.0 }
 0x59b   :  { %7302 = vadd.xlane.f32.xlu1 %v7301_v26 }
 0x59c   :  { %8263 = vmax.xlane.f32.xlu2 %v8262_v39 }
 0x59e   :  { %v8229_v23 = vpop.f32.mrf.mxu0 }
 0x59f   :  { %v8258_v60 = vpop.f32.mrf.mxu1  ;;  %v8265_v23 = vsel %vm7163_vm9, %v18218_v2, -inf }
 0x5a6   :  { %v8361_v33 = vpop.f32.mrf.mxu0 }
 0x5a7   :  { %v18199_v59 = vmul.f32 0.125, %v8361_v33  ;;  %v8382_v41 = vpop.f32.mrf.mxu1 }
 0x5a8   :  { %v18227_v33 = vmul.f32 0.125, %v8382_v41 }
 0x5a9   :  { %v8388_v4 = vsel %vm7163_vm9, %v18199_v59, -inf }
 0x5aa   :  { %8389 = vmax.xlane.f32.xlu2 %v8388_v4 }
 0x5ae   :  { %v8363_v14 = vpop.f32.mrf.mxu0 }
 0x5af   :  { %v8384_v55 = vpop.f32.mrf.mxu1 }
 0x5b6   :  { %v18205_v25 = vpop.f32.mrf.mxu0 }
 0x5b7   :  { %v18207_v30 = vpop.f32.mrf.mxu1 }
 0x5bc   :  { %v7294_v37 = vpop.xlane.xlu0 %7293 }
 0x5bd   :  { %v7296_v62 = vsub.f32 %v18116_v51, %v7294_v37 }
 0x5be   :  { %v8477_v48 = vpop.f32.mrf.mxu0 }
 0x5bf   :  { %v8502_v7 = vpop.f32.mrf.mxu1  ;;  %v7299_v36 = vmul.f32 1.442695, %v7296_v62  ;;  %v7418_v9 = vpop.xlane.xlu2 %7417 }
 0x5c0   :  { %v7422_v10 = vsub.f32 %v18118_v63, %v7418_v9  ;;  %v8391_v7 = vsel %vm7163_vm9, %v18227_v33, -inf }
 0x5c1   :  { %16722 = vpow2.f32 %v7299_v36 }
 0x5c2   :  { %v7424_v51 = vmul.f32 1.442695, %v7422_v10 }
 0x5c4   :  { %v7421_v58 = vpop.xlane.xlu0 %7420 }
 0x5c5   :  { %v7423_v12 = vsub.f32 %v18124_v3, %v7421_v58 }
 0x5c7   :  { %v18213_v42 = vpop.eup %16722  ;;  %v7426_v31 = vmul.f32 1.442695, %v7423_v12  ;;  %v7536_v53 = vpop.xlane.xlu2 %7535 }
 0x5c8   :  { %v7304_v17 = vsel %vm7163_vm9, %v18213_v42, 0.0  ;;  %v7540_v3 = vsub.f32 %v18126_v24, %v7536_v53 }
 0x5c9   :  { %16724 = vpow2.f32 %v7426_v31  ;;  %7305 = vadd.xlane.f32.xlu0 %v7304_v17 }
 0x5ca   :  { %16726 = vpow2.f32 %v7424_v51  ;;  %v7542_v60 = vmul.f32 1.442695, %v7540_v3 }
 0x5cc   :  { %v7539_v39 = vpop.xlane.xlu0 %7538  ;;  %16728 = vpow2.f32 %v7542_v60 }
 0x5cd   :  { %v7541_v37 = vsub.f32 %v18132_v35, %v7539_v39 }
 0x5cf   :  { %v18220_v26 = vpop.eup %16724  ;;  %v7657_v4 = vpop.xlane.xlu2 %7656  ;;  %v7544_v41 = vmul.f32 1.442695, %v7541_v37 }
 0x5d0   :  { %v7431_v63 = vsel %vm7163_vm9, %v18220_v26, 0.0  ;;  %v18229_v14 = vpop.eup %16726  ;;  %v7659_v24 = vsub.f32 %v18134_v40, %v7657_v4 }
 0x5d1   :  { %8266 = vmax.xlane.f32.xlu0 %v8265_v23  ;;  %7432 = vadd.xlane.f32.xlu2 %v7431_v63  ;;  %v7428_v48 = vsel %vm7163_vm9, %v18229_v14, 0.0 }
 0x5d2   :  { %v7662_v36 = vmul.f32 1.442695, %v7659_v24 }
 0x5d4   :  { %v7654_v32 = vpop.xlane.xlu0 %7653 }
 0x5d5   :  { %v7658_v55 = vsub.f32 %v18140_v18, %v7654_v32  ;;  %v18238_v18 = vpop.eup %16728 }
 0x5d6   :  { %v7546_v31 = vsel %vm7163_vm9, %v18238_v18, 0.0 }
 0x5d7   :  { %v7660_v62 = vmul.f32 1.442695, %v7658_v55 }
 0x5d9   :  { %16730 = vpow2.f32 %v7660_v62  ;;  %7429 = vadd.xlane.f32.xlu0 %v7428_v48  ;;  %8392 = vmax.xlane.f32.xlu2 %v8391_v7 }
 0x5da   :  { %16732 = vpow2.f32 %v7544_v41 }
 0x5db   :  { %16734 = vpow2.f32 %v7662_v36 }
 0x5dc   :  { %v7778_v9 = vpop.xlane.xlu0 %7777 }
 0x5dd   :  { %v7904_v58 = vpop.xlane.xlu1 %7903  ;;  %v7782_v12 = vsub.f32 %v18144_v28, %v7778_v9 }
 0x5de   :  { %v7908_v35 = vsub.f32 %v18146_v19, %v7904_v58 }
 0x5df   :  { %v18241_v40 = vpop.eup %16730  ;;  %v7784_v53 = vmul.f32 1.442695, %v7782_v12 }
 0x5e0   :  { %v7910_v10 = vmul.f32 1.442695, %v7908_v35  ;;  %v7664_v17 = vsel %vm7163_vm9, %v18241_v40, 0.0  ;;  %v18248_v51 = vpop.eup %16732 }
 0x5e1   :  { %7547 = vadd.xlane.f32.xlu0 %v7546_v31  ;;  %7665 = vadd.xlane.f32.xlu1 %v7664_v17  ;;  %v18250_v39 = vpop.eup %16734  ;;  %v7549_v23 = vsel %vm7163_vm9, %v18248_v51, 0.0 }
 0x5e2   :  { %16736 = vpow2.f32 %v7910_v10  ;;  %v7667_v63 = vsel %vm7163_vm9, %v18250_v39, 0.0 }
 0x5e3   :  { %16738 = vpow2.f32 %v7784_v53 }
 0x5e4   :  { %v7781_v19 = vpop.xlane.xlu0 %7780 }
 0x5e5   :  { %v7783_v3 = vsub.f32 %v18152_v57, %v7781_v19 }
 0x5e7   :  { %v7786_v4 = vmul.f32 1.442695, %v7783_v3  ;;  %v18287_v3 = vmul.f32 0.125, %v18205_v25 }
 0x5e8   :  { %v18253_v28 = vpop.eup %16736 }
 0x5e9   :  { %7550 = vadd.xlane.f32.xlu0 %v7549_v23  ;;  %7668 = vadd.xlane.f32.xlu1 %v7667_v63  ;;  %v7914_v60 = vsel %vm7163_vm9, %v18253_v28, 0.0  ;;  %v18261_v37 = vpop.eup %16738  ;;  %16740 = vpow2.f32 %v7786_v4  ;;  %v7460_v4 = vrot.slane %v17927_v61, 4  ;;  %v18302_v61 = vmul.f32 0.125, %v18207_v30 }
 0x5ea   :  { %7915 = vadd.xlane.f32.xlu2 %v7914_v60  ;;  %v7788_v48 = vsel %vm7163_vm9, %v18261_v37, 0.0  ;;  %v6960_v30 = vadd.f32 %v18039_v54, %v5164_v44  ;;  %v7113_v54 = vpop.f32.mrf.mxu3 }
 0x5eb   :  { %v7465_v25 = vsel %vm7191_vm8, %v7460_v4, 0 }
 0x5ec   :  { %v7907_v32 = vpop.xlane.xlu0 %7906 }
 0x5ed   :  { %v8022_v55 = vpop.xlane.xlu1 %8021  ;;  %v7909_v24 = vsub.f32 %v18156_v49, %v7907_v32 }
 0x5ee   :  { %v8026_v57 = vsub.f32 %v18160_v11, %v8022_v55  ;;  %v7440_v55 = vrot.slane %v17917_v0, 4 }
 0x5ef   :  { %v7912_v7 = vmul.f32 1.442695, %v7909_v24  ;;  %v18267_v36 = vpop.eup %16740 }
 0x5f0   :  { %v8028_v62 = vmul.f32 1.442695, %v8026_v57  ;;  %v7791_v11 = vsel %vm7163_vm9, %v18267_v36, 0.0 }
 0x5f1   :  { %7789 = vadd.xlane.f32.xlu1 %v7788_v48 }
 0x5f2   :  { %16742 = vpow2.f32 %v8028_v62  ;;  %v8506_v62 = vsel %vm7163_vm9, %v18287_v3, -inf }
 0x5f3   :  { %16744 = vpow2.f32 %v7912_v7 }
 0x5f4   :  { %v8025_v41 = vpop.xlane.xlu0 %8024 }
 0x5f5   :  { %v8027_v9 = vsub.f32 %v18166_v1, %v8025_v41 }
 0x5f7   :  { %v8030_v58 = vmul.f32 1.442695, %v8027_v9 }
 0x5f8   :  { %v18270_v35 = vpop.eup %16742 }
 0x5f9   :  { %16746 = vpow2.f32 %v8030_v58  ;;  %7792 = vadd.xlane.f32.xlu1 %v7791_v11  ;;  %v8032_v49 = vsel %vm7163_vm9, %v18270_v35, 0.0  ;;  %v18276_v12 = vpop.eup %16744  ;;  %v7560_v58 = vrot.slane %v18158_v38, 4  ;;  %v8287_v38 = vunpack.c.l.b16 %v18075_v22 }
 0x5fa   :  { %8033 = vadd.xlane.f32.xlu2 %v8032_v49  ;;  %v7917_v17 = vsel %vm7163_vm9, %v18276_v12, 0.0 }
 0x5fd   :  { %8044 = vrot.lane.b32.xlu0 %v18000_v46, %s17133_s8 }
 0x5fe   :  { %v7181_v10 = vpop.xlane.xlu1 %7180 }
 0x5ff   :  { %v7178_v1 = vpop.xlane.xlu2 %7177  ;;  %16748 = vrcp.f32 %v7181_v10  ;;  %v18280_v31 = vpop.eup %16746  ;;  %v7565_v10 = vsel %vm7191_vm8, %v7560_v58, 0 }
 0x600   :  { %16750 = vrcp.f32 %v7178_v1  ;;  %v8035_v53 = vsel %vm7163_vm9, %v18280_v31, 0.0 }
 0x601   :  { %7918 = vadd.xlane.f32.xlu1 %v7917_v17  ;;  %v7099_v17 = vpop.f32.mrf.mxu2 }
 0x602   :  { %8036 = vadd.xlane.f32.xlu2 %v8035_v53  ;;  %v7100_v15 = vadd.f32 %v7099_v17, %v18073_v21 }
 0x605   :  { %v16749_v19 = vpop.eup %16748 }
 0x606   :  { %v16751_v23 = vpop.eup %16750  ;;  %v7185_v63 = vmul.f32 %v16749_v19, %v18174_v5  ;;  %v18290_v60 = vpop.xlane.xlu1 %8142  ;;  %v7445_v5 = vsel %vm7191_vm8, %v7440_v55, 0  ;;  %v8288_v19 = vpack.c.b16 %v8287_v38, %v8287_v38 }
 0x607   :  { %v7184_v32 = vmul.f32 %v16751_v23, %v18176_v29  ;;  %v8509_v29 = vsel %vm7163_vm9, %v18302_v61, -inf  ;;  %v8140_v48 = vpop.xlane.xlu2 %8139 }
 0x608   :  { %v7187_v57 = vpack.c.bf16 %v7185_v63, %v7185_v63  ;;  %v8144_v41 = vsub.f32 %v18184_v50, %v8140_v48 }
 0x609   :  { %v7186_v24 = vpack.c.bf16 %v7184_v32, %v7184_v32  ;;  %8507 = vmax.xlane.f32.xlu1 %v8506_v62  ;;  %v8145_v62 = vsub.f32 %v18182_v56, %v18290_v60 }
 0x60a   :  { %14343 = vmatmul.msk.bf16.vlgmr.msrb.gmra.mxu3 %vm7163_vm9, %v7187_v57  ;;  %v8146_v49 = vmul.f32 1.442695, %v8144_v41 }
 0x60b   :  { %14342 = vmatmul.msk.bf16.vlgmr.msrb.gmra.mxu2 %vm7163_vm9, %v7186_v24  ;;  %7474 = vmatpush.bf16.msrb.mxu3 %v7465_v25  ;;  %v8148_v48 = vmul.f32 1.442695, %v8145_v62 }
 0x60c   :  { %7454 = vmatpush.bf16.msrb.mxu2 %v7445_v5 }
 0x60e   :  { %v7303_v0 = vpop.xlane.xlu1 %7302 }
 0x60f   :  { %16752 = vrcp.f32 %v7303_v0  ;;  %v8264_v63 = vpop.xlane.xlu2 %8263 }
 0x610   :  { %16754 = vpow2.f32 %v8146_v49  ;;  %v8268_v32 = vsub.f32 %v18191_v34, %v8264_v63  ;;  %v7582_v34 = vrot.slane %v18209_v16, 4 }
 0x611   :  { %8510 = vmax.xlane.f32.xlu1 %v8509_v29 }
 0x612   :  { %v8270_v55 = vmul.f32 1.442695, %v8268_v32  ;;  %v7587_v41 = vsel %vm7191_vm8, %v7582_v34, 0  ;;  %v7809_v34 = vsel %vm7191_vm8, %v18203_v52, 0  ;;  %v7926_v52 = vrot.slane %v18000_v46, 4 }
 0x614   :  { %16756 = vpow2.f32 %v8270_v55 }
 0x615   :  { %v16753_v7 = vpop.eup %16752 }
 0x616   :  { %v7309_v9 = vmul.f32 %v16753_v7, %v18193_v8  ;;  %v18316_v50 = vpop.eup %16754  ;;  %v6974_v8 = vadd.f32 %v18041_v13, %v6960_v30  ;;  %v7114_v13 = vadd.f32 %v7113_v54, %v7100_v15 }
 0x617   :  { %v8150_v53 = vsel %vm7163_vm9, %v18316_v50, 0.0 }
 0x618   :  { %v7311_v11 = vpack.c.bf16 %v7309_v9, %v7309_v9  ;;  %v6988_v1 = vadd.f32 %v18050_v6, %v6974_v8 }
 0x61a   :  { %8066 = vrot.lane.b32.xlu2 %v18010_v47, %s17133_s8  ;;  %v7002_v23 = vadd.f32 %v18052_v27, %v6988_v1 }
 0x61b   :  { %14346 = vmatmul.msk.bf16.vlgmr.msra.gmra.mxu2 %vm7163_vm9, %v7311_v11 }
 0x61c   :  { %7574 = vmatpush.bf16.msra.mxu2 %v7565_v10  ;;  %v7016_v44 = vadd.f32 %v18062_v20, %v7002_v23  ;;  %v18333_v20 = vpop.eup %16756 }
 0x61d   :  { %v8390_v21 = vpop.xlane.xlu2 %8389 }
 0x61e   :  { %v7030_v4 = vadd.f32 %v18064_v43, %v7016_v44  ;;  %v8274_v43 = vsel %vm7163_vm9, %v18333_v20, 0.0  ;;  %v8394_v10 = vsub.f32 %v18199_v59, %v8390_v21  ;;  %v7680_v59 = vsel %vm7191_vm8, %v18000_v46, 0 }
 0x620   :  { %v18328_v6 = vpack.c.bf16 %v7114_v13, %v7030_v4 }
 0x622   :  { %v8311_v57 = vunpack.c.l.b16 %v18328_v6 }
 0x624   :  { %v8312_v27 = vpack.c.b16 %v8311_v57, %v8311_v57 }
 0x627   :  { %8151 = vadd.xlane.f32.xlu0 %v8150_v53 }
 0x62a   :  { %8289 = vrot.lane.b32.xlu1 %v8288_v19, %s17133_s8 }
 0x63b   :  { %8313 = vrot.lane.b32.xlu0 %v8312_v27, %s17133_s8 }
 0x63c   :  { %v7306_v24 = vpop.xlane.xlu0 %7305 }
 0x63d   :  { %16758 = vrcp.f32 %v7306_v24 }
 0x643   :  { %v16759_v25 = vpop.eup %16758  ;;  %8275 = vadd.xlane.f32.xlu2 %v8274_v43 }
 0x644   :  { %v7310_v5 = vmul.f32 %v16759_v25, %v18213_v42  ;;  %v8267_v0 = vpop.xlane.xlu0 %8266  ;;  %v7433_v29 = vpop.xlane.xlu2 %7432  ;;  %v7833_v25 = vsel %vm7191_vm8, %v18172_v45, 0 }
 0x645   :  { %16760 = vrcp.f32 %v7433_v29  ;;  %v8269_v56 = vsub.f32 %v18218_v2, %v8267_v0 }
 0x646   :  { %v7312_v7 = vpack.c.bf16 %v7310_v5, %v7310_v5  ;;  %16762 = vpow2.f32 %v8148_v48 }
 0x647   :  { %v8272_v58 = vmul.f32 1.442695, %v8269_v56 }
 0x648   :  { %14347 = vmatmul.msk.bf16.vlgmr.msra.gmra.mxu3 %vm7163_vm9, %v7312_v7  ;;  %v7946_v7 = vrot.slane %v18010_v47, 4 }
 0x649   :  { %7596 = vmatpush.bf16.msra.mxu3 %v7587_v41 }
 0x64b   :  { %v16761_v42 = vpop.eup %16760 }
 0x64c   :  { %v7430_v60 = vpop.xlane.xlu0 %7429  ;;  %v8393_v9 = vpop.xlane.xlu2 %8392  ;;  %v7437_v30 = vmul.f32 %v16761_v42, %v18220_v26  ;;  %v7699_v26 = vsel %vm7191_vm8, %v18010_v47, 0 }
 0x64d   :  { %16764 = vrcp.f32 %v7430_v60  ;;  %v8395_v16 = vsub.f32 %v18227_v33, %v8393_v9  ;;  %v18345_v49 = vpop.eup %16762  ;;  %v8396_v33 = vmul.f32 1.442695, %v8394_v10  ;;  %v7931_v9 = vsel %vm7191_vm8, %v7926_v52, 0 }
 0x64e   :  { %v8153_v2 = vsel %vm7163_vm9, %v18345_v49, 0.0  ;;  %v7439_v53 = vpack.c.bf16 %v7437_v30, %v7437_v30  ;;  %v8412_v52 = vrot.slane %v18075_v22, 4 }
 0x64f   :  { %v8398_v11 = vmul.f32 1.442695, %v8395_v16  ;;  %v7951_v16 = vsel %vm7191_vm8, %v7946_v7, 0 }
 0x651   :  { %16766 = vpow2.f32 %v8398_v11 }
 0x652   :  { %16768 = vpow2.f32 %v8272_v58 }
 0x653   :  { %v16765_v8 = vpop.eup %16764 }
 0x654   :  { %v7436_v38 = vmul.f32 %v16765_v8, %v18229_v14  ;;  %v7548_v1 = vpop.xlane.xlu0 %7547  ;;  %v7666_v17 = vpop.xlane.xlu1 %7665  ;;  %8154 = vadd.xlane.f32.xlu1 %v8153_v2 }
 0x655   :  { %16770 = vrcp.f32 %v7548_v1 }
 0x656   :  { %v7438_v19 = vpack.c.bf16 %v7436_v38, %v7436_v38  ;;  %16772 = vpow2.f32 %v8396_v33 }
 0x657   :  { %v18352_v23 = vpop.eup %16766 }
 0x658   :  { %v18354_v15 = vpop.eup %16768  ;;  %14350 = vmatmul.msk.bf16.vlgmr.msrb.gmra.mxu2 %vm7163_vm9, %v7438_v19  ;;  %14351 = vmatmul.msk.bf16.vlgmr.msrb.gmra.mxu3 %vm7163_vm9, %v7439_v53  ;;  %v8403_v14 = vsel %vm7163_vm9, %v18352_v23, 0.0 }
 0x659   :  { %7689 = vmatpush.bf16.msrb.mxu2 %v7680_v59  ;;  %7708 = vmatpush.bf16.msrb.mxu3 %v7699_v26  ;;  %v8277_v44 = vsel %vm7163_vm9, %v18354_v15, 0.0 }
 0x65a   :  { %8404 = vadd.xlane.f32.xlu2 %v8403_v14 }
 0x65b   :  { %v16771_v63 = vpop.eup %16770 }
 0x65c   :  { %v7551_v54 = vpop.xlane.xlu0 %7550  ;;  %v7669_v13 = vpop.xlane.xlu1 %7668  ;;  %8278 = vadd.xlane.f32.xlu1 %v8277_v44  ;;  %v7554_v32 = vmul.f32 %v16771_v63, %v18238_v18 }
 0x65d   :  { %16774 = vrcp.f32 %v7551_v54  ;;  %v18366_v4 = vpop.eup %16772  ;;  %v7916_v24 = vpop.xlane.xlu2 %7915 }
 0x65e   :  { %v8400_v57 = vsel %vm7163_vm9, %v18366_v4, 0.0  ;;  %v7556_v62 = vpack.c.bf16 %v7554_v32, %v7554_v32  ;;  %16776 = vrcp.f32 %v7666_v17 }
 0x65f   :  { %16778 = vrcp.f32 %v7669_v13 }
 0x663   :  { %v16775_v55 = vpop.eup %16774 }
 0x664   :  { %v7555_v27 = vmul.f32 %v16775_v55, %v18248_v51  ;;  %v7790_v21 = vpop.xlane.xlu1 %7789  ;;  %8401 = vadd.xlane.f32.xlu1 %v8400_v57  ;;  %v16777_v5 = vpop.eup %16776 }
 0x665   :  { %v16779_v0 = vpop.eup %16778  ;;  %v7672_v29 = vmul.f32 %v16777_v5, %v18241_v40  ;;  %16780 = vrcp.f32 %v7790_v21  ;;  %v8166_v21 = vsel %vm7191_vm8, %v18075_v22, 0 }
 0x666   :  { %v7557_v43 = vpack.c.bf16 %v7555_v27, %v7555_v27  ;;  %v7673_v45 = vmul.f32 %v16779_v0, %v18250_v39 }
 0x667   :  { %v7674_v41 = vpack.c.bf16 %v7672_v29, %v7672_v29 }
 0x668   :  { %14354 = vmatmul.msk.bf16.vlgmr.msra.gmra.mxu2 %vm7163_vm9, %v7556_v62  ;;  %14355 = vmatmul.msk.bf16.vlgmr.msra.gmra.mxu3 %vm7163_vm9, %v7557_v43  ;;  %v7675_v56 = vpack.c.bf16 %v7673_v45, %v7673_v45 }
 0x669   :  { %7818 = vmatpush.bf16.msra.mxu2 %v7809_v34  ;;  %7842 = vmatpush.bf16.msra.mxu3 %v7833_v25 }
 0x66b   :  { %v16781_v47 = vpop.eup %16780 }
 0x66c   :  { %v7793_v18 = vpop.xlane.xlu1 %7792  ;;  %v7796_v10 = vmul.f32 %v16781_v47, %v18261_v37 }
 0x66d   :  { %v18378_v51 = vpop.xlane.xlu2 %8033  ;;  %16782 = vrcp.f32 %v7793_v18 }
 0x66e   :  { %v7798_v17 = vpack.c.bf16 %v7796_v10, %v7796_v10 }
 0x66f   :  { %v8045_v42 = vpop.permute.xlu0 %8044 }
 0x670   :  { %v8046_v8 = vrot.slane %v8045_v42, 4 }
 0x672   :  { %v8051_v19 = vsel %vm7191_vm8, %v8046_v8, 0 }
 0x673   :  { %v16783_v39 = vpop.eup %16782 }
 0x674   :  { %v7919_v48 = vpop.xlane.xlu1 %7918  ;;  %v7797_v30 = vmul.f32 %v16783_v39, %v18267_v36  ;;  %v8432_v39 = vrot.slane %v18328_v6, 4 }
 0x675   :  { %v8037_v60 = vpop.xlane.xlu2 %8036 }
 0x678   :  { %14358 = vmatmul.msk.bf16.vlgmr.msrb.gmra.mxu2 %vm7163_vm9, %v7674_v41  ;;  %14359 = vmatmul.msk.bf16.vlgmr.msrb.gmra.mxu3 %vm7163_vm9, %v7675_v56  ;;  %v8417_v56 = vsel %vm7191_vm8, %v8412_v52, 0 }
 0x679   :  { %7940 = vmatpush.bf16.msrb.mxu2 %v7931_v9  ;;  %7960 = vmatpush.bf16.msrb.mxu3 %v7951_v16 }
 0x67c   :  { %v8508_v40 = vpop.xlane.xlu1 %8507 }
 0x67d   :  { %v8512_v46 = vsub.f32 %v18287_v3, %v8508_v40  ;;  %8552 = vrot.lane.b32.xlu1 %v18328_v6, %s17133_s8  ;;  %v8067_v11 = vpop.permute.xlu2 %8066  ;;  %v7799_v3 = vpack.c.bf16 %v7797_v30, %v7797_v30 }
 0x67e   :  { %v8068_v2 = vrot.slane %v8067_v11, 4 }
 0x67f   :  { %v8514_v58 = vmul.f32 1.442695, %v8512_v46 }
 0x680   :  { %v8073_v59 = vsel %vm7191_vm8, %v8068_v2, 0 }
 0x681   :  { %16784 = vpow2.f32 %v8514_v58 }
 0x682   :  { %16786 = vrcp.f32 %v7916_v24  ;;  %v8185_v24 = vsel %vm7191_vm8, %v18328_v6, 0 }
 0x683   :  { %16788 = vrcp.f32 %v7919_v48 }
 0x684   :  { %v8511_v38 = vpop.xlane.xlu1 %8510 }
 0x685   :  { %v8513_v1 = vsub.f32 %v18302_v61, %v8511_v38 }
 0x687   :  { %v18394_v33 = vpop.eup %16784  ;;  %v8516_v53 = vmul.f32 1.442695, %v8513_v1 }
 0x688   :  { %14362 = vmatmul.msk.bf16.vlgmr.msra.gmra.mxu2 %vm7163_vm9, %v7798_v17  ;;  %14363 = vmatmul.msk.bf16.vlgmr.msra.gmra.mxu3 %vm7163_vm9, %v7799_v3  ;;  %v8518_v37 = vsel %vm7163_vm9, %v18394_v33, 0.0  ;;  %v16787_v61 = vpop.eup %16786 }
 0x689   :  { %16790 = vpow2.f32 %v8516_v53  ;;  %8060 = vmatpush.bf16.msra.mxu2 %v8051_v19  ;;  %8082 = vmatpush.bf16.msra.mxu3 %v8073_v59  ;;  %v16789_v14 = vpop.eup %16788  ;;  %v7922_v13 = vmul.f32 %v16787_v61, %v18253_v28 }
 0x68a   :  { %8519 = vadd.xlane.f32.xlu2 %v8518_v37  ;;  %v7923_v63 = vmul.f32 %v16789_v14, %v18276_v12  ;;  %16792 = vrcp.f32 %v18378_v51 }
 0x68b   :  { %v7924_v57 = vpack.c.bf16 %v7922_v13, %v7922_v13  ;;  %16794 = vrcp.f32 %v8037_v60 }
 0x68c   :  { %v7925_v27 = vpack.c.bf16 %v7923_v63, %v7923_v63 }
 0x68d   :  { %v7223_v36 = vpop.f32.mrf.mxu3 }
 0x68e   :  { %v7204_v26 = vpop.f32.mrf.mxu2  ;;  %7228 = vst.msk [vmem:[#allocation2 + $0x30] sm:$0xff] %vm7122_vm7, %v7223_v36 }
 0x68f   :  { %7227 = vst.msk [vmem:[#allocation2] sm:$0xff] %vm7122_vm7, %v7204_v26  ;;  %v18404_v44 = vpop.eup %16790 }
 0x690   :  { %v8521_v54 = vsel %vm7163_vm9, %v18404_v44, 0.0  ;;  %v16793_v12 = vpop.eup %16792 }
 0x691   :  { %8522 = vadd.xlane.f32.xlu0 %v8521_v54  ;;  %v16795_v62 = vpop.eup %16794  ;;  %v8040_v43 = vmul.f32 %v16793_v12, %v18270_v35 }
 0x692   :  { %v8041_v25 = vmul.f32 %v16795_v62, %v18280_v31 }
 0x693   :  { %v8042_v5 = vpack.c.bf16 %v8040_v43, %v8040_v43 }
 0x694   :  { %v8043_v0 = vpack.c.bf16 %v8041_v25, %v8041_v25 }
 0x695   :  { %v7225_v32 = vpop.f32.mrf.mxu3 }
 0x696   :  { %v7206_v55 = vpop.f32.mrf.mxu2 }
 0x698   :  { %14366 = vmatmul.msk.bf16.vlgmr.msrb.gmra.mxu2 %vm7163_vm9, %v7924_v57  ;;  %14367 = vmatmul.msk.bf16.vlgmr.msrb.gmra.mxu3 %vm7163_vm9, %v7925_v27  ;;  %v14558_v57 = vld [vmem:[#allocation14 + $0x150] sm:$0xf]  ;;  %v16449_v27 = vld [vmem:[#allocation14 + $0x164] sm:$0xf0] }
 0x699   :  { %8175 = vmatpush.bf16.msrb.mxu2 %v8166_v21  ;;  %8194 = vmatpush.bf16.msrb.mxu3 %v8185_v24 }
 0x69a   :  { %v8152_v34 = vpop.xlane.xlu0 %8151 }
 0x69b   :  { %16796 = vrcp.f32 %v8152_v34 }
 0x69c   :  { %v8290_v18 = vpop.permute.xlu1 %8289 }
 0x69d   :  { %v8295_v29 = vsel %vm7191_vm8, %v8290_v18, 0 }
 0x69e   :  { %v7333_v28 = vpop.f32.mrf.mxu2 }
 0x6a1   :  { %v16797_v45 = vpop.eup %16796 }
 0x6a2   :  { %8530 = vrot.lane.b32.xlu2 %v18075_v22, %s17133_s8  ;;  %v8158_v48 = vmul.f32 %v16797_v45, %v18316_v50 }
 0x6a4   :  { %v8160_v7 = vpack.c.bf16 %v8158_v48, %v8158_v48  ;;  %v16437_v48 = vld [vmem:[#allocation14 + $0x104] sm:$0xf0] }
 0x6a6   :  { %v7335_v51 = vpop.f32.mrf.mxu2 }
 0x6a8   :  { %14370 = vmatmul.msk.bf16.vlgmr.msra.gmra.mxu2 %vm7163_vm9, %v8042_v5  ;;  %14371 = vmatmul.msk.bf16.vlgmr.msra.gmra.mxu3 %vm7163_vm9, %v8043_v0 }
 0x6a9   :  { %8304 = vmatpush.bf16.msra.mxu2 %v8295_v29  ;;  %v14534_v29 = vld [vmem:[#allocation14 + $0x120] sm:$0xf] }
 0x6aa   :  { %7363 = vrot.lane.b32.xlu2 %v7333_v28, %s17133_s8  ;;  %v14559_v28 = vor.u32 %v16449_v27, %v14558_v57 }
 0x6ac   :  { %10344 = vmatpush.bf16.msrb.mxu0 %v14559_v28  ;;  %v16509_v28 = vld [vmem:[#allocation14 + $0x344] sm:$0xf0] }
 0x6ad   :  { %v8314_v35 = vpop.permute.xlu0 %8313 }
 0x6ae   :  { %v8319_v31 = vsel %vm7191_vm8, %v8314_v35, 0  ;;  %v16443_v35 = vld [vmem:[#allocation14 + $0x134] sm:$0xf0] }
 0x6af   :  { %8328 = vmatpush.bf16.msra.mxu3 %v8319_v31  ;;  %v14510_v31 = vld [vmem:[#allocation14 + $0xf0] sm:$0xf]  ;;  %v14535_v45 = vor.u32 %v16443_v35, %v14534_v29  ;;  %v14560_v29 = vld [vmem:[#allocation14 + $0x168] sm:$0xf0] }
 0x6b1   :  { %10345 = vmatpush.bf16.msrb.mxu0 %v14535_v45  ;;  %v14536_v45 = vld [vmem:[#allocation14 + $0x138] sm:$0xf0] }
 0x6b6   :  { %v8276_v41 = vpop.xlane.xlu2 %8275 }
 0x6b7   :  { %16798 = vrcp.f32 %v8276_v41 }
 0x6b8   :  { %14374 = vmatmul.msk.bf16.vlgmr.msrb.gmra.mxu2 %vm7163_vm9, %v8160_v7  ;;  %v14511_v7 = vor.u32 %v16437_v48, %v14510_v31 }
 0x6b9   :  { %8426 = vmatpush.bf16.msrb.mxu2 %v8417_v56 }
 0x6ba   :  { %10346 = vmatpush.bf16.msrb.mxu0 %v14511_v7  ;;  %v14512_v7 = vld [vmem:[#allocation14 + $0x108] sm:$0xf0] }
 0x6bd   :  { %v16799_v60 = vpop.eup %16798 }
 0x6be   :  { %v8282_v9 = vmul.f32 %v16799_v60, %v18333_v20  ;;  %v8437_v20 = vsel %vm7191_vm8, %v8432_v39, 0  ;;  %v16431_v60 = vld [vmem:[#allocation14 + $0xd4] sm:$0xf0] }
 0x6bf   :  { %v16419_v39 = vld [vmem:[#allocation14 + $0x74] sm:$0xf0] }
 0x6c0   :  { %v8284_v16 = vpack.c.bf16 %v8282_v9, %v8282_v9  ;;  %v14462_v9 = vld [vmem:[#allocation14 + $0x90] sm:$0xf] }
 0x6c7   :  { %v8155_v40 = vpop.xlane.xlu1 %8154 }
 0x6c8   :  { %16800 = vrcp.f32 %v8155_v40  ;;  %14378 = vmatmul.msk.bf16.vlgmr.msra.gmra.mxu2 %vm7163_vm9, %v8284_v16  ;;  %v16425_v40 = vld [vmem:[#allocation14 + $0xa4] sm:$0xf0] }
 0x6cb   :  { %v7357_v46 = vpop.f32.mrf.mxu3 }
 0x6cc   :  { %7365 = vrot.lane.b32.xlu0 %v7357_v46, %s17133_s8  ;;  %v14463_v46 = vor.u32 %v16425_v40, %v14462_v9  ;;  %v16422_v40 = vld [vmem:[#allocation14 + $0x94] sm:$0xf] }
 0x6cd   :  { %v8405_v38 = vpop.xlane.xlu2 %8404 }
 0x6ce   :  { %v16801_v22 = vpop.eup %16800 }
 0x6cf   :  { %v8159_v50 = vmul.f32 %v16801_v22, %v18345_v49  ;;  %v8279_v47 = vpop.xlane.xlu1 %8278 }
 0x6d0   :  { %16802 = vrcp.f32 %v8279_v47  ;;  %v14438_v47 = vld [vmem:[#allocation14 + $0x60] sm:$0xf] }
 0x6d1   :  { %v8161_v58 = vpack.c.bf16 %v8159_v50, %v8159_v50 }
 0x6d3   :  { %v7359_v42 = vpop.f32.mrf.mxu3  ;;  %14375 = vmatmul.msk.bf16.vlgmr.msrb.gmra.mxu3 %vm7163_vm9, %v8161_v58  ;;  %v14439_v58 = vor.u32 %v16419_v39, %v14438_v47  ;;  %v16593_v47 = vld [vmem:[#allocation14 + $0x5e4] sm:$0xf0] }
 0x6d4   :  { %8446 = vmatpush.bf16.msrb.mxu3 %v8437_v20  ;;  %v14414_v42 = vld [vmem:[#allocation14 + $0x30] sm:$0xf]  ;;  %v16413_v20 = vld [vmem:[#allocation14 + $0x44] sm:$0xf0] }
 0x6d6   :  { %v16803_v10 = vpop.eup %16802 }
 0x6d7   :  { %v8402_v11 = vpop.xlane.xlu1 %8401  ;;  %v8283_v49 = vmul.f32 %v16803_v10, %v18354_v15 }
 0x6d8   :  { %16804 = vrcp.f32 %v8402_v11  ;;  %v14415_v11 = vor.u32 %v16413_v20, %v14414_v42  ;;  %v14440_v42 = vld [vmem:[#allocation14 + $0x78] sm:$0xf0] }
 0x6d9   :  { %v8285_v1 = vpack.c.bf16 %v8283_v49, %v8283_v49  ;;  %16806 = vrcp.f32 %v8405_v38  ;;  %v16407_v49 = vld [vmem:[#allocation14 + $0x14] sm:$0xf0] }
 0x6db   :  { %v7456_v30 = vpop.f32.mrf.mxu2  ;;  %v7476_v8 = vpop.f32.mrf.mxu3 }
 0x6dc   :  { %7480 = vst.msk [vmem:[#allocation2 + $0x8] sm:$0xff] %vm7122_vm7, %v7456_v30 }
 0x6dd   :  { %7481 = vst.msk [vmem:[#allocation2 + $0x38] sm:$0xff] %vm7122_vm7, %v7476_v8  ;;  %v14390_v8 = vld [vmem:[#allocation14] sm:$0xf] }
 0x6de   :  { %v16805_v6 = vpop.eup %16804 }
 0x6df   :  { %v8408_v2 = vmul.f32 %v16805_v6, %v18366_v4  ;;  %v16807_v19 = vpop.eup %16806  ;;  %v14391_v6 = vor.u32 %v16407_v49, %v14390_v8  ;;  %v16410_v8 = vld [vmem:[#allocation14 + $0x34] sm:$0xf] }
 0x6e0   :  { %v8409_v15 = vmul.f32 %v16807_v19, %v18352_v23  ;;  %v16539_v19 = vld [vmem:[#allocation14 + $0x434] sm:$0xf0] }
 0x6e1   :  { %v8410_v17 = vpack.c.bf16 %v8408_v2, %v8408_v2 }
 0x6e2   :  { %v8411_v4 = vpack.c.bf16 %v8409_v15, %v8409_v15 }
 0x6e3   :  { %v7458_v3 = vpop.f32.mrf.mxu2  ;;  %v7478_v53 = vpop.f32.mrf.mxu3  ;;  %14379 = vmatmul.msk.bf16.vlgmr.msra.gmra.mxu3 %vm7163_vm9, %v8285_v1  ;;  %14382 = vmatmul.msk.bf16.vlgmr.msrb.gmra.mxu2 %vm7163_vm9, %v8410_v17  ;;  %v14942_v1 = vld [vmem:[#allocation14 + $0x450] sm:$0xf]  ;;  %v16545_v17 = vld [vmem:[#allocation14 + $0x464] sm:$0xf0] }
 0x6e4   :  { %v14943_v3 = vor.u32 %v16545_v17, %v14942_v1  ;;  %v14918_v53 = vld [vmem:[#allocation14 + $0x420] sm:$0xf] }
 0x6e5   :  { %v14919_v15 = vor.u32 %v16539_v19, %v14918_v53  ;;  %v14392_v53 = vld [vmem:[#allocation14 + $0x18] sm:$0xf0] }
 0x6eb   :  { %v18443_v59 = vpop.f32.mrf.mxu2  ;;  %v18445_v37 = vpop.f32.mrf.mxu3 }
 0x6ef   :  { %v8553_v36 = vpop.permute.xlu1 %8552 }
 0x6f0   :  { %v8554_v61 = vrot.slane %v8553_v36, 4 }
 0x6f2   :  { %v8559_v26 = vsel %vm7191_vm8, %v8554_v61, 0 }
 0x6f3   :  { %v7578_v14 = vpop.f32.mrf.mxu2  ;;  %v7600_v54 = vpop.f32.mrf.mxu3  ;;  %14383 = vmatmul.msk.bf16.vlgmr.msrb.gmra.mxu3 %vm7163_vm9, %v8411_v4  ;;  %v14894_v4 = vld [vmem:[#allocation14 + $0x3f0] sm:$0xf] }
 0x6f4   :  { %8568 = vmatpush.bf16.msra.mxu3 %v8559_v26  ;;  %v16533_v26 = vld [vmem:[#allocation14 + $0x404] sm:$0xf0]  ;;  %v14870_v54 = vld [vmem:[#allocation14 + $0x3c0] sm:$0xf] }
 0x6f5   :  { %v14895_v14 = vor.u32 %v16533_v26, %v14894_v4  ;;  %v15062_v4 = vld [vmem:[#allocation14 + $0x540] sm:$0xf]  ;;  %v16575_v26 = vld [vmem:[#allocation14 + $0x554] sm:$0xf0] }
 0x6fb   :  { %v7691_v13 = vpop.f32.mrf.mxu2  ;;  %v7710_v63 = vpop.f32.mrf.mxu3 }
 0x6fc   :  { %7714 = vst.msk [vmem:[#allocation2 + $0x10] sm:$0xff] %vm7122_vm7, %v7691_v13  ;;  %v16527_v13 = vld [vmem:[#allocation14 + $0x3d4] sm:$0xf0] }
 0x6fd   :  { %7715 = vst.msk [vmem:[#allocation2 + $0x40] sm:$0xff] %vm7122_vm7, %v7710_v63  ;;  %v8520_v32 = vpop.xlane.xlu2 %8519  ;;  %v14846_v63 = vld [vmem:[#allocation14 + $0x390] sm:$0xf] }
 0x6fe   :  { %16808 = vrcp.f32 %v8520_v32  ;;  %v14871_v32 = vor.u32 %v16527_v13, %v14870_v54  ;;  %v15038_v54 = vld [vmem:[#allocation14 + $0x510] sm:$0xf]  ;;  %v16569_v13 = vld [vmem:[#allocation14 + $0x524] sm:$0xf0] }
 0x703   :  { %v7693_v55 = vpop.f32.mrf.mxu2  ;;  %v7712_v23 = vpop.f32.mrf.mxu3 }
 0x704   :  { %v16809_v21 = vpop.eup %16808  ;;  %v8523_v24 = vpop.xlane.xlu0 %8522  ;;  %v16521_v55 = vld [vmem:[#allocation14 + $0x3a4] sm:$0xf0] }
 0x705   :  { %v8531_v12 = vpop.permute.xlu2 %8530  ;;  %16810 = vrcp.f32 %v8523_v24  ;;  %v8526_v62 = vmul.f32 %v16809_v21, %v18394_v33  ;;  %v14847_v23 = vor.u32 %v16521_v55, %v14846_v63  ;;  %v14822_v21 = vld [vmem:[#allocation14 + $0x360] sm:$0xf]  ;;  %v16515_v24 = vld [vmem:[#allocation14 + $0x374] sm:$0xf0]  ;;  %v15039_v63 = vor.u32 %v16569_v13, %v15038_v54  ;;  %v15230_v54 = vld [vmem:[#allocation14 + $0x690] sm:$0xf] }
 0x706   :  { %v8532_v43 = vrot.slane %v8531_v12, 4 }
 0x707   :  { %v8528_v34 = vpack.c.bf16 %v8526_v62, %v8526_v62 }
 0x708   :  { %v8537_v25 = vsel %vm7191_vm8, %v8532_v43, 0 }
 0x709   :  { %8546 = vmatpush.bf16.msra.mxu2 %v8537_v25 }
 0x70b   :  { %v16811_v18 = vpop.eup %16810  ;;  %v7820_v51 = vpop.f32.mrf.mxu2 }
 0x70c   :  { %v7844_v5 = vpop.f32.mrf.mxu3  ;;  %v8527_v0 = vmul.f32 %v16811_v18, %v18404_v44  ;;  %14386 = vmatmul.msk.bf16.vlgmr.msra.gmra.mxu2 %vm7163_vm9, %v8528_v34  ;;  %7850 = vrot.lane.b32.xlu2 %v7820_v51, %s17133_s8  ;;  %v14486_v44 = vld [vmem:[#allocation14 + $0xc0] sm:$0xf]  ;;  %v16503_v51 = vld [vmem:[#allocation14 + $0x314] sm:$0xf0] }
 0x70d   :  { %v7364_v33 = vpop.permute.xlu2 %7363  ;;  %v14487_v16 = vor.u32 %v16431_v60, %v14486_v44  ;;  %10372 = vmatpush.bf16.msrb.mxu2 %v14943_v3  ;;  %v14774_v18 = vld [vmem:[#allocation14 + $0x300] sm:$0xf]  ;;  %v16428_v44 = vld [vmem:[#allocation14 + $0xc4] sm:$0xf]  ;;  %v14488_v60 = vld [vmem:[#allocation14 + $0xd8] sm:$0xf0] }
 0x70e   :  { %v8529_v52 = vpack.c.bf16 %v8527_v0, %v8527_v0  ;;  %7370 = vst.msk [vmem:[#allocation2] sm:$0xff] %vm7369_vm10, %v7364_v33  ;;  %v16446_v0 = vld [vmem:[#allocation14 + $0x154] sm:$0xf]  ;;  %v16440_v33 = vld [vmem:[#allocation14 + $0x124] sm:$0xf]  ;;  %v14491_v9 = vor.u32 %v16428_v44, %v14488_v60 }
 0x70f   :  { %10347 = vmatpush.bf16.msrb.mxu0 %v14487_v16  ;;  %v14563_v35 = vor.u32 %v16446_v0, %v14560_v29  ;;  %v14539_v48 = vor.u32 %v16440_v33, %v14536_v45  ;;  %v16404_v3 = vld [vmem:[#allocation14 + $0x4] sm:$0xf]  ;;  %v14726_v0 = vld [vmem:[#allocation14 + $0x2a0] sm:$0xf]  ;;  %v16491_v29 = vld [vmem:[#allocation14 + $0x2b4] sm:$0xf0] }
 0x710   :  { %14387 = vmatmul.msk.bf16.vlgmr.msra.gmra.mxu3 %vm7163_vm9, %v8529_v52  ;;  %v16434_v52 = vld [vmem:[#allocation14 + $0xf4] sm:$0xf]  ;;  %v14395_v19 = vor.u32 %v16404_v3, %v14392_v53  ;;  %v14727_v33 = vor.u32 %v16491_v29, %v14726_v0  ;;  %v16635_v45 = vld [vmem:[#allocation14 + $0x734] sm:$0xf0]  ;;  %v15304_v44 = vld [vmem:[#allocation14 + $0x738] sm:$0xf0] }
 0x711   :  { %10373 = vmatpush.bf16.msrb.mxu2 %v14919_v15  ;;  %v14728_v3 = vld [vmem:[#allocation14 + $0x2b8] sm:$0xf0]  ;;  %v16608_v29 = vld [vmem:[#allocation14 + $0x664] sm:$0xf] }
 0x713   :  { %v7822_v41 = vpop.f32.mrf.mxu2  ;;  %10348 = vmatpush.bf16.msrb.mxu0 %v14463_v46  ;;  %v14464_v46 = vld [vmem:[#allocation14 + $0xa8] sm:$0xf0] }
 0x714   :  { %v7846_v56 = vpop.f32.mrf.mxu3  ;;  %7852 = vrot.lane.b32.xlu2 %v7844_v5, %s17133_s8  ;;  %v14775_v5 = vor.u32 %v16503_v51, %v14774_v18  ;;  %v14515_v41 = vor.u32 %v16434_v52, %v14512_v7  ;;  %v14990_v18 = vld [vmem:[#allocation14 + $0x4b0] sm:$0xf]  ;;  %v16557_v51 = vld [vmem:[#allocation14 + $0x4c4] sm:$0xf0] }
 0x715   :  { %10374 = vmatpush.bf16.msrb.mxu2 %v14895_v14  ;;  %v8584_v43 = vld [vmem:[#allocation2] sm:$0xff]  ;;  %v15063_v14 = vor.u32 %v16575_v26, %v15062_v4  ;;  %v15256_v4 = vld [vmem:[#allocation14 + $0x6d8] sm:$0xf0]  ;;  %v14654_v26 = vld [vmem:[#allocation14 + $0x210] sm:$0xf] }
 0x717   :  { %10349 = vmatpush.bf16.msrb.mxu0 %v14439_v58  ;;  %v16416_v58 = vld [vmem:[#allocation14 + $0x64] sm:$0xf] }
 0x718   :  { %v14443_v20 = vor.u32 %v16416_v58, %v14440_v42  ;;  %v16494_v58 = vld [vmem:[#allocation14 + $0x2d4] sm:$0xf]  ;;  %v14752_v42 = vld [vmem:[#allocation14 + $0x2e8] sm:$0xf0] }
 0x719   :  { %10375 = vmatpush.bf16.msrb.mxu2 %v14871_v32 }
 0x71b   :  { %v7942_v22 = vpop.f32.mrf.mxu2  ;;  %10350 = vmatpush.bf16.msrb.mxu0 %v14415_v11 }
 0x71c   :  { %v7962_v50 = vpop.f32.mrf.mxu3  ;;  %7966 = vst.msk [vmem:[#allocation2 + $0x18] sm:$0xff] %vm7122_vm7, %v7942_v22  ;;  %v14467_v22 = vor.u32 %v16422_v40, %v14464_v46  ;;  %v14702_v46 = vld [vmem:[#allocation14 + $0x270] sm:$0xf] }
 0x71d   :  { %7967 = vst.msk [vmem:[#allocation2 + $0x48] sm:$0xff] %vm7122_vm7, %v7962_v50  ;;  %10376 = vmatpush.bf16.msrb.mxu2 %v14847_v23  ;;  %v15134_v50 = vld [vmem:[#allocation14 + $0x5d0] sm:$0xf] }
 0x71e   :  { %v15135_v39 = vor.u32 %v16593_v47, %v15134_v50  ;;  %v15278_v50 = vld [vmem:[#allocation14 + $0x6f0] sm:$0xf] }
 0x71f   :  { %10351 = vmatpush.bf16.msrb.mxu0 %v14391_v6  ;;  %v14416_v6 = vld [vmem:[#allocation14 + $0x48] sm:$0xf0] }
 0x720   :  { %10386 = vmatpush.bf16.msrb.mxu3 %v15135_v39  ;;  %v14419_v1 = vor.u32 %v16410_v8, %v14416_v6  ;;  %v16629_v39 = vld [vmem:[#allocation14 + $0x704] sm:$0xf0]  ;;  %v15280_v8 = vld [vmem:[#allocation14 + $0x708] sm:$0xf0]  ;;  %v16479_v6 = vld [vmem:[#allocation14 + $0x254] sm:$0xf0] }
 0x723   :  { %v7944_v10 = vpop.f32.mrf.mxu2 }
 0x724   :  { %v7964_v30 = vpop.f32.mrf.mxu3  ;;  %v15110_v10 = vld [vmem:[#allocation14 + $0x5a0] sm:$0xf] }
 0x725   :  { %v16587_v30 = vld [vmem:[#allocation14 + $0x5b4] sm:$0xf0] }
 0x726   :  { %v15111_v49 = vor.u32 %v16587_v30, %v15110_v10  ;;  %v14755_v10 = vor.u32 %v16494_v58, %v14752_v42  ;;  %v16626_v30 = vld [vmem:[#allocation14 + $0x6f4] sm:$0xf]  ;;  %v16464_v42 = vld [vmem:[#allocation14 + $0x1e4] sm:$0xf] }
 0x728   :  { %10387 = vmatpush.bf16.msrb.mxu3 %v15111_v49  ;;  %v14678_v49 = vld [vmem:[#allocation14 + $0x240] sm:$0xf] }
 0x72b   :  { %v8062_v2 = vpop.f32.mrf.mxu2 }
 0x72c   :  { %v8084_v38 = vpop.f32.mrf.mxu3  ;;  %8090 = vrot.lane.b32.xlu2 %v8062_v2, %s17133_s8  ;;  %v15086_v2 = vld [vmem:[#allocation14 + $0x570] sm:$0xf] }
 0x72d   :  { %8092 = vrot.lane.b32.xlu1 %v8084_v38, %s17133_s8  ;;  %v16581_v38 = vld [vmem:[#allocation14 + $0x584] sm:$0xf0] }
 0x72e   :  { %v15087_v17 = vor.u32 %v16581_v38, %v15086_v2  ;;  %v15254_v2 = vld [vmem:[#allocation14 + $0x6c0] sm:$0xf]  ;;  %v14679_v38 = vor.u32 %v16479_v6, %v14678_v49  ;;  %v16596_v6 = vld [vmem:[#allocation14 + $0x604] sm:$0xf] }
 0x730   :  { %10388 = vmatpush.bf16.msrb.mxu3 %v15087_v17  ;;  %v16488_v17 = vld [vmem:[#allocation14 + $0x2a4] sm:$0xf] }
 0x733   :  { %v8064_v36 = vpop.f32.mrf.mxu2 }
 0x734   :  { %v8086_v61 = vpop.f32.mrf.mxu3  ;;  %7604 = vrot.lane.b32.xlu2 %v18443_v59, %s17133_s8  ;;  %v14798_v59 = vld [vmem:[#allocation14 + $0x330] sm:$0xf]  ;;  %10389 = vmatpush.bf16.msrb.mxu3 %v15063_v14  ;;  %v16473_v14 = vld [vmem:[#allocation14 + $0x224] sm:$0xf0] }
 0x735   :  { %7606 = vrot.lane.b32.xlu1 %v18445_v37, %s17133_s8  ;;  %v14823_v37 = vor.u32 %v16515_v24, %v14822_v21  ;;  %v14799_v12 = vor.u32 %v16509_v28, %v14798_v59  ;;  %v14750_v24 = vld [vmem:[#allocation14 + $0x2d0] sm:$0xf]  ;;  %v14655_v13 = vor.u32 %v16473_v14, %v14654_v26  ;;  %v16452_v14 = vld [vmem:[#allocation14 + $0x184] sm:$0xf] }
 0x736   :  { %v15326_v59 = vld [vmem:[#allocation14 + $0x750] sm:$0xf] }
 0x737   :  { %10377 = vmatpush.bf16.msrb.mxu2 %v14823_v37  ;;  %v16497_v37 = vld [vmem:[#allocation14 + $0x2e4] sm:$0xf0] }
 0x738   :  { %10390 = vmatpush.bf16.msrb.mxu3 %v15039_v63  ;;  %v14751_v28 = vor.u32 %v16497_v37, %v14750_v24  ;;  %v16617_v63 = vld [vmem:[#allocation14 + $0x6a4] sm:$0xf0]  ;;  %v16467_v37 = vld [vmem:[#allocation14 + $0x1f4] sm:$0xf0] }
 0x73a   :  { %10358 = vmatpush.bf16.msrb.mxu1 %v14751_v28  ;;  %v16611_v28 = vld [vmem:[#allocation14 + $0x674] sm:$0xf0] }
 0x73b   :  { %v8177_v57 = vpop.f32.mrf.mxu2  ;;  %10378 = vmatpush.bf16.msrb.mxu2 %v14799_v12  ;;  %v16641_v12 = vld [vmem:[#allocation14 + $0x764] sm:$0xf0] }
 0x73c   :  { %8200 = vst.msk [vmem:[#allocation2 + $0x20] sm:$0xff] %vm7122_vm7, %v8177_v57  ;;  %v15014_v57 = vld [vmem:[#allocation14 + $0x4e0] sm:$0xf] }
 0x73e   :  { %v7366_v27 = vpop.permute.xlu0 %7365  ;;  %10359 = vmatpush.bf16.msrb.mxu1 %v14727_v33  ;;  %v16461_v33 = vld [vmem:[#allocation14 + $0x1c4] sm:$0xf0] }
 0x73f   :  { %7371 = vst.msk [vmem:[#allocation2 + $0x30] sm:$0xff] %vm7369_vm10, %v7366_v27  ;;  %10379 = vmatpush.bf16.msrb.mxu2 %v14775_v5  ;;  %v16563_v27 = vld [vmem:[#allocation14 + $0x4f4] sm:$0xf0]  ;;  %v14991_v5 = vor.u32 %v16557_v51, %v14990_v18 }
 0x740   :  { %v15015_v21 = vor.u32 %v16563_v27, %v15014_v57  ;;  %v16614_v27 = vld [vmem:[#allocation14 + $0x694] sm:$0xf] }
 0x742   :  { %10391 = vmatpush.bf16.msrb.mxu3 %v15015_v21  ;;  %v14630_v21 = vld [vmem:[#allocation14 + $0x1e0] sm:$0xf] }
 0x743   :  { %v8179_v62 = vpop.f32.mrf.mxu2  ;;  %10428 = vmatpush.bf16.msra.mxu2 %v14563_v35  ;;  %v15302_v35 = vld [vmem:[#allocation14 + $0x720] sm:$0xf] }
 0x744   :  { %v15327_v62 = vor.u32 %v16641_v12, %v15326_v59  ;;  %v15206_v59 = vld [vmem:[#allocation14 + $0x660] sm:$0xf]  ;;  %v15232_v12 = vld [vmem:[#allocation14 + $0x6a8] sm:$0xf0] }
 0x745   :  { %v15207_v18 = vor.u32 %v16611_v28, %v15206_v59  ;;  %v15235_v0 = vor.u32 %v16614_v27, %v15232_v12  ;;  %v14902_v59 = vld [vmem:[#allocation14 + $0x3f8] sm:$0xf]  ;;  %v16534_v28 = vld [vmem:[#allocation14 + $0x40c] sm:$0xf0]  ;;  %v16524_v12 = vld [vmem:[#allocation14 + $0x3c4] sm:$0xf] }
 0x746   :  { %v8590_v25 = vld [vmem:[#allocation2 + $0x30] sm:$0xff]  ;;  %10400 = vmatpush.bf16.msra.mxu0 %v15327_v62  ;;  %10392 = vmatpush.bf16.msrb.mxu3 %v14991_v5  ;;  %v14631_v62 = vor.u32 %v16467_v37, %v14630_v21 }
 0x747   :  { %v18470_v34 = vpack.c.bf16 %v8590_v25, %v8584_v43  ;;  %10429 = vmatpush.bf16.msra.mxu2 %v14539_v48  ;;  %v16638_v43 = vld [vmem:[#allocation14 + $0x754] sm:$0xf]  ;;  %v15328_v25 = vld [vmem:[#allocation14 + $0x768] sm:$0xf0] }
 0x748   :  { %v15331_v7 = vor.u32 %v16638_v43, %v15328_v25  ;;  %v16476_v43 = vld [vmem:[#allocation14 + $0x244] sm:$0xf]  ;;  %v14680_v25 = vld [vmem:[#allocation14 + $0x258] sm:$0xf0] }
 0x749   :  { %10352 = vmatmul.bf16.vlgmr.msrb.gmra.mxu0 %v18470_v34  ;;  %v14683_v51 = vor.u32 %v16476_v43, %v14680_v25 }
 0x74b   :  { %v8306_v31 = vpop.f32.mrf.mxu2  ;;  %10430 = vmatpush.bf16.msra.mxu2 %v14515_v41  ;;  %v15303_v41 = vor.u32 %v16635_v45, %v15302_v35  ;;  %v15208_v35 = vld [vmem:[#allocation14 + $0x678] sm:$0xf0]  ;;  %v15182_v45 = vld [vmem:[#allocation14 + $0x630] sm:$0xf] }
 0x74c   :  { %8336 = vrot.lane.b32.xlu0 %v8306_v31, %s17133_s8 }
 0x74d   :  { %10401 = vmatpush.bf16.msra.mxu0 %v15303_v41  ;;  %v14656_v41 = vld [vmem:[#allocation14 + $0x228] sm:$0xf0] }
 0x74f   :  { %10431 = vmatpush.bf16.msra.mxu2 %v14491_v9  ;;  %v14966_v9 = vld [vmem:[#allocation14 + $0x480] sm:$0xf] }
 0x753   :  { %v8308_v56 = vpop.f32.mrf.mxu2  ;;  %10432 = vmatpush.bf16.msra.mxu2 %v14467_v22  ;;  %v16485_v22 = vld [vmem:[#allocation14 + $0x284] sm:$0xf0] }
 0x754   :  { %v16632_v56 = vld [vmem:[#allocation14 + $0x724] sm:$0xf]  ;;  %v14703_v47 = vor.u32 %v16485_v22, %v14702_v46  ;;  %v14582_v46 = vld [vmem:[#allocation14 + $0x180] sm:$0xf]  ;;  %v16455_v22 = vld [vmem:[#allocation14 + $0x194] sm:$0xf0] }
 0x756   :  { %v8196_v16 = vpop.f32.mrf.mxu3  ;;  %10360 = vmatpush.bf16.msrb.mxu1 %v14703_v47  ;;  %v16599_v47 = vld [vmem:[#allocation14 + $0x614] sm:$0xf0] }
 0x757   :  { %8201 = vst.msk [vmem:[#allocation2 + $0x50] sm:$0xff] %vm7122_vm7, %v8196_v16  ;;  %10433 = vmatpush.bf16.msra.mxu2 %v14443_v20  ;;  %v16551_v16 = vld [vmem:[#allocation14 + $0x494] sm:$0xf0]  ;;  %v15307_v20 = vor.u32 %v16632_v56, %v15304_v44  ;;  %v15211_v56 = vor.u32 %v16608_v29, %v15208_v35  ;;  %v14848_v29 = vld [vmem:[#allocation14 + $0x3a8] sm:$0xf0] }
 0x758   :  { %v14967_v40 = vor.u32 %v16551_v16, %v14966_v9  ;;  %v16602_v16 = vld [vmem:[#allocation14 + $0x634] sm:$0xf] }
 0x75a   :  { %10393 = vmatpush.bf16.msrb.mxu3 %v14967_v40  ;;  %10361 = vmatpush.bf16.msrb.mxu1 %v14679_v38  ;;  %v15184_v40 = vld [vmem:[#allocation14 + $0x648] sm:$0xf0] }
 0x75b   :  { %10434 = vmatpush.bf16.msra.mxu2 %v14419_v1  ;;  %v16623_v1 = vld [vmem:[#allocation14 + $0x6d4] sm:$0xf0]  ;;  %v15187_v49 = vor.u32 %v16602_v16, %v15184_v40  ;;  %v16506_v16 = vld [vmem:[#allocation14 + $0x334] sm:$0xf]  ;;  %v14800_v40 = vld [vmem:[#allocation14 + $0x348] sm:$0xf0] }
 0x75c   :  { %v15255_v53 = vor.u32 %v16623_v1, %v15254_v2  ;;  %v15160_v1 = vld [vmem:[#allocation14 + $0x618] sm:$0xf0] }
 0x75e   :  { %v8198_v11 = vpop.f32.mrf.mxu3  ;;  %10442 = vmatpush.bf16.msra.mxu3 %v14755_v10  ;;  %10362 = vmatpush.bf16.msrb.mxu1 %v14655_v13  ;;  %v16542_v10 = vld [vmem:[#allocation14 + $0x454] sm:$0xf] }
 0x75f   :  { %10435 = vmatpush.bf16.msra.mxu2 %v14395_v19  ;;  %v15279_v11 = vor.u32 %v16629_v39, %v15278_v50  ;;  %v14731_v19 = vor.u32 %v16488_v17, %v14728_v3  ;;  %v15158_v50 = vld [vmem:[#allocation14 + $0x600] sm:$0xf]  ;;  %v14583_v39 = vor.u32 %v16455_v22, %v14582_v46  ;;  %v14950_v17 = vld [vmem:[#allocation14 + $0x458] sm:$0xf]  ;;  %v16546_v3 = vld [vmem:[#allocation14 + $0x46c] sm:$0xf0] }
 0x760   :  { %v15159_v58 = vor.u32 %v16599_v47, %v15158_v50  ;;  %v14803_v47 = vor.u32 %v16506_v16, %v14800_v40 }
 0x761   :  { %10402 = vmatpush.bf16.msra.mxu0 %v15279_v11 }
 0x762   :  { %10443 = vmatpush.bf16.msra.mxu3 %v14731_v19  ;;  %10363 = vmatpush.bf16.msrb.mxu1 %v14631_v62  ;;  %v14608_v19 = vld [vmem:[#allocation14 + $0x1c8] sm:$0xf0]  ;;  %v14872_v62 = vld [vmem:[#allocation14 + $0x3d8] sm:$0xf0] }
 0x763   :  { %v14875_v43 = vor.u32 %v16524_v12, %v14872_v62  ;;  %v16668_v12 = vld [vmem:[#allocation14 + $0x844] sm:$0xf] }
 0x765   :  { %10403 = vmatpush.bf16.msra.mxu0 %v15255_v53  ;;  %v16458_v53 = vld [vmem:[#allocation14 + $0x1b4] sm:$0xf] }
 0x766   :  { %v7851_v15 = vpop.permute.xlu2 %7850  ;;  %v8330_v36 = vpop.f32.mrf.mxu3 }
 0x767   :  { %7856 = vst.msk [vmem:[#allocation2 + $0x10] sm:$0xff] %vm7369_vm10, %v7851_v15  ;;  %v8428_v61 = vpop.f32.mrf.mxu2  ;;  %8338 = vrot.lane.b32.xlu2 %v8330_v36, %s17133_s8  ;;  %v15283_v36 = vor.u32 %v16626_v30, %v15280_v8  ;;  %v14944_v30 = vld [vmem:[#allocation14 + $0x468] sm:$0xf0] }
 0x768   :  { %8452 = vst.msk [vmem:[#allocation2 + $0x28] sm:$0xff] %vm7122_vm7, %v8428_v61  ;;  %v16620_v61 = vld [vmem:[#allocation14 + $0x6c4] sm:$0xf]  ;;  %v14947_v2 = vor.u32 %v16542_v10, %v14944_v30  ;;  %v16510_v10 = vld [vmem:[#allocation14 + $0x34c] sm:$0xf0] }
 0x769   :  { %v15259_v24 = vor.u32 %v16620_v61, %v15256_v4  ;;  %v14920_v61 = vld [vmem:[#allocation14 + $0x438] sm:$0xf0]  ;;  %v15163_v4 = vor.u32 %v16596_v6, %v15160_v1  ;;  %v16504_v6 = vld [vmem:[#allocation14 + $0x31c] sm:$0xf0] }
 0x76e   :  { %v7853_v32 = vpop.permute.xlu2 %7852  ;;  %v8332_v55 = vpop.f32.mrf.mxu3  ;;  %v8586_v31 = vld [vmem:[#allocation2 + $0x10] sm:$0xff] }
 0x76f   :  { %7857 = vst.msk [vmem:[#allocation2 + $0x40] sm:$0xff] %vm7369_vm10, %v7853_v32  ;;  %v8430_v23 = vpop.f32.mrf.mxu2  ;;  %v16482_v32 = vld [vmem:[#allocation14 + $0x274] sm:$0xf]  ;;  %v14704_v55 = vld [vmem:[#allocation14 + $0x288] sm:$0xf0] }
 0x770   :  { %v15231_v23 = vor.u32 %v16617_v63, %v15230_v54  ;;  %v14707_v57 = vor.u32 %v16482_v32, %v14704_v55  ;;  %v14584_v54 = vld [vmem:[#allocation14 + $0x198] sm:$0xf0]  ;;  %v14951_v63 = vor.u32 %v16546_v3, %v14950_v17  ;;  %v16530_v32 = vld [vmem:[#allocation14 + $0x3f4] sm:$0xf]  ;;  %v14896_v55 = vld [vmem:[#allocation14 + $0x408] sm:$0xf0] }
 0x771   :  { %v14587_v27 = vor.u32 %v16452_v14, %v14584_v54  ;;  %v14899_v21 = vor.u32 %v16530_v32, %v14896_v55  ;;  %v15518_v3 = vld [vmem:[#allocation14 + $0x8d0] sm:$0xf]  ;;  %v16680_v14 = vld [vmem:[#allocation14 + $0x8a4] sm:$0xf]  ;;  %v16677_v55 = vld [vmem:[#allocation14 + $0x884] sm:$0xf0] }
 0x772   :  { %10404 = vmatpush.bf16.msra.mxu0 %v15231_v23  ;;  %10444 = vmatpush.bf16.msra.mxu3 %v14707_v57  ;;  %v14926_v23 = vld [vmem:[#allocation14 + $0x428] sm:$0xf]  ;;  %v16540_v57 = vld [vmem:[#allocation14 + $0x43c] sm:$0xf0]  ;;  %v15470_v32 = vld [vmem:[#allocation14 + $0x870] sm:$0xf] }
 0x773   :  { %v14927_v37 = vor.u32 %v16540_v57, %v14926_v23  ;;  %v16674_v23 = vld [vmem:[#allocation14 + $0x874] sm:$0xf] }
 0x776   :  { %v8448_v48 = vpop.f32.mrf.mxu3  ;;  %v8592_v52 = vld [vmem:[#allocation2 + $0x40] sm:$0xff]  ;;  %10405 = vmatpush.bf16.msra.mxu0 %v15207_v18  ;;  %10445 = vmatpush.bf16.msra.mxu3 %v14683_v51  ;;  %v14903_v18 = vor.u32 %v16534_v28, %v14902_v59  ;;  %v14878_v51 = vld [vmem:[#allocation14 + $0x3c8] sm:$0xf]  ;;  %v15446_v59 = vld [vmem:[#allocation14 + $0x840] sm:$0xf] }
 0x777   :  { %8453 = vst.msk [vmem:[#allocation2 + $0x58] sm:$0xff] %vm7122_vm7, %v8448_v48  ;;  %v18480_v60 = vpack.c.bf16 %v8592_v52, %v8586_v31  ;;  %v14606_v31 = vld [vmem:[#allocation14 + $0x1b0] sm:$0xf]  ;;  %v16605_v52 = vld [vmem:[#allocation14 + $0x644] sm:$0xf0] }
 0x778   :  { %v14607_v48 = vor.u32 %v16461_v33, %v14606_v31  ;;  %v15183_v44 = vor.u32 %v16605_v52, %v15182_v45  ;;  %v14854_v45 = vld [vmem:[#allocation14 + $0x398] sm:$0xf]  ;;  %v16512_v52 = vld [vmem:[#allocation14 + $0x364] sm:$0xf] }
 0x779   :  { %10380 = vmatmul.bf16.vlgmr.msrb.gmra.mxu2 %v18480_v60  ;;  %v16671_v28 = vld [vmem:[#allocation14 + $0x854] sm:$0xf0] }
 0x77a   :  { %10484 = vmatpush.bf16.msrb.mxu2 %v15331_v7  ;;  %v16470_v7 = vld [vmem:[#allocation14 + $0x214] sm:$0xf]  ;;  %10364 = vmatpush.bf16.msrb.mxu1 %v14607_v48  ;;  %v16522_v48 = vld [vmem:[#allocation14 + $0x3ac] sm:$0xf0]  ;;  %v15447_v62 = vor.u32 %v16671_v28, %v15446_v59  ;;  %v14470_v59 = vld [vmem:[#allocation14 + $0x98] sm:$0xf] }
 0x77b   :  { %v14659_v9 = vor.u32 %v16470_v7, %v14656_v41  ;;  %10406 = vmatpush.bf16.msra.mxu0 %v15183_v44  ;;  %v14824_v7 = vld [vmem:[#allocation14 + $0x378] sm:$0xf0]  ;;  %v14830_v44 = vld [vmem:[#allocation14 + $0x368] sm:$0xf] }
 0x77c   :  { %v14827_v41 = vor.u32 %v16512_v52, %v14824_v7  ;;  %v14542_v52 = vld [vmem:[#allocation14 + $0x128] sm:$0xf]  ;;  %v16444_v7 = vld [vmem:[#allocation14 + $0x13c] sm:$0xf0] }
 0x77d   :  { %10446 = vmatpush.bf16.msra.mxu3 %v14659_v9  ;;  %v16516_v9 = vld [vmem:[#allocation14 + $0x37c] sm:$0xf0] }
 0x77e   :  { %v8450_v15 = vpop.f32.mrf.mxu3  ;;  %10485 = vmatpush.bf16.msrb.mxu2 %v15307_v20  ;;  %v14632_v20 = vld [vmem:[#allocation14 + $0x1f8] sm:$0xf0]  ;;  %10365 = vmatpush.bf16.msrb.mxu1 %v14583_v39 }
 0x77f   :  { %v14635_v11 = vor.u32 %v16464_v42, %v14632_v20  ;;  %10407 = vmatpush.bf16.msra.mxu0 %v15159_v58  ;;  %v14611_v15 = vor.u32 %v16458_v53, %v14608_v19  ;;  %v14831_v58 = vor.u32 %v16516_v9, %v14830_v44  ;;  %v16500_v42 = vld [vmem:[#allocation14 + $0x304] sm:$0xf]  ;;  %v14776_v20 = vld [vmem:[#allocation14 + $0x318] sm:$0xf0]  ;;  %v16689_v53 = vld [vmem:[#allocation14 + $0x8e4] sm:$0xf0] }
 0x780   :  { %v14779_v30 = vor.u32 %v16500_v42, %v14776_v20  ;;  %v16686_v19 = vld [vmem:[#allocation14 + $0x8d4] sm:$0xf] }
 0x781   :  { %10447 = vmatpush.bf16.msra.mxu3 %v14635_v11  ;;  %v14806_v11 = vld [vmem:[#allocation14 + $0x338] sm:$0xf] }
 0x782   :  { %10486 = vmatpush.bf16.msrb.mxu2 %v15283_v36  ;;  %v16536_v36 = vld [vmem:[#allocation14 + $0x424] sm:$0xf] }
 0x783   :  { %10456 = vmatpush.bf16.msrb.mxu0 %v14947_v2  ;;  %v14923_v26 = vor.u32 %v16536_v36, %v14920_v61  ;;  %v15520_v36 = vld [vmem:[#allocation14 + $0x8e8] sm:$0xf0] }
 0x784   :  { %v15523_v61 = vor.u32 %v16686_v19, %v15520_v36  ;;  %v16432_v36 = vld [vmem:[#allocation14 + $0xdc] sm:$0xf0] }
 0x785   :  { %10448 = vmatpush.bf16.msra.mxu3 %v14611_v15  ;;  %v15519_v15 = vor.u32 %v16689_v53, %v15518_v3  ;;  %v15376_v53 = vld [vmem:[#allocation14 + $0x7c8] sm:$0xf0] }
 0x786   :  { %v8091_v5 = vpop.permute.xlu2 %8090  ;;  %10487 = vmatpush.bf16.msrb.mxu2 %v15259_v24 }
 0x787   :  { %8096 = vst.msk [vmem:[#allocation2 + $0x18] sm:$0xff] %vm7369_vm10, %v8091_v5  ;;  %10457 = vmatpush.bf16.msrb.mxu0 %v14923_v26  ;;  %v16528_v5 = vld [vmem:[#allocation14 + $0x3dc] sm:$0xf0]  ;;  %10414 = vmatpush.bf16.msra.mxu1 %v15519_v15  ;;  %v16683_v26 = vld [vmem:[#allocation14 + $0x8b4] sm:$0xf0] }
 0x788   :  { %v14879_v33 = vor.u32 %v16528_v5, %v14878_v51  ;;  %v16450_v51 = vld [vmem:[#allocation14 + $0x16c] sm:$0xf0]  ;;  %v14494_v15 = vld [vmem:[#allocation14 + $0xc8] sm:$0xf] }
 0x789   :  { %10436 = vmatmul.bf16.vlgmr.msra.gmra.mxu2 %v18470_v34  ;;  %10449 = vmatpush.bf16.msra.mxu3 %v14587_v27  ;;  %v15471_v27 = vor.u32 %v16677_v55, %v15470_v32  ;;  %v15422_v5 = vld [vmem:[#allocation14 + $0x810] sm:$0xf]  ;;  %v15352_v55 = vld [vmem:[#allocation14 + $0x798] sm:$0xf0] }
 0x78a   :  { %10488 = vmatpush.bf16.msrb.mxu2 %v15235_v0  ;;  %v16518_v0 = vld [vmem:[#allocation14 + $0x394] sm:$0xf] }
 0x78b   :  { %10458 = vmatpush.bf16.msrb.mxu0 %v14899_v21  ;;  %v14851_v31 = vor.u32 %v16518_v0, %v14848_v29  ;;  %v15472_v21 = vld [vmem:[#allocation14 + $0x888] sm:$0xf0]  ;;  %v16665_v0 = vld [vmem:[#allocation14 + $0x824] sm:$0xf0]  ;;  %v16662_v29 = vld [vmem:[#allocation14 + $0x814] sm:$0xf] }
 0x78e   :  { %v7605_v8 = vpop.permute.xlu2 %7604  ;;  %10489 = vmatpush.bf16.msrb.mxu2 %v15211_v56  ;;  %v14855_v56 = vor.u32 %v16522_v48, %v14854_v45  ;;  %v8587_v22 = vld [vmem:[#allocation2 + $0x18] sm:$0xff] }
 0x78f   :  { %7610 = vst.msk [vmem:[#allocation2 + $0x8] sm:$0xff] %vm7369_vm10, %v7605_v8  ;;  %v8548_v38 = vpop.f32.mrf.mxu2  ;;  %10459 = vmatpush.bf16.msrb.mxu0 %v14875_v43  ;;  %v14807_v8 = vor.u32 %v16510_v10, %v14806_v11  ;;  %v15448_v43 = vld [vmem:[#allocation14 + $0x858] sm:$0xf0]  ;;  %v15424_v45 = vld [vmem:[#allocation14 + $0x828] sm:$0xf0] }
 0x790   :  { %8576 = vrot.lane.b32.xlu1 %v8548_v38, %s17133_s8  ;;  %v15427_v48 = vor.u32 %v16662_v29, %v15424_v45  ;;  %v14518_v11 = vld [vmem:[#allocation14 + $0xf8] sm:$0xf]  ;;  %v16438_v10 = vld [vmem:[#allocation14 + $0x10c] sm:$0xf0] }
 0x792   :  { %10490 = vmatpush.bf16.msrb.mxu2 %v15187_v49  ;;  %v14782_v49 = vld [vmem:[#allocation14 + $0x308] sm:$0xf] }
 0x793   :  { %v8570_v13 = vpop.f32.mrf.mxu3  ;;  %10460 = vmatpush.bf16.msrb.mxu0 %v14851_v31  ;;  %v14783_v17 = vor.u32 %v16504_v6, %v14782_v49  ;;  %v14568_v31 = vld [vmem:[#allocation14 + $0x170] sm:$0xf0]  ;;  %v15374_v49 = vld [vmem:[#allocation14 + $0x7b0] sm:$0xf]  ;;  %v16653_v6 = vld [vmem:[#allocation14 + $0x7c4] sm:$0xf0] }
 0x794   :  { %8578 = vrot.lane.b32.xlu0 %v8570_v13, %s17133_s8  ;;  %v15496_v13 = vld [vmem:[#allocation14 + $0x8b8] sm:$0xf0]  ;;  %v15375_v3 = vor.u32 %v16653_v6, %v15374_v49  ;;  %v16576_v6 = vld [vmem:[#allocation14 + $0x55c] sm:$0xf0] }
 0x796   :  { %10491 = vmatpush.bf16.msrb.mxu2 %v15163_v4  ;;  %v8585_v2 = vld [vmem:[#allocation2 + $0x8] sm:$0xff] }
 0x797   :  { %v8550_v24 = vpop.f32.mrf.mxu2  ;;  %10461 = vmatpush.bf16.msrb.mxu0 %v14827_v41  ;;  %v15494_v4 = vld [vmem:[#allocation14 + $0x8a0] sm:$0xf]  ;;  %v16441_v41 = vld [vmem:[#allocation14 + $0x12c] sm:$0xf] }
 0x798   :  { %v15495_v54 = vor.u32 %v16683_v26, %v15494_v4  ;;  %v15475_v24 = vor.u32 %v16674_v23, %v15472_v21  ;;  %v14496_v4 = vld [vmem:[#allocation14 + $0xe0] sm:$0xf0]  ;;  %v14519_v26 = vor.u32 %v16438_v10, %v14518_v11  ;;  %v16590_v23 = vld [vmem:[#allocation14 + $0x5d4] sm:$0xf] }
 0x799   :  { %v14424_v11 = vld [vmem:[#allocation14 + $0x50] sm:$0xf0]  ;;  %v16572_v10 = vld [vmem:[#allocation14 + $0x544] sm:$0xf] }
 0x79a   :  { %10540 = vmatpush.bf16.msra.mxu2 %v14951_v63  ;;  %v15499_v63 = vor.u32 %v16680_v14, %v15496_v13  ;;  %10415 = vmatpush.bf16.msra.mxu1 %v15495_v54  ;;  %v15350_v54 = vld [vmem:[#allocation14 + $0x780] sm:$0xf]  ;;  %v16647_v13 = vld [vmem:[#allocation14 + $0x794] sm:$0xf0] }
 0x79b   :  { %v8572_v25 = vpop.f32.mrf.mxu3  ;;  %10462 = vmatpush.bf16.msrb.mxu0 %v14803_v47  ;;  %v16656_v47 = vld [vmem:[#allocation14 + $0x7e4] sm:$0xf]  ;;  %v15351_v32 = vor.u32 %v16647_v13, %v15350_v54  ;;  %v16639_v54 = vld [vmem:[#allocation14 + $0x75c] sm:$0xf]  ;;  %v15336_v13 = vld [vmem:[#allocation14 + $0x770] sm:$0xf0] }
 0x79c   :  { %v15451_v25 = vor.u32 %v16668_v12, %v15448_v43  ;;  %v14495_v12 = vor.u32 %v16432_v36, %v14494_v15  ;;  %v16426_v43 = vld [vmem:[#allocation14 + $0xac] sm:$0xf0]  ;;  %v14400_v15 = vld [vmem:[#allocation14 + $0x20] sm:$0xf0]  ;;  %v15334_v36 = vld [vmem:[#allocation14 + $0x758] sm:$0xf] }
 0x79d   :  { %v14471_v45 = vor.u32 %v16426_v43, %v14470_v59  ;;  %v16560_v59 = vld [vmem:[#allocation14 + $0x4e4] sm:$0xf] }
 0x79e   :  { %10541 = vmatpush.bf16.msra.mxu2 %v14927_v37  ;;  %10416 = vmatpush.bf16.msra.mxu1 %v15471_v27  ;;  %v15312_v43 = vld [vmem:[#allocation14 + $0x740] sm:$0xf0] }
 0x79f   :  { %v8093_v35 = vpop.permute.xlu1 %8092  ;;  %10463 = vmatpush.bf16.msrb.mxu0 %v14779_v30  ;;  %v14543_v30 = vor.u32 %v16444_v7, %v14542_v52  ;;  %v16420_v52 = vld [vmem:[#allocation14 + $0x7c] sm:$0xf0]  ;;  %v16417_v7 = vld [vmem:[#allocation14 + $0x6c] sm:$0xf] }
 0x7a0   :  { %8097 = vst.msk [vmem:[#allocation2 + $0x48] sm:$0xff] %vm7369_vm10, %v8093_v35  ;;  %v16447_v35 = vld [vmem:[#allocation14 + $0x15c] sm:$0xf] }
 0x7a1   :  { %v14571_v40 = vor.u32 %v16447_v35, %v14568_v31  ;;  %v16588_v35 = vld [vmem:[#allocation14 + $0x5bc] sm:$0xf0]  ;;  %v14446_v31 = vld [vmem:[#allocation14 + $0x68] sm:$0xf] }
 0x7a2   :  { %10542 = vmatpush.bf16.msra.mxu2 %v14903_v18  ;;  %v14566_v18 = vld [vmem:[#allocation14 + $0x158] sm:$0xf]  ;;  %10417 = vmatpush.bf16.msra.mxu1 %v15447_v62 }
 0x7a3   :  { %v14567_v16 = vor.u32 %v16450_v51, %v14566_v18  ;;  %v14472_v18 = vld [vmem:[#allocation14 + $0xb0] sm:$0xf0]  ;;  %v16584_v51 = vld [vmem:[#allocation14 + $0x5a4] sm:$0xf] }
 0x7a6   :  { %10543 = vmatpush.bf16.msra.mxu2 %v14879_v33  ;;  %v15423_v33 = vor.u32 %v16665_v0, %v15422_v5  ;;  %v15112_v5 = vld [vmem:[#allocation14 + $0x5b8] sm:$0xf0]  ;;  %v15118_v0 = vld [vmem:[#allocation14 + $0x5a8] sm:$0xf] }
 0x7a7   :  { %v7607_v46 = vpop.permute.xlu1 %7606  ;;  %v8593_v50 = vld [vmem:[#allocation2 + $0x48] sm:$0xff]  ;;  %v15115_v29 = vor.u32 %v16584_v51, %v15112_v5  ;;  %v15286_v5 = vld [vmem:[#allocation14 + $0x6f8] sm:$0xf] }
 0x7a8   :  { %7611 = vst.msk [vmem:[#allocation2 + $0x38] sm:$0xff] %vm7369_vm10, %v7607_v46  ;;  %v18490_v39 = vpack.c.bf16 %v8593_v50, %v8587_v22  ;;  %10418 = vmatpush.bf16.msra.mxu1 %v15423_v33  ;;  %v15398_v46 = vld [vmem:[#allocation14 + $0x7e0] sm:$0xf]  ;;  %v16659_v50 = vld [vmem:[#allocation14 + $0x7f4] sm:$0xf0]  ;;  %v15119_v33 = vor.u32 %v16588_v35, %v15118_v0 }
 0x7a9   :  { %v15399_v42 = vor.u32 %v16659_v50, %v15398_v46  ;;  %v14422_v46 = vld [vmem:[#allocation14 + $0x38] sm:$0xf]  ;;  %v16630_v0 = vld [vmem:[#allocation14 + $0x70c] sm:$0xf0] }
 0x7aa   :  { %10544 = vmatpush.bf16.msra.mxu2 %v14855_v56  ;;  %10394 = vmatmul.bf16.vlgmr.msrb.gmra.mxu3 %v18490_v39  ;;  %v14544_v56 = vld [vmem:[#allocation14 + $0x140] sm:$0xf0] }
 0x7ab   :  { %10498 = vmatpush.bf16.msrb.mxu3 %v15523_v61  ;;  %v16429_v61 = vld [vmem:[#allocation14 + $0xcc] sm:$0xf] }
 0x7ac   :  { %10419 = vmatpush.bf16.msra.mxu1 %v15399_v42  ;;  %v14499_v62 = vor.u32 %v16429_v61, %v14496_v4  ;;  %v16414_v42 = vld [vmem:[#allocation14 + $0x4c] sm:$0xf0]  ;;  %v16566_v4 = vld [vmem:[#allocation14 + $0x514] sm:$0xf] }
 0x7ad   :  { %v16642_v61 = vld [vmem:[#allocation14 + $0x76c] sm:$0xf0] }
 0x7ae   :  { %10545 = vmatpush.bf16.msra.mxu2 %v14831_v58  ;;  %v15400_v58 = vld [vmem:[#allocation14 + $0x7f8] sm:$0xf0] }
 0x7af   :  { %v8591_v38 = vld [vmem:[#allocation2 + $0x38] sm:$0xff]  ;;  %10499 = vmatpush.bf16.msrb.mxu3 %v15499_v63  ;;  %v15403_v20 = vor.u32 %v16656_v47, %v15400_v58  ;;  %v16644_v63 = vld [vmem:[#allocation14 + $0x784] sm:$0xf]  ;;  %v14447_v47 = vor.u32 %v16420_v52, %v14446_v31  ;;  %v16554_v31 = vld [vmem:[#allocation14 + $0x4b4] sm:$0xf] }
 0x7b0   :  { %v18493_v1 = vpack.c.bf16 %v8591_v38, %v8585_v2  ;;  %v16650_v2 = vld [vmem:[#allocation14 + $0x7b4] sm:$0xf]  ;;  %v16435_v38 = vld [vmem:[#allocation14 + $0xfc] sm:$0xf]  ;;  %10420 = vmatpush.bf16.msra.mxu1 %v15375_v3  ;;  %v15355_v27 = vor.u32 %v16644_v63, %v15352_v55 }
 0x7b1   :  { %v15379_v19 = vor.u32 %v16650_v2, %v15376_v53  ;;  %v14398_v2 = vld [vmem:[#allocation14 + $0x8] sm:$0xf]  ;;  %v14423_v53 = vor.u32 %v16414_v42, %v14422_v46  ;;  %v15288_v52 = vld [vmem:[#allocation14 + $0x710] sm:$0xf0]  ;;  %v16548_v46 = vld [vmem:[#allocation14 + $0x484] sm:$0xf] }
 0x7b2   :  { %10546 = vmatpush.bf16.msra.mxu2 %v14807_v8  ;;  %10366 = vmatmul.bf16.vlgmr.msrb.gmra.mxu1 %v18493_v1  ;;  %v14547_v8 = vor.u32 %v16441_v41, %v14544_v56  ;;  %v14448_v41 = vld [vmem:[#allocation14 + $0x80] sm:$0xf0]  ;;  %v16578_v56 = vld [vmem:[#allocation14 + $0x574] sm:$0xf] }
 0x7b3   :  { %10500 = vmatpush.bf16.msrb.mxu3 %v15475_v24  ;;  %v15142_v24 = vld [vmem:[#allocation14 + $0x5d8] sm:$0xf]  ;;  %v14451_v58 = vor.u32 %v16417_v7, %v14448_v41  ;;  %v16558_v41 = vld [vmem:[#allocation14 + $0x4cc] sm:$0xf0]  ;;  %v15264_v42 = vld [vmem:[#allocation14 + $0x6e0] sm:$0xf0] }
 0x7b4   :  { %10421 = vmatpush.bf16.msra.mxu1 %v15351_v32  ;;  %v16570_v32 = vld [vmem:[#allocation14 + $0x52c] sm:$0xf0] }
 0x7b6   :  { %10547 = vmatpush.bf16.msra.mxu2 %v14783_v17  ;;  %v14520_v17 = vld [vmem:[#allocation14 + $0x110] sm:$0xf0] }
 0x7b7   :  { %10501 = vmatpush.bf16.msrb.mxu3 %v15451_v25  ;;  %v14523_v14 = vor.u32 %v16435_v38, %v14520_v17  ;;  %v16423_v25 = vld [vmem:[#allocation14 + $0x9c] sm:$0xf]  ;;  %v16408_v38 = vld [vmem:[#allocation14 + $0x1c] sm:$0xf0]  ;;  %v16405_v17 = vld [vmem:[#allocation14 + $0xc] sm:$0xf] }
 0x7ba   :  { %10450 = vmatmul.bf16.vlgmr.msra.gmra.mxu3 %v18493_v1 }
 0x7bb   :  { %10502 = vmatpush.bf16.msrb.mxu3 %v15427_v48  ;;  %v14475_v48 = vor.u32 %v16423_v25, %v14472_v18  ;;  %v16564_v18 = vld [vmem:[#allocation14 + $0x4fc] sm:$0xf0] }
 0x7be   :  { %v8337_v57 = vpop.permute.xlu0 %8336 }
 0x7bf   :  { %8342 = vst.msk [vmem:[#allocation2 + $0x20] sm:$0xff] %vm7369_vm10, %v8337_v57  ;;  %10503 = vmatpush.bf16.msrb.mxu3 %v15403_v20  ;;  %v15136_v57 = vld [vmem:[#allocation14 + $0x5e8] sm:$0xf0]  ;;  %v16411_v20 = vld [vmem:[#allocation14 + $0x3c] sm:$0xf] }
 0x7c0   :  { %v15139_v21 = vor.u32 %v16590_v23, %v15136_v57  ;;  %v14399_v23 = vor.u32 %v16408_v38, %v14398_v2  ;;  %v14403_v57 = vor.u32 %v16405_v17, %v14400_v15  ;;  %v16615_v2 = vld [vmem:[#allocation14 + $0x69c] sm:$0xf]  ;;  %v15240_v38 = vld [vmem:[#allocation14 + $0x6b0] sm:$0xf0]  ;;  %v16609_v15 = vld [vmem:[#allocation14 + $0x66c] sm:$0xf] }
 0x7c1   :  { %v8339_v37 = vpop.permute.xlu2 %8338 }
 0x7c2   :  { %8343 = vst.msk [vmem:[#allocation2 + $0x50] sm:$0xff] %vm7369_vm10, %v8339_v37  ;;  %v16594_v37 = vld [vmem:[#allocation14 + $0x5ec] sm:$0xf0]  ;;  %10470 = vmatpush.bf16.msrb.mxu1 %v15139_v21  ;;  %v16636_v21 = vld [vmem:[#allocation14 + $0x73c] sm:$0xf0] }
 0x7c3   :  { %10504 = vmatpush.bf16.msrb.mxu3 %v15379_v19  ;;  %v15143_v28 = vor.u32 %v16594_v37, %v15142_v24  ;;  %v14427_v19 = vor.u32 %v16411_v20, %v14424_v11  ;;  %v15335_v24 = vor.u32 %v16642_v61, %v15334_v36  ;;  %v15339_v37 = vor.u32 %v16639_v54, %v15336_v13  ;;  %v16552_v11 = vld [vmem:[#allocation14 + $0x49c] sm:$0xf0]  ;;  %v15216_v36 = vld [vmem:[#allocation14 + $0x680] sm:$0xf0]  ;;  %v16603_v54 = vld [vmem:[#allocation14 + $0x63c] sm:$0xf] }
 0x7c4   :  { %v15192_v13 = vld [vmem:[#allocation14 + $0x650] sm:$0xf0] }
 0x7c6   :  { %v8588_v44 = vld [vmem:[#allocation2 + $0x20] sm:$0xff]  ;;  %10471 = vmatpush.bf16.msrb.mxu1 %v15115_v29 }
 0x7c7   :  { %10505 = vmatpush.bf16.msrb.mxu3 %v15355_v27  ;;  %v15310_v27 = vld [vmem:[#allocation14 + $0x728] sm:$0xf] }
 0x7c8   :  { %v15311_v29 = vor.u32 %v16636_v21, %v15310_v27  ;;  %v15168_v27 = vld [vmem:[#allocation14 + $0x620] sm:$0xf0]  ;;  %v16543_v21 = vld [vmem:[#allocation14 + $0x45c] sm:$0xf] }
 0x7c9   :  { %v8594_v9 = vld [vmem:[#allocation2 + $0x50] sm:$0xff] }
 0x7ca   :  { %v18499_v22 = vpack.c.bf16 %v8594_v9, %v8588_v44  ;;  %v15088_v44 = vld [vmem:[#allocation14 + $0x588] sm:$0xf0]  ;;  %v15094_v9 = vld [vmem:[#allocation14 + $0x578] sm:$0xf] }
 0x7cb   :  { %10554 = vmatpush.bf16.msra.mxu3 %v15143_v28  ;;  %v15016_v28 = vld [vmem:[#allocation14 + $0x4f8] sm:$0xf0] }
 0x7cc   :  { %10408 = vmatmul.bf16.vlgmr.msra.gmra.mxu0 %v18499_v22  ;;  %10492 = vmatmul.bf16.vlgmr.msrb.gmra.mxu2 %v18499_v22  ;;  %v15019_v25 = vor.u32 %v16560_v59, %v15016_v28  ;;  %v16547_v59 = vld [vmem:[#allocation14 + $0x474] sm:$0xf0] }
 0x7cd   :  { %10512 = vmatpush.bf16.msra.mxu0 %v14567_v16  ;;  %10596 = vmatpush.bf16.msrb.mxu2 %v14571_v40  ;;  %v15091_v16 = vor.u32 %v16578_v56, %v15088_v44  ;;  %v16582_v40 = vld [vmem:[#allocation14 + $0x58c] sm:$0xf0]  ;;  %v15262_v44 = vld [vmem:[#allocation14 + $0x6c8] sm:$0xf] }
 0x7ce   :  { %v15095_v50 = vor.u32 %v16582_v40, %v15094_v9  ;;  %v16624_v9 = vld [vmem:[#allocation14 + $0x6dc] sm:$0xf0] }
 0x7cf   :  { %10555 = vmatpush.bf16.msra.mxu3 %v15119_v33  ;;  %10472 = vmatpush.bf16.msrb.mxu1 %v15091_v16  ;;  %v14992_v33 = vld [vmem:[#allocation14 + $0x4c8] sm:$0xf0]  ;;  %v15287_v16 = vor.u32 %v16630_v0, %v15286_v5  ;;  %v14934_v5 = vld [vmem:[#allocation14 + $0x430] sm:$0xf]  ;;  %v16541_v0 = vld [vmem:[#allocation14 + $0x444] sm:$0xf0] }
 0x7d0   :  { %v14995_v7 = vor.u32 %v16554_v31, %v14992_v33  ;;  %v14935_v31 = vor.u32 %v16541_v0, %v14934_v5  ;;  %v16531_v33 = vld [vmem:[#allocation14 + $0x3fc] sm:$0xf]  ;;  %v14662_v0 = vld [vmem:[#allocation14 + $0x218] sm:$0xf] }
 0x7d1   :  { %10513 = vmatpush.bf16.msra.mxu0 %v14543_v30  ;;  %10597 = vmatpush.bf16.msrb.mxu2 %v14547_v8  ;;  %v15064_v30 = vld [vmem:[#allocation14 + $0x558] sm:$0xf0]  ;;  %v15070_v8 = vld [vmem:[#allocation14 + $0x548] sm:$0xf] }
 0x7d2   :  { %v15067_v49 = vor.u32 %v16572_v10, %v15064_v30  ;;  %v15071_v3 = vor.u32 %v16576_v6, %v15070_v8  ;;  %v15263_v30 = vor.u32 %v16624_v9, %v15262_v44  ;;  %v16618_v6 = vld [vmem:[#allocation14 + $0x6ac] sm:$0xf0]  ;;  %v16495_v9 = vld [vmem:[#allocation14 + $0x2dc] sm:$0xf] }
 0x7d3   :  { %10556 = vmatpush.bf16.msra.mxu3 %v15095_v50  ;;  %v14968_v50 = vld [vmem:[#allocation14 + $0x498] sm:$0xf0] }
 0x7d4   :  { %10473 = vmatpush.bf16.msrb.mxu1 %v15067_v49  ;;  %v14971_v20 = vor.u32 %v16548_v46, %v14968_v50  ;;  %v15238_v49 = vld [vmem:[#allocation14 + $0x698] sm:$0xf]  ;;  %v14880_v46 = vld [vmem:[#allocation14 + $0x3e0] sm:$0xf0]  ;;  %v14886_v50 = vld [vmem:[#allocation14 + $0x3d0] sm:$0xf] }
 0x7d5   :  { %10514 = vmatpush.bf16.msra.mxu0 %v14519_v26  ;;  %10598 = vmatpush.bf16.msrb.mxu2 %v14523_v14  ;;  %v15040_v26 = vld [vmem:[#allocation14 + $0x528] sm:$0xf0]  ;;  %v15046_v14 = vld [vmem:[#allocation14 + $0x518] sm:$0xf]  ;;  %v15239_v17 = vor.u32 %v16618_v6, %v15238_v49 }
 0x7d6   :  { %v15043_v63 = vor.u32 %v16566_v4, %v15040_v26  ;;  %v15047_v55 = vor.u32 %v16570_v32, %v15046_v14  ;;  %v15219_v4 = vor.u32 %v16609_v15, %v15216_v36  ;;  %v15190_v26 = vld [vmem:[#allocation14 + $0x638] sm:$0xf]  ;;  %v16606_v14 = vld [vmem:[#allocation14 + $0x64c] sm:$0xf0]  ;;  %v15195_v32 = vor.u32 %v16603_v54, %v15192_v13  ;;  %v16483_v54 = vld [vmem:[#allocation14 + $0x27c] sm:$0xf] }
 0x7d7   :  { %10557 = vmatpush.bf16.msra.mxu3 %v15071_v3  ;;  %v15243_v3 = vor.u32 %v16615_v2, %v15240_v38  ;;  %v16489_v2 = vld [vmem:[#allocation14 + $0x2ac] sm:$0xf]  ;;  %v14736_v38 = vld [vmem:[#allocation14 + $0x2c0] sm:$0xf0]  ;;  %v14712_v13 = vld [vmem:[#allocation14 + $0x290] sm:$0xf0] }
 0x7d8   :  { %10474 = vmatpush.bf16.msrb.mxu1 %v15043_v63  ;;  %v15191_v63 = vor.u32 %v16606_v14, %v15190_v26  ;;  %v14739_v36 = vor.u32 %v16489_v2, %v14736_v38  ;;  %v16442_v2 = vld [vmem:[#allocation14 + $0x134] sm:$0xf]  ;;  %v14552_v38 = vld [vmem:[#allocation14 + $0x148] sm:$0xf0] }
 0x7d9   :  { %10515 = vmatpush.bf16.msra.mxu0 %v14495_v12  ;;  %10599 = vmatpush.bf16.msrb.mxu2 %v14499_v62  ;;  %v15022_v12 = vld [vmem:[#allocation14 + $0x4e8] sm:$0xf]  ;;  %v16633_v62 = vld [vmem:[#allocation14 + $0x72c] sm:$0xf] }
 0x7da   :  { %v15023_v51 = vor.u32 %v16564_v18, %v15022_v12  ;;  %v15315_v35 = vor.u32 %v16633_v62, %v15312_v43  ;;  %v16537_v18 = vld [vmem:[#allocation14 + $0x42c] sm:$0xf] }
 0x7db   :  { %10558 = vmatpush.bf16.msra.mxu3 %v15047_v55  ;;  %v15166_v55 = vld [vmem:[#allocation14 + $0x608] sm:$0xf] }
 0x7dc   :  { %10464 = vmatmul.bf16.vlgmr.msrb.gmra.mxu0 %v18480_v60  ;;  %10548 = vmatmul.bf16.vlgmr.msra.gmra.mxu2 %v18480_v60 }
 0x7dd   :  { %10516 = vmatpush.bf16.msra.mxu0 %v14471_v45  ;;  %10600 = vmatpush.bf16.msrb.mxu2 %v14475_v48  ;;  %v14998_v45 = vld [vmem:[#allocation14 + $0x4b8] sm:$0xf]  ;;  %v16627_v48 = vld [vmem:[#allocation14 + $0x6fc] sm:$0xf] }
 0x7de   :  { %10475 = vmatpush.bf16.msrb.mxu1 %v15019_v25  ;;  %v14999_v56 = vor.u32 %v16558_v41, %v14998_v45  ;;  %v15291_v40 = vor.u32 %v16627_v48, %v15288_v52  ;;  %v14904_v45 = vld [vmem:[#allocation14 + $0x410] sm:$0xf0]  ;;  %v14910_v48 = vld [vmem:[#allocation14 + $0x400] sm:$0xf]  ;;  %v16535_v52 = vld [vmem:[#allocation14 + $0x414] sm:$0xf0] }
 0x7df   :  { %10559 = vmatpush.bf16.msra.mxu3 %v15023_v51  ;;  %v14928_v51 = vld [vmem:[#allocation14 + $0x440] sm:$0xf0]  ;;  %v16498_v41 = vld [vmem:[#allocation14 + $0x2ec] sm:$0xf0]  ;;  %v14911_v44 = vor.u32 %v16535_v52, %v14910_v48  ;;  %v16501_v48 = vld [vmem:[#allocation14 + $0x30c] sm:$0xf] }
 0x7e0   :  { %v14784_v52 = vld [vmem:[#allocation14 + $0x320] sm:$0xf0] }
 0x7e1   :  { %10517 = vmatpush.bf16.msra.mxu0 %v14447_v47  ;;  %10601 = vmatpush.bf16.msrb.mxu2 %v14451_v58  ;;  %v14974_v47 = vld [vmem:[#allocation14 + $0x488] sm:$0xf]  ;;  %v16621_v58 = vld [vmem:[#allocation14 + $0x6cc] sm:$0xf] }
 0x7e2   :  { %10476 = vmatpush.bf16.msrb.mxu1 %v14995_v7  ;;  %v14975_v10 = vor.u32 %v16552_v11, %v14974_v47  ;;  %v15267_v8 = vor.u32 %v16621_v58, %v15264_v42  ;;  %v14758_v7 = vld [vmem:[#allocation14 + $0x2d8] sm:$0xf]  ;;  %v16529_v47 = vld [vmem:[#allocation14 + $0x3e4] sm:$0xf0] }
 0x7e3   :  { %10560 = vmatpush.bf16.msra.mxu3 %v14999_v56  ;;  %v14907_v56 = vor.u32 %v16531_v33, %v14904_v45  ;;  %v14734_v58 = vld [vmem:[#allocation14 + $0x2a8] sm:$0xf]  ;;  %v14759_v11 = vor.u32 %v16498_v41, %v14758_v7  ;;  %v14887_v6 = vor.u32 %v16529_v47, %v14886_v50  ;;  %v14664_v45 = vld [vmem:[#allocation14 + $0x230] sm:$0xf0]  ;;  %v14790_v7 = vld [vmem:[#allocation14 + $0x310] sm:$0xf]  ;;  %v14787_v47 = vor.u32 %v16501_v48, %v14784_v52 }
 0x7e4   :  { %v16505_v41 = vld [vmem:[#allocation14 + $0x324] sm:$0xf0]  ;;  %v16681_v48 = vld [vmem:[#allocation14 + $0x8ac] sm:$0xf]  ;;  %v15504_v52 = vld [vmem:[#allocation14 + $0x8c0] sm:$0xf0] }
 0x7e5   :  { %10518 = vmatpush.bf16.msra.mxu0 %v14423_v53  ;;  %10602 = vmatpush.bf16.msrb.mxu2 %v14427_v19  ;;  %v15214_v53 = vld [vmem:[#allocation14 + $0x668] sm:$0xf]  ;;  %v16612_v19 = vld [vmem:[#allocation14 + $0x67c] sm:$0xf0] }
 0x7e6   :  { %10477 = vmatpush.bf16.msrb.mxu1 %v14971_v20  ;;  %v15215_v61 = vor.u32 %v16612_v19, %v15214_v53  ;;  %v14862_v53 = vld [vmem:[#allocation14 + $0x3a0] sm:$0xf]  ;;  %v16523_v19 = vld [vmem:[#allocation14 + $0x3b4] sm:$0xf0]  ;;  %v14638_v50 = vld [vmem:[#allocation14 + $0x1e8] sm:$0xf] }
 0x7e7   :  { %10561 = vmatpush.bf16.msra.mxu3 %v14975_v10  ;;  %v14863_v14 = vor.u32 %v16523_v19, %v14862_v53  ;;  %v14614_v53 = vld [vmem:[#allocation14 + $0x1b8] sm:$0xf]  ;;  %v16462_v19 = vld [vmem:[#allocation14 + $0x1cc] sm:$0xf0] }
 0x7e9   :  { %10519 = vmatpush.bf16.msra.mxu0 %v14399_v23  ;;  %10603 = vmatpush.bf16.msrb.mxu2 %v14403_v57  ;;  %v16600_v23 = vld [vmem:[#allocation14 + $0x61c] sm:$0xf0]  ;;  %v16597_v57 = vld [vmem:[#allocation14 + $0x60c] sm:$0xf] }
 0x7ea   :  { %v15167_v12 = vor.u32 %v16600_v23, %v15166_v55  ;;  %v15171_v62 = vor.u32 %v16597_v57, %v15168_v27  ;;  %v14838_v55 = vld [vmem:[#allocation14 + $0x370] sm:$0xf]  ;;  %v16517_v23 = vld [vmem:[#allocation14 + $0x384] sm:$0xf0]  ;;  %v14715_v27 = vor.u32 %v16483_v54, %v14712_v13  ;;  %v16436_v54 = vld [vmem:[#allocation14 + $0x104] sm:$0xf] }
 0x7eb   :  { %v14528_v13 = vld [vmem:[#allocation14 + $0x118] sm:$0xf0] }
 0x7ec   :  { %10520 = vmatmul.bf16.vlgmr.msra.gmra.mxu0 %v18470_v34  ;;  %10604 = vmatmul.bf16.vlgmr.msrb.gmra.mxu2 %v18470_v34 }
 0x7ed   :  { %10568 = vmatpush.bf16.msrb.mxu0 %v15335_v24  ;;  %10652 = vmatpush.bf16.msra.mxu2 %v15339_v37  ;;  %v14952_v24 = vld [vmem:[#allocation14 + $0x470] sm:$0xf0]  ;;  %v14958_v37 = vld [vmem:[#allocation14 + $0x460] sm:$0xf] }
 0x7ee   :  { %v14955_v43 = vor.u32 %v16543_v21, %v14952_v24  ;;  %v14959_v25 = vor.u32 %v16547_v59, %v14958_v37  ;;  %v14686_v21 = vld [vmem:[#allocation14 + $0x248] sm:$0xf]  ;;  %v16480_v24 = vld [vmem:[#allocation14 + $0x25c] sm:$0xf0]  ;;  %v14839_v59 = vor.u32 %v16517_v23, %v14838_v55 }
 0x7ef   :  { %v14590_v55 = vld [vmem:[#allocation14 + $0x188] sm:$0xf]  ;;  %v16456_v23 = vld [vmem:[#allocation14 + $0x19c] sm:$0xf0] }
 0x7f1   :  { %10569 = vmatpush.bf16.msrb.mxu0 %v15311_v29  ;;  %10653 = vmatpush.bf16.msra.mxu2 %v15315_v35  ;;  %v14931_v35 = vor.u32 %v16537_v18, %v14928_v51  ;;  %v16511_v18 = vld [vmem:[#allocation14 + $0x354] sm:$0xf0]  ;;  %v14687_v51 = vor.u32 %v16480_v24, %v14686_v21  ;;  %v16690_v24 = vld [vmem:[#allocation14 + $0x8ec] sm:$0xf0] }
 0x7f2   :  { %v15526_v21 = vld [vmem:[#allocation14 + $0x8d8] sm:$0xf] }
 0x7f5   :  { %10570 = vmatpush.bf16.msrb.mxu0 %v15287_v16  ;;  %10654 = vmatpush.bf16.msra.mxu2 %v15291_v40  ;;  %v14760_v16 = vld [vmem:[#allocation14 + $0x2f0] sm:$0xf0]  ;;  %v16525_v40 = vld [vmem:[#allocation14 + $0x3cc] sm:$0xf] }
 0x7f6   :  { %v14763_v10 = vor.u32 %v16495_v9, %v14760_v16  ;;  %v14883_v49 = vor.u32 %v16525_v40, %v14880_v46  ;;  %v16448_v9 = vld [vmem:[#allocation14 + $0x164] sm:$0xf]  ;;  %v14576_v16 = vld [vmem:[#allocation14 + $0x178] sm:$0xf0] }
 0x7f9   :  { %10571 = vmatpush.bf16.msrb.mxu0 %v15263_v30  ;;  %10655 = vmatpush.bf16.msra.mxu2 %v15267_v8  ;;  %v16492_v30 = vld [vmem:[#allocation14 + $0x2bc] sm:$0xf0] }
 0x7fa   :  { %v14735_v15 = vor.u32 %v16492_v30, %v14734_v58  ;;  %v14791_v58 = vor.u32 %v16505_v41, %v14790_v7  ;;  %v14579_v30 = vor.u32 %v16448_v9, %v14576_v16  ;;  %v14478_v7 = vld [vmem:[#allocation14 + $0xa0] sm:$0xf]  ;;  %v16427_v41 = vld [vmem:[#allocation14 + $0xb4] sm:$0xf0]  ;;  %v15507_v16 = vor.u32 %v16681_v48, %v15504_v52  ;;  %v16634_v48 = vld [vmem:[#allocation14 + $0x734] sm:$0xf] }
 0x7fb   :  { %v15320_v52 = vld [vmem:[#allocation14 + $0x748] sm:$0xf0] }
 0x7fd   :  { %10572 = vmatpush.bf16.msrb.mxu0 %v15239_v17  ;;  %10656 = vmatpush.bf16.msra.mxu2 %v15243_v3  ;;  %v16519_v17 = vld [vmem:[#allocation14 + $0x39c] sm:$0xf]  ;;  %v14856_v3 = vld [vmem:[#allocation14 + $0x3b0] sm:$0xf0] }
 0x7fe   :  { %v14859_v26 = vor.u32 %v16519_v17, %v14856_v3 }
 0x801   :  { %10573 = vmatpush.bf16.msrb.mxu0 %v15215_v61  ;;  %10657 = vmatpush.bf16.msra.mxu2 %v15219_v4  ;;  %v14710_v61 = vld [vmem:[#allocation14 + $0x278] sm:$0xf]  ;;  %v16486_v4 = vld [vmem:[#allocation14 + $0x28c] sm:$0xf0] }
 0x802   :  { %v8577_v28 = vpop.permute.xlu1 %8576  ;;  %v14711_v57 = vor.u32 %v16486_v4, %v14710_v61  ;;  %v14555_v4 = vor.u32 %v16442_v2, %v14552_v38  ;;  %v15454_v2 = vld [vmem:[#allocation14 + $0x848] sm:$0xf]  ;;  %v16672_v38 = vld [vmem:[#allocation14 + $0x85c] sm:$0xf0] }
 0x803   :  { %8582 = vst.msk [vmem:[#allocation2 + $0x28] sm:$0xff] %vm7369_vm10, %v8577_v28  ;;  %v16477_v28 = vld [vmem:[#allocation14 + $0x24c] sm:$0xf] }
 0x805   :  { %10574 = vmatpush.bf16.msrb.mxu0 %v15191_v63  ;;  %10658 = vmatpush.bf16.msra.mxu2 %v15195_v32  ;;  %v16513_v63 = vld [vmem:[#allocation14 + $0x36c] sm:$0xf]  ;;  %v14832_v32 = vld [vmem:[#allocation14 + $0x380] sm:$0xf0] }
 0x806   :  { %v8579_v29 = vpop.permute.xlu0 %8578  ;;  %v14835_v37 = vor.u32 %v16513_v63, %v14832_v32  ;;  %v14615_v63 = vor.u32 %v16462_v19, %v14614_v53  ;;  %v16669_v53 = vld [vmem:[#allocation14 + $0x84c] sm:$0xf]  ;;  %v15456_v19 = vld [vmem:[#allocation14 + $0x860] sm:$0xf0] }
 0x807   :  { %8583 = vst.msk [vmem:[#allocation2 + $0x58] sm:$0xff] %vm7369_vm10, %v8579_v29  ;;  %v16474_v29 = vld [vmem:[#allocation14 + $0x22c] sm:$0xf0] }
 0x808   :  { %v14663_v40 = vor.u32 %v16474_v29, %v14662_v0  ;;  %v15527_v0 = vor.u32 %v16690_v24, %v15526_v21  ;;  %v16406_v21 = vld [vmem:[#allocation14 + $0x14] sm:$0xf]  ;;  %v14408_v24 = vld [vmem:[#allocation14 + $0x28] sm:$0xf0] }
 0x809   :  { %10575 = vmatpush.bf16.msrb.mxu0 %v15167_v12  ;;  %10659 = vmatpush.bf16.msra.mxu2 %v15171_v62  ;;  %v14688_v12 = vld [vmem:[#allocation14 + $0x260] sm:$0xf0]  ;;  %v16507_v62 = vld [vmem:[#allocation14 + $0x33c] sm:$0xf] }
 0x80a   :  { %v8589_v42 = vld [vmem:[#allocation2 + $0x28] sm:$0xff]  ;;  %v14691_v5 = vor.u32 %v16477_v28, %v14688_v12  ;;  %v15528_v12 = vld [vmem:[#allocation14 + $0x8f0] sm:$0xf0] }
 0x80b   :  { %v16687_v28 = vld [vmem:[#allocation14 + $0x8dc] sm:$0xf] }
 0x80c   :  { %10576 = vmatmul.bf16.vlgmr.msrb.gmra.mxu0 %v18499_v22  ;;  %10660 = vmatmul.bf16.vlgmr.msra.gmra.mxu2 %v18499_v22  ;;  %v15531_v29 = vor.u32 %v16687_v28, %v15528_v12  ;;  %v16640_v28 = vld [vmem:[#allocation14 + $0x764] sm:$0xf]  ;;  %v15344_v12 = vld [vmem:[#allocation14 + $0x778] sm:$0xf0] }
 0x80d   :  { %10624 = vmatpush.bf16.msra.mxu0 %v14955_v43  ;;  %10708 = vmatpush.bf16.msrb.mxu2 %v14959_v25  ;;  %v14808_v43 = vld [vmem:[#allocation14 + $0x350] sm:$0xf0]  ;;  %v14814_v25 = vld [vmem:[#allocation14 + $0x340] sm:$0xf] }
 0x80e   :  { %v8595_v20 = vld [vmem:[#allocation2 + $0x58] sm:$0xff]  ;;  %v14815_v33 = vor.u32 %v16511_v18, %v14814_v25  ;;  %v16430_v25 = vld [vmem:[#allocation14 + $0xd4] sm:$0xf] }
 0x80f   :  { %v18511_v8 = vpack.c.bf16 %v8595_v20, %v8589_v42  ;;  %v16468_v42 = vld [vmem:[#allocation14 + $0x1fc] sm:$0xf0]  ;;  %v16465_v20 = vld [vmem:[#allocation14 + $0x1ec] sm:$0xf] }
 0x810   :  { %v14639_v17 = vor.u32 %v16468_v42, %v14638_v50  ;;  %v14504_v18 = vld [vmem:[#allocation14 + $0xe8] sm:$0xf0]  ;;  %v14479_v50 = vor.u32 %v16427_v41, %v14478_v7  ;;  %v15480_v42 = vld [vmem:[#allocation14 + $0x890] sm:$0xf0] }
 0x811   :  { %10625 = vmatpush.bf16.msra.mxu0 %v14931_v35  ;;  %10709 = vmatpush.bf16.msrb.mxu2 %v14935_v31  ;;  %v16471_v35 = vld [vmem:[#allocation14 + $0x21c] sm:$0xf]  ;;  %v14811_v31 = vor.u32 %v16507_v62, %v14808_v43  ;;  %v14502_v62 = vld [vmem:[#allocation14 + $0xd0] sm:$0xf]  ;;  %v16433_v43 = vld [vmem:[#allocation14 + $0xe4] sm:$0xf0] }
 0x812   :  { %10422 = vmatmul.bf16.vlgmr.msra.gmra.mxu1 %v18511_v8  ;;  %10506 = vmatmul.bf16.vlgmr.msrb.gmra.mxu3 %v18511_v8  ;;  %v14667_v46 = vor.u32 %v16471_v35, %v14664_v45  ;;  %v15502_v35 = vld [vmem:[#allocation14 + $0x8a8] sm:$0xf]  ;;  %v14507_v45 = vor.u32 %v16430_v25, %v14504_v18 }
 0x813   :  { %10526 = vmatpush.bf16.msra.mxu1 %v14759_v11  ;;  %10610 = vmatpush.bf16.msrb.mxu3 %v14763_v10  ;;  %v14640_v11 = vld [vmem:[#allocation14 + $0x200] sm:$0xf0]  ;;  %v15406_v25 = vld [vmem:[#allocation14 + $0x7e8] sm:$0xf] }
 0x814   :  { %v14643_v3 = vor.u32 %v16465_v20, %v14640_v11  ;;  %v14454_v20 = vld [vmem:[#allocation14 + $0x70] sm:$0xf]  ;;  %v16421_v11 = vld [vmem:[#allocation14 + $0x84] sm:$0xf0] }
 0x815   :  { %10626 = vmatpush.bf16.msra.mxu0 %v14907_v56  ;;  %10710 = vmatpush.bf16.msrb.mxu2 %v14911_v44  ;;  %v14574_v56 = vld [vmem:[#allocation14 + $0x160] sm:$0xf]  ;;  %v16451_v44 = vld [vmem:[#allocation14 + $0x174] sm:$0xf0] }
 0x816   :  { %v14575_v10 = vor.u32 %v16451_v44, %v14574_v56  ;;  %v16424_v56 = vld [vmem:[#allocation14 + $0xa4] sm:$0xf]  ;;  %v14480_v44 = vld [vmem:[#allocation14 + $0xb8] sm:$0xf0] }
 0x817   :  { %10527 = vmatpush.bf16.msra.mxu1 %v14735_v15  ;;  %10611 = vmatpush.bf16.msrb.mxu3 %v14739_v36  ;;  %v16459_v15 = vld [vmem:[#allocation14 + $0x1bc] sm:$0xf]  ;;  %v14616_v36 = vld [vmem:[#allocation14 + $0x1d0] sm:$0xf0] }
 0x818   :  { %v14619_v32 = vor.u32 %v16459_v15, %v14616_v36  ;;  %v14430_v15 = vld [vmem:[#allocation14 + $0x40] sm:$0xf]  ;;  %v16415_v36 = vld [vmem:[#allocation14 + $0x54] sm:$0xf0] }
 0x819   :  { %10627 = vmatpush.bf16.msra.mxu0 %v14883_v49  ;;  %10711 = vmatpush.bf16.msrb.mxu2 %v14887_v6  ;;  %v14550_v49 = vld [vmem:[#allocation14 + $0x130] sm:$0xf]  ;;  %v16445_v6 = vld [vmem:[#allocation14 + $0x144] sm:$0xf0] }
 0x81a   :  { %v14551_v61 = vor.u32 %v16445_v6, %v14550_v49 }
 0x81b   :  { %10528 = vmatpush.bf16.msra.mxu1 %v14711_v57  ;;  %10612 = vmatpush.bf16.msrb.mxu3 %v14715_v27  ;;  %v16453_v57 = vld [vmem:[#allocation14 + $0x18c] sm:$0xf]  ;;  %v14592_v27 = vld [vmem:[#allocation14 + $0x1a0] sm:$0xf0] }
 0x81d   :  { %10628 = vmatpush.bf16.msra.mxu0 %v14859_v26  ;;  %10712 = vmatpush.bf16.msrb.mxu2 %v14863_v14  ;;  %v14526_v26 = vld [vmem:[#allocation14 + $0x100] sm:$0xf]  ;;  %v16439_v14 = vld [vmem:[#allocation14 + $0x114] sm:$0xf0] }
 0x81f   :  { %10529 = vmatpush.bf16.msra.mxu1 %v14687_v51  ;;  %10613 = vmatpush.bf16.msrb.mxu3 %v14691_v5  ;;  %v14591_v51 = vor.u32 %v16456_v23, %v14590_v55  ;;  %v14595_v5 = vor.u32 %v16453_v57, %v14592_v27  ;;  %v15432_v23 = vld [vmem:[#allocation14 + $0x830] sm:$0xf0]  ;;  %v14406_v57 = vld [vmem:[#allocation14 + $0x10] sm:$0xf]  ;;  %v16409_v27 = vld [vmem:[#allocation14 + $0x24] sm:$0xf0] }
 0x820   :  { %v14407_v18 = vor.u32 %v16409_v27, %v14406_v57  ;;  %v16589_v57 = vld [vmem:[#allocation14 + $0x5c4] sm:$0xf0]  ;;  %v15246_v27 = vld [vmem:[#allocation14 + $0x6a0] sm:$0xf] }
 0x821   :  { %10629 = vmatpush.bf16.msra.mxu0 %v14835_v37  ;;  %10713 = vmatpush.bf16.msrb.mxu2 %v14839_v59  ;;  %v14527_v37 = vor.u32 %v16439_v14, %v14526_v26  ;;  %v14531_v59 = vor.u32 %v16436_v54, %v14528_v13  ;;  %v15455_v26 = vor.u32 %v16672_v38, %v15454_v2  ;;  %v15430_v54 = vld [vmem:[#allocation14 + $0x818] sm:$0xf]  ;;  %v16666_v13 = vld [vmem:[#allocation14 + $0x82c] sm:$0xf0]  ;;  %v16591_v2 = vld [vmem:[#allocation14 + $0x5dc] sm:$0xf] }
 0x822   :  { %10478 = vmatmul.bf16.vlgmr.msrb.gmra.mxu1 %v18490_v39  ;;  %10562 = vmatmul.bf16.vlgmr.msra.gmra.mxu3 %v18490_v39  ;;  %v15459_v14 = vor.u32 %v16669_v53, %v15456_v19  ;;  %v15144_v38 = vld [vmem:[#allocation14 + $0x5f0] sm:$0xf0]  ;;  %v15150_v53 = vld [vmem:[#allocation14 + $0x5e0] sm:$0xf]  ;;  %v16595_v19 = vld [vmem:[#allocation14 + $0x5f4] sm:$0xf0] }
 0x823   :  { %10530 = vmatpush.bf16.msra.mxu1 %v14663_v40  ;;  %10614 = vmatpush.bf16.msrb.mxu3 %v14667_v46  ;;  %v15478_v40 = vld [vmem:[#allocation14 + $0x878] sm:$0xf]  ;;  %v16678_v46 = vld [vmem:[#allocation14 + $0x88c] sm:$0xf0] }
 0x824   :  { %v15479_v49 = vor.u32 %v16678_v46, %v15478_v40  ;;  %v15323_v46 = vor.u32 %v16634_v48, %v15320_v52  ;;  %v15072_v48 = vld [vmem:[#allocation14 + $0x560] sm:$0xf0] }
 0x825   :  { %10630 = vmatpush.bf16.msra.mxu0 %v14811_v31  ;;  %10714 = vmatpush.bf16.msrb.mxu2 %v14815_v33  ;;  %v16684_v31 = vld [vmem:[#allocation14 + $0x8bc] sm:$0xf0]  ;;  %v14503_v33 = vor.u32 %v16433_v43, %v14502_v62  ;;  %v15431_v62 = vor.u32 %v16666_v13, %v15430_v54  ;;  %v15147_v54 = vor.u32 %v16591_v2, %v15144_v38  ;;  %v15176_v2 = vld [vmem:[#allocation14 + $0x628] sm:$0xf0]  ;;  %v16544_v38 = vld [vmem:[#allocation14 + $0x464] sm:$0xf] }
 0x826   :  { %v15503_v9 = vor.u32 %v16684_v31, %v15502_v35  ;;  %v15347_v31 = vor.u32 %v16640_v28, %v15344_v12  ;;  %v15151_v13 = vor.u32 %v16595_v19, %v15150_v53  ;;  %v16579_v12 = vld [vmem:[#allocation14 + $0x57c] sm:$0xf]  ;;  %v16561_v19 = vld [vmem:[#allocation14 + $0x4ec] sm:$0xf] }
 0x827   :  { %10531 = vmatpush.bf16.msra.mxu1 %v14639_v17  ;;  %10615 = vmatpush.bf16.msrb.mxu3 %v14643_v3  ;;  %v14455_v17 = vor.u32 %v16421_v11, %v14454_v20 }
 0x829   :  { %10631 = vmatpush.bf16.msra.mxu0 %v14787_v47  ;;  %10715 = vmatpush.bf16.msrb.mxu2 %v14791_v58  ;;  %v14483_v47 = vor.u32 %v16424_v56, %v14480_v44  ;;  %v16675_v58 = vld [vmem:[#allocation14 + $0x87c] sm:$0xf]  ;;  %v15382_v56 = vld [vmem:[#allocation14 + $0x7b8] sm:$0xf]  ;;  %v16654_v44 = vld [vmem:[#allocation14 + $0x7cc] sm:$0xf0] }
 0x82a   :  { %v15483_v6 = vor.u32 %v16675_v58, %v15480_v42  ;;  %v16628_v58 = vld [vmem:[#allocation14 + $0x704] sm:$0xf]  ;;  %v15296_v42 = vld [vmem:[#allocation14 + $0x718] sm:$0xf0]  ;;  %v15383_v20 = vor.u32 %v16654_v44, %v15382_v56  ;;  %v16577_v56 = vld [vmem:[#allocation14 + $0x564] sm:$0xf0] }
 0x82b   :  { %10532 = vmatpush.bf16.msra.mxu1 %v14615_v63  ;;  %10616 = vmatpush.bf16.msrb.mxu3 %v14619_v32  ;;  %v16663_v63 = vld [vmem:[#allocation14 + $0x81c] sm:$0xf]  ;;  %v14431_v32 = vor.u32 %v16415_v36, %v14430_v15  ;;  %v15270_v15 = vld [vmem:[#allocation14 + $0x6d0] sm:$0xf]  ;;  %v16625_v36 = vld [vmem:[#allocation14 + $0x6e4] sm:$0xf0] }
 0x82c   :  { %10632 = vmatmul.bf16.vlgmr.msra.gmra.mxu0 %v18480_v60  ;;  %10716 = vmatmul.bf16.vlgmr.msrb.gmra.mxu2 %v18480_v60  ;;  %v15435_v43 = vor.u32 %v16663_v63, %v15432_v23  ;;  %v15120_v63 = vld [vmem:[#allocation14 + $0x5c0] sm:$0xf0]  ;;  %v15126_v23 = vld [vmem:[#allocation14 + $0x5b0] sm:$0xf]  ;;  %v15198_v44 = vld [vmem:[#allocation14 + $0x640] sm:$0xf] }
 0x82d   :  { %10680 = vmatpush.bf16.msrb.mxu0 %v14575_v10  ;;  %10764 = vmatpush.bf16.msra.mxu2 %v14579_v30  ;;  %v16418_v10 = vld [vmem:[#allocation14 + $0x74] sm:$0xf]  ;;  %v14456_v30 = vld [vmem:[#allocation14 + $0x88] sm:$0xf0]  ;;  %v15127_v28 = vor.u32 %v16589_v57, %v15126_v23  ;;  %v15006_v23 = vld [vmem:[#allocation14 + $0x4c0] sm:$0xf] }
 0x82e   :  { %v14459_v3 = vor.u32 %v16418_v10, %v14456_v30  ;;  %v15358_v10 = vld [vmem:[#allocation14 + $0x788] sm:$0xf]  ;;  %v16648_v30 = vld [vmem:[#allocation14 + $0x79c] sm:$0xf0]  ;;  %v16559_v57 = vld [vmem:[#allocation14 + $0x4d4] sm:$0xf0] }
 0x82f   :  { %10533 = vmatpush.bf16.msra.mxu1 %v14591_v51  ;;  %10617 = vmatpush.bf16.msrb.mxu3 %v14595_v5  ;;  %v14411_v51 = vor.u32 %v16406_v21, %v14408_v24  ;;  %v16660_v5 = vld [vmem:[#allocation14 + $0x7fc] sm:$0xf0]  ;;  %v16619_v21 = vld [vmem:[#allocation14 + $0x6b4] sm:$0xf0]  ;;  %v16616_v24 = vld [vmem:[#allocation14 + $0x6a4] sm:$0xf] }
 0x830   :  { %v15407_v7 = vor.u32 %v16660_v5, %v15406_v25  ;;  %v15222_v5 = vld [vmem:[#allocation14 + $0x670] sm:$0xf] }
 0x831   :  { %10681 = vmatpush.bf16.msrb.mxu0 %v14551_v61  ;;  %10765 = vmatpush.bf16.msra.mxu2 %v14555_v4  ;;  %v16412_v61 = vld [vmem:[#allocation14 + $0x44] sm:$0xf]  ;;  %v14432_v4 = vld [vmem:[#allocation14 + $0x58] sm:$0xf0] }
 0x832   :  { %10534 = vmatmul.bf16.vlgmr.msra.gmra.mxu1 %v18493_v1  ;;  %10618 = vmatmul.bf16.vlgmr.msrb.gmra.mxu3 %v18493_v1  ;;  %v14435_v55 = vor.u32 %v16412_v61, %v14432_v4  ;;  %v16622_v61 = vld [vmem:[#allocation14 + $0x6d4] sm:$0xf]  ;;  %v15272_v4 = vld [vmem:[#allocation14 + $0x6e8] sm:$0xf0] }
 0x833   :  { %10582 = vmatpush.bf16.msrb.mxu1 %v15527_v0  ;;  %10666 = vmatpush.bf16.msra.mxu3 %v15531_v29  ;;  %v16657_v0 = vld [vmem:[#allocation14 + $0x7ec] sm:$0xf]  ;;  %v15408_v29 = vld [vmem:[#allocation14 + $0x800] sm:$0xf0] }
 0x834   :  { %v15411_v41 = vor.u32 %v16657_v0, %v15408_v29  ;;  %v16613_v0 = vld [vmem:[#allocation14 + $0x684] sm:$0xf0]  ;;  %v16610_v29 = vld [vmem:[#allocation14 + $0x674] sm:$0xf] }
 0x835   :  { %10682 = vmatpush.bf16.msrb.mxu0 %v14527_v37  ;;  %10766 = vmatpush.bf16.msra.mxu2 %v14531_v59  ;;  %v15342_v37 = vld [vmem:[#allocation14 + $0x760] sm:$0xf]  ;;  %v16643_v59 = vld [vmem:[#allocation14 + $0x774] sm:$0xf0]  ;;  %v15223_v52 = vor.u32 %v16613_v0, %v15222_v5  ;;  %v16496_v5 = vld [vmem:[#allocation14 + $0x2e4] sm:$0xf] }
 0x836   :  { %v15343_v35 = vor.u32 %v16643_v59, %v15342_v37  ;;  %v15248_v37 = vld [vmem:[#allocation14 + $0x6b8] sm:$0xf0] }
 0x837   :  { %10583 = vmatpush.bf16.msrb.mxu1 %v15503_v9  ;;  %10667 = vmatpush.bf16.msra.mxu3 %v15507_v16  ;;  %v16651_v9 = vld [vmem:[#allocation14 + $0x7bc] sm:$0xf]  ;;  %v15384_v16 = vld [vmem:[#allocation14 + $0x7d0] sm:$0xf0]  ;;  %v15251_v25 = vor.u32 %v16616_v24, %v15248_v37 }
 0x838   :  { %v15387_v11 = vor.u32 %v16651_v9, %v15384_v16  ;;  %v16607_v9 = vld [vmem:[#allocation14 + $0x654] sm:$0xf0]  ;;  %v16604_v16 = vld [vmem:[#allocation14 + $0x644] sm:$0xf]  ;;  %v14912_v24 = vld [vmem:[#allocation14 + $0x418] sm:$0xf0] }
 0x839   :  { %10683 = vmatpush.bf16.msrb.mxu0 %v14503_v33  ;;  %10767 = vmatpush.bf16.msra.mxu2 %v14507_v45  ;;  %v15318_v33 = vld [vmem:[#allocation14 + $0x730] sm:$0xf]  ;;  %v16637_v45 = vld [vmem:[#allocation14 + $0x744] sm:$0xf0]  ;;  %v14768_v0 = vld [vmem:[#allocation14 + $0x2f8] sm:$0xf0] }
 0x83a   :  { %v15319_v40 = vor.u32 %v16637_v45, %v15318_v33  ;;  %v16573_v45 = vld [vmem:[#allocation14 + $0x54c] sm:$0xf] }
 0x83b   :  { %10584 = vmatpush.bf16.msrb.mxu1 %v15479_v49  ;;  %10668 = vmatpush.bf16.msra.mxu3 %v15483_v6  ;;  %v16645_v49 = vld [vmem:[#allocation14 + $0x78c] sm:$0xf]  ;;  %v15360_v6 = vld [vmem:[#allocation14 + $0x7a0] sm:$0xf0] }
 0x83d   :  { %10684 = vmatpush.bf16.msrb.mxu0 %v14479_v50  ;;  %10768 = vmatpush.bf16.msra.mxu2 %v14483_v47  ;;  %v15294_v50 = vld [vmem:[#allocation14 + $0x700] sm:$0xf]  ;;  %v16631_v47 = vld [vmem:[#allocation14 + $0x714] sm:$0xf0] }
 0x83f   :  { %10585 = vmatpush.bf16.msrb.mxu1 %v15455_v26  ;;  %10669 = vmatpush.bf16.msra.mxu3 %v15459_v14  ;;  %v15359_v26 = vor.u32 %v16648_v30, %v15358_v10  ;;  %v15363_v14 = vor.u32 %v16645_v49, %v15360_v6  ;;  %v16571_v10 = vld [vmem:[#allocation14 + $0x534] sm:$0xf0]  ;;  %v15174_v30 = vld [vmem:[#allocation14 + $0x610] sm:$0xf]  ;;  %v16601_v49 = vld [vmem:[#allocation14 + $0x624] sm:$0xf0] }
 0x840   :  { %v16598_v6 = vld [vmem:[#allocation14 + $0x614] sm:$0xf] }
 0x841   :  { %10685 = vmatpush.bf16.msrb.mxu0 %v14455_v17  ;;  %10769 = vmatpush.bf16.msra.mxu2 %v14459_v3  ;;  %v15295_v17 = vor.u32 %v16631_v47, %v15294_v50  ;;  %v15299_v3 = vor.u32 %v16628_v58, %v15296_v42  ;;  %v16567_v47 = vld [vmem:[#allocation14 + $0x51c] sm:$0xf]  ;;  %v15048_v58 = vld [vmem:[#allocation14 + $0x530] sm:$0xf0]  ;;  %v15199_v42 = vor.u32 %v16607_v9, %v15198_v44  ;;  %v16520_v44 = vld [vmem:[#allocation14 + $0x3a4] sm:$0xf] }
 0x842   :  { %v14864_v9 = vld [vmem:[#allocation14 + $0x3b8] sm:$0xf0] }
 0x843   :  { %10586 = vmatpush.bf16.msrb.mxu1 %v15431_v62  ;;  %10670 = vmatpush.bf16.msra.mxu3 %v15435_v43  ;;  %v15096_v62 = vld [vmem:[#allocation14 + $0x590] sm:$0xf0]  ;;  %v15247_v43 = vor.u32 %v16619_v21, %v15246_v27  ;;  %v16532_v21 = vld [vmem:[#allocation14 + $0x404] sm:$0xf] }
 0x845   :  { %10686 = vmatpush.bf16.msrb.mxu0 %v14431_v32  ;;  %10770 = vmatpush.bf16.msra.mxu2 %v14435_v55  ;;  %v15271_v32 = vor.u32 %v16625_v36, %v15270_v15  ;;  %v15275_v55 = vor.u32 %v16622_v61, %v15272_v4  ;;  %v15175_v15 = vor.u32 %v16601_v49, %v15174_v30  ;;  %v15024_v61 = vld [vmem:[#allocation14 + $0x500] sm:$0xf0]  ;;  %v15030_v4 = vld [vmem:[#allocation14 + $0x4f0] sm:$0xf] }
 0x846   :  { %v15179_v36 = vor.u32 %v16598_v6, %v15176_v2  ;;  %v14694_v49 = vld [vmem:[#allocation14 + $0x250] sm:$0xf]  ;;  %v16481_v2 = vld [vmem:[#allocation14 + $0x264] sm:$0xf0] }
 0x847   :  { %10587 = vmatpush.bf16.msrb.mxu1 %v15407_v7  ;;  %10671 = vmatpush.bf16.msra.mxu3 %v15411_v41  ;;  %v15078_v41 = vld [vmem:[#allocation14 + $0x550] sm:$0xf] }
 0x848   :  { %v15079_v50 = vor.u32 %v16577_v56, %v15078_v41  ;;  %v16490_v41 = vld [vmem:[#allocation14 + $0x2b4] sm:$0xf]  ;;  %v14744_v56 = vld [vmem:[#allocation14 + $0x2c8] sm:$0xf0] }
 0x849   :  { %10687 = vmatpush.bf16.msrb.mxu0 %v14407_v18  ;;  %10771 = vmatpush.bf16.msra.mxu2 %v14411_v51  ;;  %v15102_v18 = vld [vmem:[#allocation14 + $0x580] sm:$0xf]  ;;  %v16583_v51 = vld [vmem:[#allocation14 + $0x594] sm:$0xf0] }
 0x84a   :  { %v15103_v33 = vor.u32 %v16583_v51, %v15102_v18  ;;  %v14915_v18 = vor.u32 %v16532_v21, %v14912_v24  ;;  %v16499_v51 = vld [vmem:[#allocation14 + $0x2f4] sm:$0xf0]  ;;  %v14648_v21 = vld [vmem:[#allocation14 + $0x208] sm:$0xf0]  ;;  %v10381_v24 = vpop.f32.mrf.mxu2 }
 0x84b   :  { %10588 = vmatpush.bf16.msrb.mxu1 %v15383_v20  ;;  %10672 = vmatpush.bf16.msra.mxu3 %v15387_v11  ;;  %v15054_v11 = vld [vmem:[#allocation14 + $0x520] sm:$0xf] }
 0x84c   :  { %10688 = vmatmul.bf16.vlgmr.msrb.gmra.mxu0 %v18470_v34  ;;  %10772 = vmatmul.bf16.vlgmr.msra.gmra.mxu2 %v18470_v34  ;;  %v16585_v34 = vld [vmem:[#allocation14 + $0x5ac] sm:$0xf]  ;;  %v15055_v53 = vor.u32 %v16571_v10, %v15054_v11 }
 0x84d   :  { %10736 = vmatpush.bf16.msra.mxu0 %v15343_v35  ;;  %10820 = vmatpush.bf16.msrb.mxu2 %v15347_v31  ;;  %v15123_v59 = vor.u32 %v16585_v34, %v15120_v63  ;;  %v15224_v35 = vld [vmem:[#allocation14 + $0x688] sm:$0xf0]  ;;  %v15099_v31 = vor.u32 %v16579_v12, %v15096_v62  ;;  %v15027_v34 = vor.u32 %v16561_v19, %v15024_v61  ;;  %v14976_v12 = vld [vmem:[#allocation14 + $0x4a0] sm:$0xf0]  ;;  %v14982_v62 = vld [vmem:[#allocation14 + $0x490] sm:$0xf]  ;;  %v10353_v61 = vpop.f32.mrf.mxu0 }
 0x84e   :  { %v15227_v7 = vor.u32 %v16610_v29, %v15224_v35  ;;  %v16526_v29 = vld [vmem:[#allocation14 + $0x3d4] sm:$0xf]  ;;  %v14888_v35 = vld [vmem:[#allocation14 + $0x3e8] sm:$0xf0]  ;;  %v14695_v19 = vor.u32 %v16481_v2, %v14694_v49 }
 0x84f   :  { %10589 = vmatpush.bf16.msrb.mxu1 %v15359_v26  ;;  %10673 = vmatpush.bf16.msra.mxu3 %v15363_v14  ;;  %v16565_v26 = vld [vmem:[#allocation14 + $0x504] sm:$0xf0]  ;;  %v14840_v11 = vld [vmem:[#allocation14 + $0x388] sm:$0xf0] }
 0x850   :  { %v15031_v63 = vor.u32 %v16565_v26, %v15030_v4  ;;  %v16475_v26 = vld [vmem:[#allocation14 + $0x234] sm:$0xf0] }
 0x851   :  { %10737 = vmatpush.bf16.msra.mxu0 %v15319_v40  ;;  %10821 = vmatpush.bf16.msrb.mxu2 %v15323_v46  ;;  %v15200_v40 = vld [vmem:[#allocation14 + $0x658] sm:$0xf0]  ;;  %v15075_v46 = vor.u32 %v16573_v45, %v15072_v48  ;;  %v14771_v48 = vor.u32 %v16496_v5, %v14768_v0  ;;  %v10367_v5 = vpop.f32.mrf.mxu1 }
 0x852   :  { %10590 = vmatmul.bf16.vlgmr.msrb.gmra.mxu1 %v18511_v8  ;;  %10674 = vmatmul.bf16.vlgmr.msra.gmra.mxu3 %v18511_v8  ;;  %v15203_v20 = vor.u32 %v16604_v16, %v15200_v40  ;;  %v14747_v40 = vor.u32 %v16490_v41, %v14744_v56  ;;  %v15536_v41 = vld [vmem:[#allocation14 + $0x8f8] sm:$0xf0] }
 0x853   :  { %10638 = vmatpush.bf16.msra.mxu1 %v15147_v54  ;;  %10722 = vmatpush.bf16.msrb.mxu3 %v15151_v13  ;;  %v16538_v54 = vld [vmem:[#allocation14 + $0x434] sm:$0xf]  ;;  %v14936_v13 = vld [vmem:[#allocation14 + $0x448] sm:$0xf0] }
 0x854   :  { %v14939_v27 = vor.u32 %v16538_v54, %v14936_v13  ;;  %v14672_v54 = vld [vmem:[#allocation14 + $0x238] sm:$0xf0]  ;;  %v16502_v13 = vld [vmem:[#allocation14 + $0x314] sm:$0xf] }
 0x855   :  { %10738 = vmatpush.bf16.msra.mxu0 %v15295_v17  ;;  %10822 = vmatpush.bf16.msrb.mxu2 %v15299_v3  ;;  %v14960_v17 = vld [vmem:[#allocation14 + $0x478] sm:$0xf0]  ;;  %v15051_v3 = vor.u32 %v16567_v47, %v15048_v58  ;;  %v16487_v47 = vld [vmem:[#allocation14 + $0x294] sm:$0xf0]  ;;  %v16484_v58 = vld [vmem:[#allocation14 + $0x284] sm:$0xf] }
 0x856   :  { %v14963_v14 = vor.u32 %v16544_v38, %v14960_v17  ;;  %v16478_v38 = vld [vmem:[#allocation14 + $0x254] sm:$0xf]  ;;  %v14696_v17 = vld [vmem:[#allocation14 + $0x268] sm:$0xf0] }
 0x857   :  { %10639 = vmatpush.bf16.msra.mxu1 %v15123_v59  ;;  %10723 = vmatpush.bf16.msrb.mxu3 %v15127_v28  ;;  %v15007_v59 = vor.u32 %v16559_v57, %v15006_v23  ;;  %v16549_v28 = vld [vmem:[#allocation14 + $0x48c] sm:$0xf]  ;;  %v16469_v57 = vld [vmem:[#allocation14 + $0x204] sm:$0xf0] }
 0x859   :  { %10739 = vmatpush.bf16.msra.mxu0 %v15271_v32  ;;  %10823 = vmatpush.bf16.msrb.mxu2 %v15275_v55  ;;  %v16555_v32 = vld [vmem:[#allocation14 + $0x4bc] sm:$0xf]  ;;  %v15000_v55 = vld [vmem:[#allocation14 + $0x4d0] sm:$0xf0] }
 0x85a   :  { %v15003_v37 = vor.u32 %v16555_v32, %v15000_v55  ;;  %v14646_v55 = vld [vmem:[#allocation14 + $0x1f0] sm:$0xf] }
 0x85b   :  { %10640 = vmatpush.bf16.msra.mxu1 %v15099_v31  ;;  %10724 = vmatpush.bf16.msrb.mxu3 %v15103_v33  ;;  %v14979_v31 = vor.u32 %v16549_v28, %v14976_v12  ;;  %v14647_v28 = vor.u32 %v16469_v57, %v14646_v55  ;;  %v15438_v57 = vld [vmem:[#allocation14 + $0x820] sm:$0xf] }
 0x85d   :  { %10740 = vmatpush.bf16.msra.mxu0 %v15247_v43  ;;  %10824 = vmatpush.bf16.msrb.mxu2 %v15251_v25  ;;  %v16553_v43 = vld [vmem:[#allocation14 + $0x4a4] sm:$0xf0]  ;;  %v14766_v25 = vld [vmem:[#allocation14 + $0x2e0] sm:$0xf] }
 0x85e   :  { %v14983_v33 = vor.u32 %v16553_v43, %v14982_v62  ;;  %v14767_v45 = vor.u32 %v16499_v51, %v14766_v25  ;;  %v14622_v62 = vld [vmem:[#allocation14 + $0x1c0] sm:$0xf]  ;;  %v16463_v43 = vld [vmem:[#allocation14 + $0x1d4] sm:$0xf0]  ;;  %v16460_v25 = vld [vmem:[#allocation14 + $0x1c4] sm:$0xf]  ;;  %v10355_v51 = vpop.f32.mrf.mxu0 }
 0x85f   :  { %10641 = vmatpush.bf16.msra.mxu1 %v15075_v46  ;;  %10725 = vmatpush.bf16.msrb.mxu3 %v15079_v50  ;;  %v14718_v46 = vld [vmem:[#allocation14 + $0x280] sm:$0xf]  ;;  %v14867_v50 = vor.u32 %v16520_v44, %v14864_v9 }
 0x860   :  { %v14719_v10 = vor.u32 %v16487_v47, %v14718_v46 }
 0x861   :  { %10741 = vmatpush.bf16.msra.mxu0 %v15223_v52  ;;  %10825 = vmatpush.bf16.msrb.mxu2 %v15227_v7  ;;  %v14742_v52 = vld [vmem:[#allocation14 + $0x2b0] sm:$0xf]  ;;  %v14891_v7 = vor.u32 %v16526_v29, %v14888_v35  ;;  %v14623_v29 = vor.u32 %v16463_v43, %v14622_v62 }
 0x862   :  { %v15414_v43 = vld [vmem:[#allocation14 + $0x7f0] sm:$0xf] }
 0x863   :  { %10642 = vmatpush.bf16.msra.mxu1 %v15051_v3  ;;  %10726 = vmatpush.bf16.msrb.mxu3 %v15055_v53  ;;  %v16508_v3 = vld [vmem:[#allocation14 + $0x344] sm:$0xf]  ;;  %v14816_v53 = vld [vmem:[#allocation14 + $0x358] sm:$0xf0] }
 0x864   :  { %v14819_v4 = vor.u32 %v16508_v3, %v14816_v53  ;;  %v15488_v3 = vld [vmem:[#allocation14 + $0x898] sm:$0xf0] }
 0x865   :  { %10742 = vmatpush.bf16.msra.mxu0 %v15199_v42  ;;  %10826 = vmatpush.bf16.msrb.mxu2 %v15203_v20  ;;  %v14720_v42 = vld [vmem:[#allocation14 + $0x298] sm:$0xf0]  ;;  %v16514_v20 = vld [vmem:[#allocation14 + $0x374] sm:$0xf] }
 0x866   :  { %v14723_v30 = vor.u32 %v16484_v58, %v14720_v42  ;;  %v14843_v6 = vor.u32 %v16514_v20, %v14840_v11  ;;  %v16685_v42 = vld [vmem:[#allocation14 + $0x8c4] sm:$0xf0]  ;;  %v16682_v20 = vld [vmem:[#allocation14 + $0x8b4] sm:$0xf]  ;;  %v10409_v11 = vpop.f32.mrf.mxu0 }
 0x867   :  { %10643 = vmatpush.bf16.msra.mxu1 %v15027_v34  ;;  %10727 = vmatpush.bf16.msrb.mxu3 %v15031_v63  ;;  %v14792_v34 = vld [vmem:[#allocation14 + $0x328] sm:$0xf0] }
 0x868   :  { %v14795_v23 = vor.u32 %v16502_v13, %v14792_v34 }
 0x869   :  { %10743 = vmatpush.bf16.msra.mxu0 %v15175_v15  ;;  %10827 = vmatpush.bf16.msrb.mxu2 %v15179_v36  ;;  %v14699_v15 = vor.u32 %v16478_v38, %v14696_v17  ;;  %v14670_v36 = vld [vmem:[#allocation14 + $0x220] sm:$0xf]  ;;  %v16679_v38 = vld [vmem:[#allocation14 + $0x894] sm:$0xf0]  ;;  %v16676_v17 = vld [vmem:[#allocation14 + $0x884] sm:$0xf] }
 0x86a   :  { %v14671_v63 = vor.u32 %v16475_v26, %v14670_v36  ;;  %v15462_v36 = vld [vmem:[#allocation14 + $0x850] sm:$0xf]  ;;  %v16673_v26 = vld [vmem:[#allocation14 + $0x864] sm:$0xf0] }
 0x86b   :  { %10644 = vmatpush.bf16.msra.mxu1 %v15003_v37  ;;  %10728 = vmatpush.bf16.msrb.mxu3 %v15007_v59  ;;  %v18529_v37 = vld [vmem:[#allocation20] sm:$0x3f]  ;;  %v10395_v59 = vpop.f32.mrf.mxu3 }
 0x86c   :  { %10744 = vmatmul.bf16.vlgmr.msra.gmra.mxu0 %v18499_v22  ;;  %10828 = vmatmul.bf16.vlgmr.msrb.gmra.mxu2 %v18499_v22  ;;  %v16493_v22 = vld [vmem:[#allocation14 + $0x2c4] sm:$0xf0]  ;;  %v8892_v0 = vperm.slane %v18529_v37, 0 }
 0x86d   :  { %10792 = vmatpush.bf16.msrb.mxu0 %v14963_v14  ;;  %v14743_v16 = vor.u32 %v16493_v22, %v14742_v52  ;;  %v16472_v14 = vld [vmem:[#allocation14 + $0x224] sm:$0xf]  ;;  %v15534_v52 = vld [vmem:[#allocation14 + $0x8e0] sm:$0xf] }
 0x86e   :  { %v14675_v32 = vor.u32 %v16472_v14, %v14672_v54  ;;  %v16688_v22 = vld [vmem:[#allocation14 + $0x8e4] sm:$0xf]  ;;  %v10354_v56 = vadd.f32 %v10353_v61, %v8892_v0  ;;  %v10356_v53 = vadd.f32 %v10355_v51, %v8892_v0  ;;  %v16670_v14 = vld [vmem:[#allocation14 + $0x854] sm:$0xf]  ;;  %v15464_v54 = vld [vmem:[#allocation14 + $0x868] sm:$0xf0] }
 0x86f   :  { %10645 = vmatpush.bf16.msra.mxu1 %v14979_v31  ;;  %10729 = vmatpush.bf16.msrb.mxu3 %v14983_v33  ;;  %v14598_v31 = vld [vmem:[#allocation14 + $0x190] sm:$0xf]  ;;  %v16457_v33 = vld [vmem:[#allocation14 + $0x1a4] sm:$0xf0]  ;;  %v15539_v46 = vor.u32 %v16688_v22, %v15536_v41  ;;  %v16658_v51 = vld [vmem:[#allocation14 + $0x7f4] sm:$0xf] }
 0x870   :  { %v14599_v44 = vor.u32 %v16457_v33, %v14598_v31  ;;  %v10368_v47 = vadd.f32 %v10367_v5, %v10354_v56  ;;  %v15416_v5 = vld [vmem:[#allocation14 + $0x808] sm:$0xf0]  ;;  %v8893_v0 = vperm.slane %v18529_v37, 1  ;;  %v16652_v22 = vld [vmem:[#allocation14 + $0x7c4] sm:$0xf] }
 0x871   :  { %10793 = vmatpush.bf16.msrb.mxu0 %v14939_v27  ;;  %v16466_v27 = vld [vmem:[#allocation14 + $0x1f4] sm:$0xf]  ;;  %v15392_v41 = vld [vmem:[#allocation14 + $0x7d8] sm:$0xf0] }
 0x872   :  { %10646 = vmatmul.bf16.vlgmr.msra.gmra.mxu1 %v18490_v39  ;;  %10730 = vmatmul.bf16.vlgmr.msrb.gmra.mxu3 %v18490_v39  ;;  %v14651_v12 = vor.u32 %v16466_v27, %v14648_v21  ;;  %v10382_v2 = vadd.f32 %v10381_v24, %v10368_v47  ;;  %v16667_v24 = vld [vmem:[#allocation14 + $0x834] sm:$0xf0]  ;;  %v16649_v47 = vld [vmem:[#allocation14 + $0x7a4] sm:$0xf0] }
 0x873   :  { %10694 = vmatpush.bf16.msrb.mxu1 %v14767_v45  ;;  %10778 = vmatpush.bf16.msra.mxu3 %v14771_v48  ;;  %v16454_v45 = vld [vmem:[#allocation14 + $0x194] sm:$0xf]  ;;  %v14600_v48 = vld [vmem:[#allocation14 + $0x1a8] sm:$0xf0]  ;;  %v10397_v58 = vpop.f32.mrf.mxu3 }
 0x874   :  { %v14603_v9 = vor.u32 %v16454_v45, %v14600_v48  ;;  %v15419_v45 = vor.u32 %v16658_v51, %v15416_v5  ;;  %v15390_v48 = vld [vmem:[#allocation14 + $0x7c0] sm:$0xf] }
 0x875   :  { %10794 = vmatpush.bf16.msrb.mxu0 %v14915_v18  ;;  %v14624_v18 = vld [vmem:[#allocation14 + $0x1d8] sm:$0xf0] }
 0x876   :  { %v14627_v35 = vor.u32 %v16460_v25, %v14624_v18  ;;  %v16661_v18 = vld [vmem:[#allocation14 + $0x804] sm:$0xf0] }
 0x877   :  { %10695 = vmatpush.bf16.msrb.mxu1 %v14743_v16  ;;  %10779 = vmatpush.bf16.msra.mxu3 %v14747_v40  ;;  %v10383_v16 = vpop.f32.mrf.mxu2  ;;  %v15415_v33 = vor.u32 %v16661_v18, %v15414_v43  ;;  %v15032_v43 = vld [vmem:[#allocation14 + $0x508] sm:$0xf0]  ;;  %v15008_v18 = vld [vmem:[#allocation14 + $0x4d8] sm:$0xf0] }
 0x879   :  { %10795 = vmatpush.bf16.msrb.mxu0 %v14891_v7  ;;  %v16691_v7 = vld [vmem:[#allocation14 + $0x8f4] sm:$0xf0] }
 0x87a   :  { %v15535_v40 = vor.u32 %v16691_v7, %v15534_v52  ;;  %v16655_v7 = vld [vmem:[#allocation14 + $0x7d4] sm:$0xf0] }
 0x87b   :  { %10696 = vmatpush.bf16.msrb.mxu1 %v14719_v10  ;;  %10780 = vmatpush.bf16.msra.mxu3 %v14723_v30  ;;  %v10369_v10 = vpop.f32.mrf.mxu1  ;;  %v10451_v34 = vpop.f32.mrf.mxu3 }
 0x87c   :  { %v10370_v61 = vadd.f32 %v10369_v10, %v10356_v53  ;;  %v15128_v53 = vld [vmem:[#allocation14 + $0x5c8] sm:$0xf0] }
 0x87d   :  { %10796 = vmatpush.bf16.msrb.mxu0 %v14867_v50  ;;  %v15510_v50 = vld [vmem:[#allocation14 + $0x8b0] sm:$0xf] }
 0x87e   :  { %v15511_v30 = vor.u32 %v16685_v42, %v15510_v50  ;;  %v10384_v27 = vadd.f32 %v10383_v16, %v10370_v61  ;;  %v15391_v16 = vor.u32 %v16655_v7, %v15390_v48  ;;  %v15368_v42 = vld [vmem:[#allocation14 + $0x7a8] sm:$0xf0] }
 0x87f   :  { %10697 = vmatpush.bf16.msrb.mxu1 %v14695_v19  ;;  %10781 = vmatpush.bf16.msra.mxu3 %v14699_v15  ;;  %v15491_v15 = vor.u32 %v16676_v17, %v15488_v3  ;;  %v10437_v13 = vpop.f32.mrf.mxu2  ;;  %v16586_v3 = vld [vmem:[#allocation14 + $0x5b4] sm:$0xf] }
 0x880   :  { %v10398_v25 = vadd.f32 %v10397_v58, %v10384_v27  ;;  %v16646_v58 = vld [vmem:[#allocation14 + $0x794] sm:$0xf] }
 0x881   :  { %10797 = vmatpush.bf16.msrb.mxu0 %v14843_v6  ;;  %v15486_v6 = vld [vmem:[#allocation14 + $0x880] sm:$0xf] }
 0x882   :  { %v15487_v19 = vor.u32 %v16679_v38, %v15486_v6  ;;  %v15371_v6 = vor.u32 %v16646_v58, %v15368_v42 }
 0x883   :  { %10698 = vmatpush.bf16.msrb.mxu1 %v14671_v63  ;;  %10782 = vmatpush.bf16.msra.mxu3 %v14675_v32  ;;  %v10411_v32 = vpop.f32.mrf.mxu0  ;;  %v10453_v56 = vpop.f32.mrf.mxu3 }
 0x885   :  { %10798 = vmatpush.bf16.msrb.mxu0 %v14819_v4  ;;  %v10396_v4 = vadd.f32 %v10395_v59, %v10382_v2  ;;  %v15439_v59 = vor.u32 %v16667_v24, %v15438_v57 }
 0x887   :  { %10699 = vmatpush.bf16.msrb.mxu1 %v14647_v28  ;;  %10783 = vmatpush.bf16.msra.mxu3 %v14651_v12  ;;  %v10410_v63 = vadd.f32 %v10409_v11, %v10396_v4  ;;  %v16664_v28 = vld [vmem:[#allocation14 + $0x824] sm:$0xf]  ;;  %v15440_v12 = vld [vmem:[#allocation14 + $0x838] sm:$0xf0] }
 0x888   :  { %v15443_v62 = vor.u32 %v16664_v28, %v15440_v12  ;;  %v16568_v28 = vld [vmem:[#allocation14 + $0x524] sm:$0xf]  ;;  %v15056_v12 = vld [vmem:[#allocation14 + $0x538] sm:$0xf0] }
 0x889   :  { %10799 = vmatpush.bf16.msrb.mxu0 %v14795_v23  ;;  %v15463_v23 = vor.u32 %v16673_v26, %v15462_v36  ;;  %v15131_v26 = vor.u32 %v16586_v3, %v15128_v53 }
 0x88b   :  { %10700 = vmatpush.bf16.msrb.mxu1 %v14623_v29  ;;  %10784 = vmatpush.bf16.msra.mxu3 %v14627_v35  ;;  %v10412_v29 = vadd.f32 %v10411_v32, %v10398_v25  ;;  %v10439_v35 = vpop.f32.mrf.mxu2  ;;  %v16556_v25 = vld [vmem:[#allocation14 + $0x4c4] sm:$0xf] }
 0x88c   :  { %10800 = vmatmul.bf16.vlgmr.msrb.gmra.mxu0 %v18480_v60  ;;  %v15512_v60 = vld [vmem:[#allocation14 + $0x8c8] sm:$0xf0]  ;;  %v15011_v5 = vor.u32 %v16556_v25, %v15008_v18 }
 0x88d   :  { %v15515_v49 = vor.u32 %v16682_v20, %v15512_v60  ;;  %v16592_v20 = vld [vmem:[#allocation14 + $0x5e4] sm:$0xf]  ;;  %v15152_v60 = vld [vmem:[#allocation14 + $0x5f8] sm:$0xf0] }
 0x88e   :  { %v15155_v38 = vor.u32 %v16592_v20, %v15152_v60 }
 0x88f   :  { %10701 = vmatpush.bf16.msrb.mxu1 %v14599_v44  ;;  %10785 = vmatpush.bf16.msra.mxu3 %v14603_v9  ;;  %v10423_v55 = vpop.f32.mrf.mxu1  ;;  %v10465_v44 = vpop.f32.mrf.mxu0  ;;  %v10438_v9 = vadd.f32 %v10437_v13, %v8893_v0 }
 0x890   :  { %v10424_v21 = vadd.f32 %v10423_v55, %v10410_v63 }
 0x891   :  { %v10452_v50 = vadd.f32 %v10451_v34, %v10438_v9 }
 0x892   :  { %10702 = vmatmul.bf16.vlgmr.msrb.gmra.mxu1 %v18493_v1  ;;  %10786 = vmatmul.bf16.vlgmr.msra.gmra.mxu3 %v18493_v1  ;;  %v15467_v1 = vor.u32 %v16670_v14, %v15464_v54  ;;  %10848 = vst [vmem:[#allocation21] sm:$0xff] %v10424_v21  ;;  %v16580_v14 = vld [vmem:[#allocation14 + $0x584] sm:$0xf]  ;;  %v15104_v54 = vld [vmem:[#allocation14 + $0x598] sm:$0xf0] }
 0x893   :  { %10750 = vmatpush.bf16.msra.mxu1 %v15535_v40  ;;  %10834 = vmatpush.bf16.msrb.mxu3 %v15539_v46  ;;  %v15395_v40 = vor.u32 %v16652_v22, %v15392_v41  ;;  %v15366_v46 = vld [vmem:[#allocation14 + $0x790] sm:$0xf]  ;;  %v10466_v11 = vadd.f32 %v10465_v44, %v10452_v50  ;;  %v10493_v10 = vpop.f32.mrf.mxu2  ;;  %v15107_v32 = vor.u32 %v16580_v14, %v15104_v54 }
 0x895   :  { %v10507_v17 = vpop.f32.mrf.mxu3 }
 0x897   :  { %10751 = vmatpush.bf16.msra.mxu1 %v15511_v30  ;;  %10835 = vmatpush.bf16.msrb.mxu3 %v15515_v49  ;;  %v10425_v31 = vpop.f32.mrf.mxu1  ;;  %v15367_v49 = vor.u32 %v16649_v47, %v15366_v46  ;;  %v10467_v36 = vpop.f32.mrf.mxu0 }
 0x898   :  { %v10426_v52 = vadd.f32 %v10425_v31, %v10412_v29  ;;  %v16550_v29 = vld [vmem:[#allocation14 + $0x494] sm:$0xf] }
 0x89a   :  { %10854 = vst [vmem:[#allocation21 + $0x30] sm:$0xff] %v10426_v52 }
 0x89b   :  { %10752 = vmatpush.bf16.msra.mxu1 %v15487_v19  ;;  %10836 = vmatpush.bf16.msrb.mxu3 %v15491_v15  ;;  %v10440_v19 = vadd.f32 %v10439_v35, %v8893_v0  ;;  %v10495_v55 = vpop.f32.mrf.mxu2  ;;  %v8894_v0 = vperm.slane %v18529_v37, 2  ;;  %v14984_v35 = vld [vmem:[#allocation14 + $0x4a8] sm:$0xf0] }
 0x89d   :  { %v10454_v61 = vadd.f32 %v10453_v56, %v10440_v19  ;;  %v10509_v27 = vpop.f32.mrf.mxu3 }
 0x89f   :  { %10753 = vmatpush.bf16.msra.mxu1 %v15463_v23  ;;  %10837 = vmatpush.bf16.msrb.mxu3 %v15467_v1  ;;  %v10479_v30 = vpop.f32.mrf.mxu1  ;;  %v10468_v13 = vadd.f32 %v10467_v36, %v10454_v61  ;;  %v16574_v23 = vld [vmem:[#allocation14 + $0x554] sm:$0xf]  ;;  %v15080_v1 = vld [vmem:[#allocation14 + $0x568] sm:$0xf0]  ;;  %v10521_v51 = vpop.f32.mrf.mxu0 }
 0x8a0   :  { %v10480_v2 = vadd.f32 %v10479_v30, %v10466_v11  ;;  %v15083_v24 = vor.u32 %v16574_v23, %v15080_v1 }
 0x8a2   :  { %v10494_v15 = vadd.f32 %v10493_v10, %v10480_v2  ;;  %v8895_v2 = vperm.slane %v18529_v37, 3 }
 0x8a3   :  { %10754 = vmatpush.bf16.msra.mxu1 %v15439_v59  ;;  %10838 = vmatpush.bf16.msrb.mxu3 %v15443_v62  ;;  %v15059_v59 = vor.u32 %v16568_v28, %v15056_v12  ;;  %v16562_v62 = vld [vmem:[#allocation14 + $0x4f4] sm:$0xf]  ;;  %v10549_v52 = vpop.f32.mrf.mxu2  ;;  %v8896_v28 = vperm.slane %v18529_v37, 4 }
 0x8a4   :  { %v10508_v4 = vadd.f32 %v10507_v17, %v10494_v15 }
 0x8a5   :  { %v10563_v41 = vpop.f32.mrf.mxu3 }
 0x8a6   :  { %10849 = vst [vmem:[#allocation21 + $0x8] sm:$0xff] %v10508_v4 }
 0x8a7   :  { %10755 = vmatpush.bf16.msra.mxu1 %v15415_v33  ;;  %10839 = vmatpush.bf16.msrb.mxu3 %v15419_v45  ;;  %v10481_v34 = vpop.f32.mrf.mxu1  ;;  %v14987_v33 = vor.u32 %v16550_v29, %v14984_v35  ;;  %v10522_v45 = vadd.f32 %v10521_v51, %v8894_v0  ;;  %v10523_v7 = vpop.f32.mrf.mxu0 }
 0x8a8   :  { %v10482_v63 = vadd.f32 %v10481_v34, %v10468_v13  ;;  %v10524_v44 = vadd.f32 %v10523_v7, %v8894_v0 }
 0x8aa   :  { %v10496_v57 = vadd.f32 %v10495_v55, %v10482_v63 }
 0x8ab   :  { %10756 = vmatpush.bf16.msra.mxu1 %v15391_v16  ;;  %10840 = vmatpush.bf16.msrb.mxu3 %v15395_v40  ;;  %v10551_v46 = vpop.f32.mrf.mxu2 }
 0x8ac   :  { %v10510_v21 = vadd.f32 %v10509_v27, %v10496_v57 }
 0x8ad   :  { %v10565_v20 = vpop.f32.mrf.mxu3 }
 0x8ae   :  { %10855 = vst [vmem:[#allocation21 + $0x38] sm:$0xff] %v10510_v21 }
 0x8af   :  { %10757 = vmatpush.bf16.msra.mxu1 %v15367_v49  ;;  %10841 = vmatpush.bf16.msrb.mxu3 %v15371_v6  ;;  %v10535_v31 = vpop.f32.mrf.mxu1  ;;  %v10577_v40 = vpop.f32.mrf.mxu0 }
 0x8b0   :  { %v10536_v48 = vadd.f32 %v10535_v31, %v10522_v45 }
 0x8b2   :  { %10758 = vmatmul.bf16.vlgmr.msra.gmra.mxu1 %v18511_v8  ;;  %10842 = vmatmul.bf16.vlgmr.msrb.gmra.mxu3 %v18511_v8  ;;  %v15035_v8 = vor.u32 %v16562_v62, %v15032_v43  ;;  %v10550_v22 = vadd.f32 %v10549_v52, %v10536_v48 }
 0x8b3   :  { %10806 = vmatpush.bf16.msrb.mxu1 %v15155_v38  ;;  %v10605_v6 = vpop.f32.mrf.mxu2 }
 0x8b4   :  { %v10564_v16 = vadd.f32 %v10563_v41, %v10550_v22  ;;  %v10606_v17 = vadd.f32 %v10605_v6, %v8895_v2 }
 0x8b6   :  { %v10578_v47 = vadd.f32 %v10577_v40, %v10564_v16 }
 0x8b7   :  { %10807 = vmatpush.bf16.msrb.mxu1 %v15131_v26  ;;  %v10537_v56 = vpop.f32.mrf.mxu1  ;;  %v10579_v11 = vpop.f32.mrf.mxu0 }
 0x8b8   :  { %v10538_v9 = vadd.f32 %v10537_v56, %v10524_v44 }
 0x8ba   :  { %v10552_v50 = vadd.f32 %v10551_v46, %v10538_v9  ;;  %v8897_v46 = vperm.slane %v18529_v37, 5 }
 0x8bb   :  { %10808 = vmatpush.bf16.msrb.mxu1 %v15107_v32  ;;  %v10607_v38 = vpop.f32.mrf.mxu2 }
 0x8bc   :  { %v10566_v60 = vadd.f32 %v10565_v20, %v10552_v50  ;;  %v10608_v4 = vadd.f32 %v10607_v38, %v8895_v2 }
 0x8be   :  { %v10580_v10 = vadd.f32 %v10579_v11, %v10566_v60 }
 0x8bf   :  { %10809 = vmatpush.bf16.msrb.mxu1 %v15083_v24  ;;  %v10633_v19 = vpop.f32.mrf.mxu0 }
 0x8c3   :  { %10810 = vmatpush.bf16.msrb.mxu1 %v15059_v59  ;;  %v10661_v36 = vpop.f32.mrf.mxu2 }
 0x8c7   :  { %10811 = vmatpush.bf16.msrb.mxu1 %v15035_v8  ;;  %v10635_v63 = vpop.f32.mrf.mxu0 }
 0x8cb   :  { %10812 = vmatpush.bf16.msrb.mxu1 %v15011_v5  ;;  %v10663_v1 = vpop.f32.mrf.mxu2 }
 0x8cf   :  { %10813 = vmatpush.bf16.msrb.mxu1 %v14987_v33  ;;  %v10591_v58 = vpop.f32.mrf.mxu1  ;;  %v10689_v24 = vpop.f32.mrf.mxu0 }
 0x8d0   :  { %v10592_v42 = vadd.f32 %v10591_v58, %v10578_v47  ;;  %v10690_v59 = vadd.f32 %v10689_v24, %v8896_v28 }
 0x8d2   :  { %10814 = vmatmul.bf16.vlgmr.msrb.gmra.mxu1 %v18490_v39  ;;  %10850 = vst [vmem:[#allocation21 + $0x10] sm:$0xff] %v10592_v42  ;;  %v10619_v39 = vpop.f32.mrf.mxu3 }
 0x8d3   :  { %v10620_v53 = vadd.f32 %v10619_v39, %v10606_v17  ;;  %v10717_v43 = vpop.f32.mrf.mxu2 }
 0x8d5   :  { %v10634_v15 = vadd.f32 %v10633_v19, %v10620_v53 }
 0x8d7   :  { %v10593_v30 = vpop.f32.mrf.mxu1  ;;  %v10691_v8 = vpop.f32.mrf.mxu0 }
 0x8d8   :  { %v10594_v49 = vadd.f32 %v10593_v30, %v10580_v10  ;;  %v10692_v5 = vadd.f32 %v10691_v8, %v8896_v28 }
 0x8da   :  { %10856 = vst [vmem:[#allocation21 + $0x40] sm:$0xff] %v10594_v49  ;;  %v10621_v3 = vpop.f32.mrf.mxu3 }
 0x8db   :  { %v10622_v54 = vadd.f32 %v10621_v3, %v10608_v4  ;;  %v10719_v31 = vpop.f32.mrf.mxu2 }
 0x8dd   :  { %v10636_v32 = vadd.f32 %v10635_v63, %v10622_v54 }
 0x8e2   :  { %v10675_v14 = vpop.f32.mrf.mxu3 }
 0x8e3   :  { %v10773_v16 = vpop.f32.mrf.mxu2 }
 0x8e4   :  { %v10774_v47 = vadd.f32 %v10773_v16, %v8897_v46 }
 0x8e9   :  { %v10745_v35 = vpop.f32.mrf.mxu0 }
 0x8ea   :  { %v10677_v27 = vpop.f32.mrf.mxu3 }
 0x8eb   :  { %v10775_v50 = vpop.f32.mrf.mxu2 }
 0x8ec   :  { %v10776_v30 = vadd.f32 %v10775_v50, %v8897_v46 }
 0x8ef   :  { %v10647_v61 = vpop.f32.mrf.mxu1 }
 0x8f0   :  { %v10648_v26 = vadd.f32 %v10647_v61, %v10634_v15 }
 0x8f1   :  { %v10747_v41 = vpop.f32.mrf.mxu0 }
 0x8f2   :  { %v10662_v13 = vadd.f32 %v10661_v36, %v10648_v26 }
 0x8f3   :  { %v10829_v11 = vpop.f32.mrf.mxu2 }
 0x8f4   :  { %v10676_v34 = vadd.f32 %v10675_v14, %v10662_v13 }
 0x8f5   :  { %v10731_v18 = vpop.f32.mrf.mxu3 }
 0x8f6   :  { %10851 = vst [vmem:[#allocation21 + $0x18] sm:$0xff] %v10676_v34 }
 0x8f7   :  { %v10649_v55 = vpop.f32.mrf.mxu1 }
 0x8f8   :  { %v10650_v23 = vadd.f32 %v10649_v55, %v10636_v32 }
 0x8fa   :  { %v10664_v57 = vadd.f32 %v10663_v1, %v10650_v23 }
 0x8fb   :  { %v10831_v37 = vpop.f32.mrf.mxu2 }
 0x8fc   :  { %v10678_v21 = vadd.f32 %v10677_v27, %v10664_v57 }
 0x8fd   :  { %v10733_v7 = vpop.f32.mrf.mxu3 }
 0x8fe   :  { %10857 = vst [vmem:[#allocation21 + $0x48] sm:$0xff] %v10678_v21 }
 0x909   :  { %v10801_v20 = vpop.f32.mrf.mxu0 }
 0x90f   :  { %v10703_v12 = vpop.f32.mrf.mxu1 }
 0x910   :  { %v10704_v62 = vadd.f32 %v10703_v12, %v10690_v59 }
 0x911   :  { %v10803_v17 = vpop.f32.mrf.mxu0 }
 0x912   :  { %v10718_v25 = vadd.f32 %v10717_v43, %v10704_v62 }
 0x914   :  { %v10732_v29 = vadd.f32 %v10731_v18, %v10718_v25 }
 0x915   :  { %v10787_v40 = vpop.f32.mrf.mxu3 }
 0x916   :  { %v10746_v45 = vadd.f32 %v10745_v35, %v10732_v29  ;;  %v10788_v42 = vadd.f32 %v10787_v40, %v10774_v47 }
 0x917   :  { %v10705_v51 = vpop.f32.mrf.mxu1 }
 0x918   :  { %v10706_v0 = vadd.f32 %v10705_v51, %v10692_v5  ;;  %v10802_v60 = vadd.f32 %v10801_v20, %v10788_v42 }
 0x91a   :  { %v10720_v33 = vadd.f32 %v10719_v31, %v10706_v0 }
 0x91c   :  { %v10734_v22 = vadd.f32 %v10733_v7, %v10720_v33 }
 0x91d   :  { %v10789_v58 = vpop.f32.mrf.mxu3 }
 0x91e   :  { %v10748_v56 = vadd.f32 %v10747_v41, %v10734_v22  ;;  %v10790_v39 = vadd.f32 %v10789_v58, %v10776_v30 }
 0x920   :  { %v10804_v3 = vadd.f32 %v10803_v17, %v10790_v39 }
 0x92f   :  { %v10759_v48 = vpop.f32.mrf.mxu1 }
 0x930   :  { %v10760_v52 = vadd.f32 %v10759_v48, %v10746_v45 }
 0x932   :  { %10852 = vst [vmem:[#allocation21 + $0x20] sm:$0xff] %v10760_v52 }
 0x935   :  { %v10843_v6 = vpop.f32.mrf.mxu3 }
 0x937   :  { %v10761_v44 = vpop.f32.mrf.mxu1 }
 0x938   :  { %v10762_v9 = vadd.f32 %v10761_v44, %v10748_v56 }
 0x93a   :  { %10858 = vst [vmem:[#allocation21 + $0x50] sm:$0xff] %v10762_v9 }
 0x93d   :  { %v10845_v36 = vpop.f32.mrf.mxu3 }
 0x94f   :  { %v10815_v10 = vpop.f32.mrf.mxu1 }
 0x950   :  { %v10816_v49 = vadd.f32 %v10815_v10, %v10802_v60 }
 0x952   :  { %v10830_v2 = vadd.f32 %v10829_v11, %v10816_v49 }
 0x954   :  { %v10844_v38 = vadd.f32 %v10843_v6, %v10830_v2 }
 0x956   :  { %10853 = vst [vmem:[#allocation21 + $0x28] sm:$0xff] %v10844_v38 }
 0x957   :  { %v10817_v53 = vpop.f32.mrf.mxu1 }
 0x958   :  { %v10818_v19 = vadd.f32 %v10817_v53, %v10804_v3 }
 0x95a   :  { %v10832_v15 = vadd.f32 %v10831_v37, %v10818_v19 }
 0x95c   :  { %v10846_v61 = vadd.f32 %v10845_v36, %v10832_v15 }
 0x95e   :  { %10859 = vst [vmem:[#allocation21 + $0x58] sm:$0xff] %v10846_v61 }
 0x95f   :  { %10872 = dma.vmem_to_hbm [thread:$0]  %s10865_s27, 1536, %s10867_s30, [#allocation5], %s17125_s26, %s17125_s26, %s17126_s1  }
 0x960   :  { %17115 = dma.done.wait [#allocation5], 1536  }
 0x961   :  { %17116 = vsyncadd [#allocation5], 4294965760 }
 0x962   :  { %10877 = vsyncpa [#allocation4], 1 }
 0x963   :  { %10878 = vsyncpa [#allocation7], 1 }
 0x964   :  { %10879 = vsyncpa [#allocation10], 1 }
 0x965   :  { %10880 = vsyncpa [#allocation13], 1 }
 0x966   :  { %10881 = vsyncpa [#allocation16], 1 }
 0x967   :  { %10882 = vsyncpa [#allocation19], 1 }
 0x968   :  { %10883 = vsyncpa [#allocation5], 1 }

</bundles_post_ra>
